<compile_context>
chip_gen: v7x
topology: tpu7x:2x2x1
jax: 0.10.0
libtpu: 0.0.40
codegen_flags: <defaults>
</compile_context>

<pallas_src>
import jax
import jax.numpy as jnp
from jax.experimental import pallas as pl
from jax.experimental.pallas import tpu as pltpu

LANE = 128
SUBLANE = 8


def _round_up(x, m):
    return (x + m - 1) // m * m


def _pad_axis(x, axis, target, value=0):
    pad = target - x.shape[axis]
    if pad <= 0:
        return x
    widths = [(0, 0)] * x.ndim
    widths[axis] = (0, pad)
    return jnp.pad(x, widths, constant_values=value)


def _decoder_kernel(ids_ref,                                   # SMEM (Bp,) int32 (scalar prefetch)
                    emb_ref,                                   # HBM  (V_emb, Hp)
                    h_ref, enc_ref,                            # VMEM (Bp,Hp), (Bp,L,Hp)
                    w_ir, w_iz, w_in, w_hr, w_hz, w_hn,        # VMEM (Hp,Hp) each
                    b_r, b_z, b_in, b_hn,                      # VMEM (1,Hp) each
                    wc1, wc2, b_cat,                           # VMEM (Hp,Hp),(Hp,Hp),(1,Hp)
                    wout_ref, bout_ref,                        # VMEM (Hp,TILE_V), (1,TILE_V)
                    out_ref, hid_ref,                          # VMEM (Bp,Vp), (Bp,Hp) outputs
                    x_scr, cc_scr, m_scr, l_scr, dma_sems):    # scratch
    j = pl.program_id(0)
    tile_v = wout_ref.shape[1]
    bp = x_scr.shape[0]

    @pl.when(j == 0)
    def _prologue():
        # ---- in-kernel embedding gather: DMA one row per batch element ----
        # (padded batch rows gather token 0; their results are sliced off in the
        #  wrapper — wasted but harmless work.)
        copies = []
        for b in range(bp):
            cp = pltpu.make_async_copy(
                emb_ref.at[pl.ds(ids_ref[b], 1), :],
                x_scr.at[pl.ds(b, 1), :],
                dma_sems.at[b])
            cp.start()
            copies.append(cp)

        # embedding_dropout(p=0.1): identity (eval mode)
        h = h_ref[...]                      # (Bp, Hp)

        # ---- h-only GRU terms run while the embedding-row gathers are in flight
        hr = jnp.dot(h, w_hr[...], preferred_element_type=jnp.float32) + b_r[...]
        hz = jnp.dot(h, w_hz[...], preferred_element_type=jnp.float32) + b_z[...]
        hn = jnp.dot(h, w_hn[...], preferred_element_type=jnp.float32) + b_hn[...]

        for cp in copies:
            cp.wait()
        x = x_scr[...]                      # (Bp, Hp)

        # ---- GRU cell, PyTorch gate order (r, z, n); gates pre-split ----
        r = jax.nn.sigmoid(
            jnp.dot(x, w_ir[...], preferred_element_type=jnp.float32) + hr)
        z = jax.nn.sigmoid(
            jnp.dot(x, w_iz[...], preferred_element_type=jnp.float32) + hz)
        n = jnp.tanh(
            jnp.dot(x, w_in[...], preferred_element_type=jnp.float32)
            + b_in[...] + r * hn)
        h_new = (1.0 - z) * n + z * h                           # (Bp, Hp)

        # ---- dot attention on (B, L, H) layout: no transposes in-kernel ----
        enc = enc_ref[...]                                      # (Bp, L, Hp)
        scores = jnp.sum(h_new[:, None, :] * enc, axis=2)       # (Bp, L)  lane-axis reduce
        s_max = jnp.max(scores, axis=1, keepdims=True)
        s_exp = jnp.exp(scores - s_max)
        attn = s_exp * pl.reciprocal(
            jnp.sum(s_exp, axis=1, keepdims=True), approx=True)  # softmax over L
        context = jnp.sum(attn[:, :, None] * enc, axis=1)        # (Bp, Hp)

        # ---- concat Linear + tanh (w_concat split, no concatenate) ----
        cc_scr[...] = jnp.tanh(
            jnp.dot(h_new, wc1[...], preferred_element_type=jnp.float32)
            + jnp.dot(context, wc2[...], preferred_element_type=jnp.float32)
            + b_cat[...])

        hid_ref[...] = h_new
        m_scr[...] = jnp.full_like(m_scr, -jnp.inf)
        l_scr[...] = jnp.zeros_like(l_scr)

    # ---- output Linear on this vocab tile + online softmax statistics ----
    # Weight tile may be streamed in bf16; upcast in VMEM and keep the
    # activation (cc) in f32 so only the weight is quantized.
    w_tile = wout_ref[...].astype(jnp.float32)
    logits = jnp.dot(cc_scr[...], w_tile,
                     preferred_element_type=jnp.float32) + bout_ref[...]

    col = pl.multiple_of(j * tile_v, tile_v)
    out_ref[:, pl.ds(col, tile_v)] = logits                      # raw logits into resident slab

    m_prev = m_scr[...]
    m_new = jnp.maximum(m_prev, jnp.max(logits, axis=1, keepdims=True))
    l_scr[...] = (l_scr[...] * jnp.exp(m_prev - m_new)
                  + jnp.sum(jnp.exp(logits - m_new), axis=1, keepdims=True))
    m_scr[...] = m_new

    @pl.when(j == pl.num_programs(0) - 1)
    def _epilogue():
        # exact normalization of the VMEM-resident logits slab (probs sum to 1)
        out_ref[...] = jnp.exp(out_ref[...] - m_scr[...]) / l_scr[...]


def prepare_params(params, *, tile_v=512, weight_dtype=jnp.bfloat16):
    """One-time weight prep (transpose / gate-split / pad). Hoisted out of the
    per-step decode path so no per-step HBM weight transposes are emitted.
    `tile_v` should be a multiple of 128 (512-2048 recommended); the dominant
    (H,V) projection weight streams in `weight_dtype` (bf16 default;
    TODO(synk): int8+scales on v5e/v6e, fp8 on v7x, for a further 2x)."""
    emb = params["embedding"].astype(jnp.float32)
    H = emb.shape[1]
    V = params["w_out"].shape[0]
    Hp = _round_up(H, LANE)
    Vp = _round_up(V, tile_v)

    w_ih, w_hh = params["w_ih"], params["w_hh"]
    b_ih, b_hh = params["b_ih"], params["b_hh"]
    w_cat = params["w_concat"]

    def pad_hh(w_t):                      # (H, H) -> (Hp, Hp), zero padded
        return _pad_axis(_pad_axis(w_t, 0, Hp), 1, Hp).astype(jnp.float32)

    def pad_bias(b):                      # (H,) -> (1, Hp), zero padded
        return _pad_axis(b.reshape(1, -1), 1, Hp).astype(jnp.float32)

    wout_t = _pad_axis(_pad_axis(params["w_out"].T, 0, Hp), 1, Vp).astype(weight_dtype)
    # padded vocab columns get a -1e30 bias -> exp underflows to exactly 0
    b_out = _pad_axis(params["b_out"].reshape(1, -1), 1, Vp, value=-1e30).astype(jnp.float32)

    return {
        "H": H, "V": V, "Hp": Hp, "Vp": Vp, "tile_v": tile_v,
        "emb": _pad_axis(emb, 1, Hp),                       # (V_emb, Hp); stays in HBM
        "w_ir": pad_hh(w_ih[:H].T), "w_iz": pad_hh(w_ih[H:2 * H].T), "w_in": pad_hh(w_ih[2 * H:].T),
        "w_hr": pad_hh(w_hh[:H].T), "w_hz": pad_hh(w_hh[H:2 * H].T), "w_hn": pad_hh(w_hh[2 * H:].T),
        "b_r": pad_bias(b_ih[:H] + b_hh[:H]),
        "b_z": pad_bias(b_ih[H:2 * H] + b_hh[H:2 * H]),
        "b_in": pad_bias(b_ih[2 * H:]),
        "b_hn": pad_bias(b_hh[2 * H:]),
        "wc1": pad_hh(w_cat[:, :H].T),
        "wc2": pad_hh(w_cat[:, H:].T),
        "b_cat": pad_bias(params["b_concat"]),
        "wout_t": wout_t,                                    # (Hp, Vp), bf16 by default
        "b_out": b_out,                                      # (1, Vp), f32
    }


def luong_attn_decoder_forward(input_step, last_hidden, encoder_outputs, prep):
    """Single decode step.  Returns (output (B,V) softmax, hidden (1,B,H))."""
    H, V, Hp, Vp, tile_v = prep["H"], prep["V"], prep["Hp"], prep["Vp"], prep["tile_v"]
    B = input_step.shape[1]
    L = encoder_outputs.shape[0]
    Bp = _round_up(B, SUBLANE)
    n_vtiles = Vp // tile_v

    # pad activations to the native (8,128) tile; padded rows/cols are inert
    ids = _pad_axis(input_step[0].astype(jnp.int32), 0, Bp)            # (Bp,)
    h_prev = _pad_axis(_pad_axis(last_hidden[0], 0, Bp), 1, Hp)        # (Bp, Hp)
    enc = jnp.transpose(encoder_outputs, (1, 0, 2))                    # (B, L, H)
    enc = _pad_axis(_pad_axis(enc, 0, Bp), 2, Hp)                      # (Bp, L, Hp)

    w_isz = jnp.dtype(prep["wout_t"].dtype).itemsize

    def run(single_buffer_invariants):
        # Grid-invariant blocks never change across the vocab axis: single-buffer
        # them so they don't pay 2x VMEM for pointless double-buffering.
        kw = dict(pipeline_mode=pl.Buffered(1)) if single_buffer_invariants else {}
        const2 = lambda j, ids_ref: (0, 0)
        const3 = lambda j, ids_ref: (0, 0, 0)
        hh_spec = pl.BlockSpec((Hp, Hp), const2, **kw)
        bias_spec = pl.BlockSpec((1, Hp), const2, **kw)
        h_spec = pl.BlockSpec((Bp, Hp), const2, **kw)
        enc_spec = pl.BlockSpec((Bp, L, Hp), const3, **kw)
        wout_spec = pl.BlockSpec((Hp, tile_v), lambda j, ids_ref: (0, j))   # streamed, double-buffered
        bout_spec = pl.BlockSpec((1, tile_v), lambda j, ids_ref: (0, j))

        # explicit scoped-VMEM budget (defaults are 16/32 MiB and would trip at
        # realistic H/V); padded generously but capped well below physical VMEM.
        inv_mult = 1 if single_buffer_invariants else 2
        f32 = 4
        vmem_need = (
            inv_mult * (8 * Hp * Hp * f32 + 5 * Hp * f32            # GRU/concat weights + biases
                        + Bp * Hp * f32 + Bp * L * Hp * f32)        # h_prev + encoder outputs
            + 2 * (Hp * tile_v * w_isz + tile_v * f32)              # double-buffered wout/bout tiles
            + Bp * Vp * f32 + Bp * Hp * f32                         # resident prob slab + hidden out
            + 2 * Bp * Hp * f32 + 2 * Bp * f32)                     # VMEM scratch
        vmem_limit = int(min(max(2 * vmem_need + (2 << 20), 32 << 20), 100 << 20))

        grid_spec = pltpu.PrefetchScalarGridSpec(
            num_scalar_prefetch=1,
            grid=(n_vtiles,),
            in_specs=[
                pl.BlockSpec(memory_space=pl.ANY),                         # embedding table (HBM)
                h_spec,                                                    # previous hidden
                enc_spec,                                                  # encoder outputs
                hh_spec, hh_spec, hh_spec,                                 # w_ir, w_iz, w_in
                hh_spec, hh_spec, hh_spec,                                 # w_hr, w_hz, w_hn
                bias_spec, bias_spec, bias_spec, bias_spec,                # b_r, b_z, b_in, b_hn
                hh_spec, hh_spec, bias_spec,                               # wc1, wc2, b_cat
                wout_spec,                                                 # w_out^T vocab tile
                bout_spec,                                                 # b_out vocab tile
            ],
            out_specs=(
                pl.BlockSpec((Bp, Vp), const2),                            # probs (VMEM resident)
                pl.BlockSpec((Bp, Hp), const2),                            # new hidden
            ),
            scratch_shapes=[
                pltpu.VMEM((Bp, Hp), jnp.float32),                         # embedded input
                pltpu.VMEM((Bp, Hp), jnp.float32),                         # concat_output
                pltpu.VMEM((Bp, 1), jnp.float32),                          # running max
                pltpu.VMEM((Bp, 1), jnp.float32),                          # running sum
                pltpu.SemaphoreType.DMA((Bp,)),                            # gather semaphores
            ],
        )

        return pl.pallas_call(
            _decoder_kernel,
            grid_spec=grid_spec,
            out_shape=(jax.ShapeDtypeStruct((Bp, Vp), jnp.float32),
                       jax.ShapeDtypeStruct((Bp, Hp), jnp.float32)),
            compiler_params=pltpu.CompilerParams(
                dimension_semantics=("arbitrary",),   # vocab axis carries softmax stats + resident output
                vmem_limit_bytes=vmem_limit),
        )(ids, prep["emb"], h_prev, enc,
          prep["w_ir"], prep["w_iz"], prep["w_in"],
          prep["w_hr"], prep["w_hz"], prep["w_hn"],
          prep["b_r"], prep["b_z"], prep["b_in"], prep["b_hn"],
          prep["wc1"], prep["wc2"], prep["b_cat"],
          prep["wout_t"], prep["b_out"])

    try:
        out, hid = run(True)
        jax.block_until_ready((out, hid))
    except Exception:
        # pl.Buffered(1) unsupported on this jax version -> default double-buffering
        out, hid = run(False)

    return out[:B, :V], hid[None, :B, :H]


def _reference_forward(input_step, last_hidden, encoder_outputs, params):
    """Pure-JAX f32 reference for correctness check."""
    H = params["embedding"].shape[1]
    x = jnp.take(params["embedding"], input_step, axis=0)[0]
    h = last_hidden[0]
    gi = x @ params["w_ih"].T + params["b_ih"]
    gh = h @ params["w_hh"].T + params["b_hh"]
    r = jax.nn.sigmoid(gi[:, :H] + gh[:, :H])
    z = jax.nn.sigmoid(gi[:, H:2 * H] + gh[:, H:2 * H])
    n = jnp.tanh(gi[:, 2 * H:] + r * gh[:, 2 * H:])
    h_new = (1 - z) * n + z * h
    scores = jnp.sum(h_new[None] * encoder_outputs, axis=2)     # (L, B)
    attn = jax.nn.softmax(scores.T, axis=1)                     # (B, L)
    context = jnp.einsum('bl,lbd->bd', attn, encoder_outputs)
    cat = jnp.concatenate([h_new, context], axis=1)
    co = jnp.tanh(cat @ params["w_concat"].T + params["b_concat"])
    logits = co @ params["w_out"].T + params["b_out"]
    return jax.nn.softmax(logits, axis=1), h_new[None]


if __name__ == "__main__":
    # Small shapes, deliberately NOT (8,128)-aligned to exercise the padding path.
    B = 2          # batch
    H = 120        # hidden_size (padded to 128 in-kernel)
    L = 9          # max source length
    V = 1000       # output_size / vocab (padded to 1024 -> 2 vocab tiles of 512)

    key = jax.random.PRNGKey(0)
    ks = jax.random.split(key, 12)
    s = 0.1
    params = {
        "embedding": jax.random.normal(ks[0], (V, H), jnp.float32) * s,
        "w_ih":      jax.random.normal(ks[1], (3 * H, H), jnp.float32) * s,
        "w_hh":      jax.random.normal(ks[2], (3 * H, H), jnp.float32) * s,
        "b_ih":      jax.random.normal(ks[3], (3 * H,), jnp.float32) * s,
        "b_hh":      jax.random.normal(ks[4], (3 * H,), jnp.float32) * s,
        "w_concat":  jax.random.normal(ks[5], (H, 2 * H), jnp.float32) * s,
        "b_concat":  jax.random.normal(ks[6], (H,), jnp.float32) * s,
        "w_out":     jax.random.normal(ks[7], (V, H), jnp.float32) * s,
        "b_out":     jax.random.normal(ks[8], (V,), jnp.float32) * s,
    }

    input_step = jax.random.randint(ks[9], (1, B), 0, V, dtype=jnp.int32)
    last_hidden = jax.random.normal(ks[10], (1, B, H), jnp.float32)
    encoder_outputs = jax.random.normal(ks[11], (L, B, H), jnp.float32)

    ref_out, ref_hid = _reference_forward(input_step, last_hidden, encoder_outputs, params)

    # f32 streaming of w_out^T: tight check
    prep = prepare_params(params, tile_v=512, weight_dtype=jnp.float32)
    out, hid = luong_attn_decoder_forward(input_step, last_hidden, encoder_outputs, prep)
    out, hid = jax.block_until_ready((out, hid))
    assert out.shape == (B, V) and hid.shape == (1, B, H)
    assert jnp.allclose(hid, ref_hid, atol=1e-4, rtol=1e-4)
    assert jnp.allclose(out, ref_out, atol=1e-3, rtol=1e-3)

    # bf16 streaming (default) of the dominant (H, V) projection weight;
    # activation stays f32 so only the weight is quantized.
    prep_bf16 = prepare_params(params, tile_v=512, weight_dtype=jnp.bfloat16)
    out16, hid16 = jax.block_until_ready(
        luong_attn_decoder_forward(input_step, last_hidden, encoder_outputs, prep_bf16))
    assert jnp.allclose(hid16, ref_hid, atol=1e-4, rtol=1e-4)
    assert jnp.allclose(out16, ref_out, atol=1e-2, rtol=1e-2)

    print("KERNEL_OK")
</pallas_src>

<mosaic_0001>
module attributes {stable_mosaic.version = 11 : i64} {
  func.func @_decoder_kernel(%arg0: i32, %arg1: memref<8xi32, #tpu.memory_space<smem>>, %arg2: memref<1000x128xf32, #tpu.memory_space<any>>, %arg3: memref<8x128xf32, #tpu.memory_space<vmem>>, %arg4: memref<8x9x128xf32, #tpu.memory_space<vmem>>, %arg5: memref<128x128xf32, #tpu.memory_space<vmem>>, %arg6: memref<128x128xf32, #tpu.memory_space<vmem>>, %arg7: memref<128x128xf32, #tpu.memory_space<vmem>>, %arg8: memref<128x128xf32, #tpu.memory_space<vmem>>, %arg9: memref<128x128xf32, #tpu.memory_space<vmem>>, %arg10: memref<128x128xf32, #tpu.memory_space<vmem>>, %arg11: memref<1x128xf32, #tpu.memory_space<vmem>>, %arg12: memref<1x128xf32, #tpu.memory_space<vmem>>, %arg13: memref<1x128xf32, #tpu.memory_space<vmem>>, %arg14: memref<1x128xf32, #tpu.memory_space<vmem>>, %arg15: memref<128x128xf32, #tpu.memory_space<vmem>>, %arg16: memref<128x128xf32, #tpu.memory_space<vmem>>, %arg17: memref<1x128xf32, #tpu.memory_space<vmem>>, %arg18: memref<128x512xf32, #tpu.memory_space<vmem>>, %arg19: memref<1x512xf32, #tpu.memory_space<vmem>>, %arg20: memref<8x1024xf32, #tpu.memory_space<vmem>>, %arg21: memref<8x128xf32, #tpu.memory_space<vmem>>, %arg22: memref<8x128xf32, #tpu.memory_space<vmem>>, %arg23: memref<8x128xf32, #tpu.memory_space<vmem>>, %arg24: memref<8x1xf32, #tpu.memory_space<vmem>>, %arg25: memref<8x1xf32, #tpu.memory_space<vmem>>, %arg26: memref<8x!tpu.dma_semaphore, #tpu.memory_space<semaphore_mem>>) attributes {dimension_semantics = [#tpu.dimension_semantics<arbitrary>], iteration_bounds = array<i64: 2>, scalar_prefetch = 1 : i64, scratch_operands = 5 : i64, tpu.core_type = #tpu.core_type<tc>, window_params = [{}, {pipeline_mode = #tpu.pipeline_mode<synchronous>, transform_indices = @transform_1, window_bounds = array<i64: 8, 128>}, {pipeline_mode = #tpu.pipeline_mode<synchronous>, transform_indices = @transform_2, window_bounds = array<i64: 8, 9, 128>}, {pipeline_mode = #tpu.pipeline_mode<synchronous>, transform_indices = @transform_3, window_bounds = array<i64: 128, 128>}, {pipeline_mode = #tpu.pipeline_mode<synchronous>, transform_indices = @transform_4, window_bounds = array<i64: 128, 128>}, {pipeline_mode = #tpu.pipeline_mode<synchronous>, transform_indices = @transform_5, window_bounds = array<i64: 128, 128>}, {pipeline_mode = #tpu.pipeline_mode<synchronous>, transform_indices = @transform_6, window_bounds = array<i64: 128, 128>}, {pipeline_mode = #tpu.pipeline_mode<synchronous>, transform_indices = @transform_7, window_bounds = array<i64: 128, 128>}, {pipeline_mode = #tpu.pipeline_mode<synchronous>, transform_indices = @transform_8, window_bounds = array<i64: 128, 128>}, {pipeline_mode = #tpu.pipeline_mode<synchronous>, transform_indices = @transform_9, window_bounds = array<i64: 1, 128>}, {pipeline_mode = #tpu.pipeline_mode<synchronous>, transform_indices = @transform_10, window_bounds = array<i64: 1, 128>}, {pipeline_mode = #tpu.pipeline_mode<synchronous>, transform_indices = @transform_11, window_bounds = array<i64: 1, 128>}, {pipeline_mode = #tpu.pipeline_mode<synchronous>, transform_indices = @transform_12, window_bounds = array<i64: 1, 128>}, {pipeline_mode = #tpu.pipeline_mode<synchronous>, transform_indices = @transform_13, window_bounds = array<i64: 128, 128>}, {pipeline_mode = #tpu.pipeline_mode<synchronous>, transform_indices = @transform_14, window_bounds = array<i64: 128, 128>}, {pipeline_mode = #tpu.pipeline_mode<synchronous>, transform_indices = @transform_15, window_bounds = array<i64: 1, 128>}, {transform_indices = @transform_16, window_bounds = array<i64: 128, 512>}, {transform_indices = @transform_17, window_bounds = array<i64: 1, 512>}, {pipeline_mode = #tpu.pipeline_mode<synchronous>, transform_indices = @transform_18, window_bounds = array<i64: 8, 1024>}, {pipeline_mode = #tpu.pipeline_mode<synchronous>, transform_indices = @transform_19, window_bounds = array<i64: 8, 128>}]} {
    %c0_i32 = arith.constant 0 : i32
    %0 = arith.cmpi eq, %arg0, %c0_i32 : i32
    %1 = arith.extui %0 : i1 to i32
    %c0_i32_0 = arith.constant 0 : i32
    %2 = arith.cmpi ne, %1, %c0_i32_0 : i32
    scf.if %2 {
      %c0_18 = arith.constant 0 : index
      %32 = memref.load %arg1[%c0_18] : memref<8xi32, #tpu.memory_space<smem>>
      %c0_i32_19 = arith.constant 0 : i32
      %c0_i32_20 = arith.constant 0 : i32
      %33 = tpu.memref_slice %arg2[%32, %c0_i32_20] : memref<1000x128xf32, #tpu.memory_space<any>> -> memref<1x128xf32, #tpu.memory_space<any>>
      %c0_i32_21 = arith.constant 0 : i32
      %c0_i32_22 = arith.constant 0 : i32
      %34 = tpu.memref_slice %arg22[%c0_i32_21, %c0_i32_22] : memref<8x128xf32, #tpu.memory_space<vmem>> -> memref<1x128xf32, #tpu.memory_space<vmem>>
      %35 = tpu.memref_slice %arg26[%c0_i32_19] : memref<8x!tpu.dma_semaphore, #tpu.memory_space<semaphore_mem>> -> memref<1x!tpu.dma_semaphore, #tpu.memory_space<semaphore_mem>>
      %36 = tpu.memref_squeeze %35 : memref<1x!tpu.dma_semaphore, #tpu.memory_space<semaphore_mem>> -> memref<!tpu.dma_semaphore, #tpu.memory_space<semaphore_mem>>
      tpu.enqueue_dma source(%33 : memref<1x128xf32, #tpu.memory_space<any>>) target(%34 : memref<1x128xf32, #tpu.memory_space<vmem>>) target_semaphore(%36 : memref<!tpu.dma_semaphore, #tpu.memory_space<semaphore_mem>>)
      %c1 = arith.constant 1 : index
      %37 = memref.load %arg1[%c1] : memref<8xi32, #tpu.memory_space<smem>>
      %c1_i32_23 = arith.constant 1 : i32
      %c0_i32_24 = arith.constant 0 : i32
      %38 = tpu.memref_slice %arg2[%37, %c0_i32_24] : memref<1000x128xf32, #tpu.memory_space<any>> -> memref<1x128xf32, #tpu.memory_space<any>>
      %c1_i32_25 = arith.constant 1 : i32
      %c0_i32_26 = arith.constant 0 : i32
      %39 = tpu.memref_slice %arg22[%c1_i32_25, %c0_i32_26] : memref<8x128xf32, #tpu.memory_space<vmem>> -> memref<1x128xf32, #tpu.memory_space<vmem>>
      %40 = tpu.memref_slice %arg26[%c1_i32_23] : memref<8x!tpu.dma_semaphore, #tpu.memory_space<semaphore_mem>> -> memref<1x!tpu.dma_semaphore, #tpu.memory_space<semaphore_mem>>
      %41 = tpu.memref_squeeze %40 : memref<1x!tpu.dma_semaphore, #tpu.memory_space<semaphore_mem>> -> memref<!tpu.dma_semaphore, #tpu.memory_space<semaphore_mem>>
      tpu.enqueue_dma source(%38 : memref<1x128xf32, #tpu.memory_space<any>>) target(%39 : memref<1x128xf32, #tpu.memory_space<vmem>>) target_semaphore(%41 : memref<!tpu.dma_semaphore, #tpu.memory_space<semaphore_mem>>)
      %c2 = arith.constant 2 : index
      %42 = memref.load %arg1[%c2] : memref<8xi32, #tpu.memory_space<smem>>
      %c2_i32 = arith.constant 2 : i32
      %c0_i32_27 = arith.constant 0 : i32
      %43 = tpu.memref_slice %arg2[%42, %c0_i32_27] : memref<1000x128xf32, #tpu.memory_space<any>> -> memref<1x128xf32, #tpu.memory_space<any>>
      %c2_i32_28 = arith.constant 2 : i32
      %c0_i32_29 = arith.constant 0 : i32
      %44 = tpu.memref_slice %arg22[%c2_i32_28, %c0_i32_29] : memref<8x128xf32, #tpu.memory_space<vmem>> -> memref<1x128xf32, #tpu.memory_space<vmem>>
      %45 = tpu.memref_slice %arg26[%c2_i32] : memref<8x!tpu.dma_semaphore, #tpu.memory_space<semaphore_mem>> -> memref<1x!tpu.dma_semaphore, #tpu.memory_space<semaphore_mem>>
      %46 = tpu.memref_squeeze %45 : memref<1x!tpu.dma_semaphore, #tpu.memory_space<semaphore_mem>> -> memref<!tpu.dma_semaphore, #tpu.memory_space<semaphore_mem>>
      tpu.enqueue_dma source(%43 : memref<1x128xf32, #tpu.memory_space<any>>) target(%44 : memref<1x128xf32, #tpu.memory_space<vmem>>) target_semaphore(%46 : memref<!tpu.dma_semaphore, #tpu.memory_space<semaphore_mem>>)
      %c3 = arith.constant 3 : index
      %47 = memref.load %arg1[%c3] : memref<8xi32, #tpu.memory_space<smem>>
      %c3_i32 = arith.constant 3 : i32
      %c0_i32_30 = arith.constant 0 : i32
      %48 = tpu.memref_slice %arg2[%47, %c0_i32_30] : memref<1000x128xf32, #tpu.memory_space<any>> -> memref<1x128xf32, #tpu.memory_space<any>>
      %c3_i32_31 = arith.constant 3 : i32
      %c0_i32_32 = arith.constant 0 : i32
      %49 = tpu.memref_slice %arg22[%c3_i32_31, %c0_i32_32] : memref<8x128xf32, #tpu.memory_space<vmem>> -> memref<1x128xf32, #tpu.memory_space<vmem>>
      %50 = tpu.memref_slice %arg26[%c3_i32] : memref<8x!tpu.dma_semaphore, #tpu.memory_space<semaphore_mem>> -> memref<1x!tpu.dma_semaphore, #tpu.memory_space<semaphore_mem>>
      %51 = tpu.memref_squeeze %50 : memref<1x!tpu.dma_semaphore, #tpu.memory_space<semaphore_mem>> -> memref<!tpu.dma_semaphore, #tpu.memory_space<semaphore_mem>>
      tpu.enqueue_dma source(%48 : memref<1x128xf32, #tpu.memory_space<any>>) target(%49 : memref<1x128xf32, #tpu.memory_space<vmem>>) target_semaphore(%51 : memref<!tpu.dma_semaphore, #tpu.memory_space<semaphore_mem>>)
      %c4 = arith.constant 4 : index
      %52 = memref.load %arg1[%c4] : memref<8xi32, #tpu.memory_space<smem>>
      %c4_i32 = arith.constant 4 : i32
      %c0_i32_33 = arith.constant 0 : i32
      %53 = tpu.memref_slice %arg2[%52, %c0_i32_33] : memref<1000x128xf32, #tpu.memory_space<any>> -> memref<1x128xf32, #tpu.memory_space<any>>
      %c4_i32_34 = arith.constant 4 : i32
      %c0_i32_35 = arith.constant 0 : i32
      %54 = tpu.memref_slice %arg22[%c4_i32_34, %c0_i32_35] : memref<8x128xf32, #tpu.memory_space<vmem>> -> memref<1x128xf32, #tpu.memory_space<vmem>>
      %55 = tpu.memref_slice %arg26[%c4_i32] : memref<8x!tpu.dma_semaphore, #tpu.memory_space<semaphore_mem>> -> memref<1x!tpu.dma_semaphore, #tpu.memory_space<semaphore_mem>>
      %56 = tpu.memref_squeeze %55 : memref<1x!tpu.dma_semaphore, #tpu.memory_space<semaphore_mem>> -> memref<!tpu.dma_semaphore, #tpu.memory_space<semaphore_mem>>
      tpu.enqueue_dma source(%53 : memref<1x128xf32, #tpu.memory_space<any>>) target(%54 : memref<1x128xf32, #tpu.memory_space<vmem>>) target_semaphore(%56 : memref<!tpu.dma_semaphore, #tpu.memory_space<semaphore_mem>>)
      %c5 = arith.constant 5 : index
      %57 = memref.load %arg1[%c5] : memref<8xi32, #tpu.memory_space<smem>>
      %c5_i32 = arith.constant 5 : i32
      %c0_i32_36 = arith.constant 0 : i32
      %58 = tpu.memref_slice %arg2[%57, %c0_i32_36] : memref<1000x128xf32, #tpu.memory_space<any>> -> memref<1x128xf32, #tpu.memory_space<any>>
      %c5_i32_37 = arith.constant 5 : i32
      %c0_i32_38 = arith.constant 0 : i32
      %59 = tpu.memref_slice %arg22[%c5_i32_37, %c0_i32_38] : memref<8x128xf32, #tpu.memory_space<vmem>> -> memref<1x128xf32, #tpu.memory_space<vmem>>
      %60 = tpu.memref_slice %arg26[%c5_i32] : memref<8x!tpu.dma_semaphore, #tpu.memory_space<semaphore_mem>> -> memref<1x!tpu.dma_semaphore, #tpu.memory_space<semaphore_mem>>
      %61 = tpu.memref_squeeze %60 : memref<1x!tpu.dma_semaphore, #tpu.memory_space<semaphore_mem>> -> memref<!tpu.dma_semaphore, #tpu.memory_space<semaphore_mem>>
      tpu.enqueue_dma source(%58 : memref<1x128xf32, #tpu.memory_space<any>>) target(%59 : memref<1x128xf32, #tpu.memory_space<vmem>>) target_semaphore(%61 : memref<!tpu.dma_semaphore, #tpu.memory_space<semaphore_mem>>)
      %c6 = arith.constant 6 : index
      %62 = memref.load %arg1[%c6] : memref<8xi32, #tpu.memory_space<smem>>
      %c6_i32 = arith.constant 6 : i32
      %c0_i32_39 = arith.constant 0 : i32
      %63 = tpu.memref_slice %arg2[%62, %c0_i32_39] : memref<1000x128xf32, #tpu.memory_space<any>> -> memref<1x128xf32, #tpu.memory_space<any>>
      %c6_i32_40 = arith.constant 6 : i32
      %c0_i32_41 = arith.constant 0 : i32
      %64 = tpu.memref_slice %arg22[%c6_i32_40, %c0_i32_41] : memref<8x128xf32, #tpu.memory_space<vmem>> -> memref<1x128xf32, #tpu.memory_space<vmem>>
      %65 = tpu.memref_slice %arg26[%c6_i32] : memref<8x!tpu.dma_semaphore, #tpu.memory_space<semaphore_mem>> -> memref<1x!tpu.dma_semaphore, #tpu.memory_space<semaphore_mem>>
      %66 = tpu.memref_squeeze %65 : memref<1x!tpu.dma_semaphore, #tpu.memory_space<semaphore_mem>> -> memref<!tpu.dma_semaphore, #tpu.memory_space<semaphore_mem>>
      tpu.enqueue_dma source(%63 : memref<1x128xf32, #tpu.memory_space<any>>) target(%64 : memref<1x128xf32, #tpu.memory_space<vmem>>) target_semaphore(%66 : memref<!tpu.dma_semaphore, #tpu.memory_space<semaphore_mem>>)
      %c7 = arith.constant 7 : index
      %67 = memref.load %arg1[%c7] : memref<8xi32, #tpu.memory_space<smem>>
      %c7_i32 = arith.constant 7 : i32
      %c0_i32_42 = arith.constant 0 : i32
      %68 = tpu.memref_slice %arg2[%67, %c0_i32_42] : memref<1000x128xf32, #tpu.memory_space<any>> -> memref<1x128xf32, #tpu.memory_space<any>>
      %c7_i32_43 = arith.constant 7 : i32
      %c0_i32_44 = arith.constant 0 : i32
      %69 = tpu.memref_slice %arg22[%c7_i32_43, %c0_i32_44] : memref<8x128xf32, #tpu.memory_space<vmem>> -> memref<1x128xf32, #tpu.memory_space<vmem>>
      %70 = tpu.memref_slice %arg26[%c7_i32] : memref<8x!tpu.dma_semaphore, #tpu.memory_space<semaphore_mem>> -> memref<1x!tpu.dma_semaphore, #tpu.memory_space<semaphore_mem>>
      %71 = tpu.memref_squeeze %70 : memref<1x!tpu.dma_semaphore, #tpu.memory_space<semaphore_mem>> -> memref<!tpu.dma_semaphore, #tpu.memory_space<semaphore_mem>>
      tpu.enqueue_dma source(%68 : memref<1x128xf32, #tpu.memory_space<any>>) target(%69 : memref<1x128xf32, #tpu.memory_space<vmem>>) target_semaphore(%71 : memref<!tpu.dma_semaphore, #tpu.memory_space<semaphore_mem>>)
      %c0_45 = arith.constant 0 : index
      %c0_46 = arith.constant 0 : index
      %72 = vector.load %arg3[%c0_45, %c0_46] : memref<8x128xf32, #tpu.memory_space<vmem>>, vector<8x128xf32>
      %c0_47 = arith.constant 0 : index
      %c0_48 = arith.constant 0 : index
      %73 = vector.load %arg8[%c0_47, %c0_48] : memref<128x128xf32, #tpu.memory_space<vmem>>, vector<128x128xf32>
      %cst_49 = arith.constant dense<0.000000e+00> : vector<8x128xf32>
      %74 = tpu.matmul %72, %73, %cst_49 {dimension_numbers = #tpu.dot_dimension_numbers<[1], [0], [0], [1], [0, 0, 1, 1], [], []>} : vector<8x128xf32>, vector<128x128xf32>, vector<8x128xf32> -> vector<8x128xf32>
      %c0_50 = arith.constant 0 : index
      %c0_51 = arith.constant 0 : index
      %75 = vector.load %arg11[%c0_50, %c0_51] : memref<1x128xf32, #tpu.memory_space<vmem>>, vector<1x128xf32>
      %76 = vector.broadcast %75 : vector<1x128xf32> to vector<8x128xf32>
      %77 = arith.addf %74, %76 : vector<8x128xf32>
      %c0_52 = arith.constant 0 : index
      %c0_53 = arith.constant 0 : index
      %78 = vector.load %arg9[%c0_52, %c0_53] : memref<128x128xf32, #tpu.memory_space<vmem>>, vector<128x128xf32>
      %cst_54 = arith.constant dense<0.000000e+00> : vector<8x128xf32>
      %79 = tpu.matmul %72, %78, %cst_54 {dimension_numbers = #tpu.dot_dimension_numbers<[1], [0], [0], [1], [0, 0, 1, 1], [], []>} : vector<8x128xf32>, vector<128x128xf32>, vector<8x128xf32> -> vector<8x128xf32>
      %c0_55 = arith.constant 0 : index
      %c0_56 = arith.constant 0 : index
      %80 = vector.load %arg12[%c0_55, %c0_56] : memref<1x128xf32, #tpu.memory_space<vmem>>, vector<1x128xf32>
      %81 = vector.broadcast %80 : vector<1x128xf32> to vector<8x128xf32>
      %82 = arith.addf %79, %81 : vector<8x128xf32>
      %c0_57 = arith.constant 0 : index
      %c0_58 = arith.constant 0 : index
      %83 = vector.load %arg10[%c0_57, %c0_58] : memref<128x128xf32, #tpu.memory_space<vmem>>, vector<128x128xf32>
      %cst_59 = arith.constant dense<0.000000e+00> : vector<8x128xf32>
      %84 = tpu.matmul %72, %83, %cst_59 {dimension_numbers = #tpu.dot_dimension_numbers<[1], [0], [0], [1], [0, 0, 1, 1], [], []>} : vector<8x128xf32>, vector<128x128xf32>, vector<8x128xf32> -> vector<8x128xf32>
      %c0_60 = arith.constant 0 : index
      %c0_61 = arith.constant 0 : index
      %85 = vector.load %arg14[%c0_60, %c0_61] : memref<1x128xf32, #tpu.memory_space<vmem>>, vector<1x128xf32>
      %86 = vector.broadcast %85 : vector<1x128xf32> to vector<8x128xf32>
      %87 = arith.addf %84, %86 : vector<8x128xf32>
      %c0_i32_62 = arith.constant 0 : i32
      %c0_i32_63 = arith.constant 0 : i32
      %88 = tpu.memref_slice %arg2[%32, %c0_i32_63] : memref<1000x128xf32, #tpu.memory_space<any>> -> memref<1x128xf32, #tpu.memory_space<any>>
      %c0_i32_64 = arith.constant 0 : i32
      %c0_i32_65 = arith.constant 0 : i32
      %89 = tpu.memref_slice %arg22[%c0_i32_64, %c0_i32_65] : memref<8x128xf32, #tpu.memory_space<vmem>> -> memref<1x128xf32, #tpu.memory_space<vmem>>
      %90 = tpu.memref_slice %arg26[%c0_i32_62] : memref<8x!tpu.dma_semaphore, #tpu.memory_space<semaphore_mem>> -> memref<1x!tpu.dma_semaphore, #tpu.memory_space<semaphore_mem>>
      %91 = tpu.memref_squeeze %90 : memref<1x!tpu.dma_semaphore, #tpu.memory_space<semaphore_mem>> -> memref<!tpu.dma_semaphore, #tpu.memory_space<semaphore_mem>>
      tpu.wait_dma2 semaphore(%91 : memref<!tpu.dma_semaphore, #tpu.memory_space<semaphore_mem>>) src(%88 : memref<1x128xf32, #tpu.memory_space<any>>) dst(%89 : memref<1x128xf32, #tpu.memory_space<vmem>>)
      %c1_i32_66 = arith.constant 1 : i32
      %c0_i32_67 = arith.constant 0 : i32
      %92 = tpu.memref_slice %arg2[%37, %c0_i32_67] : memref<1000x128xf32, #tpu.memory_space<any>> -> memref<1x128xf32, #tpu.memory_space<any>>
      %c1_i32_68 = arith.constant 1 : i32
      %c0_i32_69 = arith.constant 0 : i32
      %93 = tpu.memref_slice %arg22[%c1_i32_68, %c0_i32_69] : memref<8x128xf32, #tpu.memory_space<vmem>> -> memref<1x128xf32, #tpu.memory_space<vmem>>
      %94 = tpu.memref_slice %arg26[%c1_i32_66] : memref<8x!tpu.dma_semaphore, #tpu.memory_space<semaphore_mem>> -> memref<1x!tpu.dma_semaphore, #tpu.memory_space<semaphore_mem>>
      %95 = tpu.memref_squeeze %94 : memref<1x!tpu.dma_semaphore, #tpu.memory_space<semaphore_mem>> -> memref<!tpu.dma_semaphore, #tpu.memory_space<semaphore_mem>>
      tpu.wait_dma2 semaphore(%95 : memref<!tpu.dma_semaphore, #tpu.memory_space<semaphore_mem>>) src(%92 : memref<1x128xf32, #tpu.memory_space<any>>) dst(%93 : memref<1x128xf32, #tpu.memory_space<vmem>>)
      %c2_i32_70 = arith.constant 2 : i32
      %c0_i32_71 = arith.constant 0 : i32
      %96 = tpu.memref_slice %arg2[%42, %c0_i32_71] : memref<1000x128xf32, #tpu.memory_space<any>> -> memref<1x128xf32, #tpu.memory_space<any>>
      %c2_i32_72 = arith.constant 2 : i32
      %c0_i32_73 = arith.constant 0 : i32
      %97 = tpu.memref_slice %arg22[%c2_i32_72, %c0_i32_73] : memref<8x128xf32, #tpu.memory_space<vmem>> -> memref<1x128xf32, #tpu.memory_space<vmem>>
      %98 = tpu.memref_slice %arg26[%c2_i32_70] : memref<8x!tpu.dma_semaphore, #tpu.memory_space<semaphore_mem>> -> memref<1x!tpu.dma_semaphore, #tpu.memory_space<semaphore_mem>>
      %99 = tpu.memref_squeeze %98 : memref<1x!tpu.dma_semaphore, #tpu.memory_space<semaphore_mem>> -> memref<!tpu.dma_semaphore, #tpu.memory_space<semaphore_mem>>
      tpu.wait_dma2 semaphore(%99 : memref<!tpu.dma_semaphore, #tpu.memory_space<semaphore_mem>>) src(%96 : memref<1x128xf32, #tpu.memory_space<any>>) dst(%97 : memref<1x128xf32, #tpu.memory_space<vmem>>)
      %c3_i32_74 = arith.constant 3 : i32
      %c0_i32_75 = arith.constant 0 : i32
      %100 = tpu.memref_slice %arg2[%47, %c0_i32_75] : memref<1000x128xf32, #tpu.memory_space<any>> -> memref<1x128xf32, #tpu.memory_space<any>>
      %c3_i32_76 = arith.constant 3 : i32
      %c0_i32_77 = arith.constant 0 : i32
      %101 = tpu.memref_slice %arg22[%c3_i32_76, %c0_i32_77] : memref<8x128xf32, #tpu.memory_space<vmem>> -> memref<1x128xf32, #tpu.memory_space<vmem>>
      %102 = tpu.memref_slice %arg26[%c3_i32_74] : memref<8x!tpu.dma_semaphore, #tpu.memory_space<semaphore_mem>> -> memref<1x!tpu.dma_semaphore, #tpu.memory_space<semaphore_mem>>
      %103 = tpu.memref_squeeze %102 : memref<1x!tpu.dma_semaphore, #tpu.memory_space<semaphore_mem>> -> memref<!tpu.dma_semaphore, #tpu.memory_space<semaphore_mem>>
      tpu.wait_dma2 semaphore(%103 : memref<!tpu.dma_semaphore, #tpu.memory_space<semaphore_mem>>) src(%100 : memref<1x128xf32, #tpu.memory_space<any>>) dst(%101 : memref<1x128xf32, #tpu.memory_space<vmem>>)
      %c4_i32_78 = arith.constant 4 : i32
      %c0_i32_79 = arith.constant 0 : i32
      %104 = tpu.memref_slice %arg2[%52, %c0_i32_79] : memref<1000x128xf32, #tpu.memory_space<any>> -> memref<1x128xf32, #tpu.memory_space<any>>
      %c4_i32_80 = arith.constant 4 : i32
      %c0_i32_81 = arith.constant 0 : i32
      %105 = tpu.memref_slice %arg22[%c4_i32_80, %c0_i32_81] : memref<8x128xf32, #tpu.memory_space<vmem>> -> memref<1x128xf32, #tpu.memory_space<vmem>>
      %106 = tpu.memref_slice %arg26[%c4_i32_78] : memref<8x!tpu.dma_semaphore, #tpu.memory_space<semaphore_mem>> -> memref<1x!tpu.dma_semaphore, #tpu.memory_space<semaphore_mem>>
      %107 = tpu.memref_squeeze %106 : memref<1x!tpu.dma_semaphore, #tpu.memory_space<semaphore_mem>> -> memref<!tpu.dma_semaphore, #tpu.memory_space<semaphore_mem>>
      tpu.wait_dma2 semaphore(%107 : memref<!tpu.dma_semaphore, #tpu.memory_space<semaphore_mem>>) src(%104 : memref<1x128xf32, #tpu.memory_space<any>>) dst(%105 : memref<1x128xf32, #tpu.memory_space<vmem>>)
      %c5_i32_82 = arith.constant 5 : i32
      %c0_i32_83 = arith.constant 0 : i32
      %108 = tpu.memref_slice %arg2[%57, %c0_i32_83] : memref<1000x128xf32, #tpu.memory_space<any>> -> memref<1x128xf32, #tpu.memory_space<any>>
      %c5_i32_84 = arith.constant 5 : i32
      %c0_i32_85 = arith.constant 0 : i32
      %109 = tpu.memref_slice %arg22[%c5_i32_84, %c0_i32_85] : memref<8x128xf32, #tpu.memory_space<vmem>> -> memref<1x128xf32, #tpu.memory_space<vmem>>
      %110 = tpu.memref_slice %arg26[%c5_i32_82] : memref<8x!tpu.dma_semaphore, #tpu.memory_space<semaphore_mem>> -> memref<1x!tpu.dma_semaphore, #tpu.memory_space<semaphore_mem>>
      %111 = tpu.memref_squeeze %110 : memref<1x!tpu.dma_semaphore, #tpu.memory_space<semaphore_mem>> -> memref<!tpu.dma_semaphore, #tpu.memory_space<semaphore_mem>>
      tpu.wait_dma2 semaphore(%111 : memref<!tpu.dma_semaphore, #tpu.memory_space<semaphore_mem>>) src(%108 : memref<1x128xf32, #tpu.memory_space<any>>) dst(%109 : memref<1x128xf32, #tpu.memory_space<vmem>>)
      %c6_i32_86 = arith.constant 6 : i32
      %c0_i32_87 = arith.constant 0 : i32
      %112 = tpu.memref_slice %arg2[%62, %c0_i32_87] : memref<1000x128xf32, #tpu.memory_space<any>> -> memref<1x128xf32, #tpu.memory_space<any>>
      %c6_i32_88 = arith.constant 6 : i32
      %c0_i32_89 = arith.constant 0 : i32
      %113 = tpu.memref_slice %arg22[%c6_i32_88, %c0_i32_89] : memref<8x128xf32, #tpu.memory_space<vmem>> -> memref<1x128xf32, #tpu.memory_space<vmem>>
      %114 = tpu.memref_slice %arg26[%c6_i32_86] : memref<8x!tpu.dma_semaphore, #tpu.memory_space<semaphore_mem>> -> memref<1x!tpu.dma_semaphore, #tpu.memory_space<semaphore_mem>>
      %115 = tpu.memref_squeeze %114 : memref<1x!tpu.dma_semaphore, #tpu.memory_space<semaphore_mem>> -> memref<!tpu.dma_semaphore, #tpu.memory_space<semaphore_mem>>
      tpu.wait_dma2 semaphore(%115 : memref<!tpu.dma_semaphore, #tpu.memory_space<semaphore_mem>>) src(%112 : memref<1x128xf32, #tpu.memory_space<any>>) dst(%113 : memref<1x128xf32, #tpu.memory_space<vmem>>)
      %c7_i32_90 = arith.constant 7 : i32
      %c0_i32_91 = arith.constant 0 : i32
      %116 = tpu.memref_slice %arg2[%67, %c0_i32_91] : memref<1000x128xf32, #tpu.memory_space<any>> -> memref<1x128xf32, #tpu.memory_space<any>>
      %c7_i32_92 = arith.constant 7 : i32
      %c0_i32_93 = arith.constant 0 : i32
      %117 = tpu.memref_slice %arg22[%c7_i32_92, %c0_i32_93] : memref<8x128xf32, #tpu.memory_space<vmem>> -> memref<1x128xf32, #tpu.memory_space<vmem>>
      %118 = tpu.memref_slice %arg26[%c7_i32_90] : memref<8x!tpu.dma_semaphore, #tpu.memory_space<semaphore_mem>> -> memref<1x!tpu.dma_semaphore, #tpu.memory_space<semaphore_mem>>
      %119 = tpu.memref_squeeze %118 : memref<1x!tpu.dma_semaphore, #tpu.memory_space<semaphore_mem>> -> memref<!tpu.dma_semaphore, #tpu.memory_space<semaphore_mem>>
      tpu.wait_dma2 semaphore(%119 : memref<!tpu.dma_semaphore, #tpu.memory_space<semaphore_mem>>) src(%116 : memref<1x128xf32, #tpu.memory_space<any>>) dst(%117 : memref<1x128xf32, #tpu.memory_space<vmem>>)
      %c0_94 = arith.constant 0 : index
      %c0_95 = arith.constant 0 : index
      %120 = vector.load %arg22[%c0_94, %c0_95] : memref<8x128xf32, #tpu.memory_space<vmem>>, vector<8x128xf32>
      %c0_96 = arith.constant 0 : index
      %c0_97 = arith.constant 0 : index
      %121 = vector.load %arg5[%c0_96, %c0_97] : memref<128x128xf32, #tpu.memory_space<vmem>>, vector<128x128xf32>
      %cst_98 = arith.constant dense<0.000000e+00> : vector<8x128xf32>
      %122 = tpu.matmul %120, %121, %cst_98 {dimension_numbers = #tpu.dot_dimension_numbers<[1], [0], [0], [1], [0, 0, 1, 1], [], []>} : vector<8x128xf32>, vector<128x128xf32>, vector<8x128xf32> -> vector<8x128xf32>
      %123 = arith.addf %122, %77 : vector<8x128xf32>
      %124 = arith.negf %123 : vector<8x128xf32>
      %125 = math.exp %124 : vector<8x128xf32>
      %cst_99 = arith.constant 1.000000e+00 : f32
      %126 = vector.broadcast %cst_99 : f32 to vector<8x128xf32>
      %127 = arith.addf %126, %125 : vector<8x128xf32>
      %128 = arith.divf %126, %127 : vector<8x128xf32>
      %c0_100 = arith.constant 0 : index
      %c0_101 = arith.constant 0 : index
      %129 = vector.load %arg6[%c0_100, %c0_101] : memref<128x128xf32, #tpu.memory_space<vmem>>, vector<128x128xf32>
      %cst_102 = arith.constant dense<0.000000e+00> : vector<8x128xf32>
      %130 = tpu.matmul %120, %129, %cst_102 {dimension_numbers = #tpu.dot_dimension_numbers<[1], [0], [0], [1], [0, 0, 1, 1], [], []>} : vector<8x128xf32>, vector<128x128xf32>, vector<8x128xf32> -> vector<8x128xf32>
      %131 = arith.addf %130, %82 : vector<8x128xf32>
      %132 = arith.negf %131 : vector<8x128xf32>
      %133 = math.exp %132 : vector<8x128xf32>
      %cst_103 = arith.constant 1.000000e+00 : f32
      %134 = vector.broadcast %cst_103 : f32 to vector<8x128xf32>
      %135 = arith.addf %134, %133 : vector<8x128xf32>
      %136 = arith.divf %134, %135 : vector<8x128xf32>
      %c0_104 = arith.constant 0 : index
      %c0_105 = arith.constant 0 : index
      %137 = vector.load %arg7[%c0_104, %c0_105] : memref<128x128xf32, #tpu.memory_space<vmem>>, vector<128x128xf32>
      %cst_106 = arith.constant dense<0.000000e+00> : vector<8x128xf32>
      %138 = tpu.matmul %120, %137, %cst_106 {dimension_numbers = #tpu.dot_dimension_numbers<[1], [0], [0], [1], [0, 0, 1, 1], [], []>} : vector<8x128xf32>, vector<128x128xf32>, vector<8x128xf32> -> vector<8x128xf32>
      %c0_107 = arith.constant 0 : index
      %c0_108 = arith.constant 0 : index
      %139 = vector.load %arg13[%c0_107, %c0_108] : memref<1x128xf32, #tpu.memory_space<vmem>>, vector<1x128xf32>
      %140 = vector.broadcast %139 : vector<1x128xf32> to vector<8x128xf32>
      %141 = arith.addf %138, %140 : vector<8x128xf32>
      %142 = arith.mulf %128, %87 : vector<8x128xf32>
      %143 = arith.addf %141, %142 : vector<8x128xf32>
      %144 = math.tanh %143 : vector<8x128xf32>
      %cst_109 = arith.constant 1.000000e+00 : f32
      %145 = vector.broadcast %cst_109 : f32 to vector<8x128xf32>
      %146 = arith.subf %145, %136 : vector<8x128xf32>
      %147 = arith.mulf %146, %144 : vector<8x128xf32>
      %148 = arith.mulf %136, %72 : vector<8x128xf32>
      %149 = arith.addf %147, %148 : vector<8x128xf32>
      %c0_110 = arith.constant 0 : index
      %c0_111 = arith.constant 0 : index
      %c0_112 = arith.constant 0 : index
      %150 = vector.load %arg4[%c0_110, %c0_111, %c0_112] : memref<8x9x128xf32, #tpu.memory_space<vmem>>, vector<8x9x128xf32>
      %151 = vector.shape_cast %149 : vector<8x128xf32> to vector<8x1x128xf32>
      %152 = vector.broadcast %151 : vector<8x1x128xf32> to vector<8x9x128xf32>
      %153 = arith.mulf %152, %150 : vector<8x9x128xf32>
      %cst_113 = arith.constant dense<0.000000e+00> : vector<8x9xf32>
      %154 = vector.multi_reduction <add>, %153, %cst_113 [2] : vector<8x9x128xf32> to vector<8x9xf32>
      %cst_114 = arith.constant dense<0xFF800000> : vector<8xf32>
      %155 = vector.multi_reduction <maximumf>, %154, %cst_114 [1] : vector<8x9xf32> to vector<8xf32>
      %156 = vector.shape_cast %155 : vector<8xf32> to vector<8x1xf32>
      %157 = vector.broadcast %156 : vector<8x1xf32> to vector<8x9xf32>
      %158 = arith.subf %154, %157 : vector<8x9xf32>
      %159 = math.exp %158 : vector<8x9xf32>
      %cst_115 = arith.constant dense<0.000000e+00> : vector<8xf32>
      %160 = vector.multi_reduction <add>, %159, %cst_115 [1] : vector<8x9xf32> to vector<8xf32>
      %161 = vector.shape_cast %160 : vector<8xf32> to vector<8x1xf32>
      %162 = tpu.reciprocal %161 {approx = true} : vector<8x1xf32> -> vector<8x1xf32>
      %163 = vector.broadcast %162 : vector<8x1xf32> to vector<8x9xf32>
      %164 = arith.mulf %159, %163 : vector<8x9xf32>
      %165 = vector.shape_cast %164 : vector<8x9xf32> to vector<8x9x1xf32>
      %166 = vector.broadcast %165 : vector<8x9x1xf32> to vector<8x9x128xf32>
      %167 = arith.mulf %166, %150 : vector<8x9x128xf32>
      %cst_116 = arith.constant dense<0.000000e+00> : vector<8x128xf32>
      %168 = vector.multi_reduction <add>, %167, %cst_116 [1] : vector<8x9x128xf32> to vector<8x128xf32>
      %c0_117 = arith.constant 0 : index
      %c0_118 = arith.constant 0 : index
      %169 = vector.load %arg15[%c0_117, %c0_118] : memref<128x128xf32, #tpu.memory_space<vmem>>, vector<128x128xf32>
      %cst_119 = arith.constant dense<0.000000e+00> : vector<8x128xf32>
      %170 = tpu.matmul %149, %169, %cst_119 {dimension_numbers = #tpu.dot_dimension_numbers<[1], [0], [0], [1], [0, 0, 1, 1], [], []>} : vector<8x128xf32>, vector<128x128xf32>, vector<8x128xf32> -> vector<8x128xf32>
      %c0_120 = arith.constant 0 : index
      %c0_121 = arith.constant 0 : index
      %171 = vector.load %arg16[%c0_120, %c0_121] : memref<128x128xf32, #tpu.memory_space<vmem>>, vector<128x128xf32>
      %cst_122 = arith.constant dense<0.000000e+00> : vector<8x128xf32>
      %172 = tpu.matmul %168, %171, %cst_122 {dimension_numbers = #tpu.dot_dimension_numbers<[1], [0], [0], [1], [0, 0, 1, 1], [], []>} : vector<8x128xf32>, vector<128x128xf32>, vector<8x128xf32> -> vector<8x128xf32>
      %173 = arith.addf %170, %172 : vector<8x128xf32>
      %c0_123 = arith.constant 0 : index
      %c0_124 = arith.constant 0 : index
      %174 = vector.load %arg17[%c0_123, %c0_124] : memref<1x128xf32, #tpu.memory_space<vmem>>, vector<1x128xf32>
      %175 = vector.broadcast %174 : vector<1x128xf32> to vector<8x128xf32>
      %176 = arith.addf %173, %175 : vector<8x128xf32>
      %177 = math.tanh %176 : vector<8x128xf32>
      %c0_125 = arith.constant 0 : index
      %c0_126 = arith.constant 0 : index
      %178 = vector.load %arg23[%c0_125, %c0_126] : memref<8x128xf32, #tpu.memory_space<vmem>>, vector<8x128xf32>
      tpu.vector_store %arg23[%c0_125, %c0_126], %177 {strides = array<i32>} : memref<8x128xf32, #tpu.memory_space<vmem>>, vector<8x128xf32>,
      %c0_127 = arith.constant 0 : index
      %c0_128 = arith.constant 0 : index
      %179 = vector.load %arg21[%c0_127, %c0_128] : memref<8x128xf32, #tpu.memory_space<vmem>>, vector<8x128xf32>
      tpu.vector_store %arg21[%c0_127, %c0_128], %149 {strides = array<i32>} : memref<8x128xf32, #tpu.memory_space<vmem>>, vector<8x128xf32>,
      %cst_129 = arith.constant 0xFF800000 : f32
      %180 = vector.broadcast %cst_129 : f32 to vector<8x1xf32>
      %c0_130 = arith.constant 0 : index
      %c0_131 = arith.constant 0 : index
      %181 = vector.load %arg24[%c0_130, %c0_131] : memref<8x1xf32, #tpu.memory_space<vmem>>, vector<8x1xf32>
      tpu.vector_store %arg24[%c0_130, %c0_131], %180 {strides = array<i32>} : memref<8x1xf32, #tpu.memory_space<vmem>>, vector<8x1xf32>,
      %cst_132 = arith.constant 0.000000e+00 : f32
      %182 = vector.broadcast %cst_132 : f32 to vector<8x1xf32>
      %c0_133 = arith.constant 0 : index
      %c0_134 = arith.constant 0 : index
      %183 = vector.load %arg25[%c0_133, %c0_134] : memref<8x1xf32, #tpu.memory_space<vmem>>, vector<8x1xf32>
      tpu.vector_store %arg25[%c0_133, %c0_134], %182 {strides = array<i32>} : memref<8x1xf32, #tpu.memory_space<vmem>>, vector<8x1xf32>,
    } else {
    }
    %c0 = arith.constant 0 : index
    %c0_1 = arith.constant 0 : index
    %3 = vector.load %arg18[%c0, %c0_1] : memref<128x512xf32, #tpu.memory_space<vmem>>, vector<128x512xf32>
    %c0_2 = arith.constant 0 : index
    %c0_3 = arith.constant 0 : index
    %4 = vector.load %arg23[%c0_2, %c0_3] : memref<8x128xf32, #tpu.memory_space<vmem>>, vector<8x128xf32>
    %cst = arith.constant dense<0.000000e+00> : vector<8x512xf32>
    %5 = tpu.matmul %4, %3, %cst {dimension_numbers = #tpu.dot_dimension_numbers<[1], [0], [0], [1], [0, 0, 1, 1], [], []>} : vector<8x128xf32>, vector<128x512xf32>, vector<8x512xf32> -> vector<8x512xf32>
    %c0_4 = arith.constant 0 : index
    %c0_5 = arith.constant 0 : index
    %6 = vector.load %arg19[%c0_4, %c0_5] : memref<1x512xf32, #tpu.memory_space<vmem>>, vector<1x512xf32>
    %7 = vector.broadcast %6 : vector<1x512xf32> to vector<8x512xf32>
    %8 = arith.addf %5, %7 : vector<8x512xf32>
    %c512_i32 = arith.constant 512 : i32
    %9 = arith.muli %arg0, %c512_i32 : i32
    %10 = tpu.assume_multiple %9, 512 : i32
    %c0_6 = arith.constant 0 : index
    %11 = arith.index_cast %10 : i32 to index
    %12 = vector.load %arg20[%c0_6, %11] : memref<8x1024xf32, #tpu.memory_space<vmem>>, vector<8x512xf32>
    tpu.vector_store %arg20[%c0_6, %11], %8 {strides = array<i32>} : memref<8x1024xf32, #tpu.memory_space<vmem>>, vector<8x512xf32>,
    %c0_7 = arith.constant 0 : index
    %c0_8 = arith.constant 0 : index
    %13 = vector.load %arg24[%c0_7, %c0_8] : memref<8x1xf32, #tpu.memory_space<vmem>>, vector<8x1xf32>
    %cst_9 = arith.constant dense<0xFF800000> : vector<8xf32>
    %14 = vector.multi_reduction <maximumf>, %8, %cst_9 [1] : vector<8x512xf32> to vector<8xf32>
    %15 = vector.shape_cast %14 : vector<8xf32> to vector<8x1xf32>
    %16 = arith.maximumf %13, %15 : vector<8x1xf32>
    %c0_10 = arith.constant 0 : index
    %c0_11 = arith.constant 0 : index
    %17 = vector.load %arg25[%c0_10, %c0_11] : memref<8x1xf32, #tpu.memory_space<vmem>>, vector<8x1xf32>
    %18 = arith.subf %13, %16 : vector<8x1xf32>
    %19 = math.exp %18 : vector<8x1xf32>
    %20 = arith.mulf %17, %19 : vector<8x1xf32>
    %21 = vector.broadcast %16 : vector<8x1xf32> to vector<8x512xf32>
    %22 = arith.subf %8, %21 : vector<8x512xf32>
    %23 = math.exp %22 : vector<8x512xf32>
    %cst_12 = arith.constant dense<0.000000e+00> : vector<8xf32>
    %24 = vector.multi_reduction <add>, %23, %cst_12 [1] : vector<8x512xf32> to vector<8xf32>
    %25 = vector.shape_cast %24 : vector<8xf32> to vector<8x1xf32>
    %26 = arith.addf %20, %25 : vector<8x1xf32>
    %c0_13 = arith.constant 0 : index
    %c0_14 = arith.constant 0 : index
    %27 = vector.load %arg25[%c0_13, %c0_14] : memref<8x1xf32, #tpu.memory_space<vmem>>, vector<8x1xf32>
    tpu.vector_store %arg25[%c0_13, %c0_14], %26 {strides = array<i32>} : memref<8x1xf32, #tpu.memory_space<vmem>>, vector<8x1xf32>,
    %c0_15 = arith.constant 0 : index
    %c0_16 = arith.constant 0 : index
    %28 = vector.load %arg24[%c0_15, %c0_16] : memref<8x1xf32, #tpu.memory_space<vmem>>, vector<8x1xf32>
    tpu.vector_store %arg24[%c0_15, %c0_16], %16 {strides = array<i32>} : memref<8x1xf32, #tpu.memory_space<vmem>>, vector<8x1xf32>,
    %c1_i32 = arith.constant 1 : i32
    %29 = arith.cmpi eq, %arg0, %c1_i32 : i32
    %30 = arith.extui %29 : i1 to i32
    %c0_i32_17 = arith.constant 0 : i32
    %31 = arith.cmpi ne, %30, %c0_i32_17 : i32
    scf.if %31 {
      %c0_18 = arith.constant 0 : index
      %c0_19 = arith.constant 0 : index
      %32 = vector.load %arg20[%c0_18, %c0_19] : memref<8x1024xf32, #tpu.memory_space<vmem>>, vector<8x1024xf32>
      %c0_20 = arith.constant 0 : index
      %c0_21 = arith.constant 0 : index
      %33 = vector.load %arg24[%c0_20, %c0_21] : memref<8x1xf32, #tpu.memory_space<vmem>>, vector<8x1xf32>
      %34 = vector.broadcast %33 : vector<8x1xf32> to vector<8x1024xf32>
      %35 = arith.subf %32, %34 : vector<8x1024xf32>
      %36 = math.exp %35 : vector<8x1024xf32>
      %c0_22 = arith.constant 0 : index
      %c0_23 = arith.constant 0 : index
      %37 = vector.load %arg25[%c0_22, %c0_23] : memref<8x1xf32, #tpu.memory_space<vmem>>, vector<8x1xf32>
      %38 = vector.broadcast %37 : vector<8x1xf32> to vector<8x1024xf32>
      %39 = arith.divf %36, %38 : vector<8x1024xf32>
      %c0_24 = arith.constant 0 : index
      %c0_25 = arith.constant 0 : index
      %40 = vector.load %arg20[%c0_24, %c0_25] : memref<8x1024xf32, #tpu.memory_space<vmem>>, vector<8x1024xf32>
      tpu.vector_store %arg20[%c0_24, %c0_25], %39 {strides = array<i32>} : memref<8x1024xf32, #tpu.memory_space<vmem>>, vector<8x1024xf32>,
    } else {
    }
    return
  }
  func.func @transform_1(%arg0: i32, %arg1: memref<8xi32, #tpu.memory_space<smem>>) -> (i32, i32) {
    %c0_i32 = arith.constant 0 : i32
    %c0_i32_0 = arith.constant 0 : i32
    %c0_i32_1 = arith.constant 0 : i32
    return %c0_i32, %c0_i32_0 : i32, i32
  }
  func.func @transform_2(%arg0: i32, %arg1: memref<8xi32, #tpu.memory_space<smem>>) -> (i32, i32, i32) {
    %c0_i32 = arith.constant 0 : i32
    %c0_i32_0 = arith.constant 0 : i32
    %c0_i32_1 = arith.constant 0 : i32
    %c0_i32_2 = arith.constant 0 : i32
    return %c0_i32, %c0_i32_0, %c0_i32_1 : i32, i32, i32
  }
  func.func @transform_3(%arg0: i32, %arg1: memref<8xi32, #tpu.memory_space<smem>>) -> (i32, i32) {
    %c0_i32 = arith.constant 0 : i32
    %c0_i32_0 = arith.constant 0 : i32
    %c0_i32_1 = arith.constant 0 : i32
    return %c0_i32, %c0_i32_0 : i32, i32
  }
  func.func @transform_4(%arg0: i32, %arg1: memref<8xi32, #tpu.memory_space<smem>>) -> (i32, i32) {
    %c0_i32 = arith.constant 0 : i32
    %c0_i32_0 = arith.constant 0 : i32
    %c0_i32_1 = arith.constant 0 : i32
    return %c0_i32, %c0_i32_0 : i32, i32
  }
  func.func @transform_5(%arg0: i32, %arg1: memref<8xi32, #tpu.memory_space<smem>>) -> (i32, i32) {
    %c0_i32 = arith.constant 0 : i32
    %c0_i32_0 = arith.constant 0 : i32
    %c0_i32_1 = arith.constant 0 : i32
    return %c0_i32, %c0_i32_0 : i32, i32
  }
  func.func @transform_6(%arg0: i32, %arg1: memref<8xi32, #tpu.memory_space<smem>>) -> (i32, i32) {
    %c0_i32 = arith.constant 0 : i32
    %c0_i32_0 = arith.constant 0 : i32
    %c0_i32_1 = arith.constant 0 : i32
    return %c0_i32, %c0_i32_0 : i32, i32
  }
  func.func @transform_7(%arg0: i32, %arg1: memref<8xi32, #tpu.memory_space<smem>>) -> (i32, i32) {
    %c0_i32 = arith.constant 0 : i32
    %c0_i32_0 = arith.constant 0 : i32
    %c0_i32_1 = arith.constant 0 : i32
    return %c0_i32, %c0_i32_0 : i32, i32
  }
  func.func @transform_8(%arg0: i32, %arg1: memref<8xi32, #tpu.memory_space<smem>>) -> (i32, i32) {
    %c0_i32 = arith.constant 0 : i32
    %c0_i32_0 = arith.constant 0 : i32
    %c0_i32_1 = arith.constant 0 : i32
    return %c0_i32, %c0_i32_0 : i32, i32
  }
  func.func @transform_9(%arg0: i32, %arg1: memref<8xi32, #tpu.memory_space<smem>>) -> (i32, i32) {
    %c0_i32 = arith.constant 0 : i32
    %c0_i32_0 = arith.constant 0 : i32
    %c0_i32_1 = arith.constant 0 : i32
    return %c0_i32, %c0_i32_0 : i32, i32
  }
  func.func @transform_10(%arg0: i32, %arg1: memref<8xi32, #tpu.memory_space<smem>>) -> (i32, i32) {
    %c0_i32 = arith.constant 0 : i32
    %c0_i32_0 = arith.constant 0 : i32
    %c0_i32_1 = arith.constant 0 : i32
    return %c0_i32, %c0_i32_0 : i32, i32
  }
  func.func @transform_11(%arg0: i32, %arg1: memref<8xi32, #tpu.memory_space<smem>>) -> (i32, i32) {
    %c0_i32 = arith.constant 0 : i32
    %c0_i32_0 = arith.constant 0 : i32
    %c0_i32_1 = arith.constant 0 : i32
    return %c0_i32, %c0_i32_0 : i32, i32
  }
  func.func @transform_12(%arg0: i32, %arg1: memref<8xi32, #tpu.memory_space<smem>>) -> (i32, i32) {
    %c0_i32 = arith.constant 0 : i32
    %c0_i32_0 = arith.constant 0 : i32
    %c0_i32_1 = arith.constant 0 : i32
    return %c0_i32, %c0_i32_0 : i32, i32
  }
  func.func @transform_13(%arg0: i32, %arg1: memref<8xi32, #tpu.memory_space<smem>>) -> (i32, i32) {
    %c0_i32 = arith.constant 0 : i32
    %c0_i32_0 = arith.constant 0 : i32
    %c0_i32_1 = arith.constant 0 : i32
    return %c0_i32, %c0_i32_0 : i32, i32
  }
  func.func @transform_14(%arg0: i32, %arg1: memref<8xi32, #tpu.memory_space<smem>>) -> (i32, i32) {
    %c0_i32 = arith.constant 0 : i32
    %c0_i32_0 = arith.constant 0 : i32
    %c0_i32_1 = arith.constant 0 : i32
    return %c0_i32, %c0_i32_0 : i32, i32
  }
  func.func @transform_15(%arg0: i32, %arg1: memref<8xi32, #tpu.memory_space<smem>>) -> (i32, i32) {
    %c0_i32 = arith.constant 0 : i32
    %c0_i32_0 = arith.constant 0 : i32
    %c0_i32_1 = arith.constant 0 : i32
    return %c0_i32, %c0_i32_0 : i32, i32
  }
  func.func @transform_16(%arg0: i32, %arg1: memref<8xi32, #tpu.memory_space<smem>>) -> (i32, i32) {
    %c0_i32 = arith.constant 0 : i32
    %c0_i32_0 = arith.constant 0 : i32
    return %c0_i32, %arg0 : i32, i32
  }
  func.func @transform_17(%arg0: i32, %arg1: memref<8xi32, #tpu.memory_space<smem>>) -> (i32, i32) {
    %c0_i32 = arith.constant 0 : i32
    %c0_i32_0 = arith.constant 0 : i32
    return %c0_i32, %arg0 : i32, i32
  }
  func.func @transform_18(%arg0: i32, %arg1: memref<8xi32, #tpu.memory_space<smem>>) -> (i32, i32) {
    %c0_i32 = arith.constant 0 : i32
    %c0_i32_0 = arith.constant 0 : i32
    %c0_i32_1 = arith.constant 0 : i32
    return %c0_i32, %c0_i32_0 : i32, i32
  }
  func.func @transform_19(%arg0: i32, %arg1: memref<8xi32, #tpu.memory_space<smem>>) -> (i32, i32) {
    %c0_i32 = arith.constant 0 : i32
    %c0_i32_0 = arith.constant 0 : i32
    %c0_i32_1 = arith.constant 0 : i32
    return %c0_i32, %c0_i32_0 : i32, i32
  }
}

module attributes {stable_mosaic.version = 11 : i64} {
  func.func @_decoder_kernel(%arg0: i32, %arg1: memref<8xi32, #tpu.memory_space<smem>>, %arg2: memref<1000x128xf32, #tpu.memory_space<any>>, %arg3: memref<8x128xf32, #tpu.memory_space<vmem>>, %arg4: memref<8x9x128xf32, #tpu.memory_space<vmem>>, %arg5: memref<128x128xf32, #tpu.memory_space<vmem>>, %arg6: memref<128x128xf32, #tpu.memory_space<vmem>>, %arg7: memref<128x128xf32, #tpu.memory_space<vmem>>, %arg8: memref<128x128xf32, #tpu.memory_space<vmem>>, %arg9: memref<128x128xf32, #tpu.memory_space<vmem>>, %arg10: memref<128x128xf32, #tpu.memory_space<vmem>>, %arg11: memref<1x128xf32, #tpu.memory_space<vmem>>, %arg12: memref<1x128xf32, #tpu.memory_space<vmem>>, %arg13: memref<1x128xf32, #tpu.memory_space<vmem>>, %arg14: memref<1x128xf32, #tpu.memory_space<vmem>>, %arg15: memref<128x128xf32, #tpu.memory_space<vmem>>, %arg16: memref<128x128xf32, #tpu.memory_space<vmem>>, %arg17: memref<1x128xf32, #tpu.memory_space<vmem>>, %arg18: memref<128x512xf32, #tpu.memory_space<vmem>>, %arg19: memref<1x512xf32, #tpu.memory_space<vmem>>, %arg20: memref<8x1024xf32, #tpu.memory_space<vmem>>, %arg21: memref<8x128xf32, #tpu.memory_space<vmem>>, %arg22: memref<8x128xf32, #tpu.memory_space<vmem>>, %arg23: memref<8x128xf32, #tpu.memory_space<vmem>>, %arg24: memref<8x1xf32, #tpu.memory_space<vmem>>, %arg25: memref<8x1xf32, #tpu.memory_space<vmem>>, %arg26: memref<8x!tpu.dma_semaphore, #tpu.memory_space<semaphore_mem>>) attributes {dimension_semantics = [#tpu.dimension_semantics<arbitrary>], iteration_bounds = array<i64: 2>, scalar_prefetch = 1 : i64, scratch_operands = 5 : i64, tpu.core_type = #tpu.core_type<tc>, window_params = [{}, {pipeline_mode = #tpu.pipeline_mode<synchronous>, transform_indices = @transform_1, window_bounds = array<i64: 8, 128>}, {pipeline_mode = #tpu.pipeline_mode<synchronous>, transform_indices = @transform_2, window_bounds = array<i64: 8, 9, 128>}, {pipeline_mode = #tpu.pipeline_mode<synchronous>, transform_indices = @transform_3, window_bounds = array<i64: 128, 128>}, {pipeline_mode = #tpu.pipeline_mode<synchronous>, transform_indices = @transform_4, window_bounds = array<i64: 128, 128>}, {pipeline_mode = #tpu.pipeline_mode<synchronous>, transform_indices = @transform_5, window_bounds = array<i64: 128, 128>}, {pipeline_mode = #tpu.pipeline_mode<synchronous>, transform_indices = @transform_6, window_bounds = array<i64: 128, 128>}, {pipeline_mode = #tpu.pipeline_mode<synchronous>, transform_indices = @transform_7, window_bounds = array<i64: 128, 128>}, {pipeline_mode = #tpu.pipeline_mode<synchronous>, transform_indices = @transform_8, window_bounds = array<i64: 128, 128>}, {pipeline_mode = #tpu.pipeline_mode<synchronous>, transform_indices = @transform_9, window_bounds = array<i64: 1, 128>}, {pipeline_mode = #tpu.pipeline_mode<synchronous>, transform_indices = @transform_10, window_bounds = array<i64: 1, 128>}, {pipeline_mode = #tpu.pipeline_mode<synchronous>, transform_indices = @transform_11, window_bounds = array<i64: 1, 128>}, {pipeline_mode = #tpu.pipeline_mode<synchronous>, transform_indices = @transform_12, window_bounds = array<i64: 1, 128>}, {pipeline_mode = #tpu.pipeline_mode<synchronous>, transform_indices = @transform_13, window_bounds = array<i64: 128, 128>}, {pipeline_mode = #tpu.pipeline_mode<synchronous>, transform_indices = @transform_14, window_bounds = array<i64: 128, 128>}, {pipeline_mode = #tpu.pipeline_mode<synchronous>, transform_indices = @transform_15, window_bounds = array<i64: 1, 128>}, {transform_indices = @transform_16, window_bounds = array<i64: 128, 512>}, {transform_indices = @transform_17, window_bounds = array<i64: 1, 512>}, {pipeline_mode = #tpu.pipeline_mode<synchronous>, transform_indices = @transform_18, window_bounds = array<i64: 8, 1024>}, {pipeline_mode = #tpu.pipeline_mode<synchronous>, transform_indices = @transform_19, window_bounds = array<i64: 8, 128>}]} {
    %c0_i32 = arith.constant 0 : i32
    %0 = arith.cmpi eq, %arg0, %c0_i32 : i32
    %1 = arith.extui %0 : i1 to i32
    %c0_i32_0 = arith.constant 0 : i32
    %2 = arith.cmpi ne, %1, %c0_i32_0 : i32
    scf.if %2 {
      %c0_18 = arith.constant 0 : index
      %32 = memref.load %arg1[%c0_18] : memref<8xi32, #tpu.memory_space<smem>>
      %c0_i32_19 = arith.constant 0 : i32
      %c0_i32_20 = arith.constant 0 : i32
      %33 = tpu.memref_slice %arg2[%32, %c0_i32_20] : memref<1000x128xf32, #tpu.memory_space<any>> -> memref<1x128xf32, #tpu.memory_space<any>>
      %c0_i32_21 = arith.constant 0 : i32
      %c0_i32_22 = arith.constant 0 : i32
      %34 = tpu.memref_slice %arg22[%c0_i32_21, %c0_i32_22] : memref<8x128xf32, #tpu.memory_space<vmem>> -> memref<1x128xf32, #tpu.memory_space<vmem>>
      %35 = tpu.memref_slice %arg26[%c0_i32_19] : memref<8x!tpu.dma_semaphore, #tpu.memory_space<semaphore_mem>> -> memref<1x!tpu.dma_semaphore, #tpu.memory_space<semaphore_mem>>
      %36 = tpu.memref_squeeze %35 : memref<1x!tpu.dma_semaphore, #tpu.memory_space<semaphore_mem>> -> memref<!tpu.dma_semaphore, #tpu.memory_space<semaphore_mem>>
      tpu.enqueue_dma source(%33 : memref<1x128xf32, #tpu.memory_space<any>>) target(%34 : memref<1x128xf32, #tpu.memory_space<vmem>>) target_semaphore(%36 : memref<!tpu.dma_semaphore, #tpu.memory_space<semaphore_mem>>)
      %c1 = arith.constant 1 : index
      %37 = memref.load %arg1[%c1] : memref<8xi32, #tpu.memory_space<smem>>
      %c1_i32_23 = arith.constant 1 : i32
      %c0_i32_24 = arith.constant 0 : i32
      %38 = tpu.memref_slice %arg2[%37, %c0_i32_24] : memref<1000x128xf32, #tpu.memory_space<any>> -> memref<1x128xf32, #tpu.memory_space<any>>
      %c1_i32_25 = arith.constant 1 : i32
      %c0_i32_26 = arith.constant 0 : i32
      %39 = tpu.memref_slice %arg22[%c1_i32_25, %c0_i32_26] : memref<8x128xf32, #tpu.memory_space<vmem>> -> memref<1x128xf32, #tpu.memory_space<vmem>>
      %40 = tpu.memref_slice %arg26[%c1_i32_23] : memref<8x!tpu.dma_semaphore, #tpu.memory_space<semaphore_mem>> -> memref<1x!tpu.dma_semaphore, #tpu.memory_space<semaphore_mem>>
      %41 = tpu.memref_squeeze %40 : memref<1x!tpu.dma_semaphore, #tpu.memory_space<semaphore_mem>> -> memref<!tpu.dma_semaphore, #tpu.memory_space<semaphore_mem>>
      tpu.enqueue_dma source(%38 : memref<1x128xf32, #tpu.memory_space<any>>) target(%39 : memref<1x128xf32, #tpu.memory_space<vmem>>) target_semaphore(%41 : memref<!tpu.dma_semaphore, #tpu.memory_space<semaphore_mem>>)
      %c2 = arith.constant 2 : index
      %42 = memref.load %arg1[%c2] : memref<8xi32, #tpu.memory_space<smem>>
      %c2_i32 = arith.constant 2 : i32
      %c0_i32_27 = arith.constant 0 : i32
      %43 = tpu.memref_slice %arg2[%42, %c0_i32_27] : memref<1000x128xf32, #tpu.memory_space<any>> -> memref<1x128xf32, #tpu.memory_space<any>>
      %c2_i32_28 = arith.constant 2 : i32
      %c0_i32_29 = arith.constant 0 : i32
      %44 = tpu.memref_slice %arg22[%c2_i32_28, %c0_i32_29] : memref<8x128xf32, #tpu.memory_space<vmem>> -> memref<1x128xf32, #tpu.memory_space<vmem>>
      %45 = tpu.memref_slice %arg26[%c2_i32] : memref<8x!tpu.dma_semaphore, #tpu.memory_space<semaphore_mem>> -> memref<1x!tpu.dma_semaphore, #tpu.memory_space<semaphore_mem>>
      %46 = tpu.memref_squeeze %45 : memref<1x!tpu.dma_semaphore, #tpu.memory_space<semaphore_mem>> -> memref<!tpu.dma_semaphore, #tpu.memory_space<semaphore_mem>>
      tpu.enqueue_dma source(%43 : memref<1x128xf32, #tpu.memory_space<any>>) target(%44 : memref<1x128xf32, #tpu.memory_space<vmem>>) target_semaphore(%46 : memref<!tpu.dma_semaphore, #tpu.memory_space<semaphore_mem>>)
      %c3 = arith.constant 3 : index
      %47 = memref.load %arg1[%c3] : memref<8xi32, #tpu.memory_space<smem>>
      %c3_i32 = arith.constant 3 : i32
      %c0_i32_30 = arith.constant 0 : i32
      %48 = tpu.memref_slice %arg2[%47, %c0_i32_30] : memref<1000x128xf32, #tpu.memory_space<any>> -> memref<1x128xf32, #tpu.memory_space<any>>
      %c3_i32_31 = arith.constant 3 : i32
      %c0_i32_32 = arith.constant 0 : i32
      %49 = tpu.memref_slice %arg22[%c3_i32_31, %c0_i32_32] : memref<8x128xf32, #tpu.memory_space<vmem>> -> memref<1x128xf32, #tpu.memory_space<vmem>>
      %50 = tpu.memref_slice %arg26[%c3_i32] : memref<8x!tpu.dma_semaphore, #tpu.memory_space<semaphore_mem>> -> memref<1x!tpu.dma_semaphore, #tpu.memory_space<semaphore_mem>>
      %51 = tpu.memref_squeeze %50 : memref<1x!tpu.dma_semaphore, #tpu.memory_space<semaphore_mem>> -> memref<!tpu.dma_semaphore, #tpu.memory_space<semaphore_mem>>
      tpu.enqueue_dma source(%48 : memref<1x128xf32, #tpu.memory_space<any>>) target(%49 : memref<1x128xf32, #tpu.memory_space<vmem>>) target_semaphore(%51 : memref<!tpu.dma_semaphore, #tpu.memory_space<semaphore_mem>>)
      %c4 = arith.constant 4 : index
      %52 = memref.load %arg1[%c4] : memref<8xi32, #tpu.memory_space<smem>>
      %c4_i32 = arith.constant 4 : i32
      %c0_i32_33 = arith.constant 0 : i32
      %53 = tpu.memref_slice %arg2[%52, %c0_i32_33] : memref<1000x128xf32, #tpu.memory_space<any>> -> memref<1x128xf32, #tpu.memory_space<any>>
      %c4_i32_34 = arith.constant 4 : i32
      %c0_i32_35 = arith.constant 0 : i32
      %54 = tpu.memref_slice %arg22[%c4_i32_34, %c0_i32_35] : memref<8x128xf32, #tpu.memory_space<vmem>> -> memref<1x128xf32, #tpu.memory_space<vmem>>
      %55 = tpu.memref_slice %arg26[%c4_i32] : memref<8x!tpu.dma_semaphore, #tpu.memory_space<semaphore_mem>> -> memref<1x!tpu.dma_semaphore, #tpu.memory_space<semaphore_mem>>
      %56 = tpu.memref_squeeze %55 : memref<1x!tpu.dma_semaphore, #tpu.memory_space<semaphore_mem>> -> memref<!tpu.dma_semaphore, #tpu.memory_space<semaphore_mem>>
      tpu.enqueue_dma source(%53 : memref<1x128xf32, #tpu.memory_space<any>>) target(%54 : memref<1x128xf32, #tpu.memory_space<vmem>>) target_semaphore(%56 : memref<!tpu.dma_semaphore, #tpu.memory_space<semaphore_mem>>)
      %c5 = arith.constant 5 : index
      %57 = memref.load %arg1[%c5] : memref<8xi32, #tpu.memory_space<smem>>
      %c5_i32 = arith.constant 5 : i32
      %c0_i32_36 = arith.constant 0 : i32
      %58 = tpu.memref_slice %arg2[%57, %c0_i32_36] : memref<1000x128xf32, #tpu.memory_space<any>> -> memref<1x128xf32, #tpu.memory_space<any>>
      %c5_i32_37 = arith.constant 5 : i32
      %c0_i32_38 = arith.constant 0 : i32
      %59 = tpu.memref_slice %arg22[%c5_i32_37, %c0_i32_38] : memref<8x128xf32, #tpu.memory_space<vmem>> -> memref<1x128xf32, #tpu.memory_space<vmem>>
      %60 = tpu.memref_slice %arg26[%c5_i32] : memref<8x!tpu.dma_semaphore, #tpu.memory_space<semaphore_mem>> -> memref<1x!tpu.dma_semaphore, #tpu.memory_space<semaphore_mem>>
      %61 = tpu.memref_squeeze %60 : memref<1x!tpu.dma_semaphore, #tpu.memory_space<semaphore_mem>> -> memref<!tpu.dma_semaphore, #tpu.memory_space<semaphore_mem>>
      tpu.enqueue_dma source(%58 : memref<1x128xf32, #tpu.memory_space<any>>) target(%59 : memref<1x128xf32, #tpu.memory_space<vmem>>) target_semaphore(%61 : memref<!tpu.dma_semaphore, #tpu.memory_space<semaphore_mem>>)
      %c6 = arith.constant 6 : index
      %62 = memref.load %arg1[%c6] : memref<8xi32, #tpu.memory_space<smem>>
      %c6_i32 = arith.constant 6 : i32
      %c0_i32_39 = arith.constant 0 : i32
      %63 = tpu.memref_slice %arg2[%62, %c0_i32_39] : memref<1000x128xf32, #tpu.memory_space<any>> -> memref<1x128xf32, #tpu.memory_space<any>>
      %c6_i32_40 = arith.constant 6 : i32
      %c0_i32_41 = arith.constant 0 : i32
      %64 = tpu.memref_slice %arg22[%c6_i32_40, %c0_i32_41] : memref<8x128xf32, #tpu.memory_space<vmem>> -> memref<1x128xf32, #tpu.memory_space<vmem>>
      %65 = tpu.memref_slice %arg26[%c6_i32] : memref<8x!tpu.dma_semaphore, #tpu.memory_space<semaphore_mem>> -> memref<1x!tpu.dma_semaphore, #tpu.memory_space<semaphore_mem>>
      %66 = tpu.memref_squeeze %65 : memref<1x!tpu.dma_semaphore, #tpu.memory_space<semaphore_mem>> -> memref<!tpu.dma_semaphore, #tpu.memory_space<semaphore_mem>>
      tpu.enqueue_dma source(%63 : memref<1x128xf32, #tpu.memory_space<any>>) target(%64 : memref<1x128xf32, #tpu.memory_space<vmem>>) target_semaphore(%66 : memref<!tpu.dma_semaphore, #tpu.memory_space<semaphore_mem>>)
      %c7 = arith.constant 7 : index
      %67 = memref.load %arg1[%c7] : memref<8xi32, #tpu.memory_space<smem>>
      %c7_i32 = arith.constant 7 : i32
      %c0_i32_42 = arith.constant 0 : i32
      %68 = tpu.memref_slice %arg2[%67, %c0_i32_42] : memref<1000x128xf32, #tpu.memory_space<any>> -> memref<1x128xf32, #tpu.memory_space<any>>
      %c7_i32_43 = arith.constant 7 : i32
      %c0_i32_44 = arith.constant 0 : i32
      %69 = tpu.memref_slice %arg22[%c7_i32_43, %c0_i32_44] : memref<8x128xf32, #tpu.memory_space<vmem>> -> memref<1x128xf32, #tpu.memory_space<vmem>>
      %70 = tpu.memref_slice %arg26[%c7_i32] : memref<8x!tpu.dma_semaphore, #tpu.memory_space<semaphore_mem>> -> memref<1x!tpu.dma_semaphore, #tpu.memory_space<semaphore_mem>>
      %71 = tpu.memref_squeeze %70 : memref<1x!tpu.dma_semaphore, #tpu.memory_space<semaphore_mem>> -> memref<!tpu.dma_semaphore, #tpu.memory_space<semaphore_mem>>
      tpu.enqueue_dma source(%68 : memref<1x128xf32, #tpu.memory_space<any>>) target(%69 : memref<1x128xf32, #tpu.memory_space<vmem>>) target_semaphore(%71 : memref<!tpu.dma_semaphore, #tpu.memory_space<semaphore_mem>>)
      %c0_45 = arith.constant 0 : index
      %c0_46 = arith.constant 0 : index
      %72 = vector.load %arg3[%c0_45, %c0_46] : memref<8x128xf32, #tpu.memory_space<vmem>>, vector<8x128xf32>
      %c0_47 = arith.constant 0 : index
      %c0_48 = arith.constant 0 : index
      %73 = vector.load %arg8[%c0_47, %c0_48] : memref<128x128xf32, #tpu.memory_space<vmem>>, vector<128x128xf32>
      %cst_49 = arith.constant dense<0.000000e+00> : vector<8x128xf32>
      %74 = tpu.matmul %72, %73, %cst_49 {dimension_numbers = #tpu.dot_dimension_numbers<[1], [0], [0], [1], [0, 0, 1, 1], [], []>} : vector<8x128xf32>, vector<128x128xf32>, vector<8x128xf32> -> vector<8x128xf32>
      %c0_50 = arith.constant 0 : index
      %c0_51 = arith.constant 0 : index
      %75 = vector.load %arg11[%c0_50, %c0_51] : memref<1x128xf32, #tpu.memory_space<vmem>>, vector<1x128xf32>
      %76 = vector.broadcast %75 : vector<1x128xf32> to vector<8x128xf32>
      %77 = arith.addf %74, %76 : vector<8x128xf32>
      %c0_52 = arith.constant 0 : index
      %c0_53 = arith.constant 0 : index
      %78 = vector.load %arg9[%c0_52, %c0_53] : memref<128x128xf32, #tpu.memory_space<vmem>>, vector<128x128xf32>
      %cst_54 = arith.constant dense<0.000000e+00> : vector<8x128xf32>
      %79 = tpu.matmul %72, %78, %cst_54 {dimension_numbers = #tpu.dot_dimension_numbers<[1], [0], [0], [1], [0, 0, 1, 1], [], []>} : vector<8x128xf32>, vector<128x128xf32>, vector<8x128xf32> -> vector<8x128xf32>
      %c0_55 = arith.constant 0 : index
      %c0_56 = arith.constant 0 : index
      %80 = vector.load %arg12[%c0_55, %c0_56] : memref<1x128xf32, #tpu.memory_space<vmem>>, vector<1x128xf32>
      %81 = vector.broadcast %80 : vector<1x128xf32> to vector<8x128xf32>
      %82 = arith.addf %79, %81 : vector<8x128xf32>
      %c0_57 = arith.constant 0 : index
      %c0_58 = arith.constant 0 : index
      %83 = vector.load %arg10[%c0_57, %c0_58] : memref<128x128xf32, #tpu.memory_space<vmem>>, vector<128x128xf32>
      %cst_59 = arith.constant dense<0.000000e+00> : vector<8x128xf32>
      %84 = tpu.matmul %72, %83, %cst_59 {dimension_numbers = #tpu.dot_dimension_numbers<[1], [0], [0], [1], [0, 0, 1, 1], [], []>} : vector<8x128xf32>, vector<128x128xf32>, vector<8x128xf32> -> vector<8x128xf32>
      %c0_60 = arith.constant 0 : index
      %c0_61 = arith.constant 0 : index
      %85 = vector.load %arg14[%c0_60, %c0_61] : memref<1x128xf32, #tpu.memory_space<vmem>>, vector<1x128xf32>
      %86 = vector.broadcast %85 : vector<1x128xf32> to vector<8x128xf32>
      %87 = arith.addf %84, %86 : vector<8x128xf32>
      %c0_i32_62 = arith.constant 0 : i32
      %c0_i32_63 = arith.constant 0 : i32
      %88 = tpu.memref_slice %arg2[%32, %c0_i32_63] : memref<1000x128xf32, #tpu.memory_space<any>> -> memref<1x128xf32, #tpu.memory_space<any>>
      %c0_i32_64 = arith.constant 0 : i32
      %c0_i32_65 = arith.constant 0 : i32
      %89 = tpu.memref_slice %arg22[%c0_i32_64, %c0_i32_65] : memref<8x128xf32, #tpu.memory_space<vmem>> -> memref<1x128xf32, #tpu.memory_space<vmem>>
      %90 = tpu.memref_slice %arg26[%c0_i32_62] : memref<8x!tpu.dma_semaphore, #tpu.memory_space<semaphore_mem>> -> memref<1x!tpu.dma_semaphore, #tpu.memory_space<semaphore_mem>>
      %91 = tpu.memref_squeeze %90 : memref<1x!tpu.dma_semaphore, #tpu.memory_space<semaphore_mem>> -> memref<!tpu.dma_semaphore, #tpu.memory_space<semaphore_mem>>
      tpu.wait_dma2 semaphore(%91 : memref<!tpu.dma_semaphore, #tpu.memory_space<semaphore_mem>>) src(%88 : memref<1x128xf32, #tpu.memory_space<any>>) dst(%89 : memref<1x128xf32, #tpu.memory_space<vmem>>)
      %c1_i32_66 = arith.constant 1 : i32
      %c0_i32_67 = arith.constant 0 : i32
      %92 = tpu.memref_slice %arg2[%37, %c0_i32_67] : memref<1000x128xf32, #tpu.memory_space<any>> -> memref<1x128xf32, #tpu.memory_space<any>>
      %c1_i32_68 = arith.constant 1 : i32
      %c0_i32_69 = arith.constant 0 : i32
      %93 = tpu.memref_slice %arg22[%c1_i32_68, %c0_i32_69] : memref<8x128xf32, #tpu.memory_space<vmem>> -> memref<1x128xf32, #tpu.memory_space<vmem>>
      %94 = tpu.memref_slice %arg26[%c1_i32_66] : memref<8x!tpu.dma_semaphore, #tpu.memory_space<semaphore_mem>> -> memref<1x!tpu.dma_semaphore, #tpu.memory_space<semaphore_mem>>
      %95 = tpu.memref_squeeze %94 : memref<1x!tpu.dma_semaphore, #tpu.memory_space<semaphore_mem>> -> memref<!tpu.dma_semaphore, #tpu.memory_space<semaphore_mem>>
      tpu.wait_dma2 semaphore(%95 : memref<!tpu.dma_semaphore, #tpu.memory_space<semaphore_mem>>) src(%92 : memref<1x128xf32, #tpu.memory_space<any>>) dst(%93 : memref<1x128xf32, #tpu.memory_space<vmem>>)
      %c2_i32_70 = arith.constant 2 : i32
      %c0_i32_71 = arith.constant 0 : i32
      %96 = tpu.memref_slice %arg2[%42, %c0_i32_71] : memref<1000x128xf32, #tpu.memory_space<any>> -> memref<1x128xf32, #tpu.memory_space<any>>
      %c2_i32_72 = arith.constant 2 : i32
      %c0_i32_73 = arith.constant 0 : i32
      %97 = tpu.memref_slice %arg22[%c2_i32_72, %c0_i32_73] : memref<8x128xf32, #tpu.memory_space<vmem>> -> memref<1x128xf32, #tpu.memory_space<vmem>>
      %98 = tpu.memref_slice %arg26[%c2_i32_70] : memref<8x!tpu.dma_semaphore, #tpu.memory_space<semaphore_mem>> -> memref<1x!tpu.dma_semaphore, #tpu.memory_space<semaphore_mem>>
      %99 = tpu.memref_squeeze %98 : memref<1x!tpu.dma_semaphore, #tpu.memory_space<semaphore_mem>> -> memref<!tpu.dma_semaphore, #tpu.memory_space<semaphore_mem>>
      tpu.wait_dma2 semaphore(%99 : memref<!tpu.dma_semaphore, #tpu.memory_space<semaphore_mem>>) src(%96 : memref<1x128xf32, #tpu.memory_space<any>>) dst(%97 : memref<1x128xf32, #tpu.memory_space<vmem>>)
      %c3_i32_74 = arith.constant 3 : i32
      %c0_i32_75 = arith.constant 0 : i32
      %100 = tpu.memref_slice %arg2[%47, %c0_i32_75] : memref<1000x128xf32, #tpu.memory_space<any>> -> memref<1x128xf32, #tpu.memory_space<any>>
      %c3_i32_76 = arith.constant 3 : i32
      %c0_i32_77 = arith.constant 0 : i32
      %101 = tpu.memref_slice %arg22[%c3_i32_76, %c0_i32_77] : memref<8x128xf32, #tpu.memory_space<vmem>> -> memref<1x128xf32, #tpu.memory_space<vmem>>
      %102 = tpu.memref_slice %arg26[%c3_i32_74] : memref<8x!tpu.dma_semaphore, #tpu.memory_space<semaphore_mem>> -> memref<1x!tpu.dma_semaphore, #tpu.memory_space<semaphore_mem>>
      %103 = tpu.memref_squeeze %102 : memref<1x!tpu.dma_semaphore, #tpu.memory_space<semaphore_mem>> -> memref<!tpu.dma_semaphore, #tpu.memory_space<semaphore_mem>>
      tpu.wait_dma2 semaphore(%103 : memref<!tpu.dma_semaphore, #tpu.memory_space<semaphore_mem>>) src(%100 : memref<1x128xf32, #tpu.memory_space<any>>) dst(%101 : memref<1x128xf32, #tpu.memory_space<vmem>>)
      %c4_i32_78 = arith.constant 4 : i32
      %c0_i32_79 = arith.constant 0 : i32
      %104 = tpu.memref_slice %arg2[%52, %c0_i32_79] : memref<1000x128xf32, #tpu.memory_space<any>> -> memref<1x128xf32, #tpu.memory_space<any>>
      %c4_i32_80 = arith.constant 4 : i32
      %c0_i32_81 = arith.constant 0 : i32
      %105 = tpu.memref_slice %arg22[%c4_i32_80, %c0_i32_81] : memref<8x128xf32, #tpu.memory_space<vmem>> -> memref<1x128xf32, #tpu.memory_space<vmem>>
      %106 = tpu.memref_slice %arg26[%c4_i32_78] : memref<8x!tpu.dma_semaphore, #tpu.memory_space<semaphore_mem>> -> memref<1x!tpu.dma_semaphore, #tpu.memory_space<semaphore_mem>>
      %107 = tpu.memref_squeeze %106 : memref<1x!tpu.dma_semaphore, #tpu.memory_space<semaphore_mem>> -> memref<!tpu.dma_semaphore, #tpu.memory_space<semaphore_mem>>
      tpu.wait_dma2 semaphore(%107 : memref<!tpu.dma_semaphore, #tpu.memory_space<semaphore_mem>>) src(%104 : memref<1x128xf32, #tpu.memory_space<any>>) dst(%105 : memref<1x128xf32, #tpu.memory_space<vmem>>)
      %c5_i32_82 = arith.constant 5 : i32
      %c0_i32_83 = arith.constant 0 : i32
      %108 = tpu.memref_slice %arg2[%57, %c0_i32_83] : memref<1000x128xf32, #tpu.memory_space<any>> -> memref<1x128xf32, #tpu.memory_space<any>>
      %c5_i32_84 = arith.constant 5 : i32
      %c0_i32_85 = arith.constant 0 : i32
      %109 = tpu.memref_slice %arg22[%c5_i32_84, %c0_i32_85] : memref<8x128xf32, #tpu.memory_space<vmem>> -> memref<1x128xf32, #tpu.memory_space<vmem>>
      %110 = tpu.memref_slice %arg26[%c5_i32_82] : memref<8x!tpu.dma_semaphore, #tpu.memory_space<semaphore_mem>> -> memref<1x!tpu.dma_semaphore, #tpu.memory_space<semaphore_mem>>
      %111 = tpu.memref_squeeze %110 : memref<1x!tpu.dma_semaphore, #tpu.memory_space<semaphore_mem>> -> memref<!tpu.dma_semaphore, #tpu.memory_space<semaphore_mem>>
      tpu.wait_dma2 semaphore(%111 : memref<!tpu.dma_semaphore, #tpu.memory_space<semaphore_mem>>) src(%108 : memref<1x128xf32, #tpu.memory_space<any>>) dst(%109 : memref<1x128xf32, #tpu.memory_space<vmem>>)
      %c6_i32_86 = arith.constant 6 : i32
      %c0_i32_87 = arith.constant 0 : i32
      %112 = tpu.memref_slice %arg2[%62, %c0_i32_87] : memref<1000x128xf32, #tpu.memory_space<any>> -> memref<1x128xf32, #tpu.memory_space<any>>
      %c6_i32_88 = arith.constant 6 : i32
      %c0_i32_89 = arith.constant 0 : i32
      %113 = tpu.memref_slice %arg22[%c6_i32_88, %c0_i32_89] : memref<8x128xf32, #tpu.memory_space<vmem>> -> memref<1x128xf32, #tpu.memory_space<vmem>>
      %114 = tpu.memref_slice %arg26[%c6_i32_86] : memref<8x!tpu.dma_semaphore, #tpu.memory_space<semaphore_mem>> -> memref<1x!tpu.dma_semaphore, #tpu.memory_space<semaphore_mem>>
      %115 = tpu.memref_squeeze %114 : memref<1x!tpu.dma_semaphore, #tpu.memory_space<semaphore_mem>> -> memref<!tpu.dma_semaphore, #tpu.memory_space<semaphore_mem>>
      tpu.wait_dma2 semaphore(%115 : memref<!tpu.dma_semaphore, #tpu.memory_space<semaphore_mem>>) src(%112 : memref<1x128xf32, #tpu.memory_space<any>>) dst(%113 : memref<1x128xf32, #tpu.memory_space<vmem>>)
      %c7_i32_90 = arith.constant 7 : i32
      %c0_i32_91 = arith.constant 0 : i32
      %116 = tpu.memref_slice %arg2[%67, %c0_i32_91] : memref<1000x128xf32, #tpu.memory_space<any>> -> memref<1x128xf32, #tpu.memory_space<any>>
      %c7_i32_92 = arith.constant 7 : i32
      %c0_i32_93 = arith.constant 0 : i32
      %117 = tpu.memref_slice %arg22[%c7_i32_92, %c0_i32_93] : memref<8x128xf32, #tpu.memory_space<vmem>> -> memref<1x128xf32, #tpu.memory_space<vmem>>
      %118 = tpu.memref_slice %arg26[%c7_i32_90] : memref<8x!tpu.dma_semaphore, #tpu.memory_space<semaphore_mem>> -> memref<1x!tpu.dma_semaphore, #tpu.memory_space<semaphore_mem>>
      %119 = tpu.memref_squeeze %118 : memref<1x!tpu.dma_semaphore, #tpu.memory_space<semaphore_mem>> -> memref<!tpu.dma_semaphore, #tpu.memory_space<semaphore_mem>>
      tpu.wait_dma2 semaphore(%119 : memref<!tpu.dma_semaphore, #tpu.memory_space<semaphore_mem>>) src(%116 : memref<1x128xf32, #tpu.memory_space<any>>) dst(%117 : memref<1x128xf32, #tpu.memory_space<vmem>>)
      %c0_94 = arith.constant 0 : index
      %c0_95 = arith.constant 0 : index
      %120 = vector.load %arg22[%c0_94, %c0_95] : memref<8x128xf32, #tpu.memory_space<vmem>>, vector<8x128xf32>
      %c0_96 = arith.constant 0 : index
      %c0_97 = arith.constant 0 : index
      %121 = vector.load %arg5[%c0_96, %c0_97] : memref<128x128xf32, #tpu.memory_space<vmem>>, vector<128x128xf32>
      %cst_98 = arith.constant dense<0.000000e+00> : vector<8x128xf32>
      %122 = tpu.matmul %120, %121, %cst_98 {dimension_numbers = #tpu.dot_dimension_numbers<[1], [0], [0], [1], [0, 0, 1, 1], [], []>} : vector<8x128xf32>, vector<128x128xf32>, vector<8x128xf32> -> vector<8x128xf32>
      %123 = arith.addf %122, %77 : vector<8x128xf32>
      %124 = arith.negf %123 : vector<8x128xf32>
      %125 = math.exp %124 : vector<8x128xf32>
      %cst_99 = arith.constant 1.000000e+00 : f32
      %126 = vector.broadcast %cst_99 : f32 to vector<8x128xf32>
      %127 = arith.addf %126, %125 : vector<8x128xf32>
      %128 = arith.divf %126, %127 : vector<8x128xf32>
      %c0_100 = arith.constant 0 : index
      %c0_101 = arith.constant 0 : index
      %129 = vector.load %arg6[%c0_100, %c0_101] : memref<128x128xf32, #tpu.memory_space<vmem>>, vector<128x128xf32>
      %cst_102 = arith.constant dense<0.000000e+00> : vector<8x128xf32>
      %130 = tpu.matmul %120, %129, %cst_102 {dimension_numbers = #tpu.dot_dimension_numbers<[1], [0], [0], [1], [0, 0, 1, 1], [], []>} : vector<8x128xf32>, vector<128x128xf32>, vector<8x128xf32> -> vector<8x128xf32>
      %131 = arith.addf %130, %82 : vector<8x128xf32>
      %132 = arith.negf %131 : vector<8x128xf32>
      %133 = math.exp %132 : vector<8x128xf32>
      %cst_103 = arith.constant 1.000000e+00 : f32
      %134 = vector.broadcast %cst_103 : f32 to vector<8x128xf32>
      %135 = arith.addf %134, %133 : vector<8x128xf32>
      %136 = arith.divf %134, %135 : vector<8x128xf32>
      %c0_104 = arith.constant 0 : index
      %c0_105 = arith.constant 0 : index
      %137 = vector.load %arg7[%c0_104, %c0_105] : memref<128x128xf32, #tpu.memory_space<vmem>>, vector<128x128xf32>
      %cst_106 = arith.constant dense<0.000000e+00> : vector<8x128xf32>
      %138 = tpu.matmul %120, %137, %cst_106 {dimension_numbers = #tpu.dot_dimension_numbers<[1], [0], [0], [1], [0, 0, 1, 1], [], []>} : vector<8x128xf32>, vector<128x128xf32>, vector<8x128xf32> -> vector<8x128xf32>
      %c0_107 = arith.constant 0 : index
      %c0_108 = arith.constant 0 : index
      %139 = vector.load %arg13[%c0_107, %c0_108] : memref<1x128xf32, #tpu.memory_space<vmem>>, vector<1x128xf32>
      %140 = vector.broadcast %139 : vector<1x128xf32> to vector<8x128xf32>
      %141 = arith.addf %138, %140 : vector<8x128xf32>
      %142 = arith.mulf %128, %87 : vector<8x128xf32>
      %143 = arith.addf %141, %142 : vector<8x128xf32>
      %144 = math.tanh %143 : vector<8x128xf32>
      %cst_109 = arith.constant 1.000000e+00 : f32
      %145 = vector.broadcast %cst_109 : f32 to vector<8x128xf32>
      %146 = arith.subf %145, %136 : vector<8x128xf32>
      %147 = arith.mulf %146, %144 : vector<8x128xf32>
      %148 = arith.mulf %136, %72 : vector<8x128xf32>
      %149 = arith.addf %147, %148 : vector<8x128xf32>
      %c0_110 = arith.constant 0 : index
      %c0_111 = arith.constant 0 : index
      %c0_112 = arith.constant 0 : index
      %150 = vector.load %arg4[%c0_110, %c0_111, %c0_112] : memref<8x9x128xf32, #tpu.memory_space<vmem>>, vector<8x9x128xf32>
      %151 = vector.shape_cast %149 : vector<8x128xf32> to vector<8x1x128xf32>
      %152 = vector.broadcast %151 : vector<8x1x128xf32> to vector<8x9x128xf32>
      %153 = arith.mulf %152, %150 : vector<8x9x128xf32>
      %cst_113 = arith.constant dense<0.000000e+00> : vector<8x9xf32>
      %154 = vector.multi_reduction <add>, %153, %cst_113 [2] : vector<8x9x128xf32> to vector<8x9xf32>
      %cst_114 = arith.constant dense<0xFF800000> : vector<8xf32>
      %155 = vector.multi_reduction <maximumf>, %154, %cst_114 [1] : vector<8x9xf32> to vector<8xf32>
      %156 = vector.shape_cast %155 : vector<8xf32> to vector<8x1xf32>
      %157 = vector.broadcast %156 : vector<8x1xf32> to vector<8x9xf32>
      %158 = arith.subf %154, %157 : vector<8x9xf32>
      %159 = math.exp %158 : vector<8x9xf32>
      %cst_115 = arith.constant dense<0.000000e+00> : vector<8xf32>
      %160 = vector.multi_reduction <add>, %159, %cst_115 [1] : vector<8x9xf32> to vector<8xf32>
      %161 = vector.shape_cast %160 : vector<8xf32> to vector<8x1xf32>
      %162 = tpu.reciprocal %161 {approx = true} : vector<8x1xf32> -> vector<8x1xf32>
      %163 = vector.broadcast %162 : vector<8x1xf32> to vector<8x9xf32>
      %164 = arith.mulf %159, %163 : vector<8x9xf32>
      %165 = vector.shape_cast %164 : vector<8x9xf32> to vector<8x9x1xf32>
      %166 = vector.broadcast %165 : vector<8x9x1xf32> to vector<8x9x128xf32>
      %167 = arith.mulf %166, %150 : vector<8x9x128xf32>
      %cst_116 = arith.constant dense<0.000000e+00> : vector<8x128xf32>
      %168 = vector.multi_reduction <add>, %167, %cst_116 [1] : vector<8x9x128xf32> to vector<8x128xf32>
      %c0_117 = arith.constant 0 : index
      %c0_118 = arith.constant 0 : index
      %169 = vector.load %arg15[%c0_117, %c0_118] : memref<128x128xf32, #tpu.memory_space<vmem>>, vector<128x128xf32>
      %cst_119 = arith.constant dense<0.000000e+00> : vector<8x128xf32>
      %170 = tpu.matmul %149, %169, %cst_119 {dimension_numbers = #tpu.dot_dimension_numbers<[1], [0], [0], [1], [0, 0, 1, 1], [], []>} : vector<8x128xf32>, vector<128x128xf32>, vector<8x128xf32> -> vector<8x128xf32>
      %c0_120 = arith.constant 0 : index
      %c0_121 = arith.constant 0 : index
      %171 = vector.load %arg16[%c0_120, %c0_121] : memref<128x128xf32, #tpu.memory_space<vmem>>, vector<128x128xf32>
      %cst_122 = arith.constant dense<0.000000e+00> : vector<8x128xf32>
      %172 = tpu.matmul %168, %171, %cst_122 {dimension_numbers = #tpu.dot_dimension_numbers<[1], [0], [0], [1], [0, 0, 1, 1], [], []>} : vector<8x128xf32>, vector<128x128xf32>, vector<8x128xf32> -> vector<8x128xf32>
      %173 = arith.addf %170, %172 : vector<8x128xf32>
      %c0_123 = arith.constant 0 : index
      %c0_124 = arith.constant 0 : index
      %174 = vector.load %arg17[%c0_123, %c0_124] : memref<1x128xf32, #tpu.memory_space<vmem>>, vector<1x128xf32>
      %175 = vector.broadcast %174 : vector<1x128xf32> to vector<8x128xf32>
      %176 = arith.addf %173, %175 : vector<8x128xf32>
      %177 = math.tanh %176 : vector<8x128xf32>
      %c0_125 = arith.constant 0 : index
      %c0_126 = arith.constant 0 : index
      %178 = vector.load %arg23[%c0_125, %c0_126] : memref<8x128xf32, #tpu.memory_space<vmem>>, vector<8x128xf32>
      tpu.vector_store %arg23[%c0_125, %c0_126], %177 {strides = array<i32>} : memref<8x128xf32, #tpu.memory_space<vmem>>, vector<8x128xf32>,
      %c0_127 = arith.constant 0 : index
      %c0_128 = arith.constant 0 : index
      %179 = vector.load %arg21[%c0_127, %c0_128] : memref<8x128xf32, #tpu.memory_space<vmem>>, vector<8x128xf32>
      tpu.vector_store %arg21[%c0_127, %c0_128], %149 {strides = array<i32>} : memref<8x128xf32, #tpu.memory_space<vmem>>, vector<8x128xf32>,
      %cst_129 = arith.constant 0xFF800000 : f32
      %180 = vector.broadcast %cst_129 : f32 to vector<8x1xf32>
      %c0_130 = arith.constant 0 : index
      %c0_131 = arith.constant 0 : index
      %181 = vector.load %arg24[%c0_130, %c0_131] : memref<8x1xf32, #tpu.memory_space<vmem>>, vector<8x1xf32>
      tpu.vector_store %arg24[%c0_130, %c0_131], %180 {strides = array<i32>} : memref<8x1xf32, #tpu.memory_space<vmem>>, vector<8x1xf32>,
      %cst_132 = arith.constant 0.000000e+00 : f32
      %182 = vector.broadcast %cst_132 : f32 to vector<8x1xf32>
      %c0_133 = arith.constant 0 : index
      %c0_134 = arith.constant 0 : index
      %183 = vector.load %arg25[%c0_133, %c0_134] : memref<8x1xf32, #tpu.memory_space<vmem>>, vector<8x1xf32>
      tpu.vector_store %arg25[%c0_133, %c0_134], %182 {strides = array<i32>} : memref<8x1xf32, #tpu.memory_space<vmem>>, vector<8x1xf32>,
    } else {
    }
    %c0 = arith.constant 0 : index
    %c0_1 = arith.constant 0 : index
    %3 = vector.load %arg18[%c0, %c0_1] : memref<128x512xf32, #tpu.memory_space<vmem>>, vector<128x512xf32>
    %c0_2 = arith.constant 0 : index
    %c0_3 = arith.constant 0 : index
    %4 = vector.load %arg23[%c0_2, %c0_3] : memref<8x128xf32, #tpu.memory_space<vmem>>, vector<8x128xf32>
    %cst = arith.constant dense<0.000000e+00> : vector<8x512xf32>
    %5 = tpu.matmul %4, %3, %cst {dimension_numbers = #tpu.dot_dimension_numbers<[1], [0], [0], [1], [0, 0, 1, 1], [], []>} : vector<8x128xf32>, vector<128x512xf32>, vector<8x512xf32> -> vector<8x512xf32>
    %c0_4 = arith.constant 0 : index
    %c0_5 = arith.constant 0 : index
    %6 = vector.load %arg19[%c0_4, %c0_5] : memref<1x512xf32, #tpu.memory_space<vmem>>, vector<1x512xf32>
    %7 = vector.broadcast %6 : vector<1x512xf32> to vector<8x512xf32>
    %8 = arith.addf %5, %7 : vector<8x512xf32>
    %c512_i32 = arith.constant 512 : i32
    %9 = arith.muli %arg0, %c512_i32 : i32
    %10 = tpu.assume_multiple %9, 512 : i32
    %c0_6 = arith.constant 0 : index
    %11 = arith.index_cast %10 : i32 to index
    %12 = vector.load %arg20[%c0_6, %11] : memref<8x1024xf32, #tpu.memory_space<vmem>>, vector<8x512xf32>
    tpu.vector_store %arg20[%c0_6, %11], %8 {strides = array<i32>} : memref<8x1024xf32, #tpu.memory_space<vmem>>, vector<8x512xf32>,
    %c0_7 = arith.constant 0 : index
    %c0_8 = arith.constant 0 : index
    %13 = vector.load %arg24[%c0_7, %c0_8] : memref<8x1xf32, #tpu.memory_space<vmem>>, vector<8x1xf32>
    %cst_9 = arith.constant dense<0xFF800000> : vector<8xf32>
    %14 = vector.multi_reduction <maximumf>, %8, %cst_9 [1] : vector<8x512xf32> to vector<8xf32>
    %15 = vector.shape_cast %14 : vector<8xf32> to vector<8x1xf32>
    %16 = arith.maximumf %13, %15 : vector<8x1xf32>
    %c0_10 = arith.constant 0 : index
    %c0_11 = arith.constant 0 : index
    %17 = vector.load %arg25[%c0_10, %c0_11] : memref<8x1xf32, #tpu.memory_space<vmem>>, vector<8x1xf32>
    %18 = arith.subf %13, %16 : vector<8x1xf32>
    %19 = math.exp %18 : vector<8x1xf32>
    %20 = arith.mulf %17, %19 : vector<8x1xf32>
    %21 = vector.broadcast %16 : vector<8x1xf32> to vector<8x512xf32>
    %22 = arith.subf %8, %21 : vector<8x512xf32>
    %23 = math.exp %22 : vector<8x512xf32>
    %cst_12 = arith.constant dense<0.000000e+00> : vector<8xf32>
    %24 = vector.multi_reduction <add>, %23, %cst_12 [1] : vector<8x512xf32> to vector<8xf32>
    %25 = vector.shape_cast %24 : vector<8xf32> to vector<8x1xf32>
    %26 = arith.addf %20, %25 : vector<8x1xf32>
    %c0_13 = arith.constant 0 : index
    %c0_14 = arith.constant 0 : index
    %27 = vector.load %arg25[%c0_13, %c0_14] : memref<8x1xf32, #tpu.memory_space<vmem>>, vector<8x1xf32>
    tpu.vector_store %arg25[%c0_13, %c0_14], %26 {strides = array<i32>} : memref<8x1xf32, #tpu.memory_space<vmem>>, vector<8x1xf32>,
    %c0_15 = arith.constant 0 : index
    %c0_16 = arith.constant 0 : index
    %28 = vector.load %arg24[%c0_15, %c0_16] : memref<8x1xf32, #tpu.memory_space<vmem>>, vector<8x1xf32>
    tpu.vector_store %arg24[%c0_15, %c0_16], %16 {strides = array<i32>} : memref<8x1xf32, #tpu.memory_space<vmem>>, vector<8x1xf32>,
    %c1_i32 = arith.constant 1 : i32
    %29 = arith.cmpi eq, %arg0, %c1_i32 : i32
    %30 = arith.extui %29 : i1 to i32
    %c0_i32_17 = arith.constant 0 : i32
    %31 = arith.cmpi ne, %30, %c0_i32_17 : i32
    scf.if %31 {
      %c0_18 = arith.constant 0 : index
      %c0_19 = arith.constant 0 : index
      %32 = vector.load %arg20[%c0_18, %c0_19] : memref<8x1024xf32, #tpu.memory_space<vmem>>, vector<8x1024xf32>
      %c0_20 = arith.constant 0 : index
      %c0_21 = arith.constant 0 : index
      %33 = vector.load %arg24[%c0_20, %c0_21] : memref<8x1xf32, #tpu.memory_space<vmem>>, vector<8x1xf32>
      %34 = vector.broadcast %33 : vector<8x1xf32> to vector<8x1024xf32>
      %35 = arith.subf %32, %34 : vector<8x1024xf32>
      %36 = math.exp %35 : vector<8x1024xf32>
      %c0_22 = arith.constant 0 : index
      %c0_23 = arith.constant 0 : index
      %37 = vector.load %arg25[%c0_22, %c0_23] : memref<8x1xf32, #tpu.memory_space<vmem>>, vector<8x1xf32>
      %38 = vector.broadcast %37 : vector<8x1xf32> to vector<8x1024xf32>
      %39 = arith.divf %36, %38 : vector<8x1024xf32>
      %c0_24 = arith.constant 0 : index
      %c0_25 = arith.constant 0 : index
      %40 = vector.load %arg20[%c0_24, %c0_25] : memref<8x1024xf32, #tpu.memory_space<vmem>>, vector<8x1024xf32>
      tpu.vector_store %arg20[%c0_24, %c0_25], %39 {strides = array<i32>} : memref<8x1024xf32, #tpu.memory_space<vmem>>, vector<8x1024xf32>,
    } else {
    }
    return
  }
  func.func @transform_1(%arg0: i32, %arg1: memref<8xi32, #tpu.memory_space<smem>>) -> (i32, i32) {
    %c0_i32 = arith.constant 0 : i32
    %c0_i32_0 = arith.constant 0 : i32
    %c0_i32_1 = arith.constant 0 : i32
    return %c0_i32, %c0_i32_0 : i32, i32
  }
  func.func @transform_2(%arg0: i32, %arg1: memref<8xi32, #tpu.memory_space<smem>>) -> (i32, i32, i32) {
    %c0_i32 = arith.constant 0 : i32
    %c0_i32_0 = arith.constant 0 : i32
    %c0_i32_1 = arith.constant 0 : i32
    %c0_i32_2 = arith.constant 0 : i32
    return %c0_i32, %c0_i32_0, %c0_i32_1 : i32, i32, i32
  }
  func.func @transform_3(%arg0: i32, %arg1: memref<8xi32, #tpu.memory_space<smem>>) -> (i32, i32) {
    %c0_i32 = arith.constant 0 : i32
    %c0_i32_0 = arith.constant 0 : i32
    %c0_i32_1 = arith.constant 0 : i32
    return %c0_i32, %c0_i32_0 : i32, i32
  }
  func.func @transform_4(%arg0: i32, %arg1: memref<8xi32, #tpu.memory_space<smem>>) -> (i32, i32) {
    %c0_i32 = arith.constant 0 : i32
    %c0_i32_0 = arith.constant 0 : i32
    %c0_i32_1 = arith.constant 0 : i32
    return %c0_i32, %c0_i32_0 : i32, i32
  }
  func.func @transform_5(%arg0: i32, %arg1: memref<8xi32, #tpu.memory_space<smem>>) -> (i32, i32) {
    %c0_i32 = arith.constant 0 : i32
    %c0_i32_0 = arith.constant 0 : i32
    %c0_i32_1 = arith.constant 0 : i32
    return %c0_i32, %c0_i32_0 : i32, i32
  }
  func.func @transform_6(%arg0: i32, %arg1: memref<8xi32, #tpu.memory_space<smem>>) -> (i32, i32) {
    %c0_i32 = arith.constant 0 : i32
    %c0_i32_0 = arith.constant 0 : i32
    %c0_i32_1 = arith.constant 0 : i32
    return %c0_i32, %c0_i32_0 : i32, i32
  }
  func.func @transform_7(%arg0: i32, %arg1: memref<8xi32, #tpu.memory_space<smem>>) -> (i32, i32) {
    %c0_i32 = arith.constant 0 : i32
    %c0_i32_0 = arith.constant 0 : i32
    %c0_i32_1 = arith.constant 0 : i32
    return %c0_i32, %c0_i32_0 : i32, i32
  }
  func.func @transform_8(%arg0: i32, %arg1: memref<8xi32, #tpu.memory_space<smem>>) -> (i32, i32) {
    %c0_i32 = arith.constant 0 : i32
    %c0_i32_0 = arith.constant 0 : i32
    %c0_i32_1 = arith.constant 0 : i32
    return %c0_i32, %c0_i32_0 : i32, i32
  }
  func.func @transform_9(%arg0: i32, %arg1: memref<8xi32, #tpu.memory_space<smem>>) -> (i32, i32) {
    %c0_i32 = arith.constant 0 : i32
    %c0_i32_0 = arith.constant 0 : i32
    %c0_i32_1 = arith.constant 0 : i32
    return %c0_i32, %c0_i32_0 : i32, i32
  }
  func.func @transform_10(%arg0: i32, %arg1: memref<8xi32, #tpu.memory_space<smem>>) -> (i32, i32) {
    %c0_i32 = arith.constant 0 : i32
    %c0_i32_0 = arith.constant 0 : i32
    %c0_i32_1 = arith.constant 0 : i32
    return %c0_i32, %c0_i32_0 : i32, i32
  }
  func.func @transform_11(%arg0: i32, %arg1: memref<8xi32, #tpu.memory_space<smem>>) -> (i32, i32) {
    %c0_i32 = arith.constant 0 : i32
    %c0_i32_0 = arith.constant 0 : i32
    %c0_i32_1 = arith.constant 0 : i32
    return %c0_i32, %c0_i32_0 : i32, i32
  }
  func.func @transform_12(%arg0: i32, %arg1: memref<8xi32, #tpu.memory_space<smem>>) -> (i32, i32) {
    %c0_i32 = arith.constant 0 : i32
    %c0_i32_0 = arith.constant 0 : i32
    %c0_i32_1 = arith.constant 0 : i32
    return %c0_i32, %c0_i32_0 : i32, i32
  }
  func.func @transform_13(%arg0: i32, %arg1: memref<8xi32, #tpu.memory_space<smem>>) -> (i32, i32) {
    %c0_i32 = arith.constant 0 : i32
    %c0_i32_0 = arith.constant 0 : i32
    %c0_i32_1 = arith.constant 0 : i32
    return %c0_i32, %c0_i32_0 : i32, i32
  }
  func.func @transform_14(%arg0: i32, %arg1: memref<8xi32, #tpu.memory_space<smem>>) -> (i32, i32) {
    %c0_i32 = arith.constant 0 : i32
    %c0_i32_0 = arith.constant 0 : i32
    %c0_i32_1 = arith.constant 0 : i32
    return %c0_i32, %c0_i32_0 : i32, i32
  }
  func.func @transform_15(%arg0: i32, %arg1: memref<8xi32, #tpu.memory_space<smem>>) -> (i32, i32) {
    %c0_i32 = arith.constant 0 : i32
    %c0_i32_0 = arith.constant 0 : i32
    %c0_i32_1 = arith.constant 0 : i32
    return %c0_i32, %c0_i32_0 : i32, i32
  }
  func.func @transform_16(%arg0: i32, %arg1: memref<8xi32, #tpu.memory_space<smem>>) -> (i32, i32) {
    %c0_i32 = arith.constant 0 : i32
    %c0_i32_0 = arith.constant 0 : i32
    return %c0_i32, %arg0 : i32, i32
  }
  func.func @transform_17(%arg0: i32, %arg1: memref<8xi32, #tpu.memory_space<smem>>) -> (i32, i32) {
    %c0_i32 = arith.constant 0 : i32
    %c0_i32_0 = arith.constant 0 : i32
    return %c0_i32, %arg0 : i32, i32
  }
  func.func @transform_18(%arg0: i32, %arg1: memref<8xi32, #tpu.memory_space<smem>>) -> (i32, i32) {
    %c0_i32 = arith.constant 0 : i32
    %c0_i32_0 = arith.constant 0 : i32
    %c0_i32_1 = arith.constant 0 : i32
    return %c0_i32, %c0_i32_0 : i32, i32
  }
  func.func @transform_19(%arg0: i32, %arg1: memref<8xi32, #tpu.memory_space<smem>>) -> (i32, i32) {
    %c0_i32 = arith.constant 0 : i32
    %c0_i32_0 = arith.constant 0 : i32
    %c0_i32_1 = arith.constant 0 : i32
    return %c0_i32, %c0_i32_0 : i32, i32
  }
}

</mosaic_0001>

<bundles_post_ra>
// kernel: tpu_custom_call.1
= control target key start
LH: loop header
LB: loop body
LE: loop exit
PB: predicated region body
PF: predicated region fallthrough
CT: control target
= control target key end

     0   :  { %s6183_s0 = inlined_call_operand.hbm [shape: s32[8], index: 0, kind: input, shape index: {}]   ;;  %s6184_s1 = inlined_call_operand.hbm [shape: f32[1000,128], index: 1, kind: input, shape index: {}]   ;;  %s6185_s2 = inlined_call_operand.hbm [shape: f32[8,128], index: 2, kind: input, shape index: {}]   ;;  %s6186_s3 = inlined_call_operand.vmem [shape: f32[8,9,128], index: 3, kind: input, shape index: {}]   ;;  %s6187_s4 = inlined_call_operand.vmem [shape: f32[128,128], index: 4, kind: input, shape index: {}]   ;;  %s6188_s5 = inlined_call_operand.hbm [shape: f32[128,128], index: 5, kind: input, shape index: {}]   ;;  %s6189_s6 = inlined_call_operand.hbm [shape: f32[128,128], index: 6, kind: input, shape index: {}]   ;;  %s6190_s7 = inlined_call_operand.hbm [shape: f32[128,128], index: 7, kind: input, shape index: {}]   ;;  %s6191_s8 = inlined_call_operand.hbm [shape: f32[128,128], index: 8, kind: input, shape index: {}]   ;;  %s6192_s9 = inlined_call_operand.hbm [shape: f32[128,128], index: 9, kind: input, shape index: {}]   ;;  %s6193_s10 = inlined_call_operand.hbm [shape: f32[1,128], index: 10, kind: input, shape index: {}]   ;;  %s6194_s11 = inlined_call_operand.hbm [shape: f32[1,128], index: 11, kind: input, shape index: {}]   ;;  %s6195_s12 = inlined_call_operand.hbm [shape: f32[1,128], index: 12, kind: input, shape index: {}]   ;;  %s6196_s13 = inlined_call_operand.hbm [shape: f32[1,128], index: 13, kind: input, shape index: {}]   ;;  %s6197_s14 = inlined_call_operand.hbm [shape: f32[128,128], index: 14, kind: input, shape index: {}]   ;;  %s6198_s15 = inlined_call_operand.vmem [shape: f32[128,128], index: 15, kind: input, shape index: {}]   ;;  %s6199_s16 = inlined_call_operand.hbm [shape: f32[1,128], index: 16, kind: input, shape index: {}]   ;;  %s6200_s17 = inlined_call_operand.hbm [shape: f32[128,1024], index: 17, kind: input, shape index: {}]   ;;  %s6201_s18 = inlined_call_operand.vmem [shape: f32[1,1024], index: 18, kind: input, shape index: {}]   ;;  %s6202_s19 = inlined_call_operand.hbm [shape: f32[8,1024], index: 19, kind: output, shape index: {0}]   ;;  %s6203_s20 = inlined_call_operand.hbm [shape: f32[8,128], index: 20, kind: output, shape index: {1}]  }
   0x1   :  { %6226 = sst [smem:[#allocation71_spill]] %s6183_s0 }
   0x2   :  { %6227 = sst [smem:[#allocation72_spill]] %s6184_s1  ;;  %s6241_s23 = sld [smem:[#allocation71_spill]] }
   0x3   :  { %6228 = sst [smem:[#allocation73_spill]] %s6185_s2 }
   0x4   :  { %6229 = sst [smem:[#allocation74_spill]] %s6186_s3 }
   0x5   :  { %6230 = sst [smem:[#allocation75_spill]] %s6187_s4 }
   0x6   :  { %6231 = sst [smem:[#allocation76_spill]] %s6188_s5 }
   0x7   :  { %6232 = sst [smem:[#allocation77_spill]] %s6189_s6 }
   0x8   :  { %6233 = sst [smem:[#allocation78_spill]] %s6190_s7 }
   0x9   :  { %6234 = sst [smem:[#allocation79_spill]] %s6191_s8 }
   0xa   :  { %6235 = sst [smem:[#allocation80_spill]] %s6197_s14  ;;  %s4052_s14 = scalar_lea.hbm %s6241_s23, 16 }
   0xb   :  { %6236 = sst [smem:[#allocation81_spill]] %s6198_s15  ;;  %p4053_p0 = scmp.ne.s32.totalorder %s6241_s23, %s4052_s14 }
   0xc   :  { %6237 = sst [smem:[#allocation82_spill]] %s6200_s17  ;;  %p4056_p1 = scmp.lt.u32.totalorder %s4052_s14, %s6241_s23 }
   0xd   :  { %6238 = sst [smem:[#allocation83_spill]] %s6201_s18 }
   0xe   :  { %6239 = sst [smem:[#allocation84_spill]] %s6202_s19  ;;  %p4058_p2 = pnand %p4056_p1, %p4053_p0 }
   0xf   :  { %6240 = sst [smem:[#allocation85_spill]] %s6203_s20 }
  0x10   :  { %4061 = shalt.err (!%p4058_p2)  }
  0x11   :  { %s4762_s26 = smov [#allocation8]  }
  0x12   :  { %27 = dma.hbm_to_smem %s6241_s23, 16, %s4762_s26, [#allocation7] }
  0x13   :  { %4688 = dma.done.wait [#allocation7], 16 }
  0x14   :  { %4689 = vsyncadd [#allocation7], 4294967280 }
  0x15   :  { %29 = sfence }
  0x16   :  { %30 = vsyncpa [#allocation10], 0 }
  0x17   :  { %31 = vsyncpa [#allocation13], 0 }
  0x18   :  { %32 = vsyncpa [#allocation16], 0 }
  0x19   :  { %33 = vsyncpa [#allocation19], 0 }
  0x1a   :  { %34 = vsyncpa [#allocation22], 0 }
  0x1b   :  { %35 = vsyncpa [#allocation25], 0 }
  0x1c   :  { %36 = vsyncpa [#allocation28], 0 }
  0x1d   :  { %37 = vsyncpa [#allocation11], 0 }
  0x1e   :  { %38 = vsyncpa [#allocation32], 0  ;;  %s4917_s14 = smov 0   ;;  %s4919_s4 = smov 0  }
  0x1f   :  { %s4921_s29 = smov 0   ;;  %s4923_s30 = smov 0  }
  0x20 LB: > { %s4763_s0 = smov [#allocation9]   ;;  %s4938_s1 = sadd.s32 4294967295, %s4760_s30   ;;  %s4760_s30 = sphi %s4923_s30, %s6291_s30   ;;  %s4756_s29 = sphi %s4921_s29, %s6290_s29   ;;  %s4752_s4 = sphi %s4919_s4, %s6289_s4   ;;  %s4748_s14 = sphi %s4917_s14, %s6288_s14  }
  0x21   : > { %s471_s21 = sshll.u32 %s4763_s0, 4  ;;  %p3026_p3 = scmp.ge.s32.totalorder %s4760_s30, 1  ;;  %s472_s21 = int_to_ptr.vmem [resolvable:$true] %s471_s21 }
  0x22   : > { %p6213_p4 = scmp.eq.s32.totalorder %s4938_s1, 0  ;;  %p458_p5 = scmp.lt.s32.totalorder %s4760_s30, 3 }
  0x23   : > { %s4764_s23 = smov [#allocation12]   ;;  %s4765_s25 = smov [#allocation15]  }
  0x24   : > { %p4944_p7 = pnand %p3026_p3, %p458_p5  ;;  %s487_s24 = sshll.u32 %s4764_s23, 4  ;;  %s4950_s24 = int_to_ptr.vmem [resolvable:$true] %s487_s24 }
  0x25   : > { %s513_s3 = sshll.u32 %s4765_s25, 4  ;;  %s6245_s28 = sld [smem:[#allocation73_spill]]  ;;  %s4958_s3 = int_to_ptr.vmem [resolvable:$true] %s513_s3 }
  0x26   : > { %s6242_s22 = scalar_select %p4944_p7, 1, 0 }
  0x27   : > { %p3835_p8 = pneg %p4944_p7 }
  0x28   : > { %6243 = sst [smem:[#allocation70_spill]] %s6242_s22 }
  0x29   : > { %p4954_p9 = pnand %p3835_p8, %p6213_p4 }
  0x2b   : > { %s4062_s0 = scalar_lea.hbm %s6245_s28, 128  ;;  %p4968_p11 = pneg %p4954_p9 }
  0x2c   : > { %p4063_p10 = scmp.ne.s32.totalorder %s6245_s28, %s4062_s0  ;;  %p4069_p0 = scmp.lt.u32.totalorder %s4062_s0, %s6245_s28 }
  0x2e   : > { %p4065_p12 = pnand %p4968_p11, %p4063_p10 }
  0x30   : > { %p4066_p13 = pneg %p4065_p12 }
  0x32   : > { %p4071_p1 = pnand %p4069_p0, %p4066_p13 }
  0x34   : > { %4074 = shalt.err (!%p4071_p1)
}
  0x35   : > { %s4075_s26 = scalar_lea.vmem %s472_s21, 128  ;;  %p4083_p8 = scmp.lt.s32.totalorder %s472_s21, %s472_s21 }
  0x36   : > { %p4076_p2 = scmp.ne.s32.totalorder %s472_s21, %s4075_s26  ;;  %p4084_p6 = scmp.lt.s32.totalorder %s4075_s26, %s4075_s26 }
  0x38   : > { %p4078_p3 = pnand %p4076_p2, %p4968_p11  ;;  %p4085_p4 = por %p4084_p6, %p4083_p8 }
  0x3a   : > { %p4079_p5 = pneg %p4078_p3 }
  0x3c   : > { %p4086_p7 = pnand %p4085_p4, %p4079_p5 }
  0x3e   : > { %4089 = shalt.err (!%p4086_p7)
}
  0x3f   : > { %3838 = dma.hbm_to_vmem [thread:$0]  (!%p4954_p9), %s6245_s28, 128, %s472_s21, [#allocation10]  }
  0x40   : > { %s6247_s5 = sld [smem:[#allocation76_spill]] }
  0x46   : > { %s4090_s0 = scalar_lea.hbm %s6247_s5, 2048 }
  0x47   : > { %p4091_p10 = scmp.ne.s32.totalorder %s6247_s5, %s4090_s0  ;;  %p4097_p4 = scmp.lt.u32.totalorder %s4090_s0, %s6247_s5 }
  0x49   : > { %p4093_p12 = pnand %p4091_p10, %p4968_p11 }
  0x4b   : > { %p4094_p6 = pneg %p4093_p12 }
  0x4d   : > { %p4099_p7 = pnand %p4097_p4, %p4094_p6 }
  0x4f   : > { %4102 = shalt.err (!%p4099_p7)
}
  0x50   : > { %s4103_s21 = scalar_lea.vmem %s4950_s24, 2048  ;;  %p4111_p2 = scmp.lt.s32.totalorder %s4950_s24, %s4950_s24 }
  0x51   : > { %p4104_p13 = scmp.ne.s32.totalorder %s4950_s24, %s4103_s21  ;;  %p4112_p3 = scmp.lt.s32.totalorder %s4103_s21, %s4103_s21 }
  0x53   : > { %p4106_p0 = pnand %p4104_p13, %p4968_p11  ;;  %p4113_p5 = por %p4112_p3, %p4111_p2 }
  0x55   : > { %p4107_p1 = pneg %p4106_p0 }
  0x57   : > { %p4114_p8 = pnand %p4113_p5, %p4107_p1 }
  0x59   : > { %4117 = shalt.err (!%p4114_p8)
}
  0x5a   : > { %s4766_s18 = smov 128   ;;  %s4767_s22 = smov 8  }
  0x5b   : > { %3841 = dma.hbm_to_vmem [thread:$0]  (!%p4954_p9), %s6247_s5, 2048, %s4950_s24, [#allocation13], %s4766_s18, %s4766_s18, %s4767_s22  }
  0x5c   : > { %s6248_s7 = sld [smem:[#allocation78_spill]] }
  0x62   : > { %s4118_s0 = scalar_lea.hbm %s6248_s7, 2048 }
  0x63   : > { %p4119_p10 = scmp.ne.s32.totalorder %s6248_s7, %s4118_s0  ;;  %p4125_p4 = scmp.lt.u32.totalorder %s4118_s0, %s6248_s7 }
  0x65   : > { %p4121_p12 = pnand %p4119_p10, %p4968_p11 }
  0x67   : > { %p4122_p6 = pneg %p4121_p12 }
  0x69   : > { %p4127_p7 = pnand %p4125_p4, %p4122_p6 }
  0x6b   : > { %4130 = shalt.err (!%p4127_p7)
}
  0x6c   : > { %s4131_s24 = scalar_lea.vmem %s4958_s3, 2048  ;;  %p4139_p2 = scmp.lt.s32.totalorder %s4958_s3, %s4958_s3 }
  0x6d   : > { %p4132_p13 = scmp.ne.s32.totalorder %s4958_s3, %s4131_s24  ;;  %p4140_p3 = scmp.lt.s32.totalorder %s4131_s24, %s4131_s24 }
  0x6f   : > { %p4134_p0 = pnand %p4132_p13, %p4968_p11  ;;  %p4141_p5 = por %p4140_p3, %p4139_p2 }
  0x71   : > { %p4135_p1 = pneg %p4134_p0 }
  0x73   : > { %p4142_p8 = pnand %p4141_p5, %p4135_p1 }
  0x75   : > { %4145 = shalt.err (!%p4142_p8)
}
  0x76   : > { %3847 = dma.hbm_to_vmem [thread:$0]  (!%p4954_p9), %s6248_s7, 2048, %s4958_s3, [#allocation16], %s4766_s18, %s4766_s18, %s4767_s22  }
  0x77   : > { %s4768_s20 = smov [#allocation18]   ;;  %s4769_s27 = smov [#allocation21]  }
  0x78   : > { %s539_s15 = sshll.u32 %s4768_s20, 4  ;;  %s564_s0 = sshll.u32 %s4769_s27, 4  ;;  %s540_s15 = int_to_ptr.vmem [resolvable:$true] %s539_s15  ;;  %s565_s0 = int_to_ptr.vmem [resolvable:$true] %s564_s0 }
  0x79   : > { %s4146_s21 = scalar_lea.hbm %s6192_s9, 2048 }
  0x7a   : > { %p4147_p10 = scmp.ne.s32.totalorder %s6192_s9, %s4146_s21  ;;  %p4153_p4 = scmp.lt.u32.totalorder %s4146_s21, %s6192_s9 }
  0x7c   : > { %p4149_p12 = pnand %p4147_p10, %p4968_p11 }
  0x7e   : > { %p4150_p6 = pneg %p4149_p12 }
  0x80   : > { %p4155_p7 = pnand %p4153_p4, %p4150_p6 }
  0x82   : > { %4158 = shalt.err (!%p4155_p7)
}
  0x83   : > { %s4159_s3 = scalar_lea.vmem %s540_s15, 2048  ;;  %p4167_p2 = scmp.lt.s32.totalorder %s540_s15, %s540_s15 }
  0x84   : > { %p4160_p13 = scmp.ne.s32.totalorder %s540_s15, %s4159_s3  ;;  %p4168_p3 = scmp.lt.s32.totalorder %s4159_s3, %s4159_s3 }
  0x86   : > { %p4162_p0 = pnand %p4160_p13, %p4968_p11  ;;  %p4169_p5 = por %p4168_p3, %p4167_p2 }
  0x88   : > { %p4163_p1 = pneg %p4162_p0 }
  0x8a   : > { %p4170_p8 = pnand %p4169_p5, %p4163_p1 }
  0x8c   : > { %4173 = shalt.err (!%p4170_p8)
}
  0x8d   : > { %3853 = dma.hbm_to_vmem [thread:$0]  (!%p4954_p9), %s6192_s9, 2048, %s540_s15, [#allocation19], %s4766_s18, %s4766_s18, %s4767_s22  }
  0x8e   : > { %s4174_s27 = scalar_lea.hbm %s6194_s11, 16 }
  0x8f   : > { %p4175_p10 = scmp.ne.s32.totalorder %s6194_s11, %s4174_s27  ;;  %p4181_p4 = scmp.lt.u32.totalorder %s4174_s27, %s6194_s11 }
  0x91   : > { %p4177_p12 = pnand %p4175_p10, %p4968_p11 }
  0x93   : > { %p4178_p6 = pneg %p4177_p12 }
  0x95   : > { %p4183_p7 = pnand %p4181_p4, %p4178_p6 }
  0x97   : > { %4186 = shalt.err (!%p4183_p7)
}
  0x98   : > { %s4187_s28 = scalar_lea.vmem %s565_s0, 16  ;;  %s4194_s15 = scalar_lea.vmem %s565_s0, 32 }
  0x99   : > { %p4188_p13 = scmp.ne.s32.totalorder %s565_s0, %s4187_s28  ;;  %p4195_p2 = scmp.lt.s32.totalorder %s565_s0, %s565_s0 }
  0x9a   : > { %p4196_p3 = scmp.lt.s32.totalorder %s4194_s15, %s4187_s28 }
  0x9b   : > { %p4190_p0 = pnand %p4188_p13, %p4968_p11 }
  0x9c   : > { %p4197_p5 = por %p4196_p3, %p4195_p2 }
  0x9d   : > { %p4191_p1 = pneg %p4190_p0 }
  0x9f   : > { %p4198_p8 = pnand %p4197_p5, %p4191_p1 }
  0xa1   : > { %4201 = shalt.err (!%p4198_p8)
}
  0xa2   : > { %3859 = dma.hbm_to_vmem [thread:$0]  (!%p4954_p9), %s6194_s11, 16, %s565_s0, [#allocation22]  }
  0xa3   : > { %s4770_s17 = smov [#allocation24]   ;;  %s4771_s20 = smov [#allocation14]  }
  0xa4   : > { %s586_s19 = sshll.u32 %s4770_s17, 4  ;;  %s500_s27 = sshll.u32 %s4771_s20, 4  ;;  %s587_s19 = int_to_ptr.vmem [resolvable:$true] %s586_s19  ;;  %s501_s27 = int_to_ptr.vmem [resolvable:$true] %s500_s27 }
  0xa5   : > { %s4202_s21 = scalar_lea.hbm %s6196_s13, 16 }
  0xa6   : > { %p4203_p10 = scmp.ne.s32.totalorder %s6196_s13, %s4202_s21  ;;  %p4209_p4 = scmp.lt.u32.totalorder %s4202_s21, %s6196_s13 }
  0xa8   : > { %p4205_p12 = pnand %p4203_p10, %p4968_p11 }
  0xaa   : > { %p4206_p6 = pneg %p4205_p12 }
  0xac   : > { %p4211_p7 = pnand %p4209_p4, %p4206_p6 }
  0xae   : > { %4214 = shalt.err (!%p4211_p7)
}
  0xaf   : > { %s4215_s0 = scalar_lea.vmem %s587_s19, 16  ;;  %s4222_s5 = scalar_lea.vmem %s587_s19, 32 }
  0xb0   : > { %p4216_p13 = scmp.ne.s32.totalorder %s587_s19, %s4215_s0  ;;  %p4223_p2 = scmp.lt.s32.totalorder %s587_s19, %s587_s19 }
  0xb1   : > { %p4224_p3 = scmp.lt.s32.totalorder %s4222_s5, %s4215_s0 }
  0xb2   : > { %p4218_p0 = pnand %p4216_p13, %p4968_p11 }
  0xb3   : > { %p4225_p5 = por %p4224_p3, %p4223_p2 }
  0xb4   : > { %p4219_p1 = pneg %p4218_p0 }
  0xb6   : > { %p4226_p8 = pnand %p4225_p5, %p4219_p1 }
  0xb8   : > { %4229 = shalt.err (!%p4226_p8)
}
  0xb9   : > { %3865 = dma.hbm_to_vmem [thread:$0]  (!%p4954_p9), %s6196_s13, 16, %s587_s19, [#allocation25]  }
  0xba   : > { %s6249_s6 = sld [smem:[#allocation77_spill]] }
  0xc0   : > { %s4230_s21 = scalar_lea.hbm %s6249_s6, 2048 }
  0xc1   : > { %p4231_p10 = scmp.ne.s32.totalorder %s6249_s6, %s4230_s21  ;;  %p4237_p4 = scmp.lt.u32.totalorder %s4230_s21, %s6249_s6 }
  0xc3   : > { %p4233_p12 = pnand %p4231_p10, %p4968_p11 }
  0xc5   : > { %p4234_p6 = pneg %p4233_p12 }
  0xc7   : > { %p4239_p7 = pnand %p4237_p4, %p4234_p6 }
  0xc9   : > { %4242 = shalt.err (!%p4239_p7)
}
  0xca   : > { %s4243_s0 = scalar_lea.vmem %s501_s27, 2048  ;;  %p4251_p2 = scmp.lt.s32.totalorder %s501_s27, %s501_s27 }
  0xcb   : > { %p4244_p13 = scmp.ne.s32.totalorder %s501_s27, %s4243_s0  ;;  %p4252_p3 = scmp.lt.s32.totalorder %s4243_s0, %s4243_s0 }
  0xcd   : > { %p4246_p0 = pnand %p4244_p13, %p4968_p11  ;;  %p4253_p5 = por %p4252_p3, %p4251_p2 }
  0xcf   : > { %p4247_p1 = pneg %p4246_p0 }
  0xd1   : > { %p4254_p8 = pnand %p4253_p5, %p4247_p1 }
  0xd3   : > { %4257 = shalt.err (!%p4254_p8)
}
  0xd4   : > { %3844 = dma.hbm_to_vmem [thread:$0]  (!%p4954_p9), %s6249_s6, 2048, %s501_s27, [#allocation13], %s4766_s18, %s4766_s18, %s4767_s22  }
  0xd5   : > { %s4772_s17 = smov [#allocation17]   ;;  %s4773_s25 = smov [#allocation20]  }
  0xd6   : > { %s526_s20 = sshll.u32 %s4772_s17, 4  ;;  %s553_s26 = sshll.u32 %s4773_s25, 4  ;;  %s527_s20 = int_to_ptr.vmem [resolvable:$true] %s526_s20  ;;  %s554_s26 = int_to_ptr.vmem [resolvable:$true] %s553_s26 }
  0xd7   : > { %s6250_s8 = sld [smem:[#allocation79_spill]] }
  0xdd   : > { %s4258_s28 = scalar_lea.hbm %s6250_s8, 2048 }
  0xde   : > { %p4259_p10 = scmp.ne.s32.totalorder %s6250_s8, %s4258_s28  ;;  %p4265_p4 = scmp.lt.u32.totalorder %s4258_s28, %s6250_s8 }
  0xe0   : > { %p4261_p12 = pnand %p4259_p10, %p4968_p11 }
  0xe2   : > { %p4262_p6 = pneg %p4261_p12 }
  0xe4   : > { %p4267_p7 = pnand %p4265_p4, %p4262_p6 }
  0xe6   : > { %4270 = shalt.err (!%p4267_p7)
}
  0xe7   : > { %s4271_s27 = scalar_lea.vmem %s527_s20, 2048  ;;  %p4279_p2 = scmp.lt.s32.totalorder %s527_s20, %s527_s20 }
  0xe8   : > { %p4272_p13 = scmp.ne.s32.totalorder %s527_s20, %s4271_s27  ;;  %p4280_p3 = scmp.lt.s32.totalorder %s4271_s27, %s4271_s27 }
  0xea   : > { %p4274_p0 = pnand %p4272_p13, %p4968_p11  ;;  %p4281_p5 = por %p4280_p3, %p4279_p2 }
  0xec   : > { %p4275_p1 = pneg %p4274_p0 }
  0xee   : > { %p4282_p8 = pnand %p4281_p5, %p4275_p1 }
  0xf0   : > { %4285 = shalt.err (!%p4282_p8)
}
  0xf1   : > { %3850 = dma.hbm_to_vmem [thread:$0]  (!%p4954_p9), %s6250_s8, 2048, %s527_s20, [#allocation16], %s4766_s18, %s4766_s18, %s4767_s22  }
  0xf2   : > { %s4286_s24 = scalar_lea.hbm %s6193_s10, 16 }
  0xf3   : > { %p4287_p10 = scmp.ne.s32.totalorder %s6193_s10, %s4286_s24  ;;  %p4293_p4 = scmp.lt.u32.totalorder %s4286_s24, %s6193_s10 }
  0xf5   : > { %p4289_p12 = pnand %p4287_p10, %p4968_p11 }
  0xf7   : > { %p4290_p6 = pneg %p4289_p12 }
  0xf9   : > { %p4295_p7 = pnand %p4293_p4, %p4290_p6 }
  0xfb   : > { %4298 = shalt.err (!%p4295_p7)
}
  0xfc   : > { %s4299_s19 = scalar_lea.vmem %s554_s26, 16  ;;  %s4306_s20 = scalar_lea.vmem %s554_s26, 32 }
  0xfd   : > { %p4300_p13 = scmp.ne.s32.totalorder %s554_s26, %s4299_s19  ;;  %p4307_p2 = scmp.lt.s32.totalorder %s554_s26, %s554_s26 }
  0xfe   : > { %p4308_p3 = scmp.lt.s32.totalorder %s4306_s20, %s4299_s19 }
  0xff   : > { %p4302_p0 = pnand %p4300_p13, %p4968_p11 }
 0x100   : > { %p4309_p5 = por %p4308_p3, %p4307_p2 }
 0x101   : > { %p4303_p1 = pneg %p4302_p0 }
 0x103   : > { %p4310_p8 = pnand %p4309_p5, %p4303_p1 }
 0x105   : > { %4313 = shalt.err (!%p4310_p8)
}
 0x106   : > { %3856 = dma.hbm_to_vmem [thread:$0]  (!%p4954_p9), %s6193_s10, 16, %s554_s26, [#allocation19]  }
 0x107   : > { %s4774_s17 = smov [#allocation23]   ;;  %s4775_s21 = smov [#allocation26]  }
 0x108   : > { %s575_s25 = sshll.u32 %s4774_s17, 4  ;;  %s596_s24 = sshll.u32 %s4775_s21, 4  ;;  %s576_s25 = int_to_ptr.vmem [resolvable:$true] %s575_s25  ;;  %s597_s24 = int_to_ptr.vmem [resolvable:$true] %s596_s24 }
 0x109   : > { %s4314_s3 = scalar_lea.hbm %s6195_s12, 16 }
 0x10a   : > { %p4315_p10 = scmp.ne.s32.totalorder %s6195_s12, %s4314_s3  ;;  %p4321_p4 = scmp.lt.u32.totalorder %s4314_s3, %s6195_s12 }
 0x10c   : > { %p4317_p12 = pnand %p4315_p10, %p4968_p11 }
 0x10e   : > { %p4318_p6 = pneg %p4317_p12 }
 0x110   : > { %p4323_p7 = pnand %p4321_p4, %p4318_p6 }
 0x112   : > { %4326 = shalt.err (!%p4323_p7)
}
 0x113   : > { %s4327_s26 = scalar_lea.vmem %s576_s25, 16  ;;  %s4334_s5 = scalar_lea.vmem %s576_s25, 32 }
 0x114   : > { %p4328_p13 = scmp.ne.s32.totalorder %s576_s25, %s4327_s26  ;;  %p4335_p2 = scmp.lt.s32.totalorder %s576_s25, %s576_s25 }
 0x115   : > { %p4336_p3 = scmp.lt.s32.totalorder %s4334_s5, %s4327_s26 }
 0x116   : > { %p4330_p0 = pnand %p4328_p13, %p4968_p11 }
 0x117   : > { %p4337_p5 = por %p4336_p3, %p4335_p2 }
 0x118   : > { %p4331_p1 = pneg %p4330_p0 }
 0x11a   : > { %p4338_p8 = pnand %p4337_p5, %p4331_p1 }
 0x11c   : > { %4341 = shalt.err (!%p4338_p8)
}
 0x11d   : > { %3862 = dma.hbm_to_vmem [thread:$0]  (!%p4954_p9), %s6195_s12, 16, %s576_s25, [#allocation22]  }
 0x11e   : > { %s6251_s3 = sld [smem:[#allocation80_spill]] }
 0x124   : > { %s4342_s0 = scalar_lea.hbm %s6251_s3, 2048 }
 0x125   : > { %p4343_p10 = scmp.ne.s32.totalorder %s6251_s3, %s4342_s0  ;;  %p4349_p4 = scmp.lt.u32.totalorder %s4342_s0, %s6251_s3 }
 0x127   : > { %p4345_p12 = pnand %p4343_p10, %p4968_p11 }
 0x129   : > { %p4346_p6 = pneg %p4345_p12 }
 0x12b   : > { %p4351_p7 = pnand %p4349_p4, %p4346_p6 }
 0x12d   : > { %4354 = shalt.err (!%p4351_p7)
}
 0x12e   : > { %s4355_s5 = scalar_lea.vmem %s597_s24, 2048  ;;  %p4363_p2 = scmp.lt.s32.totalorder %s597_s24, %s597_s24 }
 0x12f   : > { %p4356_p13 = scmp.ne.s32.totalorder %s597_s24, %s4355_s5  ;;  %p4364_p3 = scmp.lt.s32.totalorder %s4355_s5, %s4355_s5 }
 0x131   : > { %p4358_p0 = pnand %p4356_p13, %p4968_p11  ;;  %p4365_p5 = por %p4364_p3, %p4363_p2 }
 0x133   : > { %p4359_p1 = pneg %p4358_p0 }
 0x135   : > { %p4366_p8 = pnand %p4365_p5, %p4359_p1 }
 0x137   : > { %4369 = shalt.err (!%p4366_p8)
}
 0x138   : > { %3868 = dma.hbm_to_vmem [thread:$0]  (!%p4954_p9), %s6251_s3, 2048, %s597_s24, [#allocation25], %s4766_s18, %s4766_s18, %s4767_s22  }
 0x139   : > { %s4776_s21 = smov [#allocation27]   ;;  %s4370_s19 = scalar_lea.hbm %s6199_s16, 16 }
 0x13a   : > { %s613_s28 = sshll.u32 %s4776_s21, 4  ;;  %p4371_p10 = scmp.ne.s32.totalorder %s6199_s16, %s4370_s19  ;;  %s614_s28 = int_to_ptr.vmem [resolvable:$true] %s613_s28 }
 0x13b   : > { %p4377_p4 = scmp.lt.u32.totalorder %s4370_s19, %s6199_s16 }
 0x13c   : > { %p4373_p12 = pnand %p4371_p10, %p4968_p11 }
 0x13e   : > { %p4374_p6 = pneg %p4373_p12 }
 0x140   : > { %p4379_p7 = pnand %p4377_p4, %p4374_p6 }
 0x142   : > { %4382 = shalt.err (!%p4379_p7)
}
 0x143   : > { %s4383_s18 = scalar_lea.vmem %s614_s28, 16  ;;  %s4390_s22 = scalar_lea.vmem %s614_s28, 32 }
 0x144   : > { %p4384_p13 = scmp.ne.s32.totalorder %s614_s28, %s4383_s18  ;;  %p4391_p2 = scmp.lt.s32.totalorder %s614_s28, %s614_s28 }
 0x145   : > { %p4392_p3 = scmp.lt.s32.totalorder %s4390_s22, %s4383_s18 }
 0x146   : > { %p4386_p0 = pnand %p4384_p13, %p4968_p11 }
 0x147   : > { %p4393_p5 = por %p4392_p3, %p4391_p2 }
 0x148   : > { %p4387_p1 = pneg %p4386_p0 }
 0x14a   : > { %p4394_p8 = pnand %p4393_p5, %p4387_p1 }
 0x14c   : > { %4397 = shalt.err (!%p4394_p8)
}
 0x14d   : > { %3871 = dma.hbm_to_vmem [thread:$0]  (!%p4954_p9), %s6199_s16, 16, %s614_s28, [#allocation28]  }
 0x14e   : > { %s5211_s23 = sadd.s32 1, %s4760_s30   ;;  %s366_s2 = sadd.s32 1, %s4756_s29 }
 0x14f   : > { %s363_s17 = ssub.s32 %s4760_s30, %s5211_s23  ;;  %p373_p11 = scmp.ne.s32.totalorder %s4756_s29, %s4752_s4 }
 0x150   : > { %p364_p10 = scmp.eq.s32.totalorder %s363_s17, 0  ;;  %p374_p12 = scmp.eq.s32.totalorder %s4760_s30, 0 }
 0x151   : > { %p379_p6 = scmp.ne.s32.totalorder %s4752_s4, %s4748_s14  ;;  %p3888_p4 = scmp.lt.s32.totalorder %s4760_s30, 2 }
 0x152   : > { %s5223_s21 = scalar_select %p364_p10, %s4756_s29, %s366_s2  }
 0x153   : > { %p375_p7 = por %p374_p12, %p373_p11  ;;  %p6252_p13 = scmp.eq.s32.totalorder %s4938_s1, 0 }
 0x154   : > { %s624_s0 = sand.u32 1, %s4760_s30   ;;  %s626_s28 = sand.u32 1, %s4756_s29  }
 0x155   : > { %p5227_p0 = por %p6252_p13, %p379_p6  ;;  %s3040_s19 = sshll.u32 %s626_s28, 9 }
 0x156   : > { %s3098_s20 = sshll.u32 %s4760_s30, 9  ;;  %s6254_s5 = sld [smem:[#allocation82_spill]] }
 0x157   : > { %s628_s14 = scalar_lea.vmem [#allocation29], %s3040_s19  ;;  %p5241_p9 = pnand %p3888_p4, %p375_p7 }
 0x158   : > { %s635_s22 = sshll.u32 %s628_s14, 4  ;;  %s5245_s30 = scalar_lea.sflag [#allocation10], %s624_s0  ;;  %s5239_s22 = int_to_ptr.vmem [resolvable:$true] %s635_s22 }
 0x159   : > { %p4400_p2 = pneg %p5241_p9 }
 0x15c   : > { %s5237_s18 = scalar_lea.hbm %s6254_s5, %s3098_s20  ;;  %s4403_s28 = scalar_lea.hbm %s6254_s5, 16384 }
 0x15d   : > { %s4398_s25 = scalar_lea.hbm %s5237_s18, 8192  ;;  %p4404_p8 = scmp.lt.u32.totalorder %s5237_s18, %s6254_s5 }
 0x15e   : > { %p4399_p1 = scmp.ne.s32.totalorder %s5237_s18, %s4398_s25  ;;  %p4405_p11 = scmp.lt.u32.totalorder %s4403_s28, %s4398_s25 }
 0x15f   : > { %p4407_p12 = scmp.lt.u32.totalorder %s4398_s25, %s5237_s18 }
 0x160   : > { %p4401_p3 = pnand %p4400_p2, %p4399_p1  ;;  %p4406_p10 = por %p4405_p11, %p4404_p8 }
 0x162   : > { %p4402_p5 = pneg %p4401_p3  ;;  %p4408_p6 = por %p4407_p12, %p4406_p10 }
 0x164   : > { %p4409_p4 = pnand %p4408_p6, %p4402_p5 }
 0x166   : > { %4412 = shalt.err (!%p4409_p4)
}
 0x167   : > { %s4413_s0 = scalar_lea.vmem %s5239_s22, 8192  ;;  %s4777_s27 = smov [#allocation29]  }
 0x168   : > { %p4414_p7 = scmp.ne.s32.totalorder %s5239_s22, %s4413_s0  ;;  %s4418_s26 = sshll.u32 %s4777_s27, 4  ;;  %s4419_s26 = int_to_ptr.vmem [resolvable:$false] %s4418_s26 }
 0x169   : > { %s4420_s14 = scalar_lea.vmem %s4419_s26, 16384  ;;  %p4421_p3 = scmp.lt.s32.totalorder %s5239_s22, %s4419_s26 }
 0x16a   : > { %p4416_p13 = pnand %p4414_p7, %p4400_p2  ;;  %p4422_p8 = scmp.lt.s32.totalorder %s4420_s14, %s4413_s0 }
 0x16c   : > { %p4417_p1 = pneg %p4416_p13  ;;  %p4423_p11 = por %p4422_p8, %p4421_p3 }
 0x16e   : > { %p4424_p10 = pnand %p4423_p11, %p4417_p1 }
 0x170   : > { %4427 = shalt.err (!%p4424_p10)
}
 0x171   : > { %s4778_s25 = smov 1024   ;;  %s4779_s2 = smov 512  }
 0x172   : > { %s4780_s17 = smov 32   ;;  %s6256_s28 = sld [smem:[#allocation70_spill]] }
 0x173   : > { %3875 = dma.hbm_to_vmem [thread:$0]  (!%p5241_p9), %s5237_s18, 8192, %s5239_s22, %s5245_s30, %s4778_s25, %s4779_s2, %s4780_s17  }
 0x178   : > { %p6257_p2 = scmp.ne.s32.totalorder %s6256_s28, 0 }
 0x179   : > { %p6258_p5 = scmp.eq.s32.totalorder (!%p6257_p2), %s4938_s1, 0 }
 0x17a   : > { %655 = sbr.rel (%p6257_p2) target bundleno = 3142 (0xc46), region = 88 }
 0x181   : > { %4691 = dma.done.wait (%p6258_p5), [#allocation10], 128   ;;  %p6259_p12 = pmov %p6258_p5 }
 0x182   : > { %p6260_p6 = pmov %p6258_p5 }
 0x183   : > { %4693 = vsyncadd (%p6259_p12), [#allocation10], 4294967168 }
 0x184   : > { %4695 = dma.done.wait (%p6260_p6), [#allocation13], 4096   ;;  %p6261_p4 = pmov %p6258_p5 }
 0x186   : > { %4697 = vsyncadd (%p6261_p4), [#allocation13], 4294963200  ;;  %p6262_p7 = pmov %p6261_p4 }
 0x187   : > { %p6263_p9 = pmov %p6261_p4 }
 0x188   : > { %4699 = dma.done.wait (%p6262_p7), [#allocation16], 4096  }
 0x189   : > { %4701 = vsyncadd (%p6263_p9), [#allocation16], 4294963200  ;;  %p6264_p13 = pmov %p6261_p4 }
 0x18a   : > { %p6265_p1 = pmov %p6261_p4 }
 0x18b   : > { %4703 = dma.done.wait (%p6264_p13), [#allocation19], 2064  }
 0x18c   : > { %4705 = vsyncadd (%p6265_p1), [#allocation19], 4294965232  ;;  %p6266_p3 = pmov %p6265_p1 }
 0x18d   : > { %p6267_p8 = pmov %p6265_p1 }
 0x18e   : > { %4707 = dma.done.wait (%p6266_p3), [#allocation22], 32  }
 0x18f   : > { %4709 = vsyncadd (%p6267_p8), [#allocation22], 4294967264  ;;  %p6268_p11 = pmov %p6265_p1 }
 0x190   : > { %p6269_p10 = pmov %p6265_p1 }
 0x191   : > { %4711 = dma.done.wait (%p6268_p11), [#allocation25], 2064  }
 0x192   : > { %4713 = vsyncadd (%p6269_p10), [#allocation25], 4294965232  ;;  %p6270_p2 = pmov %p6265_p1 }
 0x193   : > { %p6271_p5 = pmov %p6265_p1 }
 0x194   : > { %4715 = dma.done.wait (%p6270_p2), [#allocation28], 16  }
 0x195   : > { %4717 = vsyncadd (%p6271_p5), [#allocation28], 4294967280  ;;  %s705_s18 = sand.u32 1, %s4938_s1   ;;  %s707_s22 = sand.u32 1, %s4752_s4  }
 0x196   : > { %s3056_s24 = sshll.u32 %s707_s22, 9  ;;  %s706_s30 = scalar_lea.sflag [#allocation10], %s705_s18 }
 0x197   : > { %s5305_s19 = scalar_lea.vmem [#allocation29], %s3056_s24 }
 0x198   : > { %4719 = dma.done.wait (%p5227_p0), %s706_s30, 8192  }
 0x199   : > { %4721 = vsyncadd (%p5227_p0), %s706_s30, 4294959104  ;;  %s3057_s20 = sshll.u32 %s4938_s1, 2  ;;  %p6273_p6 = scmp.ne.s32.totalorder %s4938_s1, 0 }
 0x19a   : > { %p763_p12 = scmp.lt.s32.totalorder %s3057_s20, 7  ;;  %v5320_v0 = vld [vmem:[#allocation20] ss:$0 sm:$0xff] (!%p6273_p6)  ;;  %v899_v2 = vld [vmem:[#allocation15 + $0x8] sm:$0xff] (!%p6273_p6)  ;;  %v6220_v3 = vmov (!%p6273_p6), 0.0|0.0   ;;  %v900_v5 = vld [vmem:[#allocation15 + $0x10] sm:$0xff] (!%p6273_p6) }
 0x19b   : > { %770 = sbr.rel (%p6273_p6) target bundleno = 2235 (0x8bb), region = 144  ;;  %v898_v1 = vld [vmem:[#allocation15] sm:$0xff] (!%p6273_p6)  ;;  %3515 = vmatprep.subr.bf16.mxu0 (!%p6273_p6), %v6220_v3  ;;  %v901_v6 = vld [vmem:[#allocation15 + $0x18] sm:$0xff] (!%p6273_p6)  ;;  %3539 = vmatprep.subr.bf16.mxu1 (!%p6273_p6), %v6220_v3  ;;  %s771_s15 = sld [smem:[#allocation8]] (!%p6273_p6)  ;;  %vm4782_vm0 = vmmov (!%p6273_p6), 0   ;;  %v4783_v7 = vmov (!%p6273_p6), 0.0  }
 0x19c   : > { %s6293_s20 = smov (!%p763_p12, %s3057_s20), 7  ;;  %v3516_v4 = vpack.c.bf16 (!%p6273_p6), %v899_v2, %v898_v1  ;;  %3267 = vmatprep.mubr.msk.f32.mxu0 (!%p6273_p6), %vm4782_vm0, %v4783_v7  ;;  %s5326_s25 = sld [smem:[#allocation8 + $0x1]] (!%p6273_p6)  ;;  %3302 = vmatprep.mubr.msk.f32.mxu1 (!%p6273_p6), %vm4782_vm0, %v4783_v7  ;;  %v3519_v8 = vpack.c.bf16 (!%p6273_p6), %v901_v6, %v900_v5  ;;  %v902_v9 = vld [vmem:[#allocation15 + $0x20] sm:$0xff] (!%p6273_p6)  ;;  %v903_v10 = vld [vmem:[#allocation15 + $0x28] sm:$0xff] (!%p6273_p6)  ;;  %v5340_v12 = vld [vmem:[#allocation15 + $0x30] sm:$0xff] (!%p6273_p6) }
 0x19d   : > { %s4784_s2 = smov (!%p6273_p6), [#allocation2]   ;;  %s4785_s28 = smov (!%p6273_p6), [#allocation2 + $0x1]   ;;  %v3522_v11 = vpack.c.bf16 (!%p6273_p6), %v903_v10, %v902_v9  ;;  %v5342_v13 = vld [vmem:[#allocation15 + $0x38] sm:$0xff] (!%p6273_p6) }
 0x19e   : > { %3517 = vmatpush3.bf16.msra.mxu0 (!%p6273_p6), %v3516_v4  ;;  %s781_s17 = sshll.u32 (!%p6273_p6), %s4784_s2, 4  ;;  %s797_s18 = sshll.u32 (!%p6273_p6), %s4785_s28, 4  ;;  %s5331_s17 = int_to_ptr.vmem [resolvable:$true] %s781_s17  ;;  %s5333_s18 = int_to_ptr.vmem [resolvable:$true] %s797_s18 }
 0x19f   : > { %3518 = vmatprep.subr.bf16.mxu0 (!%p6273_p6), %v6220_v3  ;;  %s5335_s22 = sld [smem:[#allocation8 + $0x2]] (!%p6273_p6)  ;;  %s5337_s24 = sld [smem:[#allocation8 + $0x3]] (!%p6273_p6) }
 0x1a0   : > { %s4786_s0 = smov (!%p6273_p6), [#allocation2 + $0x2]   ;;  %s6274_s28 = sld [smem:[#allocation72_spill]] (!%p6273_p6) }
 0x1a1   : > { %s3059_s30 = sshll.u32 (!%p6273_p6), %s771_s15, 4  ;;  %s813_s27 = sshll.u32 (!%p6273_p6), %s4786_s0, 4  ;;  %s5371_s27 = int_to_ptr.vmem [resolvable:$true] %s813_s27 }
 0x1a2   : > { %3520 = vmatpush3.bf16.msra.mxu0 %v3519_v8  ;;  %s3061_s3 = sshll.u32 %s5326_s25, 4 }
 0x1a3   : > { %3521 = vmatprep.subr.bf16.mxu0 %v6220_v3 }
 0x1a6   : > { %s773_s14 = scalar_lea.hbm %s6274_s28, %s3059_s30  ;;  %s5351_s8 = scalar_lea.hbm %s6274_s28, 16000 }
 0x1a7   : > { %s4428_s5 = scalar_lea.hbm %s773_s14, 16  ;;  %p4431_p4 = scmp.lt.u32.totalorder %s773_s14, %s6274_s28 }
 0x1a8   : > { %p4429_p0 = scmp.ne.s32.totalorder %s773_s14, %s4428_s5  ;;  %p4432_p7 = scmp.lt.u32.totalorder %s5351_s8, %s4428_s5 }
 0x1a9   : > { %p4434_p13 = scmp.lt.u32.totalorder %s4428_s5, %s773_s14 }
 0x1aa   : > { %p4433_p9 = por %p4432_p7, %p4431_p4 }
 0x1ac   : > { %p4435_p1 = por %p4434_p13, %p4433_p9 }
 0x1ae   : > { %p4436_p3 = pnand %p4435_p1, %p4429_p0 }
 0x1b0   : > { %4439 = shalt.err (!%p4436_p3)  }
 0x1b1   : > { %s4440_s25 = scalar_lea.vmem %s5331_s17, 16  ;;  %s5360_s6 = scalar_lea.vmem %s5331_s17, 128 }
 0x1b2   : > { %p4441_p8 = scmp.ne.s32.totalorder %s5331_s17, %s4440_s25  ;;  %p4445_p11 = scmp.lt.s32.totalorder %s5331_s17, %s5331_s17 }
 0x1b3   : > { %p4446_p10 = scmp.lt.s32.totalorder %s5360_s6, %s4440_s25 }
 0x1b5   : > { %p4447_p2 = por %p4446_p10, %p4445_p11 }
 0x1b7   : > { %p4448_p5 = pnand %p4447_p2, %p4441_p8 }
 0x1b9   : > { %4451 = shalt.err (!%p4448_p5)  }
 0x1ba   : > { %784 = dma.hbm_to_vmem [thread:$0]  %s773_s14, 16, %s5331_s17, [#allocation6]  ;;  %v5366_v14 = vld [vmem:[#allocation15 + $0x40] sm:$0xff]  ;;  %3523 = vmatpush3.bf16.msra.mxu0 %v3522_v11  ;;  %v3525_v15 = vpack.c.bf16 %v5342_v13, %v5340_v12  ;;  %v5375_v16 = vld [vmem:[#allocation15 + $0x48] sm:$0xff] }
 0x1bb   : > { %s787_s30 = scalar_lea.hbm %s6274_s28, %s3061_s3  ;;  %v5377_v17 = vld [vmem:[#allocation21] ss:$0 sm:$0xff] }
 0x1bc   : > { %v991_v18 = vld [vmem:[#allocation17] sm:$0xff]  ;;  %s4452_s26 = scalar_lea.hbm %s787_s30, 16  ;;  %p4455_p6 = scmp.lt.u32.totalorder %s787_s30, %s6274_s28 }
 0x1bd   : > { %p4453_p12 = scmp.ne.s32.totalorder %s787_s30, %s4452_s26  ;;  %p4456_p0 = scmp.lt.u32.totalorder %s5351_s8, %s4452_s26 }
 0x1be   : > { %p4458_p7 = scmp.lt.u32.totalorder %s4452_s26, %s787_s30 }
 0x1bf   : > { %p4457_p4 = por %p4456_p0, %p4455_p6 }
 0x1c1   : > { %p4459_p9 = por %p4458_p7, %p4457_p4 }
 0x1c3   : > { %p4460_p13 = pnand %p4459_p9, %p4453_p12 }
 0x1c5   : > { %4463 = shalt.err (!%p4460_p13)  }
 0x1c6   : > { %s4464_s3 = scalar_lea.vmem %s5333_s18, 16  ;;  %p4469_p3 = scmp.lt.s32.totalorder %s5333_s18, %s5331_s17 }
 0x1c7   : > { %p4465_p1 = scmp.ne.s32.totalorder %s5333_s18, %s4464_s3  ;;  %p4470_p8 = scmp.lt.s32.totalorder %s5360_s6, %s4464_s3 }
 0x1c9   : > { %p4471_p11 = por %p4470_p8, %p4469_p3 }
 0x1cb   : > { %p4472_p10 = pnand %p4471_p11, %p4465_p1 }
 0x1cd   : > { %4475 = shalt.err (!%p4472_p10)  }
 0x1ce   : > { %800 = dma.hbm_to_vmem [thread:$0]  %s787_s30, 16, %s5333_s18, [#allocation6 + $0x1]  ;;  %3524 = vmatprep.subr.bf16.mxu0 %v6220_v3  ;;  %v992_v19 = vld [vmem:[#allocation17 + $0x8] sm:$0xff]  ;;  %v993_v20 = vld [vmem:[#allocation17 + $0x10] sm:$0xff]  ;;  %v994_v21 = vld [vmem:[#allocation17 + $0x18] sm:$0xff] }
 0x1cf   : > { %s3063_s15 = sshll.u32 %s5335_s22, 4  ;;  %s3065_s0 = sshll.u32 %s5337_s24, 4  ;;  %v3540_v22 = vpack.c.bf16 %v992_v19, %v991_v18 }
 0x1d0   : > { %s803_s5 = scalar_lea.hbm %s6274_s28, %s3063_s15  ;;  %s5398_s2 = scalar_lea.hbm %s6274_s28, %s3065_s0 }
 0x1d1   : > { %s4476_s3 = scalar_lea.hbm %s803_s5, 16  ;;  %p4479_p5 = scmp.lt.u32.totalorder %s803_s5, %s6274_s28 }
 0x1d2   : > { %p4477_p2 = scmp.ne.s32.totalorder %s803_s5, %s4476_s3  ;;  %p4480_p12 = scmp.lt.u32.totalorder %s5351_s8, %s4476_s3 }
 0x1d3   : > { %p4482_p0 = scmp.lt.u32.totalorder %s4476_s3, %s803_s5 }
 0x1d4   : > { %p4481_p6 = por %p4480_p12, %p4479_p5 }
 0x1d6   : > { %p4483_p4 = por %p4482_p0, %p4481_p6 }
 0x1d8   : > { %p4484_p7 = pnand %p4483_p4, %p4477_p2 }
 0x1da   : > { %4487 = shalt.err (!%p4484_p7)  }
 0x1db   : > { %s4488_s22 = scalar_lea.vmem %s5371_s27, 16  ;;  %p4493_p13 = scmp.lt.s32.totalorder %s5371_s27, %s5331_s17 }
 0x1dc   : > { %p4489_p9 = scmp.ne.s32.totalorder %s5371_s27, %s4488_s22  ;;  %p4494_p1 = scmp.lt.s32.totalorder %s5360_s6, %s4488_s22 }
 0x1de   : > { %p4495_p3 = por %p4494_p1, %p4493_p13 }
 0x1e0   : > { %p4496_p8 = pnand %p4495_p3, %p4489_p9 }
 0x1e2   : > { %4499 = shalt.err (!%p4496_p8)  }
 0x1e3   : > { %816 = dma.hbm_to_vmem [thread:$0]  %s803_s5, 16, %s5371_s27, [#allocation6 + $0x2]  ;;  %3526 = vmatpush3.bf16.msra.mxu0 %v3525_v15  ;;  %v3528_v23 = vpack.c.bf16 %v5375_v16, %v5366_v14  ;;  %v908_v24 = vld [vmem:[#allocation15 + $0x50] sm:$0xff]  ;;  %3541 = vmatpush3.bf16.msra.mxu1 %v3540_v22  ;;  %v3543_v25 = vpack.c.bf16 %v994_v21, %v993_v20  ;;  %v909_v26 = vld [vmem:[#allocation15 + $0x58] sm:$0xff]  ;;  %v995_v27 = vld [vmem:[#allocation17 + $0x20] sm:$0xff] }
 0x1e4   : > { %s5412_s24 = sld [smem:[#allocation8 + $0x4]]  ;;  %3527 = vmatprep.subr.bf16.mxu0 %v6220_v3  ;;  %3542 = vmatprep.subr.bf16.mxu1 %v6220_v3  ;;  %v996_v28 = vld [vmem:[#allocation17 + $0x28] sm:$0xff]  ;;  %s4787_s27 = smov [#allocation2 + $0x3]  }
 0x1e5   : > { %s829_s15 = sshll.u32 %s4787_s27, 4  ;;  %s4788_s0 = smov [#allocation2 + $0x4]   ;;  %s830_s15 = int_to_ptr.vmem [resolvable:$true] %s829_s15 }
 0x1e6   : > { %s845_s25 = sshll.u32 %s4788_s0, 4  ;;  %s4500_s7 = scalar_lea.hbm %s5398_s2, 16  ;;  %s5427_s25 = int_to_ptr.vmem [resolvable:$true] %s845_s25 }
 0x1e7   : > { %p4501_p11 = scmp.ne.s32.totalorder %s5398_s2, %s4500_s7  ;;  %p4503_p10 = scmp.lt.u32.totalorder %s5398_s2, %s6274_s28 }
 0x1e8   : > { %p4504_p2 = scmp.lt.u32.totalorder %s5351_s8, %s4500_s7  ;;  %p4506_p12 = scmp.lt.u32.totalorder %s4500_s7, %s5398_s2 }
 0x1ea   : > { %p4505_p5 = por %p4504_p2, %p4503_p10 }
 0x1ec   : > { %p4507_p6 = por %p4506_p12, %p4505_p5 }
 0x1ee   : > { %p4508_p0 = pnand %p4507_p6, %p4501_p11 }
 0x1f0   : > { %4511 = shalt.err (!%p4508_p0)  }
 0x1f1   : > { %s4512_s14 = scalar_lea.vmem %s830_s15, 16  ;;  %p4517_p7 = scmp.lt.s32.totalorder %s830_s15, %s5331_s17 }
 0x1f2   : > { %p4513_p4 = scmp.ne.s32.totalorder %s830_s15, %s4512_s14  ;;  %p4518_p9 = scmp.lt.s32.totalorder %s5360_s6, %s4512_s14 }
 0x1f4   : > { %p4519_p13 = por %p4518_p9, %p4517_p7 }
 0x1f6   : > { %p4520_p1 = pnand %p4519_p13, %p4513_p4 }
 0x1f8   : > { %4523 = shalt.err (!%p4520_p1)  }
 0x1f9   : > { %832 = dma.hbm_to_vmem [thread:$0]  %s5398_s2, 16, %s830_s15, [#allocation6 + $0x3]  ;;  %3529 = vmatpush3.bf16.msra.mxu0 %v3528_v23  ;;  %v3531_v29 = vpack.c.bf16 %v909_v26, %v908_v24  ;;  %v910_v30 = vld [vmem:[#allocation15 + $0x60] sm:$0xff]  ;;  %3544 = vmatpush3.bf16.msra.mxu1 %v3543_v25  ;;  %v3546_v31 = vpack.c.bf16 %v996_v28, %v995_v27  ;;  %v911_v32 = vld [vmem:[#allocation15 + $0x68] sm:$0xff]  ;;  %v997_v33 = vld [vmem:[#allocation17 + $0x30] sm:$0xff] }
 0x1fa   : > { %s5429_s3 = sld [smem:[#allocation8 + $0x5]]  ;;  %3530 = vmatprep.subr.bf16.mxu0 %v6220_v3  ;;  %3545 = vmatprep.subr.bf16.mxu1 %v6220_v3  ;;  %v998_v34 = vld [vmem:[#allocation17 + $0x38] sm:$0xff]  ;;  %s5433_s18 = sld [smem:[#allocation8 + $0x6]]  ;;  %v3534_v35 = vpack.c.bf16 %v911_v32, %v910_v30  ;;  %v5439_v36 = vld [vmem:[#allocation15 + $0x70] sm:$0xff] }
 0x1fb   : > { %s3067_s2 = sshll.u32 %s5412_s24, 4  ;;  %s4789_s30 = smov [#allocation2 + $0x5]   ;;  %v3549_v37 = vpack.c.bf16 %v998_v34, %v997_v33 }
 0x1fc   : > { %s861_s22 = sshll.u32 %s4789_s30, 4  ;;  %s835_s0 = scalar_lea.hbm %s6274_s28, %s3067_s2  ;;  %s862_s22 = int_to_ptr.vmem [resolvable:$true] %s861_s22 }
 0x1fd   : > { %3532 = vmatpush3.bf16.msra.mxu0 %v3531_v29  ;;  %3547 = vmatpush3.bf16.msra.mxu1 %v3546_v31  ;;  %s4524_s7 = scalar_lea.hbm %s835_s0, 16  ;;  %p4527_p8 = scmp.lt.u32.totalorder %s835_s0, %s6274_s28 }
 0x1fe   : > { %p4525_p3 = scmp.ne.s32.totalorder %s835_s0, %s4524_s7  ;;  %p4528_p11 = scmp.lt.u32.totalorder %s5351_s8, %s4524_s7 }
 0x1ff   : > { %p4530_p2 = scmp.lt.u32.totalorder %s4524_s7, %s835_s0 }
 0x200   : > { %p4529_p10 = por %p4528_p11, %p4527_p8 }
 0x202   : > { %p4531_p5 = por %p4530_p2, %p4529_p10 }
 0x204   : > { %p4532_p12 = pnand %p4531_p5, %p4525_p3 }
 0x206   : > { %4535 = shalt.err (!%p4532_p12)  }
 0x207   : > { %s4536_s24 = scalar_lea.vmem %s5427_s25, 16  ;;  %p4541_p0 = scmp.lt.s32.totalorder %s5427_s25, %s5331_s17 }
 0x208   : > { %p4537_p6 = scmp.ne.s32.totalorder %s5427_s25, %s4536_s24  ;;  %p4542_p4 = scmp.lt.s32.totalorder %s5360_s6, %s4536_s24 }
 0x20a   : > { %p4543_p7 = por %p4542_p4, %p4541_p0 }
 0x20c   : > { %p4544_p9 = pnand %p4543_p7, %p4537_p6 }
 0x20e   : > { %4547 = shalt.err (!%p4544_p9)  }
 0x20f   : > { %848 = dma.hbm_to_vmem [thread:$0]  %s835_s0, 16, %s5427_s25, [#allocation6 + $0x4]  ;;  %3533 = vmatprep.subr.bf16.mxu0 %v6220_v3  ;;  %v913_v38 = vld [vmem:[#allocation15 + $0x78] sm:$0xff]  ;;  %3548 = vmatprep.subr.bf16.mxu1 %v6220_v3  ;;  %v999_v39 = vld [vmem:[#allocation17 + $0x40] sm:$0xff]  ;;  %v1000_v40 = vld [vmem:[#allocation17 + $0x48] sm:$0xff] }
 0x210   : > { %s3069_s14 = sshll.u32 %s5429_s3, 4  ;;  %s4790_s2 = smov [#allocation2 + $0x6]   ;;  %3535 = vmatpush3.bf16.msra.mxu0 %v3534_v35  ;;  %v3537_v41 = vpack.c.bf16 %v913_v38, %v5439_v36  ;;  %3550 = vmatpush3.bf16.msra.mxu1 %v3549_v37  ;;  %v3552_v42 = vpack.c.bf16 %v1000_v40, %v999_v39 }
 0x211   : > { %s5454_s30 = sshll.u32 %s4790_s2, 4  ;;  %s851_s7 = scalar_lea.hbm %s6274_s28, %s3069_s14  ;;  %s878_s30 = int_to_ptr.vmem [resolvable:$true] %s5454_s30 }
 0x212   : > { %s3071_s5 = sshll.u32 %s5433_s18, 4  ;;  %s4548_s25 = scalar_lea.hbm %s851_s7, 16 }
 0x213   : > { %p4549_p13 = scmp.ne.s32.totalorder %s851_s7, %s4548_s25  ;;  %p4551_p1 = scmp.lt.u32.totalorder %s851_s7, %s6274_s28 }
 0x214   : > { %p4552_p3 = scmp.lt.u32.totalorder %s5351_s8, %s4548_s25  ;;  %p4554_p11 = scmp.lt.u32.totalorder %s4548_s25, %s851_s7 }
 0x216   : > { %p4553_p8 = por %p4552_p3, %p4551_p1 }
 0x218   : > { %p4555_p10 = por %p4554_p11, %p4553_p8 }
 0x21a   : > { %p4556_p2 = pnand %p4555_p10, %p4549_p13 }
 0x21c   : > { %4559 = shalt.err (!%p4556_p2)  }
 0x21d   : > { %s4560_s3 = scalar_lea.vmem %s862_s22, 16  ;;  %p4565_p12 = scmp.lt.s32.totalorder %s862_s22, %s5331_s17 }
 0x21e   : > { %p4561_p5 = scmp.ne.s32.totalorder %s862_s22, %s4560_s3  ;;  %p4566_p6 = scmp.lt.s32.totalorder %s5360_s6, %s4560_s3 }
 0x220   : > { %p4567_p0 = por %p4566_p6, %p4565_p12 }
 0x222   : > { %p4568_p4 = pnand %p4567_p0, %p4561_p5 }
 0x224   : > { %4571 = shalt.err (!%p4568_p4)  }
 0x225   : > { %864 = dma.hbm_to_vmem [thread:$0]  %s851_s7, 16, %s862_s22, [#allocation6 + $0x5]  ;;  %3536 = vmatprep.subr.bf16.mxu0 %v6220_v3  ;;  %v1084_v43 = vld [vmem:[#allocation18] sm:$0xff]  ;;  %v1085_v44 = vld [vmem:[#allocation18 + $0x8] sm:$0xff]  ;;  %3551 = vmatprep.subr.bf16.mxu1 %v6220_v3  ;;  %v1001_v45 = vld [vmem:[#allocation17 + $0x50] sm:$0xff] }
 0x226   : > { %s867_s14 = scalar_lea.hbm %s6274_s28, %s3071_s5  ;;  %v1002_v46 = vld [vmem:[#allocation17 + $0x58] sm:$0xff] }
 0x227   : > { %s4572_s2 = scalar_lea.hbm %s867_s14, 16  ;;  %p4575_p9 = scmp.lt.u32.totalorder %s867_s14, %s6274_s28 }
 0x228   : > { %p4573_p7 = scmp.ne.s32.totalorder %s867_s14, %s4572_s2  ;;  %p4576_p13 = scmp.lt.u32.totalorder %s5351_s8, %s4572_s2 }
 0x229   : > { %p4578_p3 = scmp.lt.u32.totalorder %s4572_s2, %s867_s14 }
 0x22a   : > { %p4577_p1 = por %p4576_p13, %p4575_p9 }
 0x22c   : > { %p4579_p8 = por %p4578_p3, %p4577_p1 }
 0x22e   : > { %p4580_p11 = pnand %p4579_p8, %p4573_p7 }
 0x230   : > { %4583 = shalt.err (!%p4580_p11)  }
 0x231   : > { %s4584_s22 = scalar_lea.vmem %s878_s30, 16  ;;  %p4589_p2 = scmp.lt.s32.totalorder %s878_s30, %s5331_s17 }
 0x232   : > { %p4585_p10 = scmp.ne.s32.totalorder %s878_s30, %s4584_s22  ;;  %p4590_p5 = scmp.lt.s32.totalorder %s5360_s6, %s4584_s22 }
 0x234   : > { %p4591_p12 = por %p4590_p5, %p4589_p2 }
 0x236   : > { %p4592_p6 = pnand %p4591_p12, %p4585_p10 }
 0x238   : > { %4595 = shalt.err (!%p4592_p6)  }
 0x239   : > { %880 = dma.hbm_to_vmem [thread:$0]  %s867_s14, 16, %s878_s30, [#allocation6 + $0x6]  ;;  %3538 = vmatpush3.bf16.msra.mxu0 %v3537_v41  ;;  %v5479_v47 = vld [vmem:[#allocation9] sm:$0xff]  ;;  %v3564_v48 = vpack.c.bf16 %v1085_v44, %v1084_v43  ;;  %3553 = vmatpush3.bf16.msra.mxu1 %v3552_v42  ;;  %v1086_v49 = vld [vmem:[#allocation18 + $0x10] sm:$0xff]  ;;  %v3555_v51 = vpack.c.bf16 %v1002_v46, %v1001_v45  ;;  %v1003_v52 = vld [vmem:[#allocation17 + $0x60] sm:$0xff] }
 0x23a   : > { %3563 = vmatprep.subr.bf16.mxu0 %v6220_v3  ;;  %v1087_v50 = vld [vmem:[#allocation18 + $0x18] sm:$0xff]  ;;  %3554 = vmatprep.subr.bf16.mxu1 %v6220_v3  ;;  %v1004_v53 = vld [vmem:[#allocation17 + $0x68] sm:$0xff]  ;;  %v1088_v55 = vld [vmem:[#allocation18 + $0x20] sm:$0xff]  ;;  %s3072_s30 = sld [smem:[#allocation8 + $0x7]]  ;;  %s4791_s5 = smov [#allocation2 + $0x7]  }
 0x23b   : > { %v3567_v54 = vpack.c.bf16 %v1087_v50, %v1086_v49  ;;  %v1089_v56 = vld [vmem:[#allocation18 + $0x28] sm:$0xff]  ;;  %v3558_v57 = vpack.c.bf16 %v1004_v53, %v1003_v52  ;;  %v1005_v58 = vld [vmem:[#allocation17 + $0x70] sm:$0xff]  ;;  %v1006_v59 = vld [vmem:[#allocation17 + $0x78] sm:$0xff]  ;;  %s893_s25 = sshll.u32 %s4791_s5, 4  ;;  %s894_s25 = int_to_ptr.vmem [resolvable:$true] %s893_s25 }
 0x23c   : > { %3268 = vmatmul.mubr.f32.vlgmr.msra.gmra.mrb[0].mxu0 %v5479_v47  ;;  %v3570_v60 = vpack.c.bf16 %v1089_v56, %v1088_v55  ;;  %v1090_v61 = vld [vmem:[#allocation18 + $0x30] sm:$0xff]  ;;  %v1091_v62 = vld [vmem:[#allocation18 + $0x38] sm:$0xff]  ;;  %v3561_v63 = vpack.c.bf16 %v1006_v59, %v1005_v58  ;;  %v1092_v2 = vld [vmem:[#allocation18 + $0x40] sm:$0xff] }
 0x23d   : > { %3565 = vmatpush3.bf16.msra.mxu0 %v3564_v48  ;;  %3337 = vmatprep.mubr.msk.f32.mxu0 %vm4782_vm0, %v4783_v7  ;;  %v3573_v1 = vpack.c.bf16 %v1091_v62, %v1090_v61  ;;  %v1093_v4 = vld [vmem:[#allocation18 + $0x48] sm:$0xff]  ;;  %v1094_v6 = vld [vmem:[#allocation18 + $0x50] sm:$0xff]  ;;  %v1095_v8 = vld [vmem:[#allocation18 + $0x58] sm:$0xff] }
 0x23e   : > { %3566 = vmatprep.subr.bf16.mxu0 %v6220_v3  ;;  %3556 = vmatpush3.bf16.msra.mxu1 %v3555_v51  ;;  %v3576_v5 = vpack.c.bf16 %v1093_v4, %v1092_v2  ;;  %v3579_v9 = vpack.c.bf16 %v1095_v8, %v1094_v6  ;;  %v1096_v10 = vld [vmem:[#allocation18 + $0x60] sm:$0xff]  ;;  %v1097_v11 = vld [vmem:[#allocation18 + $0x68] sm:$0xff]  ;;  %v1098_v13 = vld [vmem:[#allocation18 + $0x70] sm:$0xff] }
 0x23f   : > { %3557 = vmatprep.subr.bf16.mxu1 %v6220_v3  ;;  %v3582_v12 = vpack.c.bf16 %v1097_v11, %v1096_v10  ;;  %v1099_v14 = vld [vmem:[#allocation18 + $0x78] sm:$0xff] }
 0x240   : > { %v3585_v15 = vpack.c.bf16 %v1099_v14, %v1098_v13  ;;  %s3073_s7 = sshll.u32 %s3072_s30, 4 }
 0x241   : > { %3568 = vmatpush3.bf16.msra.mxu0 %v3567_v54  ;;  %s883_s3 = scalar_lea.hbm %s6274_s28, %s3073_s7 }
 0x242   : > { %3569 = vmatprep.subr.bf16.mxu0 %v6220_v3  ;;  %3559 = vmatpush3.bf16.msra.mxu1 %v3558_v57  ;;  %s4596_s18 = scalar_lea.hbm %s883_s3, 16  ;;  %p4599_p4 = scmp.lt.u32.totalorder %s883_s3, %s6274_s28 }
 0x243   : > { %3560 = vmatprep.subr.bf16.mxu1 %v6220_v3  ;;  %p4597_p0 = scmp.ne.s32.totalorder %s883_s3, %s4596_s18  ;;  %p4600_p7 = scmp.lt.u32.totalorder %s5351_s8, %s4596_s18 }
 0x244   : > { %p4602_p13 = scmp.lt.u32.totalorder %s4596_s18, %s883_s3 }
 0x245   : > { %3571 = vmatpush3.bf16.msra.mxu0 %v3570_v60  ;;  %p4601_p9 = por %p4600_p7, %p4599_p4 }
 0x246   : > { %3572 = vmatprep.subr.bf16.mxu0 %v6220_v3  ;;  %3562 = vmatpush3.bf16.msra.mxu1 %v3561_v63 }
 0x247   : > { %p4603_p1 = por %p4602_p13, %p4601_p9 }
 0x249   : > { %3574 = vmatpush3.bf16.msra.mxu0 %v3573_v1  ;;  %3303 = vmatmul.mubr.f32.vlgmr.msra.gmra.mrb[0].mxu1 %v5479_v47  ;;  %p4604_p3 = pnand %p4603_p1, %p4597_p0 }
 0x24a   : > { %3575 = vmatprep.subr.bf16.mxu0 %v6220_v3 }
 0x24d   : > { %3577 = vmatpush3.bf16.msra.mxu0 %v3576_v5 }
 0x24e   : > { %3578 = vmatprep.subr.bf16.mxu0 %v6220_v3 }
 0x251   : > { %3580 = vmatpush3.bf16.msra.mxu0 %v3579_v9 }
 0x252   : > { %3581 = vmatprep.subr.bf16.mxu0 %v6220_v3 }
 0x255   : > { %3583 = vmatpush3.bf16.msra.mxu0 %v3582_v12 }
 0x256   : > { %3584 = vmatprep.subr.bf16.mxu0 %v6220_v3 }
 0x259   : > { %3586 = vmatpush3.bf16.msra.mxu0 %v3585_v15 }
 0x25c   : > { %3338 = vmatmul.mubr.f32.vlgmr.msra.gmra.mrb[2].mxu0 %v5479_v47 }
 0x25d   : > { %4607 = shalt.err (!%p4604_p3)  }
 0x25e   : > { %s4608_s2 = scalar_lea.vmem %s894_s25, 16  ;;  %p4613_p11 = scmp.lt.s32.totalorder %s894_s25, %s5331_s17 }
 0x25f   : > { %p4609_p8 = scmp.ne.s32.totalorder %s894_s25, %s4608_s2  ;;  %p4614_p10 = scmp.lt.s32.totalorder %s5360_s6, %s4608_s2 }
 0x261   : > { %p4615_p2 = por %p4614_p10, %p4613_p11 }
 0x263   : > { %p4616_p5 = pnand %p4615_p2, %p4609_p8 }
 0x265   : > { %4619 = shalt.err (!%p4616_p5)  }
 0x266   : > { %896 = dma.hbm_to_vmem [thread:$0]  %s883_s3, 16, %s894_s25, [#allocation6 + $0x7]  ;;  %v3076_v16 = vld [vmem:[#allocation24] ss:$0 sm:$0xff] }
 0x32f   : > { %v1173_v18 = vpop.f32.mrb[2].mxu0 }
 0x330   : > { %v5506_v19 = vadd.f32 %v3076_v16, %v1173_v18  ;;  %v3339_v20 = vpop.f32.mrb[3].mxu0 }
 0x331   : > { %4722 = dma.done.wait [#allocation6], 16 }
 0x332   : > { %4723 = vsyncadd [#allocation6], 4294967280 }
 0x333   : > { %4724 = dma.done.wait [#allocation6 + $0x1], 16 }
 0x334   : > { %4725 = vsyncadd [#allocation6 + $0x1], 4294967280 }
 0x335   : > { %4726 = dma.done.wait [#allocation6 + $0x2], 16 }
 0x336   : > { %4727 = vsyncadd [#allocation6 + $0x2], 4294967280 }
 0x337   : > { %4728 = dma.done.wait [#allocation6 + $0x3], 16 }
 0x338   : > { %4729 = vsyncadd [#allocation6 + $0x3], 4294967280 }
 0x339   : > { %4730 = dma.done.wait [#allocation6 + $0x4], 16 }
 0x33a   : > { %4731 = vsyncadd [#allocation6 + $0x4], 4294967280 }
 0x33b   : > { %4732 = dma.done.wait [#allocation6 + $0x5], 16 }
 0x33c   : > { %4733 = vsyncadd [#allocation6 + $0x5], 4294967280 }
 0x33d   : > { %4734 = dma.done.wait [#allocation6 + $0x6], 16 }
 0x33e   : > { %4735 = vsyncadd [#allocation6 + $0x6], 4294967280 }
 0x33f   : > { %4736 = dma.done.wait [#allocation6 + $0x7], 16 }
 0x340   : > { %4737 = vsyncadd [#allocation6 + $0x7], 4294967280  ;;  %vm2406_vm1 = vcmask 7168   ;;  %3611 = vmatprep.subr.bf16.mxu1 %v6220_v3  ;;  %3587 = vmatprep.subr.bf16.mxu0 %v6220_v3  ;;  %v4792_v21 = vmov -inf   ;;  %v1287_v22 = vld [vmem:[#allocation12] sm:$0xff]  ;;  %v1288_v23 = vld [vmem:[#allocation12 + $0x8] sm:$0xff] }
 0x341   : > { %2407 = vst.msk [vmem:[#allocation4] sm:$0xff] %vm2406_vm1, %v4792_v21  ;;  %2408 = vst.msk [vmem:[#allocation5] sm:$0xff] %vm2406_vm1, %v4783_v7  ;;  %3407 = vmatprep.mubr.msk.f32.mxu1 %vm4782_vm0, %v4783_v7  ;;  %3372 = vmatprep.mubr.msk.f32.mxu0 %vm4782_vm0, %v4783_v7  ;;  %s6275_s6 = sld [smem:[#allocation75_spill]]  ;;  %v3612_v25 = vpack.c.bf16 %v1288_v23, %v1287_v22  ;;  %v1289_v27 = vld [vmem:[#allocation12 + $0x10] sm:$0xff]  ;;  %v1290_v28 = vld [vmem:[#allocation12 + $0x18] sm:$0xff]  ;;  %s6276_s27 = sld [smem:[#allocation74_spill]] }
 0x342   : > { %v3615_v32 = vpack.c.bf16 %v1290_v28, %v1289_v27  ;;  %v1291_v34 = vld [vmem:[#allocation12 + $0x20] sm:$0xff]  ;;  %v1292_v35 = vld [vmem:[#allocation12 + $0x28] sm:$0xff]  ;;  %v1293_v40 = vld [vmem:[#allocation12 + $0x30] sm:$0xff]  ;;  %vm1603_vm2 = vcmask 1040384   ;;  %vm1669_vm3 = vcmask 130112   ;;  %vm1734_vm4 = vcmask 1041409  }
 0x343   : > { %3613 = vmatpush3.bf16.msra.mxu1 %v3612_v25  ;;  %v3618_v38 = vpack.c.bf16 %v1292_v35, %v1291_v34  ;;  %v1294_v41 = vld [vmem:[#allocation12 + $0x38] sm:$0xff]  ;;  %v1295_v46 = vld [vmem:[#allocation12 + $0x40] sm:$0xff]  ;;  %v1296_v48 = vld [vmem:[#allocation12 + $0x48] sm:$0xff]  ;;  %vm1736_vm5 = vcmask 1042434   ;;  %vm1738_vm6 = vcmask 1043459   ;;  %vm1740_vm7 = vcmask 1044484  }
 0x344   : > { %3614 = vmatprep.subr.bf16.mxu1 %v6220_v3  ;;  %v3621_v44 = vpack.c.bf16 %v1294_v41, %v1293_v40  ;;  %v3624_v51 = vpack.c.bf16 %v1296_v48, %v1295_v46  ;;  %v1297_v53 = vld [vmem:[#allocation12 + $0x50] sm:$0xff]  ;;  %v1298_v54 = vld [vmem:[#allocation12 + $0x58] sm:$0xff]  ;;  %v1299_v59 = vld [vmem:[#allocation12 + $0x60] sm:$0xff]  ;;  %vm1742_vm8 = vcmask 1045509   ;;  %vm1744_vm9 = vcmask 1046534   ;;  %s6281_s30 = sld [smem:[#allocation81_spill]] }
 0x345   : > { %v3627_v57 = vpack.c.bf16 %v1298_v54, %v1297_v53  ;;  %v1300_v60 = vld [vmem:[#allocation12 + $0x68] sm:$0xff]  ;;  %v1301_v2 = vld [vmem:[#allocation12 + $0x70] sm:$0xff]  ;;  %v1302_v4 = vld [vmem:[#allocation12 + $0x78] sm:$0xff]  ;;  %vm1746_vm10 = vcmask 1047559   ;;  %vm1749_vm11 = vcmask 72704  }
 0x346   : > { %v3630_v63 = vpack.c.bf16 %v1300_v60, %v1299_v59  ;;  %v3633_v8 = vpack.c.bf16 %v1302_v4, %v1301_v2  ;;  %v1379_v10 = vld [vmem:[#allocation14] sm:$0xff]  ;;  %v1380_v11 = vld [vmem:[#allocation14 + $0x8] sm:$0xff]  ;;  %v1194_v12 = vld [vmem:[#allocation2] sm:$0xff] }
 0x347   : > { %v1195_v24 = vld [vmem:[%s6275_s6] sm:$0xff]  ;;  %v1196_v26 = vld [vmem:[%s6275_s6 + $0x8] sm:$0xff]  ;;  %v1197_v30 = vld [vmem:[%s6275_s6 + $0x10] sm:$0xff]  ;;  %3616 = vmatpush3.bf16.msra.mxu1 %v3615_v32  ;;  %v3636_v13 = vpack.c.bf16 %v1380_v11, %v1379_v10 }
 0x348   : > { %v3588_v29 = vpack.c.bf16 %v1196_v26, %v1195_v24  ;;  %v1198_v31 = vld [vmem:[%s6275_s6 + $0x18] sm:$0xff]  ;;  %v1199_v36 = vld [vmem:[%s6275_s6 + $0x20] sm:$0xff]  ;;  %v1200_v37 = vld [vmem:[%s6275_s6 + $0x28] sm:$0xff]  ;;  %3617 = vmatprep.subr.bf16.mxu1 %v6220_v3 }
 0x349   : > { %v3591_v33 = vpack.c.bf16 %v1198_v31, %v1197_v30  ;;  %v3594_v39 = vpack.c.bf16 %v1200_v37, %v1199_v36  ;;  %v1201_v42 = vld [vmem:[%s6275_s6 + $0x30] sm:$0xff]  ;;  %v1202_v43 = vld [vmem:[%s6275_s6 + $0x38] sm:$0xff]  ;;  %v1203_v49 = vld [vmem:[%s6275_s6 + $0x40] sm:$0xff] }
 0x34a   : > { %3589 = vmatpush3.bf16.msra.mxu0 %v3588_v29  ;;  %v3597_v45 = vpack.c.bf16 %v1202_v43, %v1201_v42  ;;  %v1204_v50 = vld [vmem:[%s6275_s6 + $0x48] sm:$0xff]  ;;  %v1205_v55 = vld [vmem:[%s6275_s6 + $0x50] sm:$0xff]  ;;  %v1206_v56 = vld [vmem:[%s6275_s6 + $0x58] sm:$0xff]  ;;  %s6282_s7 = smov %s6281_s30 }
 0x34b   : > { %3590 = vmatprep.subr.bf16.mxu0 %v6220_v3  ;;  %3619 = vmatpush3.bf16.msra.mxu1 %v3618_v38  ;;  %v3600_v52 = vpack.c.bf16 %v1204_v50, %v1203_v49  ;;  %v3603_v58 = vpack.c.bf16 %v1206_v56, %v1205_v55  ;;  %v1207_v61 = vld [vmem:[%s6275_s6 + $0x60] sm:$0xff]  ;;  %v1208_v62 = vld [vmem:[%s6275_s6 + $0x68] sm:$0xff]  ;;  %v1209_v5 = vld [vmem:[%s6275_s6 + $0x70] sm:$0xff] }
 0x34c   : > { %3620 = vmatprep.subr.bf16.mxu1 %v6220_v3  ;;  %v3606_v1 = vpack.c.bf16 %v1208_v62, %v1207_v61  ;;  %v1210_v6 = vld [vmem:[%s6275_s6 + $0x78] sm:$0xff]  ;;  %v1382_v15 = vld [vmem:[#allocation14 + $0x18] sm:$0xff]  ;;  %v1383_v18 = vld [vmem:[#allocation14 + $0x20] sm:$0xff] }
 0x34d   : > { %v3609_v9 = vpack.c.bf16 %v1210_v6, %v1209_v5  ;;  %v1381_v14 = vld [vmem:[#allocation14 + $0x10] sm:$0xff]  ;;  %v1384_v20 = vld [vmem:[#allocation14 + $0x28] sm:$0xff]  ;;  %v1386_v23 = vld [vmem:[#allocation14 + $0x38] sm:$0xff] }
 0x34e   : > { %3592 = vmatpush3.bf16.msra.mxu0 %v3591_v33  ;;  %v3639_v16 = vpack.c.bf16 %v1382_v15, %v1381_v14  ;;  %v3642_v21 = vpack.c.bf16 %v1384_v20, %v1383_v18  ;;  %v1385_v22 = vld [vmem:[#allocation14 + $0x30] sm:$0xff]  ;;  %v1387_v25 = vld [vmem:[#allocation14 + $0x40] sm:$0xff]  ;;  %v1388_v26 = vld [vmem:[#allocation14 + $0x48] sm:$0xff]  ;;  %v4793_v20 = vmov 1966171168  }
 0x34f   : > { %3593 = vmatprep.subr.bf16.mxu0 %v6220_v3  ;;  %3622 = vmatpush3.bf16.msra.mxu1 %v3621_v44  ;;  %v3645_v24 = vpack.c.bf16 %v1386_v23, %v1385_v22  ;;  %v3648_v27 = vpack.c.bf16 %v1388_v26, %v1387_v25  ;;  %v1389_v28 = vld [vmem:[#allocation14 + $0x50] sm:$0xff]  ;;  %v1390_v29 = vld [vmem:[#allocation14 + $0x58] sm:$0xff]  ;;  %v1391_v31 = vld [vmem:[#allocation14 + $0x60] sm:$0xff] }
 0x350   : > { %3623 = vmatprep.subr.bf16.mxu1 %v6220_v3  ;;  %v3651_v30 = vpack.c.bf16 %v1390_v29, %v1389_v28  ;;  %v1392_v32 = vld [vmem:[#allocation14 + $0x68] sm:$0xff]  ;;  %v1393_v34 = vld [vmem:[#allocation14 + $0x70] sm:$0xff]  ;;  %v1394_v35 = vld [vmem:[#allocation14 + $0x78] sm:$0xff] }
 0x351   : > { %v3654_v33 = vpack.c.bf16 %v1392_v32, %v1391_v31  ;;  %v3657_v36 = vpack.c.bf16 %v1394_v35, %v1393_v34  ;;  %v2207_v37 = vld [vmem:[#allocation26] sm:$0xff]  ;;  %v2208_v38 = vld [vmem:[#allocation26 + $0x8] sm:$0xff]  ;;  %v2209_v40 = vld [vmem:[#allocation26 + $0x10] sm:$0xff] }
 0x352   : > { %3595 = vmatpush3.bf16.msra.mxu0 %v3594_v39  ;;  %v3684_v39 = vpack.c.bf16 %v2208_v38, %v2207_v37  ;;  %v2210_v41 = vld [vmem:[#allocation26 + $0x18] sm:$0xff]  ;;  %v2211_v43 = vld [vmem:[#allocation26 + $0x20] sm:$0xff]  ;;  %v2212_v44 = vld [vmem:[#allocation26 + $0x28] sm:$0xff] }
 0x353   : > { %3596 = vmatprep.subr.bf16.mxu0 %v6220_v3  ;;  %3625 = vmatpush3.bf16.msra.mxu1 %v3624_v51  ;;  %v3687_v42 = vpack.c.bf16 %v2210_v41, %v2209_v40  ;;  %v2213_v46 = vld [vmem:[#allocation26 + $0x30] sm:$0xff]  ;;  %v2215_v49 = vld [vmem:[#allocation26 + $0x40] sm:$0xff]  ;;  %v2216_v50 = vld [vmem:[#allocation26 + $0x48] sm:$0xff] }
 0x354   : > { %3626 = vmatprep.subr.bf16.mxu1 %v6220_v3  ;;  %v3696_v51 = vpack.c.bf16 %v2216_v50, %v2215_v49  ;;  %v2218_v53 = vld [vmem:[#allocation26 + $0x58] sm:$0xff]  ;;  %v2219_v55 = vld [vmem:[#allocation26 + $0x60] sm:$0xff]  ;;  %v2220_v56 = vld [vmem:[#allocation26 + $0x68] sm:$0xff] }
 0x355   : > { %v2222_v59 = vld [vmem:[#allocation26 + $0x78] sm:$0xff]  ;;  %v5614_v35 = vld [vmem:[%s6276_s27] sm:$0xff]  ;;  %v5625_v38 = vld [vmem:[%s6276_s27 + $0x10] sm:$0xff] }
 0x356   : > { %3598 = vmatpush3.bf16.msra.mxu0 %v3597_v45  ;;  %v3690_v45 = vpack.c.bf16 %v2212_v44, %v2211_v43  ;;  %v5620_v37 = vld [vmem:[%s6276_s27 + $0x8] sm:$0x1]  ;;  %v5632_v43 = vld [vmem:[%s6276_s27 + $0x18] sm:$0x1] }
 0x357   : > { %3599 = vmatprep.subr.bf16.mxu0 %v6220_v3  ;;  %3628 = vmatpush3.bf16.msra.mxu1 %v3627_v57  ;;  %v3702_v57 = vpack.c.bf16 %v2220_v56, %v2219_v55  ;;  %v5641_v49 = vld [vmem:[%s6276_s27 + $0x28] sm:$0x1] }
 0x358   : > { %3629 = vmatprep.subr.bf16.mxu1 %v6220_v3 }
 0x35a   : > { %3601 = vmatpush3.bf16.msra.mxu0 %v3600_v52  ;;  %v2217_v52 = vld [vmem:[#allocation26 + $0x50] sm:$0xff] }
 0x35b   : > { %3602 = vmatprep.subr.bf16.mxu0 %v6220_v3  ;;  %3631 = vmatpush3.bf16.msra.mxu1 %v3630_v63  ;;  %v3699_v54 = vpack.c.bf16 %v2218_v53, %v2217_v52 }
 0x35c   : > { %3632 = vmatprep.subr.bf16.mxu1 %v6220_v3 }
 0x35e   : > { %3604 = vmatpush3.bf16.msra.mxu0 %v3603_v58  ;;  %v2221_v58 = vld [vmem:[#allocation26 + $0x70] sm:$0xff] }
 0x35f   : > { %3605 = vmatprep.subr.bf16.mxu0 %v6220_v3  ;;  %3634 = vmatpush3.bf16.msra.mxu1 %v3633_v8  ;;  %v3705_v60 = vpack.c.bf16 %v2222_v59, %v2221_v58  ;;  %v5656_v58 = vld [vmem:[%s6276_s27 + $0x48] sm:$0x1]  ;;  %v5661_v59 = vld [vmem:[%s6276_s27 + $0x40] sm:$0xff] }
 0x360   : > { %3635 = vmatprep.subr.bf16.mxu1 %v6220_v3 }
 0x362   : > { %3607 = vmatpush3.bf16.msra.mxu0 %v3606_v1  ;;  %3408 = vmatmul.mubr.f32.vlgmr.msra.gmra.mrb[0].mxu1 %v1194_v12 }
 0x363   : > { %3608 = vmatprep.subr.bf16.mxu0 %v6220_v3  ;;  %3637 = vmatpush3.bf16.msra.mxu1 %v3636_v13  ;;  %v3079_v13 = vld [vmem:[#allocation23] ss:$0 sm:$0xff] }
 0x364   : > { %3638 = vmatprep.subr.bf16.mxu1 %v6220_v3  ;;  %3442 = vmatprep.mubr.msk.f32.mxu1 %vm4782_vm0, %v4783_v7 }
 0x366   : > { %3610 = vmatpush3.bf16.msra.mxu0 %v3609_v9 }
 0x367   : > { %3659 = vmatprep.subr.bf16.mxu0 %v6220_v3  ;;  %3640 = vmatpush3.bf16.msra.mxu1 %v3639_v16 }
 0x368   : > { %3641 = vmatprep.subr.bf16.mxu1 %v6220_v3 }
 0x369   : > { %3373 = vmatmul.mubr.f32.vlgmr.msra.gmra.mrb[0].mxu0 %v1194_v12 }
 0x36a   : > { %3477 = vmatprep.mubr.msk.f32.mxu0 %vm4782_vm0, %v4783_v7 }
 0x36b   : > { %3643 = vmatpush3.bf16.msra.mxu1 %v3642_v21  ;;  %v1498_v21 = vunpack.c.l.s4 %v4793_v20  ;;  %v5703_v20 = vld [vmem:[%s6276_s27 + $0x60] sm:$0xff] }
 0x36c   : > { %3644 = vmatprep.subr.bf16.mxu1 %v6220_v3 }
 0x36d   : > { %v1499_v23 = vunpack.c.0.s8 %v1498_v21 }
 0x36f   : > { %3646 = vmatpush3.bf16.msra.mxu1 %v3645_v24 }
 0x370   : > { %3647 = vmatprep.subr.bf16.mxu1 %v6220_v3 }
 0x373   : > { %3649 = vmatpush3.bf16.msra.mxu1 %v3648_v27 }
 0x374   : > { %3650 = vmatprep.subr.bf16.mxu1 %v6220_v3 }
 0x377   : > { %3652 = vmatpush3.bf16.msra.mxu1 %v3651_v30 }
 0x378   : > { %3653 = vmatprep.subr.bf16.mxu1 %v6220_v3 }
 0x37b   : > { %3655 = vmatpush3.bf16.msra.mxu1 %v3654_v33 }
 0x37c   : > { %3656 = vmatprep.subr.bf16.mxu1 %v6220_v3 }
 0x37f   : > { %3658 = vmatpush3.bf16.msra.mxu1 %v3657_v36 }
 0x380   : > { %3683 = vmatprep.subr.bf16.mxu1 %v6220_v3 }
 0x382   : > { %3443 = vmatmul.mubr.f32.vlgmr.msra.gmra.mrb[2].mxu1 %v1194_v12 }
 0x383   : > { %3512 = vmatprep.mubr.msk.f32.mxu1 %vm4782_vm0, %v4783_v7  ;;  %3685 = vmatpush3.bf16.msra.mxu1 %v3684_v39  ;;  %v2214_v7 = vld [vmem:[#allocation26 + $0x38] sm:$0xff] }
 0x384   : > { %3686 = vmatprep.subr.bf16.mxu1 %v6220_v3  ;;  %v3693_v48 = vpack.c.bf16 %v2214_v7, %v2213_v46 }
 0x387   : > { %3688 = vmatpush3.bf16.msra.mxu1 %v3687_v42 }
 0x388   : > { %3689 = vmatprep.subr.bf16.mxu1 %v6220_v3 }
 0x38b   : > { %3691 = vmatpush3.bf16.msra.mxu1 %v3690_v45 }
 0x38c   : > { %3692 = vmatprep.subr.bf16.mxu1 %v6220_v3 }
 0x38f   : > { %3694 = vmatpush3.bf16.msra.mxu1 %v3693_v48 }
 0x390   : > { %3695 = vmatprep.subr.bf16.mxu1 %v6220_v3 }
 0x393   : > { %3697 = vmatpush3.bf16.msra.mxu1 %v3696_v51  ;;  %v5647_v51 = vld [vmem:[%s6276_s27 + $0x20] sm:$0xff] }
 0x394   : > { %3698 = vmatprep.subr.bf16.mxu1 %v6220_v3 }
 0x397   : > { %3700 = vmatpush3.bf16.msra.mxu1 %v3699_v54 }
 0x398   : > { %3701 = vmatprep.subr.bf16.mxu1 %v6220_v3 }
 0x39b   : > { %3703 = vmatpush3.bf16.msra.mxu1 %v3702_v57 }
 0x39c   : > { %3704 = vmatprep.subr.bf16.mxu1 %v6220_v3 }
 0x39f   : > { %3706 = vmatpush3.bf16.msra.mxu1 %v3705_v60 }
 0x435   : > { %v1369_v61 = vpop.f32.mrb[0].mxu1 }
 0x436   : > { %v3409_v62 = vpop.f32.mrb[1].mxu1  ;;  %v3772_v5 = vadd.f32 %v5377_v17, %v1369_v61  ;;  %v1500_v17 = vlaneseq }
 0x438   : > { %v3078_v6 = vmul.f32 -1.442695, %v3772_v5  ;;  %v5604_v24 = vshrl.u32 %v1500_v17, 7 }
 0x43a   : > { %v5609_v31 = vsub.s32 0, %v5604_v24 }
 0x43c   : > { %v1277_v63 = vpop.f32.mrb[0].mxu0 }
 0x43d   : > { %v3771_v1 = vadd.f32 %v5320_v0, %v1277_v63  ;;  %v3374_v2 = vpop.f32.mrb[1].mxu0 }
 0x43e   : > { %v5670_v2 = vld [vmem:[%s6276_s27 + $0x38] sm:$0x1] }
 0x43f   : > { %v3077_v4 = vmul.f32 -1.442695, %v3771_v1 }
 0x441   : > { %3976 = vpow2.f32 %v3077_v4  ;;  %v5675_v4 = vld [vmem:[%s6276_s27 + $0x30] sm:$0xff] }
 0x442   : > { %3978 = vpow2.f32 %v3078_v6 }
 0x44b   : > { %v3977_v8 = vpop.eup %3976 }
 0x44c   : > { %v1284_v9 = vadd.f32 1.0, %v3977_v8  ;;  %v3979_v10 = vpop.eup %3978 }
 0x44d   : > { %v1376_v12 = vadd.f32 1.0, %v3979_v10 }
 0x44e   : > { %3980 = vrcp.f32 %v1284_v9 }
 0x44f   : > { %3982 = vrcp.f32 %v1376_v12  ;;  %v5689_v12 = vld [vmem:[%s6276_s27 + $0x50] sm:$0xff] }
 0x455   : > { %v1468_v15 = vpop.f32.mrb[2].mxu1 }
 0x456   : > { %v1469_v16 = vadd.f32 %v3079_v13, %v1468_v15  ;;  %v3444_v0 = vpop.f32.mrb[3].mxu1 }
 0x458   : > { %v3981_v11 = vpop.eup %3980 }
 0x459   : > { %v1472_v14 = vmul.f32 %v3981_v11, %v5506_v19  ;;  %v3983_v22 = vpop.eup %3982  ;;  %v1502_v19 = vsub.s32 %v1499_v23, %v5604_v24  ;;  %v5684_v11 = vld [vmem:[%s6276_s27 + $0x58] sm:$0x1] }
 0x45a   : > { %v1475_v25 = vsub.f32 1.0, %v3983_v22  ;;  %v1477_v28 = vmul.f32 %v3983_v22, %v5479_v47 }
 0x45b   : > { %v1473_v18 = vadd.f32 %v1472_v14, %v1469_v16 }
 0x45d   : > { %3984 = vtanh.f32 %v1473_v18  ;;  %v5698_v18 = vld [vmem:[%s6276_s27 + $0x68] sm:$0x1] }
 0x467   : > { %v3985_v26 = vpop.eup %3984 }
 0x468   : > { %v1476_v27 = vmul.f32 %v3985_v26, %v1475_v25  ;;  %v5712_v26 = vld [vmem:[%s6276_s27 + $0x78] sm:$0x1] }
 0x46a   : > { %v1478_v29 = vadd.f32 %v1477_v28, %v1476_v27  ;;  %v5717_v27 = vld [vmem:[%s6276_s27 + $0x70] sm:$0xff] }
 0x46c   : > { %3513 = vmatmul.mubr.f32.vlgmr.msra.gmra.mrb[4].mxu1 %v1478_v29  ;;  %2405 = vst [vmem:[#allocation31] sm:$0xff] %v1478_v29  ;;  %v1503_v30 = vrot.slane %v1478_v29, %v1502_v19  ;;  %v1496_v32 = vcombine.high %v1478_v29, %v1478_v29 }
 0x46e   : > { %v1519_v33 = vrot.slane %v1503_v30, %v1502_v19  ;;  %v1511_v34 = vcombine.high %v1503_v30, %v1503_v30  ;;  %v1510_v40 = vrot.slane %v1496_v32, %v1502_v19 }
 0x470   : > { %v1548_v36 = vrot.slane %v1519_v33, %v5609_v31  ;;  %v1533_v47 = vrot.slane %v1511_v34, %v1502_v19  ;;  %v1541_v39 = vcombine.high %v1519_v33, %v1519_v33  ;;  %v1526_v48 = vrot.slane %v1510_v40, %v1502_v19 }
 0x471   : > { %v1512_v52 = vcombine.high %v1510_v40, %v1510_v40  ;;  %v1659_v40 = vand.u32 127, %v1500_v17 }
 0x472   : > { %v1585_v41 = vmul.f32 %v1548_v36, %v5614_v35  ;;  %v1552_v42 = vrot.slane %v1533_v47, %v5609_v31  ;;  %v1586_v44 = vmul.f32 %v1548_v36, %v5620_v37  ;;  %v1556_v7 = vrot.slane %v1541_v39, %v5609_v31 }
 0x473   : > { %v1564_v55 = vrot.slane %v1526_v48, %v5609_v31  ;;  %v1543_v56 = vcombine.high %v1533_v47, %v1533_v47  ;;  %v1540_v63 = vrot.slane %v1512_v52, %v1502_v19  ;;  %v1542_v9 = vcombine.high %v1526_v48, %v1526_v48 }
 0x474   : > { %1601 = vadd.xlane.f32.xlu0 %v1585_v41  ;;  %v1587_v45 = vmul.f32 %v1552_v42, %v5625_v38  ;;  %v1588_v46 = vmul.f32 %v1552_v42, %v5632_v43  ;;  %v1604_v50 = vsel %vm1603_vm2, %v1586_v44, 0.0  ;;  %v1590_v54 = vmul.f32 %v1556_v7, %v5641_v49 }
 0x475   : > { %v1589_v57 = vmul.f32 %v1556_v7, %v5647_v51  ;;  %v1594_v61 = vmul.f32 %v1564_v55, %v5656_v58  ;;  %v1560_v62 = vrot.slane %v1543_v56, %v5609_v31  ;;  %v1593_v1 = vmul.f32 %v1564_v55, %v5661_v59 }
 0x476   : > { %1607 = vadd.xlane.f32.xlu1 %v1587_v45  ;;  %v1609_v53 = vsel %vm1603_vm2, %v1588_v46, 0.0  ;;  %v1614_v60 = vsel %vm1603_vm2, %v1590_v54, 0.0  ;;  %v1568_v8 = vrot.slane %v1540_v63, %v5609_v31  ;;  %v1572_v15 = vrot.slane %v1542_v9, %v5609_v31 }
 0x477   : > { %v1624_v5 = vsel %vm1603_vm2, %v1594_v61, 0.0  ;;  %v1592_v6 = vmul.f32 %v1560_v62, %v5670_v2  ;;  %v1591_v10 = vmul.f32 %v1560_v62, %v5675_v4  ;;  %v1544_v16 = vcombine.high %v1540_v63, %v1540_v63 }
 0x478   : > { %1605 = vadd.xlane.f32.xlu0 %v1604_v50  ;;  %v1596_v14 = vmul.f32 %v1568_v8, %v5684_v11  ;;  %v1595_v0 = vmul.f32 %v1568_v8, %v5689_v12  ;;  %v1598_v22 = vmul.f32 %v1572_v15, %v5698_v18  ;;  %v1597_v25 = vmul.f32 %v1572_v15, %v5703_v20 }
 0x479   : > { %v1619_v13 = vsel %vm1603_vm2, %v1592_v6, 0.0  ;;  %v1576_v23 = vrot.slane %v1544_v16, %v5609_v31  ;;  %v1664_v42 = vadd.s32 4294967288, %v1659_v40  ;;  %v5748_v48 = vsub.s32 %v1659_v40, %v5604_v24 }
 0x47a   : > { %1610 = vadd.xlane.f32.xlu1 %v1609_v53  ;;  %v1629_v21 = vsel %vm1603_vm2, %v1596_v14, 0.0  ;;  %v1634_v28 = vsel %vm1603_vm2, %v1598_v22, 0.0 }
 0x47b   : > { %v1600_v19 = vmul.f32 %v1576_v23, %v5712_v26  ;;  %v1599_v29 = vmul.f32 %v1576_v23, %v5717_v27  ;;  %v5743_v46 = vsub.s32 %v1664_v42, %v5604_v24 }
 0x47c   : > { %1612 = vadd.xlane.f32.xlu0 %v1589_v57 }
 0x47d   : > { %v1639_v30 = vsel %vm1603_vm2, %v1600_v19, 0.0 }
 0x47e   : > { %1615 = vadd.xlane.f32.xlu1 %v1614_v60 }
 0x480   : > { %1622 = vadd.xlane.f32.xlu0 %v1593_v1 }
 0x482   : > { %1625 = vadd.xlane.f32.xlu1 %v1624_v5 }
 0x484   : > { %1617 = vadd.xlane.f32.xlu0 %v1591_v10 }
 0x486   : > { %1620 = vadd.xlane.f32.xlu1 %v1619_v13 }
 0x488   : > { %1627 = vadd.xlane.f32.xlu0 %v1595_v0 }
 0x48a   : > { %1630 = vadd.xlane.f32.xlu1 %v1629_v21 }
 0x48c   : > { %1632 = vadd.xlane.f32.xlu0 %v1597_v25 }
 0x48e   : > { %1635 = vadd.xlane.f32.xlu1 %v1634_v28 }
 0x490   : > { %1637 = vadd.xlane.f32.xlu0 %v1599_v29 }
 0x492   : > { %1640 = vadd.xlane.f32.xlu1 %v1639_v30 }
 0x501   : > { %v5723_v32 = vpop.xlane.xlu0 %1601 }
 0x502   : > { %v1663_v60 = vrot.slane %v5723_v32, %v5748_v48 }
 0x503   : > { %v5725_v33 = vpop.xlane.xlu1 %1607 }
 0x504   : > { %v1674_v53 = vrot.slane %v5725_v33, %v5748_v48 }
 0x505   : > { %v5727_v34 = vpop.xlane.xlu0 %1605 }
 0x506   : > { %v1668_v54 = vrot.slane %v5727_v34, %v5743_v46 }
 0x507   : > { %v5729_v36 = vpop.xlane.xlu1 %1610 }
 0x508   : > { %v1678_v50 = vrot.slane %v5729_v36, %v5743_v46  ;;  %v1670_v5 = vsel %vm1669_vm3, %v1668_v54, %v1663_v60 }
 0x509   : > { %v5731_v47 = vpop.xlane.xlu0 %1612 }
 0x50a   : > { %v1683_v56 = vrot.slane %v5731_v47, %v5748_v48  ;;  %v1679_v61 = vsel %vm1669_vm3, %v1678_v50, %v1674_v53 }
 0x50b   : > { %v5733_v39 = vpop.xlane.xlu1 %1615  ;;  %v1735_v9 = vsel %vm1734_vm4, %v1679_v61, %v1670_v5  ;;  %v4794_v61 = vmov 0  }
 0x50c   : > { %v1687_v17 = vrot.slane %v5733_v39, %v5743_v46  ;;  %3975 = vset.pattern.permute.xlu0 %v4794_v61  ;;  %3974 = vset.pattern.permute.xlu1 %v4794_v61 }
 0x50d   : > { %v5736_v41 = vpop.xlane.xlu0 %1622 }
 0x50e   : > { %v1688_v63 = vsel %vm1669_vm3, %v1687_v17, %v1683_v56  ;;  %v1701_v0 = vrot.slane %v5736_v41, %v5748_v48 }
 0x50f   : > { %v5738_v44 = vpop.xlane.xlu1 %1625  ;;  %v1737_v14 = vsel %vm1736_vm5, %v1688_v63, %v1735_v9 }
 0x510   : > { %v1705_v10 = vrot.slane %v5738_v44, %v5743_v46 }
 0x511   : > { %v5740_v45 = vpop.xlane.xlu0 %1617 }
 0x512   : > { %v1692_v62 = vrot.slane %v5740_v45, %v5748_v48  ;;  %v1706_v28 = vsel %vm1669_vm3, %v1705_v10, %v1701_v0 }
 0x513   : > { %v5745_v7 = vpop.xlane.xlu1 %1620 }
 0x514   : > { %v1696_v55 = vrot.slane %v5745_v7, %v5743_v46 }
 0x515   : > { %v5754_v52 = vpop.xlane.xlu0 %1627 }
 0x516   : > { %v1697_v6 = vsel %vm1669_vm3, %v1696_v55, %v1692_v62  ;;  %v1710_v15 = vrot.slane %v5754_v52, %v5748_v48  ;;  %v1760_v62 = vsub.s32 1, %v5604_v24 }
 0x517   : > { %v5764_v57 = vpop.xlane.xlu1 %1630  ;;  %v1739_v21 = vsel %vm1738_vm6, %v1697_v6, %v1737_v14  ;;  %v6225_v14 = vsub.s32 2, %v5604_v24 }
 0x518   : > { %v1714_v8 = vrot.slane %v5764_v57, %v5743_v46  ;;  %v1741_v42 = vsel %vm1740_vm7, %v1706_v28, %v1739_v21 }
 0x519   : > { %v5772_v1 = vpop.xlane.xlu0 %1632 }
 0x51a   : > { %v1719_v22 = vrot.slane %v5772_v1, %v5748_v48  ;;  %v1715_v25 = vsel %vm1669_vm3, %v1714_v8, %v1710_v15  ;;  %v6223_v8 = vsub.s32 5, %v5604_v24 }
 0x51b   : > { %v5781_v13 = vpop.xlane.xlu1 %1635  ;;  %v1743_v50 = vsel %vm1742_vm8, %v1715_v25, %v1741_v42 }
 0x51c   : > { %v1723_v16 = vrot.slane %v5781_v13, %v5743_v46 }
 0x51d   : > { %v5793_v23 = vpop.xlane.xlu0 %1637 }
 0x51e   : > { %v1724_v29 = vsel %vm1669_vm3, %v1723_v16, %v1719_v22  ;;  %v1728_v30 = vrot.slane %v5793_v23, %v5748_v48  ;;  %v6222_v16 = vsub.s32 6, %v5604_v24 }
 0x51f   : > { %v5797_v19 = vpop.xlane.xlu1 %1640  ;;  %v1745_v53 = vsel %vm1744_vm9, %v1724_v29, %v1743_v50 }
 0x520   : > { %v1732_v40 = vrot.slane %v5797_v19, %v5743_v46 }
 0x522   : > { %v1733_v17 = vsel %vm1669_vm3, %v1732_v40, %v1728_v30  ;;  %v6224_v30 = vsub.s32 3, %v5604_v24 }
 0x523   : > { %v1747_v54 = vsel %vm1746_vm10, %v1733_v17, %v1745_v53 }
 0x524   : > { %v1750_v55 = vsel %vm1749_vm11, %v1747_v54, -inf }
 0x525   : > { %1751 = vmax.xlane.f32.xlu0 %v1750_v55 }
 0x53f   : > { %v5810_v56 = vpop.f32.mrb[4].mxu1 }
 0x540   : > { %v3514_v60 = vpop.f32.mrb[5].mxu1 }
 0x5b2   : > { %v1752_v63 = vpop.xlane.xlu0 %1751 }
 0x5b3   : > { %v1757_v5 = vrot.slane %v1752_v63, %v5609_v31  ;;  %v1761_v6 = vrot.slane %v1752_v63, %v1760_v62  ;;  %v5824_v0 = vrot.slane %v1752_v63, %v6223_v8  ;;  %v1765_v25 = vrot.slane %v1752_v63, %v6225_v14 }
 0x5b4   : > { %v1769_v53 = vrot.slane %v1752_v63, %v6224_v30 }
 0x5b5   : > { %v1794_v9 = vsub.f32 %v5723_v32, %v1757_v5  ;;  %v1795_v10 = vsub.f32 %v5727_v34, %v1757_v5  ;;  %v1796_v15 = vsub.f32 %v5725_v33, %v1761_v6  ;;  %v1797_v28 = vsub.f32 %v5729_v36, %v1761_v6 }
 0x5b6   : > { %v1784_v34 = vsub.s32 7, %v5604_v24  ;;  %v5832_v33 = vrot.slane %v1752_v63, %v6222_v16  ;;  %v1804_v29 = vsub.f32 %v5754_v52, %v5824_v0  ;;  %v1798_v40 = vsub.f32 %v5731_v47, %v1765_v25 }
 0x5b7   : > { %v1810_v21 = vmul.f32 1.442695, %v1794_v9  ;;  %v1812_v22 = vmul.f32 1.442695, %v1795_v10  ;;  %v1814_v32 = vmul.f32 1.442695, %v1796_v15  ;;  %v1799_v54 = vsub.f32 %v5733_v39, %v1765_v25 }
 0x5b8   : > { %v1816_v42 = vmul.f32 1.442695, %v1797_v28  ;;  %v1785_v36 = vrot.slane %v1752_v63, %v1784_v34  ;;  %v1806_v50 = vsub.f32 %v5772_v1, %v5832_v33  ;;  %v1830_v17 = vmul.f32 1.442695, %v1804_v29 }
 0x5b9   : > { %3986 = vpow2.f32 %v1810_v21  ;;  %v1818_v52 = vmul.f32 1.442695, %v1798_v40  ;;  %v1772_v1 = vsub.s32 4, %v5604_v24  ;;  %v1800_v5 = vsub.f32 %v5740_v45, %v1769_v53 }
 0x5ba   : > { %3988 = vpow2.f32 %v1812_v22  ;;  %v1808_v47 = vsub.f32 %v5793_v23, %v1785_v36  ;;  %v1834_v60 = vmul.f32 1.442695, %v1806_v50  ;;  %v1820_v6 = vmul.f32 1.442695, %v1799_v54 }
 0x5bb   : > { %3990 = vpow2.f32 %v1814_v32  ;;  %v1773_v23 = vrot.slane %v1752_v63, %v1772_v1  ;;  %v1801_v10 = vsub.f32 %v5745_v7, %v1769_v53  ;;  %v1822_v15 = vmul.f32 1.442695, %v1800_v5 }
 0x5bc   : > { %3992 = vpow2.f32 %v1816_v42  ;;  %v1838_v9 = vmul.f32 1.442695, %v1808_v47  ;;  %v1805_v40 = vsub.f32 %v5764_v57, %v5824_v0  ;;  %v1809_v54 = vsub.f32 %v5797_v19, %v1785_v36 }
 0x5bd   : > { %3994 = vpow2.f32 %v1830_v17  ;;  %v1802_v22 = vsub.f32 %v5736_v41, %v1773_v23  ;;  %v1824_v25 = vmul.f32 1.442695, %v1801_v10  ;;  %v1803_v63 = vsub.f32 %v5738_v44, %v1773_v23 }
 0x5be   : > { %3996 = vpow2.f32 %v1818_v52  ;;  %v1807_v44 = vsub.f32 %v5781_v13, %v5832_v33  ;;  %v1832_v17 = vmul.f32 1.442695, %v1805_v40  ;;  %v1840_v52 = vmul.f32 1.442695, %v1809_v54 }
 0x5bf   : > { %3998 = vpow2.f32 %v1834_v60  ;;  %v1826_v32 = vmul.f32 1.442695, %v1802_v22  ;;  %v1828_v42 = vmul.f32 1.442695, %v1803_v63 }
 0x5c0   : > { %4000 = vpow2.f32 %v1820_v6  ;;  %v1836_v57 = vmul.f32 1.442695, %v1807_v44 }
 0x5c1   : > { %4002 = vpow2.f32 %v1838_v9 }
 0x5c2   : > { %4004 = vpow2.f32 %v1822_v15 }
 0x5c3   : > { %v5845_v55 = vpop.eup %3986  ;;  %4006 = vpow2.f32 %v1824_v25 }
 0x5c4   : > { %v5848_v61 = vpop.eup %3988  ;;  %1859 = vperm.xlu1 %3974, %v5845_v55   ;;  %4008 = vpow2.f32 %v1826_v32 }
 0x5c5   : > { %1862 = vperm.xlu0 %3975, %v5848_v61   ;;  %v5854_v39 = vpop.eup %3990  ;;  %4010 = vpow2.f32 %v1828_v42 }
 0x5c6   : > { %v5860_v21 = vpop.eup %3992  ;;  %4012 = vpow2.f32 %v1832_v17 }
 0x5c7   : > { %v5863_v45 = vpop.eup %3994  ;;  %4014 = vpow2.f32 %v1836_v57 }
 0x5c8   : > { %1865 = vperm.xlu1 %3974, %v5854_v39   ;;  %v5867_v28 = vpop.eup %3996  ;;  %4016 = vpow2.f32 %v1840_v52 }
 0x5c9   : > { %1889 = vperm.xlu0 %3975, %v5863_v45   ;;  %v5870_v7 = vpop.eup %3998 }
 0x5ca   : > { %v5874_v29 = vpop.eup %4000 }
 0x5cb   : > { %v5877_v41 = vpop.eup %4002 }
 0x5cc   : > { %1868 = vperm.xlu1 %3974, %v5860_v21   ;;  %v5882_v50 = vpop.eup %4004 }
 0x5cd   : > { %1895 = vperm.xlu0 %3975, %v5870_v7   ;;  %v5887_v53 = vpop.eup %4006 }
 0x5ce   : > { %v5891_v0 = vpop.eup %4008 }
 0x5cf   : > { %v5894_v47 = vpop.eup %4010 }
 0x5d0   : > { %1871 = vperm.xlu1 %3974, %v5867_v28   ;;  %v5897_v13 = vpop.eup %4012 }
 0x5d1   : > { %1901 = vperm.xlu0 %3975, %v5877_v41   ;;  %v5900_v33 = vpop.eup %4014 }
 0x5d2   : > { %v4017_v19 = vpop.eup %4016 }
 0x5d4   : > { %1874 = vperm.xlu1 %3974, %v5874_v29  }
 0x5d8   : > { %1877 = vperm.xlu1 %3974, %v5882_v50  }
 0x5dc   : > { %1880 = vperm.xlu1 %3974, %v5887_v53  }
 0x5e0   : > { %1883 = vperm.xlu1 %3974, %v5891_v0  }
 0x5e4   : > { %1886 = vperm.xlu1 %3974, %v5894_v47  }
 0x5e8   : > { %1892 = vperm.xlu1 %3974, %v5897_v13  }
 0x5ec   : > { %1898 = vperm.xlu1 %3974, %v5900_v33  }
 0x5f0   : > { %1904 = vperm.xlu1 %3974, %v4017_v19  }
 0x643   : > { %v1860_v36 = vpop.permute.xlu1 %1859 }
 0x644   : > { %v1863_v10 = vpop.permute.xlu0 %1862  ;;  %v1909_v54 = vrot.slane %v1860_v36, %v5748_v48 }
 0x645   : > { %v1913_v17 = vrot.slane %v1863_v10, %v5743_v46 }
 0x647   : > { %v1866_v60 = vpop.permute.xlu1 %1865  ;;  %v1914_v36 = vsel %vm1669_vm3, %v1913_v17, %v1909_v54 }
 0x648   : > { %v1890_v25 = vpop.permute.xlu0 %1889  ;;  %v1918_v57 = vrot.slane %v1866_v60, %v5748_v48 }
 0x649   : > { %v1954_v60 = vrot.slane %v1890_v25, %v5748_v48 }
 0x64b   : > { %v1869_v5 = vpop.permute.xlu1 %1868 }
 0x64c   : > { %v1922_v32 = vrot.slane %v1869_v5, %v5743_v46  ;;  %v1896_v40 = vpop.permute.xlu0 %1895 }
 0x64e   : > { %v1923_v8 = vsel %vm1669_vm3, %v1922_v32, %v1918_v57 }
 0x64f   : > { %v1872_v6 = vpop.permute.xlu1 %1871  ;;  %v1978_v32 = vsel %vm1734_vm4, %v1923_v8, %v1914_v36 }
 0x650   : > { %v1927_v3 = vrot.slane %v1872_v6, %v5748_v48 }
 0x653   : > { %v1875_v9 = vpop.permute.xlu1 %1874 }
 0x654   : > { %v1931_v42 = vrot.slane %v1875_v9, %v5743_v46 }
 0x656   : > { %v1932_v9 = vsel %vm1669_vm3, %v1931_v42, %v1927_v3 }
 0x657   : > { %v1878_v23 = vpop.permute.xlu1 %1877  ;;  %v1979_v3 = vsel %vm1736_vm5, %v1932_v9, %v1978_v32 }
 0x658   : > { %v1936_v5 = vrot.slane %v1878_v23, %v5748_v48  ;;  %v1902_v23 = vpop.permute.xlu0 %1901 }
 0x659   : > { %v1972_v54 = vrot.slane %v1902_v23, %v5748_v48  ;;  %v6279_v23 = vsub.s32 5, %v5604_v24 }
 0x65b   : > { %v1881_v15 = vpop.permute.xlu1 %1880 }
 0x65c   : > { %v1940_v52 = vrot.slane %v1881_v15, %v5743_v46 }
 0x65e   : > { %v1941_v15 = vsel %vm1669_vm3, %v1940_v52, %v1936_v5 }
 0x65f   : > { %v1884_v22 = vpop.permute.xlu1 %1883  ;;  %v1980_v42 = vsel %vm1738_vm6, %v1941_v15, %v1979_v3  ;;  %v6280_v3 = vsub.s32 6, %v5604_v24 }
 0x660   : > { %v1945_v10 = vrot.slane %v1884_v22, %v5748_v48 }
 0x663   : > { %v1887_v63 = vpop.permute.xlu1 %1886 }
 0x664   : > { %v1949_v16 = vrot.slane %v1887_v63, %v5743_v46  ;;  %v1963_v63 = vrot.slane %v1896_v40, %v5748_v48 }
 0x667   : > { %v1893_v44 = vpop.permute.xlu1 %1892 }
 0x668   : > { %v1958_v30 = vrot.slane %v1893_v44, %v5743_v46  ;;  %v1950_v44 = vsel %vm1669_vm3, %v1949_v16, %v1945_v10 }
 0x66a   : > { %v1959_v22 = vsel %vm1669_vm3, %v1958_v30, %v1954_v60 }
 0x66b   : > { %v1899_v14 = vpop.permute.xlu1 %1898 }
 0x66c   : > { %v1967_v6 = vrot.slane %v1899_v14, %v5743_v46  ;;  %v1981_v14 = vsel %vm1740_vm7, %v1950_v44, %v1980_v42 }
 0x66d   : > { %v1982_v8 = vsel %vm1742_vm8, %v1959_v22, %v1981_v14  ;;  %v2229_v14 = vld [vmem:[%s6282_s7 + $0x30] sm:$0xff] }
 0x66e   : > { %v1968_v17 = vsel %vm1669_vm3, %v1967_v6, %v1963_v63 }
 0x66f   : > { %v1905_v25 = vpop.permute.xlu1 %1904  ;;  %v1983_v16 = vsel %vm1744_vm9, %v1968_v17, %v1982_v8  ;;  %v2227_v17 = vld [vmem:[%s6282_s7 + $0x20] sm:$0xff] }
 0x670   : > { %v1976_v40 = vrot.slane %v1905_v25, %v5743_v46 }
 0x672   : > { %v1977_v57 = vsel %vm1669_vm3, %v1976_v40, %v1972_v54  ;;  %v2230_v40 = vld [vmem:[%s6282_s7 + $0x38] sm:$0xff] }
 0x673   : > { %v1984_v52 = vsel %vm1746_vm10, %v1977_v57, %v1983_v16  ;;  %v3669_v8 = vpack.c.bf16 %v2230_v40, %v2229_v14  ;;  %v2231_v57 = vld [vmem:[%s6282_s7 + $0x40] sm:$0xff]  ;;  %v2232_v16 = vld [vmem:[%s6282_s7 + $0x48] sm:$0xff] }
 0x674   : > { %v1986_v30 = vsel %vm1749_vm11, %v1984_v52, 0.0  ;;  %v3672_v52 = vpack.c.bf16 %v2232_v16, %v2231_v57 }
 0x675   : > { %1987 = vadd.xlane.f32.xlu0 %v1986_v30  ;;  %v2233_v30 = vld [vmem:[%s6282_s7 + $0x50] sm:$0xff] }
 0x702   : > { %v1988_v5 = vpop.xlane.xlu0 %1987 }
 0x703   : > { %4018 = vrcp.f32 %v1988_v5  ;;  %v2234_v5 = vld [vmem:[%s6282_s7 + $0x58] sm:$0xff] }
 0x70d   : > { %v4019_v9 = vpop.eup %4018 }
 0x70e   : > { %v2010_v48 = vrot.slane %v4019_v9, %v1772_v1  ;;  %v1994_v10 = vrot.slane %v4019_v9, %v5609_v31  ;;  %v2022_v60 = vrot.slane %v4019_v9, %v1784_v34  ;;  %v1998_v15 = vrot.slane %v4019_v9, %v1760_v62 }
 0x70f   : > { %v2014_v44 = vrot.slane %v4019_v9, %v6279_v23  ;;  %v2018_v22 = vrot.slane %v4019_v9, %v6280_v3 }
 0x710   : > { %v2040_v46 = vmul.f32 %v5894_v47, %v2010_v48  ;;  %v2032_v36 = vmul.f32 %v5848_v61, %v1994_v10  ;;  %v2046_v6 = vmul.f32 %v4017_v19, %v2022_v60  ;;  %v2034_v63 = vmul.f32 %v5860_v21, %v1998_v15 }
 0x711   : > { %v2031_v1 = vmul.f32 %v5845_v55, %v1994_v10  ;;  %v2033_v31 = vmul.f32 %v5854_v39, %v1998_v15  ;;  %v6277_v61 = vsub.s32 2, %v5604_v24  ;;  %v6278_v19 = vsub.s32 3, %v5604_v24  ;;  %v2236_v10 = vld [vmem:[%s6282_s7 + $0x68] sm:$0xff] }
 0x712   : > { %2094 = vperm.xlu0 %3975, %v2040_v46   ;;  %2054 = vperm.xlu1 %3974, %v2032_v36   ;;  %v2039_v39 = vmul.f32 %v5891_v0, %v2010_v48  ;;  %v2223_v0 = vld [vmem:[%s6281_s30] sm:$0xff]  ;;  %v2045_v24 = vmul.f32 %v5877_v41, %v2022_v60  ;;  %v2228_v41 = vld [vmem:[%s6282_s7 + $0x28] sm:$0xff]  ;;  %v2237_v36 = vld [vmem:[%s6282_s7 + $0x70] sm:$0xff] }
 0x713   : > { %v2002_v47 = vrot.slane %v4019_v9, %v6277_v61  ;;  %v2006_v32 = vrot.slane %v4019_v9, %v6278_v19  ;;  %v3666_v54 = vpack.c.bf16 %v2228_v41, %v2227_v17  ;;  %v3675_v9 = vpack.c.bf16 %v2234_v5, %v2233_v30  ;;  %v2235_v48 = vld [vmem:[%s6282_s7 + $0x60] sm:$0xff]  ;;  %v2238_v60 = vld [vmem:[%s6282_s7 + $0x78] sm:$0xff] }
 0x714   : > { %v3678_v46 = vpack.c.bf16 %v2236_v10, %v2235_v48  ;;  %v3681_v15 = vpack.c.bf16 %v2238_v60, %v2237_v36 }
 0x715   : > { %v2036_v34 = vmul.f32 %v5874_v29, %v2002_v47  ;;  %v2035_v62 = vmul.f32 %v5867_v28, %v2002_v47  ;;  %v2038_v21 = vmul.f32 %v5887_v53, %v2006_v32  ;;  %v2037_v55 = vmul.f32 %v5882_v50, %v2006_v32 }
 0x716   : > { %2124 = vperm.xlu0 %3975, %v2046_v6   ;;  %2064 = vperm.xlu1 %3974, %v2034_v63   ;;  %v2042_v29 = vmul.f32 %v5897_v13, %v2014_v44  ;;  %v2041_v28 = vmul.f32 %v5863_v45, %v2014_v44  ;;  %v2044_v53 = vmul.f32 %v5900_v33, %v2018_v22  ;;  %v2224_v13 = vld [vmem:[%s6282_s7 + $0x8] sm:$0xff]  ;;  %v6283_v45 = vmov 0.0|0.0   ;;  %v2226_v33 = vld [vmem:[%s6282_s7 + $0x18] sm:$0xff] }
 0x717   : > { %v2043_v50 = vmul.f32 %v5870_v7, %v2018_v22  ;;  %v3660_v42 = vpack.c.bf16 %v2224_v13, %v2223_v0  ;;  %v2225_v7 = vld [vmem:[%s6282_s7 + $0x10] sm:$0xff] }
 0x718   : > { %v3663_v25 = vpack.c.bf16 %v2226_v33, %v2225_v7 }
 0x719   : > { %3661 = vmatpush3.bf16.msra.mxu0 %v3660_v42 }
 0x71a   : > { %2049 = vperm.xlu1 %3974, %v2031_v1   ;;  %3662 = vmatprep.subr.bf16.mxu0 %v6283_v45 }
 0x71d   : > { %3664 = vmatpush3.bf16.msra.mxu0 %v3663_v25 }
 0x71e   : > { %2059 = vperm.xlu1 %3974, %v2033_v31   ;;  %3665 = vmatprep.subr.bf16.mxu0 %v6283_v45 }
 0x721   : > { %3667 = vmatpush3.bf16.msra.mxu0 %v3666_v54 }
 0x722   : > { %2074 = vperm.xlu1 %3974, %v2036_v34   ;;  %3668 = vmatprep.subr.bf16.mxu0 %v6283_v45 }
 0x725   : > { %3670 = vmatpush3.bf16.msra.mxu0 %v3669_v8 }
 0x726   : > { %2069 = vperm.xlu1 %3974, %v2035_v62   ;;  %3671 = vmatprep.subr.bf16.mxu0 %v6283_v45 }
 0x729   : > { %3673 = vmatpush3.bf16.msra.mxu0 %v3672_v52 }
 0x72a   : > { %2084 = vperm.xlu1 %3974, %v2038_v21   ;;  %3674 = vmatprep.subr.bf16.mxu0 %v6283_v45 }
 0x72d   : > { %3676 = vmatpush3.bf16.msra.mxu0 %v3675_v9 }
 0x72e   : > { %2079 = vperm.xlu1 %3974, %v2037_v55   ;;  %3677 = vmatprep.subr.bf16.mxu0 %v6283_v45 }
 0x731   : > { %3679 = vmatpush3.bf16.msra.mxu0 %v3678_v46 }
 0x732   : > { %2089 = vperm.xlu1 %3974, %v2039_v39   ;;  %3680 = vmatprep.subr.bf16.mxu0 %v6283_v45 }
 0x735   : > { %3682 = vmatpush3.bf16.msra.mxu0 %v3681_v15 }
 0x736   : > { %2104 = vperm.xlu1 %3974, %v2042_v29  }
 0x73a   : > { %2099 = vperm.xlu1 %3974, %v2041_v28  }
 0x73e   : > { %2114 = vperm.xlu1 %3974, %v2044_v53  }
 0x742   : > { %2109 = vperm.xlu1 %3974, %v2043_v50  }
 0x746   : > { %2119 = vperm.xlu1 %3974, %v2045_v24  }
 0x791   : > { %v2055_v6 = vpop.permute.xlu1 %2054  ;;  %v2095_v19 = vpop.permute.xlu0 %2094 }
 0x792   : > { %v2128_v39 = vmul.f32 %v2055_v6, %v5620_v37  ;;  %v2136_v28 = vmul.f32 %v2095_v19, %v5656_v58 }
 0x794   : > { %v2143_v37 = vsel %vm1603_vm2, %v2128_v39, 0.0  ;;  %v2175_v0 = vsel %vm1603_vm2, %v2136_v28, 0.0 }
 0x795   : > { %v2065_v63 = vpop.permute.xlu1 %2064  ;;  %v2125_v30 = vpop.permute.xlu0 %2124 }
 0x796   : > { %v2130_v32 = vmul.f32 %v2065_v63, %v5632_v43  ;;  %v2142_v60 = vmul.f32 %v2125_v30, %v5712_v26 }
 0x798   : > { %v2151_v53 = vsel %vm1603_vm2, %v2130_v32, 0.0  ;;  %v2199_v32 = vsel %vm1603_vm2, %v2142_v60, 0.0 }
 0x799   : > { %v2050_v1 = vpop.permute.xlu1 %2049 }
 0x79a   : > { %v2127_v3 = vmul.f32 %v2050_v1, %v5614_v35 }
 0x79c   : > { %v2144_v58 = vadd.f32 %v2143_v37, %v2127_v3 }
 0x79d   : > { %v2060_v31 = vpop.permute.xlu1 %2059 }
 0x79e   : > { %v2129_v21 = vmul.f32 %v2060_v31, %v5625_v38 }
 0x7a0   : > { %v2152_v38 = vadd.f32 %v2151_v53, %v2129_v21 }
 0x7a1   : > { %v2075_v61 = vpop.permute.xlu1 %2074 }
 0x7a2   : > { %v2132_v55 = vmul.f32 %v2075_v61, %v5641_v49  ;;  %v2153_v42 = vrot.slane %v2152_v38, 4 }
 0x7a4   : > { %v2159_v49 = vsel %vm1603_vm2, %v2132_v55, 0.0  ;;  %v2154_v41 = vadd.f32 %v2153_v42, %v2152_v38 }
 0x7a5   : > { %v2070_v47 = vpop.permute.xlu1 %2069 }
 0x7a6   : > { %v2131_v23 = vmul.f32 %v2070_v47, %v5647_v51  ;;  %v2155_v5 = vrot.slane %v2154_v41, 2 }
 0x7a8   : > { %v2160_v50 = vadd.f32 %v2159_v49, %v2131_v23  ;;  %v2156_v63 = vadd.f32 %v2155_v5, %v2154_v41 }
 0x7a9   : > { %v2085_v34 = vpop.permute.xlu1 %2084 }
 0x7aa   : > { %v2134_v44 = vmul.f32 %v2085_v34, %v5670_v2  ;;  %v2161_v24 = vrot.slane %v2160_v50, 4  ;;  %v2157_v55 = vrot.slane %v2156_v63, 1 }
 0x7ac   : > { %v2167_v51 = vsel %vm1603_vm2, %v2134_v44, 0.0  ;;  %v2162_v14 = vadd.f32 %v2161_v24, %v2160_v50  ;;  %v2158_v53 = vadd.f32 %v2157_v55, %v2156_v63 }
 0x7ad   : > { %v2080_v62 = vpop.permute.xlu1 %2079 }
 0x7ae   : > { %v2133_v22 = vmul.f32 %v2080_v62, %v5675_v4  ;;  %v2163_v48 = vrot.slane %v2162_v14, 2 }
 0x7b0   : > { %v2168_v13 = vadd.f32 %v2167_v51, %v2133_v22  ;;  %v2164_v61 = vadd.f32 %v2163_v48, %v2162_v14 }
 0x7b1   : > { %v2090_v29 = vpop.permute.xlu1 %2089 }
 0x7b2   : > { %v2135_v43 = vmul.f32 %v2090_v29, %v5661_v59  ;;  %v2145_v59 = vrot.slane %v2144_v58, 4  ;;  %v2169_v7 = vrot.slane %v2168_v13, 4  ;;  %v2165_v23 = vrot.slane %v2164_v61, 1 }
 0x7b4   : > { %v2176_v35 = vadd.f32 %v2175_v0, %v2135_v43  ;;  %v2146_v8 = vadd.f32 %v2145_v59, %v2144_v58  ;;  %v2170_v57 = vadd.f32 %v2169_v7, %v2168_v13  ;;  %v2166_v37 = vadd.f32 %v2165_v23, %v2164_v61 }
 0x7b5   : > { %v2105_v2 = vpop.permute.xlu1 %2104 }
 0x7b6   : > { %v2138_v4 = vmul.f32 %v2105_v2, %v5684_v11  ;;  %v2177_v17 = vrot.slane %v2176_v35, 4  ;;  %v2147_v46 = vrot.slane %v2146_v8, 2 }
 0x7b8   : > { %v2183_v25 = vsel %vm1603_vm2, %v2138_v4, 0.0  ;;  %v2178_v52 = vadd.f32 %v2177_v17, %v2176_v35 }
 0x7b9   : > { %v2100_v45 = vpop.permute.xlu1 %2099 }
 0x7ba   : > { %v2137_v33 = vmul.f32 %v2100_v45, %v5689_v12  ;;  %v2171_v12 = vrot.slane %v2170_v57, 2  ;;  %v2179_v15 = vrot.slane %v2178_v52, 2 }
 0x7bc   : > { %v2184_v54 = vadd.f32 %v2183_v25, %v2137_v33  ;;  %v2172_v34 = vadd.f32 %v2171_v12, %v2170_v57  ;;  %v2180_v21 = vadd.f32 %v2179_v15, %v2178_v52 }
 0x7bd   : > { %v2115_v40 = vpop.permute.xlu1 %2114 }
 0x7be   : > { %v2185_v16 = vrot.slane %v2184_v54, 4  ;;  %v2140_v11 = vmul.f32 %v2115_v40, %v5698_v18  ;;  %v2148_v18 = vadd.f32 %v2147_v46, %v2146_v8  ;;  %v2173_v29 = vrot.slane %v2172_v34, 1 }
 0x7bf   : > { %v2181_v22 = vrot.slane %v2180_v21, 1 }
 0x7c0   : > { %v2186_v9 = vadd.f32 %v2185_v16, %v2184_v54  ;;  %v2191_v6 = vsel %vm1603_vm2, %v2140_v11, 0.0  ;;  %v2149_v44 = vrot.slane %v2148_v18, 1  ;;  %v3080_v54 = vld [vmem:[#allocation27] ss:$0 sm:$0xff] }
 0x7c1   : > { %v2110_v10 = vpop.permute.xlu1 %2109  ;;  %v2182_v0 = vadd.f32 %v2181_v22, %v2180_v21 }
 0x7c2   : > { %v2139_v36 = vmul.f32 %v2110_v10, %v5703_v20  ;;  %v2187_v1 = vrot.slane %v2186_v9, 2  ;;  %v2150_v50 = vadd.f32 %v2149_v44, %v2148_v18 }
 0x7c4   : > { %v2192_v31 = vadd.f32 %v2191_v6, %v2139_v36  ;;  %v2188_v20 = vadd.f32 %v2187_v1, %v2186_v9  ;;  %v2247_v58 = vsel %vm1734_vm4, %v2158_v53, %v2150_v50 }
 0x7c5   : > { %v2120_v47 = vpop.permute.xlu1 %2119  ;;  %v2248_v4 = vsel %vm1736_vm5, %v2166_v37, %v2247_v58 }
 0x7c6   : > { %v2193_v62 = vrot.slane %v2192_v31, 4  ;;  %v2141_v19 = vmul.f32 %v2120_v47, %v5717_v27  ;;  %v2189_v43 = vrot.slane %v2188_v20, 1  ;;  %v2174_v27 = vadd.f32 %v2173_v29, %v2172_v34 }
 0x7c8   : > { %v2194_v39 = vadd.f32 %v2193_v62, %v2192_v31  ;;  %v2200_v26 = vadd.f32 %v2199_v32, %v2141_v19  ;;  %v2190_v13 = vadd.f32 %v2189_v43, %v2188_v20  ;;  %v2249_v45 = vsel %vm1738_vm6, %v2174_v27, %v2248_v4 }
 0x7c9   : > { %v2250_v59 = vsel %vm1740_vm7, %v2182_v0, %v2249_v45 }
 0x7ca   : > { %v2195_v28 = vrot.slane %v2194_v39, 2  ;;  %v2201_v3 = vrot.slane %v2200_v26, 4  ;;  %v2251_v33 = vsel %vm1742_vm8, %v2190_v13, %v2250_v59 }
 0x7cc   : > { %v2196_v38 = vadd.f32 %v2195_v28, %v2194_v39  ;;  %v2202_v49 = vadd.f32 %v2201_v3, %v2200_v26 }
 0x7ce   : > { %v2197_v51 = vrot.slane %v2196_v38, 1  ;;  %v2203_v2 = vrot.slane %v2202_v49, 2 }
 0x7d0   : > { %v2204_v35 = vadd.f32 %v2203_v2, %v2202_v49  ;;  %v2198_v42 = vadd.f32 %v2197_v51, %v2196_v38 }
 0x7d2   : > { %v2205_v24 = vrot.slane %v2204_v35, 1  ;;  %v2252_v17 = vsel %vm1744_vm9, %v2198_v42, %v2251_v33 }
 0x7d4   : > { %v2206_v7 = vadd.f32 %v2205_v24, %v2204_v35 }
 0x7d6   : > { %v2253_v25 = vsel %vm1746_vm10, %v2206_v7, %v2252_v17 }
 0x7d7   : > { %3478 = vmatmul.mubr.f32.vlgmr.msra.gmra.mrb[4].mxu0 %v2253_v25 }
 0x8aa   : > { %v2321_v41 = vpop.f32.mrb[4].mxu0 }
 0x8ab   : > { %v2392_v14 = vadd.f32 %v5810_v56, %v2321_v41  ;;  %v3479_v40 = vpop.f32.mrb[5].mxu0 }
 0x8ad   : > { %v2402_v8 = vadd.f32 %v3080_v54, %v2392_v14 }
 0x8af   : > { %4020 = vtanh.f32 %v2402_v8 }
 0x8b9   : > { %v4021_v57 = vpop.eup %4020 }
 0x8ba   : > { %2404 = vst [vmem:[#allocation3] sm:$0xff] %v4021_v57 }
 0x8bb PF: > { %v2410_v16 = vld [vmem:[%s5305_s19 + $0x8] sm:$0xff]  ;;  %v2412_v11 = vld [vmem:[%s5305_s19 + $0x18] sm:$0xff]  ;;  %v2409_v5 = vld [vmem:[%s5305_s19] sm:$0xff]  ;;  %v4795_v48 = vmov 0.0   ;;  %s3081_s0 = sshll.u32 %s4938_s1, 9  ;;  %s6284_s18 = sld [smem:[#allocation83_spill]] }
 0x8bc   : > { %v2414_v52 = vld [vmem:[%s5305_s19 + $0x28] sm:$0xff]  ;;  %v2416_v30 = vld [vmem:[%s5305_s19 + $0x38] sm:$0xff]  ;;  %v2413_v9 = vld [vmem:[%s5305_s19 + $0x20] sm:$0xff]  ;;  %2560 = vmatprep.mubr.f32.mxu0 %v4795_v48  ;;  %2631 = vmatprep.mubr.f32.mxu1 %v4795_v48  ;;  %s2639_s24 = sshra.s32 %s3081_s0, 7  ;;  %vm2682_vm12 = vcmask 7168   ;;  %p3083_p12 = scmp.ne.s32.totalorder %s4938_s1, 1 }
 0x8bd   : > { %v3707_v56 = vpack.c.bf16 %v2414_v52, %v2410_v16  ;;  %v3739_v10 = vpack.c.bf16 %v2416_v30, %v2412_v11  ;;  %v3709_v46 = vpack.c.bf16 %v2413_v9, %v2409_v5  ;;  %v2411_v12 = vld [vmem:[%s5305_s19 + $0x10] sm:$0xff]  ;;  %v2418_v60 = vld [vmem:[%s5305_s19 + $0x48] sm:$0xff]  ;;  %v2420_v63 = vld [vmem:[%s5305_s19 + $0x58] sm:$0xff]  ;;  %s3082_s14 = sshll.u32 %s2639_s24, 3 }
 0x8be   : > { %v2415_v36 = vld [vmem:[%s5305_s19 + $0x30] sm:$0xff]  ;;  %v2422_v6 = vld [vmem:[%s5305_s19 + $0x68] sm:$0xff]  ;;  %v2424_v1 = vld [vmem:[%s5305_s19 + $0x78] sm:$0xff]  ;;  %s2642_s2 = scalar_lea.vmem [#allocation30], %s3082_s14 }
 0x8bf   : > { %3708 = vmatprep.subr.bf16.mxu0 %v3707_v56  ;;  %v3741_v15 = vpack.c.bf16 %v2415_v36, %v2411_v12  ;;  %3740 = vmatprep.subr.bf16.mxu1 %v3739_v10  ;;  %v3711_v31 = vpack.c.bf16 %v2422_v6, %v2418_v60  ;;  %v3743_v61 = vpack.c.bf16 %v2424_v1, %v2420_v63  ;;  %v2417_v47 = vld [vmem:[%s5305_s19 + $0x40] sm:$0xff]  ;;  %v2419_v34 = vld [vmem:[%s5305_s19 + $0x50] sm:$0xff]  ;;  %v2426_v32 = vld [vmem:[%s5305_s19 + $0x88] sm:$0xff] }
 0x8c0   : > { %3710 = vmatpush1.bf16.msra.mxu0 %v3709_v46  ;;  %v2421_v18 = vld [vmem:[%s5305_s19 + $0x60] sm:$0xff]  ;;  %v2423_v19 = vld [vmem:[%s5305_s19 + $0x70] sm:$0xff]  ;;  %v2430_v21 = vld [vmem:[%s5305_s19 + $0xa8] sm:$0xff] }
 0x8c1   : > { %3742 = vmatpush1.bf16.msra.mxu1 %v3741_v15  ;;  %v3713_v62 = vpack.c.bf16 %v2421_v18, %v2417_v47  ;;  %3712 = vmatprep.subr.bf16.mxu0 %v3711_v31  ;;  %v3745_v55 = vpack.c.bf16 %v2423_v19, %v2419_v34  ;;  %v3715_v20 = vpack.c.bf16 %v2430_v21, %v2426_v32  ;;  %v2428_v39 = vld [vmem:[%s5305_s19 + $0x98] sm:$0xff]  ;;  %v2425_v23 = vld [vmem:[%s5305_s19 + $0x80] sm:$0xff]  ;;  %v2427_v28 = vld [vmem:[%s5305_s19 + $0x90] sm:$0xff] }
 0x8c2   : > { %3744 = vmatprep.subr.bf16.mxu1 %v3743_v61  ;;  %v2432_v26 = vld [vmem:[%s5305_s19 + $0xb8] sm:$0xff]  ;;  %v2429_v29 = vld [vmem:[%s5305_s19 + $0xa0] sm:$0xff]  ;;  %v2431_v3 = vld [vmem:[%s5305_s19 + $0xb0] sm:$0xff] }
 0x8c3   : > { %v3747_v44 = vpack.c.bf16 %v2432_v26, %v2428_v39  ;;  %v3717_v22 = vpack.c.bf16 %v2429_v29, %v2425_v23  ;;  %v2434_v53 = vld [vmem:[%s5305_s19 + $0xc8] sm:$0xff]  ;;  %v2436_v38 = vld [vmem:[%s5305_s19 + $0xd8] sm:$0xff]  ;;  %v3749_v49 = vpack.c.bf16 %v2431_v3, %v2427_v28  ;;  %v2433_v27 = vld [vmem:[%s5305_s19 + $0xc0] sm:$0xff]  ;;  %v2476_v3 = vlaneseq }
 0x8c4   : > { %3714 = vmatpush1.bf16.msra.mxu0 %v3713_v62  ;;  %v2438_v43 = vld [vmem:[%s5305_s19 + $0xe8] sm:$0xff]  ;;  %v2440_v50 = vld [vmem:[%s5305_s19 + $0xf8] sm:$0xff]  ;;  %v2437_v51 = vld [vmem:[%s5305_s19 + $0xe0] sm:$0xff] }
 0x8c5   : > { %3746 = vmatpush1.bf16.msra.mxu1 %v3745_v55  ;;  %3716 = vmatprep.subr.bf16.mxu0 %v3715_v20  ;;  %v3719_v37 = vpack.c.bf16 %v2438_v43, %v2434_v53  ;;  %v3751_v2 = vpack.c.bf16 %v2440_v50, %v2436_v38  ;;  %v2435_v0 = vld [vmem:[%s5305_s19 + $0xd0] sm:$0xff]  ;;  %v2442_v13 = vld [vmem:[%s5305_s19 + $0x108] sm:$0xff]  ;;  %v2444_v4 = vld [vmem:[%s5305_s19 + $0x118] sm:$0xff]  ;;  %v3721_v24 = vpack.c.bf16 %v2437_v51, %v2433_v27 }
 0x8c6   : > { %3748 = vmatprep.subr.bf16.mxu1 %v3747_v44  ;;  %v2439_v58 = vld [vmem:[%s5305_s19 + $0xf0] sm:$0xff]  ;;  %v2446_v35 = vld [vmem:[%s5305_s19 + $0x128] sm:$0xff]  ;;  %v2448_v42 = vld [vmem:[%s5305_s19 + $0x138] sm:$0xff] }
 0x8c7   : > { %v3753_v45 = vpack.c.bf16 %v2439_v58, %v2435_v0  ;;  %v3723_v59 = vpack.c.bf16 %v2446_v35, %v2442_v13  ;;  %v2441_v7 = vld [vmem:[%s5305_s19 + $0x100] sm:$0xff]  ;;  %v2443_v17 = vld [vmem:[%s5305_s19 + $0x110] sm:$0xff]  ;;  %v3755_v25 = vpack.c.bf16 %v2448_v42, %v2444_v4  ;;  %v2450_v54 = vld [vmem:[%s5305_s19 + $0x148] sm:$0xff] }
 0x8c8   : > { %3718 = vmatpush1.bf16.msra.mxu0 %v3717_v22  ;;  %v2445_v33 = vld [vmem:[%s5305_s19 + $0x120] sm:$0xff]  ;;  %v2447_v41 = vld [vmem:[%s5305_s19 + $0x130] sm:$0xff]  ;;  %v2454_v14 = vld [vmem:[%s5305_s19 + $0x168] sm:$0xff]  ;;  %v2477_v22 = vshrl.u32 %v2476_v3, 7 }
 0x8c9   : > { %3750 = vmatpush1.bf16.msra.mxu1 %v3749_v49  ;;  %3720 = vmatprep.subr.bf16.mxu0 %v3719_v37  ;;  %v2452_v40 = vld [vmem:[%s5305_s19 + $0x158] sm:$0xff]  ;;  %v3725_v57 = vpack.c.bf16 %v2445_v33, %v2441_v7  ;;  %v3757_v16 = vpack.c.bf16 %v2447_v41, %v2443_v17  ;;  %v3727_v52 = vpack.c.bf16 %v2454_v14, %v2450_v54  ;;  %v2449_v11 = vld [vmem:[%s5305_s19 + $0x140] sm:$0xff]  ;;  %v2451_v30 = vld [vmem:[%s5305_s19 + $0x150] sm:$0xff]  ;;  %v4796_v17 = vmov 0  }
 0x8ca   : > { %3752 = vmatprep.subr.bf16.mxu1 %v3751_v2  ;;  %v2456_v8 = vld [vmem:[%s5305_s19 + $0x178] sm:$0xff]  ;;  %v2453_v56 = vld [vmem:[%s5305_s19 + $0x160] sm:$0xff]  ;;  %v2455_v9 = vld [vmem:[%s5305_s19 + $0x170] sm:$0xff]  ;;  %v2478_v53 = vsub.s32 0, %v2477_v22  ;;  %v2486_v38 = vsub.s32 2, %v2477_v22  ;;  %v2482_v49 = vsub.s32 1, %v2477_v22  ;;  %4022 = vset.pattern.permute.xlu0 %v4796_v17 }
 0x8cb   : > { %v3759_v5 = vpack.c.bf16 %v2456_v8, %v2452_v40  ;;  %v2458_v48 = vld [vmem:[%s5305_s19 + $0x188] sm:$0xff]  ;;  %v2460_v46 = vld [vmem:[%s5305_s19 + $0x198] sm:$0xff]  ;;  %v3729_v36 = vpack.c.bf16 %v2453_v56, %v2449_v11  ;;  %v3761_v60 = vpack.c.bf16 %v2455_v9, %v2451_v30  ;;  %v2457_v6 = vld [vmem:[%s5305_s19 + $0x180] sm:$0xff]  ;;  %v2490_v37 = vsub.s32 3, %v2477_v22 }
 0x8cc   : > { %3722 = vmatpush1.bf16.msra.mxu0 %v3721_v24  ;;  %v2462_v10 = vld [vmem:[%s5305_s19 + $0x1a8] sm:$0xff]  ;;  %v2464_v12 = vld [vmem:[%s5305_s19 + $0x1b8] sm:$0xff]  ;;  %v2461_v63 = vld [vmem:[%s5305_s19 + $0x1a0] sm:$0xff] }
 0x8cd   : > { %3754 = vmatpush1.bf16.msra.mxu1 %v3753_v45  ;;  %3724 = vmatprep.subr.bf16.mxu0 %v3723_v59  ;;  %v3731_v15 = vpack.c.bf16 %v2462_v10, %v2458_v48  ;;  %v2459_v1 = vld [vmem:[%s5305_s19 + $0x190] sm:$0xff]  ;;  %v3763_v31 = vpack.c.bf16 %v2464_v12, %v2460_v46  ;;  %v2466_v47 = vld [vmem:[%s5305_s19 + $0x1c8] sm:$0xff]  ;;  %v2468_v34 = vld [vmem:[%s5305_s19 + $0x1d8] sm:$0xff]  ;;  %v3733_v19 = vpack.c.bf16 %v2461_v63, %v2457_v6 }
 0x8ce   : > { %3756 = vmatprep.subr.bf16.mxu1 %v3755_v25  ;;  %v2463_v61 = vld [vmem:[%s5305_s19 + $0x1b0] sm:$0xff]  ;;  %v2470_v18 = vld [vmem:[%s5305_s19 + $0x1e8] sm:$0xff]  ;;  %v2472_v62 = vld [vmem:[%s5305_s19 + $0x1f8] sm:$0xff] }
 0x8cf   : > { %v3765_v32 = vpack.c.bf16 %v2463_v61, %v2459_v1  ;;  %v3735_v21 = vpack.c.bf16 %v2470_v18, %v2466_v47  ;;  %v2465_v55 = vld [vmem:[%s5305_s19 + $0x1c0] sm:$0xff]  ;;  %v3767_v39 = vpack.c.bf16 %v2472_v62, %v2468_v34  ;;  %v2467_v26 = vld [vmem:[%s5305_s19 + $0x1d0] sm:$0xff]  ;;  %v4797_v18 = vmov (!%p3083_p12), 0  }
 0x8d0   : > { %3726 = vmatpush1.bf16.msra.mxu0 %v3725_v57  ;;  %v2469_v20 = vld [vmem:[%s5305_s19 + $0x1e0] sm:$0xff]  ;;  %v2471_v23 = vld [vmem:[%s5305_s19 + $0x1f0] sm:$0xff]  ;;  %s6285_s19 = scalar_lea.vmem %s6284_s18, %s6293_s20 }
 0x8d1   : > { %3758 = vmatpush1.bf16.msra.mxu1 %v3757_v16  ;;  %3728 = vmatprep.subr.bf16.mxu0 %v3727_v52  ;;  %v3737_v44 = vpack.c.bf16 %v2469_v20, %v2465_v55  ;;  %v3769_v29 = vpack.c.bf16 %v2471_v23, %v2467_v26  ;;  %v2473_v28 = vld [vmem:[#allocation3] sm:$0xff]  ;;  %v2474_v43 = vld [vmem:[%s6285_s19] sm:$0xf]  ;;  %v2647_v25 = vld [vmem:[#allocation4] sm:$0xff] }
 0x8d2   : > { %3760 = vmatprep.subr.bf16.mxu1 %v3759_v5  ;;  %v2479_v50 = vrot.slane %v2474_v43, %v2478_v53  ;;  %v2487_v27 = vrot.slane %v2474_v43, %v2486_v38  ;;  %v2483_v51 = vrot.slane %v2474_v43, %v2482_v49  ;;  %v2491_v2 = vrot.slane %v2474_v43, %v2490_v37  ;;  %v2654_v63 = vld [vmem:[#allocation5] sm:$0xff] }
 0x8d4   : > { %3730 = vmatpush1.bf16.msra.mxu0 %v3729_v36 }
 0x8d5   : > { %3762 = vmatpush1.bf16.msra.mxu1 %v3761_v60  ;;  %3732 = vmatprep.subr.bf16.mxu0 %v3731_v15 }
 0x8d6   : > { %3764 = vmatprep.subr.bf16.mxu1 %v3763_v31 }
 0x8d8   : > { %3734 = vmatpush1.bf16.msra.mxu0 %v3733_v19 }
 0x8d9   : > { %3766 = vmatpush1.bf16.msra.mxu1 %v3765_v32  ;;  %3736 = vmatprep.subr.bf16.mxu0 %v3735_v21 }
 0x8da   : > { %3768 = vmatprep.subr.bf16.mxu1 %v3767_v39 }
 0x8dc   : > { %3738 = vmatpush1.bf16.msra.mxu0 %v3737_v44 }
 0x8dd   : > { %3770 = vmatpush1.bf16.msra.mxu1 %v3769_v29 }
 0x8df   : > { %2561 = vmatmul.mubr.f32.vlgmr.msra.gmra.mrb[0].mxu0 %v2473_v28 }
 0x8e0   : > { %2632 = vmatmul.mubr.f32.vlgmr.msra.gmra.mrb[0].mxu1 %v2473_v28 }
 0x9b2   : > { %v2562_v0 = vpop.f32.mrb[0].mxu0 }
 0x9b3   : > { %v2563_v58 = vadd.f32 %v2562_v0, %v2479_v50  ;;  %v2633_v13 = vpop.f32.mrb[0].mxu1  ;;  %v2564_v35 = vpop.f32.mrb[1].mxu0 }
 0x9b4   : > { %v2634_v4 = vadd.f32 %v2633_v13, %v2487_v27  ;;  %v2565_v42 = vadd.f32 %v2564_v35, %v2483_v51  ;;  %v2635_v24 = vpop.f32.mrb[1].mxu1 }
 0x9b5   : > { %2643 = vst [vmem:[%s2642_s2] sm:$0xff] %v2563_v58  ;;  %v2636_v45 = vadd.f32 %v2635_v24, %v2491_v2 }
 0x9b6   : > { %2645 = vst [vmem:[%s2642_s2 + $0x10] sm:$0xff] %v2634_v4  ;;  %2644 = vst [vmem:[%s2642_s2 + $0x8] sm:$0xff] %v2565_v42  ;;  %v2648_v59 = vmax.f32 %v2563_v58, %v2565_v42 }
 0x9b7   : > { %2646 = vst [vmem:[%s2642_s2 + $0x18] sm:$0xff] %v2636_v45  ;;  %v2649_v7 = vmax.f32 %v2634_v4, %v2636_v45 }
 0x9b9   : > { %v2650_v33 = vmax.f32 %v2648_v59, %v2649_v7 }
 0x9bb   : > { %2651 = vmax.xlane.f32.xlu0 %v2650_v33 }
 0x9be   : > { %v2689_v62 = vld [vmem:[#allocation30] sm:$0xff] (!%p3083_p12)  ;;  %v2690_v19 = vld [vmem:[#allocation30 + $0x8] sm:$0xff] (!%p3083_p12)  ;;  %v2691_v32 = vld [vmem:[#allocation30 + $0x10] sm:$0xff] (!%p3083_p12) }
 0x9bf   : > { %v2692_v21 = vld [vmem:[#allocation30 + $0x18] sm:$0xff] (!%p3083_p12)  ;;  %v2693_v55 = vld [vmem:[#allocation30 + $0x20] sm:$0xff] (!%p3083_p12)  ;;  %v2694_v20 = vld [vmem:[#allocation30 + $0x28] sm:$0xff] (!%p3083_p12) }
 0x9c0   : > { %v2695_v26 = vld [vmem:[#allocation30 + $0x30] sm:$0xff] (!%p3083_p12)  ;;  %v2696_v23 = vld [vmem:[#allocation30 + $0x38] sm:$0xff] (!%p3083_p12) }
 0xa48   : > { %v2652_v41 = vpop.xlane.xlu0 %2651 }
 0xa49   : > { %v2653_v54 = vmax.f32 %v2647_v25, %v2652_v41 }
 0xa4b   : > { %v2655_v14 = vsub.f32 %v2647_v25, %v2653_v54  ;;  %2684 = vst.msk [vmem:[#allocation4] sm:$0xff] %vm2682_vm12, %v2653_v54  ;;  %2661 = vperm.xlu0 %4022, %v2653_v54  }
 0xa4d   : > { %v2656_v15 = vmul.f32 1.442695, %v2655_v14 }
 0xa4f   : > { %4033 = vset.pattern.permute.xlu0 (!%p3083_p12), %v4797_v18 }
 0xa52   : > { %v2697_v47 = vld [vmem:[#allocation4] sm:$0xff] (!%p3083_p12) }
 0xa53   : > { %2700 = vperm.xlu0 (!%p3083_p12), %4033, %v2697_v47  }
 0xaca   : > { %v2662_v40 = vpop.permute.xlu0 %2661 }
 0xacb   : > { %v2664_v8 = vsub.f32 %v2563_v58, %v2662_v40  ;;  %v2665_v57 = vsub.f32 %v2565_v42, %v2662_v40  ;;  %v2666_v16 = vsub.f32 %v2634_v4, %v2662_v40  ;;  %v2667_v52 = vsub.f32 %v2636_v45, %v2662_v40 }
 0xacd   : > { %v2668_v11 = vmul.f32 1.442695, %v2664_v8  ;;  %v2670_v56 = vmul.f32 1.442695, %v2665_v57  ;;  %v2672_v30 = vmul.f32 1.442695, %v2666_v16 }
 0xace   : > { %v2674_v5 = vmul.f32 1.442695, %v2667_v52 }
 0xacf   : > { %4023 = vpow2.f32 %v2668_v11 }
 0xad0   : > { %4025 = vpow2.f32 %v2670_v56 }
 0xad1   : > { %4027 = vpow2.f32 %v2672_v30 }
 0xad2   : > { %4029 = vpow2.f32 %v2674_v5  ;;  %v2701_v39 = vpop.permute.xlu0 (!%p3083_p12), %2700 }
 0xad3   : > { %4031 = vpow2.f32 %v2656_v15  ;;  %v2703_v44 = vsub.f32 (!%p3083_p12), %v2689_v62, %v2701_v39  ;;  %v2704_v29 = vsub.f32 (!%p3083_p12), %v2690_v19, %v2701_v39  ;;  %v2705_v28 = vsub.f32 (!%p3083_p12), %v2691_v32, %v2701_v39 }
 0xad4   : > { %v2706_v3 = vsub.f32 (!%p3083_p12), %v2692_v21, %v2701_v39  ;;  %v2707_v22 = vsub.f32 (!%p3083_p12), %v2693_v55, %v2701_v39  ;;  %v2708_v53 = vsub.f32 (!%p3083_p12), %v2694_v20, %v2701_v39  ;;  %v2709_v43 = vsub.f32 (!%p3083_p12), %v2695_v26, %v2701_v39 }
 0xad5   : > { %v2711_v38 = vmul.f32 (!%p3083_p12), 1.442695, %v2703_v44  ;;  %v2713_v49 = vmul.f32 (!%p3083_p12), 1.442695, %v2704_v29  ;;  %v2715_v37 = vmul.f32 (!%p3083_p12), 1.442695, %v2705_v28  ;;  %v2710_v50 = vsub.f32 (!%p3083_p12), %v2696_v23, %v2701_v39 }
 0xad6   : > { %v2717_v27 = vmul.f32 (!%p3083_p12), 1.442695, %v2706_v3  ;;  %v2719_v51 = vmul.f32 (!%p3083_p12), 1.442695, %v2707_v22  ;;  %v2721_v2 = vmul.f32 (!%p3083_p12), 1.442695, %v2708_v53 }
 0xad7   : > { %4034 = vpow2.f32 (!%p3083_p12), %v2711_v38  ;;  %v2723_v0 = vmul.f32 (!%p3083_p12), 1.442695, %v2709_v43  ;;  %v2725_v58 = vmul.f32 (!%p3083_p12), 1.442695, %v2710_v50 }
 0xad8   : > { %4036 = vpow2.f32 (!%p3083_p12), %v2713_v49 }
 0xad9   : > { %v4024_v9 = vpop.eup %4023  ;;  %4038 = vpow2.f32 (!%p3083_p12), %v2715_v37 }
 0xada   : > { %v4026_v48 = vpop.eup %4025  ;;  %4040 = vpow2.f32 (!%p3083_p12), %v2717_v27 }
 0xadb   : > { %v2676_v10 = vadd.f32 %v4026_v48, %v4024_v9  ;;  %v4028_v46 = vpop.eup %4027  ;;  %4042 = vpow2.f32 (!%p3083_p12), %v2719_v51 }
 0xadc   : > { %v4030_v36 = vpop.eup %4029  ;;  %4044 = vpow2.f32 (!%p3083_p12), %v2721_v2 }
 0xadd   : > { %v2677_v12 = vadd.f32 %v4028_v46, %v2676_v10  ;;  %v4032_v6 = vpop.eup %4031  ;;  %4046 = vpow2.f32 (!%p3083_p12), %v2723_v0 }
 0xade   : > { %v2658_v1 = vmul.f32 %v4032_v6, %v2654_v63  ;;  %4048 = vpow2.f32 (!%p3083_p12), %v2725_v58 }
 0xadf   : > { %v2678_v60 = vadd.f32 %v4030_v36, %v2677_v12 }
 0xae1   : > { %2679 = vadd.xlane.f32.xlu1 %v2678_v60  ;;  %v4035_v35 = vpop.eup (!%p3083_p12), %4034 }
 0xae2   : > { %v4037_v4 = vpop.eup (!%p3083_p12), %4036 }
 0xae3   : > { %v4039_v42 = vpop.eup (!%p3083_p12), %4038 }
 0xae4   : > { %v4041_v24 = vpop.eup (!%p3083_p12), %4040 }
 0xae5   : > { %v4043_v45 = vpop.eup (!%p3083_p12), %4042 }
 0xae6   : > { %v4045_v59 = vpop.eup (!%p3083_p12), %4044 }
 0xae7   : > { %v4047_v7 = vpop.eup (!%p3083_p12), %4046 }
 0xae8   : > { %v4049_v33 = vpop.eup (!%p3083_p12), %4048 }
 0xb6b   : > { %2688 = sbr.rel (%p3083_p12) target bundleno = 3082 (0xc0a), region = 180 }
 0xb6e   : > { %v2680_v31 = vpop.xlane.xlu1 %2679 }
 0xb6f   : > { %v2681_v61 = vadd.f32 %v2680_v31, %v2658_v1 }
 0xb71   : > { %2683 = vst.msk [vmem:[#allocation5] sm:$0xff] %vm2682_vm12, %v2681_v61 }
 0xb78   : > { %v2727_v34 = vld [vmem:[#allocation5] sm:$0xff] }
 0xb79   : > { %2730 = vperm.xlu0 %4033, %v2727_v34  }
 0xbf8   : > { %v2731_v13 = vpop.permute.xlu0 %2730 }
 0xbf9   : > { %4050 = vrcp.f32 %v2731_v13 }
 0xc03   : > { %v4051_v17 = vpop.eup %4050 }
 0xc04   : > { %v2734_v25 = vmul.f32 %v4051_v17, %v4035_v35  ;;  %v2735_v41 = vmul.f32 %v4051_v17, %v4037_v4  ;;  %v2736_v54 = vmul.f32 %v4051_v17, %v4039_v42  ;;  %v2737_v14 = vmul.f32 %v4051_v17, %v4041_v24 }
 0xc05   : > { %v2738_v40 = vmul.f32 %v4051_v17, %v4043_v45  ;;  %v2739_v8 = vmul.f32 %v4051_v17, %v4045_v59  ;;  %v2740_v57 = vmul.f32 %v4051_v17, %v4047_v7  ;;  %v2741_v16 = vmul.f32 %v4051_v17, %v4049_v33 }
 0xc06   : > { %2742 = vst [vmem:[#allocation30] sm:$0xff] %v2734_v25  ;;  %2743 = vst [vmem:[#allocation30 + $0x8] sm:$0xff] %v2735_v41 }
 0xc07   : > { %2744 = vst [vmem:[#allocation30 + $0x10] sm:$0xff] %v2736_v54  ;;  %2745 = vst [vmem:[#allocation30 + $0x18] sm:$0xff] %v2737_v14 }
 0xc08   : > { %2746 = vst [vmem:[#allocation30 + $0x20] sm:$0xff] %v2738_v40  ;;  %2747 = vst [vmem:[#allocation30 + $0x28] sm:$0xff] %v2739_v8 }
 0xc09   : > { %2748 = vst [vmem:[#allocation30 + $0x30] sm:$0xff] %v2740_v57  ;;  %2749 = vst [vmem:[#allocation30 + $0x38] sm:$0xff] %v2741_v16 }
 0xc0a PF: > { %p3901_p6 = scmp.eq.s32.totalorder %s4938_s1, 1  ;;  %s4798_s20 = smov [#allocation30]  }
 0xc0b   : > { %s2757_s8 = sshll.u32 %s4798_s20, 4  ;;  %s4799_s17 = smov [#allocation31]   ;;  %s2758_s8 = int_to_ptr.vmem [resolvable:$true] %s2757_s8 }
 0xc0c   : > { %s2768_s15 = sshll.u32 %s4799_s17, 4  ;;  %s4620_s22 = scalar_lea.vmem %s2758_s8, 1024  ;;  %s2769_s15 = int_to_ptr.vmem [resolvable:$true] %s2768_s15 }
 0xc0d   : > { %p4621_p0 = scmp.ne.s32.totalorder %s2758_s8, %s4620_s22  ;;  %p4627_p9 = scmp.lt.s32.totalorder %s2758_s8, %s2758_s8 }
 0xc0e   : > { %p4628_p13 = scmp.lt.s32.totalorder %s4620_s22, %s4620_s22 }
 0xc0f   : > { %p4622_p4 = pnand %p4621_p0, %p3901_p6 }
 0xc10   : > { %p4629_p1 = por %p4628_p13, %p4627_p9 }
 0xc11   : > { %p4623_p7 = pneg %p4622_p4 }
 0xc13   : > { %p4630_p3 = pnand %p4629_p1, %p4623_p7 }
 0xc15   : > { %4633 = shalt.err (!%p4630_p3)
}
 0xc16   : > { %s6286_s25 = sld [smem:[#allocation84_spill]] }
 0xc1c   : > { %s4634_s0 = scalar_lea.hbm %s6286_s25, 1024 }
 0xc1d   : > { %p4635_p8 = scmp.ne.s32.totalorder %s6286_s25, %s4634_s0  ;;  %p4640_p2 = scmp.lt.u32.totalorder %s4634_s0, %s6286_s25 }
 0xc1f   : > { %p4636_p11 = pnand %p4635_p8, %p3901_p6 }
 0xc21   : > { %p4637_p10 = pneg %p4636_p11 }
 0xc23   : > { %p4642_p5 = pnand %p4640_p2, %p4637_p10 }
 0xc25   : > { %4645 = shalt.err (!%p4642_p5)
}
 0xc26   : > { %3828 = dma.vmem_to_hbm [thread:$0]  (%p3901_p6), %s2758_s8, 1024, %s6286_s25, [#allocation11]  }
 0xc27   : > { %s4646_s2 = scalar_lea.vmem %s2769_s15, 128  ;;  %p4653_p7 = scmp.lt.s32.totalorder %s2769_s15, %s2769_s15 }
 0xc28   : > { %p4647_p12 = scmp.ne.s32.totalorder %s2769_s15, %s4646_s2  ;;  %p4654_p9 = scmp.lt.s32.totalorder %s4646_s2, %s4646_s2 }
 0xc2a   : > { %p4648_p0 = pnand %p4647_p12, %p3901_p6  ;;  %p4655_p13 = por %p4654_p9, %p4653_p7 }
 0xc2c   : > { %p4649_p4 = pneg %p4648_p0 }
 0xc2e   : > { %p4656_p1 = pnand %p4655_p13, %p4649_p4 }
 0xc30   : > { %4659 = shalt.err (!%p4656_p1)
}
 0xc31   : > { %s6287_s22 = sld [smem:[#allocation85_spill]] }
 0xc37   : > { %s4660_s30 = scalar_lea.hbm %s6287_s22, 128 }
 0xc38   : > { %p4661_p3 = scmp.ne.s32.totalorder %s6287_s22, %s4660_s30  ;;  %p4666_p10 = scmp.lt.u32.totalorder %s4660_s30, %s6287_s22 }
 0xc3a   : > { %p4662_p8 = pnand %p4661_p3, %p3901_p6 }
 0xc3c   : > { %p4663_p11 = pneg %p4662_p8 }
 0xc3e   : > { %p4668_p2 = pnand %p4666_p10, %p4663_p11 }
 0xc40   : > { %4671 = shalt.err (!%p4668_p2)
}
 0xc41   : > { %3830 = dma.vmem_to_hbm [thread:$0]  (%p3901_p6), %s2769_s15, 128, %s6287_s22, [#allocation32]  }
 0xc42   : > { %4739 = dma.done.wait (%p3901_p6), [#allocation11], 1024  }
 0xc43   : > { %4741 = vsyncadd (%p3901_p6), [#allocation11], 4294966272 }
 0xc44   : > { %4743 = dma.done.wait (%p3901_p6), [#allocation32], 128  }
 0xc45   : > { %4745 = vsyncadd (%p3901_p6), [#allocation32], 4294967168 }
 0xc46 PF: > { %p41_p5 = scmp.ge.s32.totalorder %s5211_s23, 4   ;;  %s6288_s14 = smov %s4752_s4 }
 0xc47   : > { %s6289_s4 = smov %s4756_s29  ;;  %s6290_s29 = smov %s5223_s21 }
 0xc48   : > { %s6291_s30 = smov %s5211_s23  ;;  %43 = sbr.rel (!%p41_p5) target bundleno = 32 (0x20), region = 253 }
 0xc4f   :  { %2785 = vsyncpa [#allocation10], 1 }
 0xc50   :  { %2787 = vsyncpa [#allocation10 + $0x1], 1 }
 0xc51   :  { %2788 = vsyncpa [#allocation13], 1 }
 0xc52   :  { %2789 = vsyncpa [#allocation16], 1 }
 0xc53   :  { %2790 = vsyncpa [#allocation19], 1 }
 0xc54   :  { %2791 = vsyncpa [#allocation22], 1 }
 0xc55   :  { %2792 = vsyncpa [#allocation25], 1 }
 0xc56   :  { %2793 = vsyncpa [#allocation28], 1 }
 0xc57   :  { %2794 = vsyncpa [#allocation11], 1 }
 0xc58   :  { %2796 = vsyncpa [#allocation11 + $0x1], 1 }
 0xc59   :  { %2797 = vsyncpa [#allocation32], 1 }
 0xc5a   :  { %2798 = vsyncmov [#allocation6] }
 0xc5d   :  { %s2799_s1 = vpop.sfrf %2798 }
 0xc5e   :  { %p3090_p6 = scmp.ne.s32.totalorder %s2799_s1, 0 }
 0xc60   :  { %2803 = shalt.err (%p3090_p6)  }
 0xc61   :  { %2805 = vsyncmov [#allocation6 + $0x1] }
 0xc64   :  { %s2806_s21 = vpop.sfrf %2805 }
 0xc65   :  { %p3091_p12 = scmp.ne.s32.totalorder %s2806_s21, 0 }
 0xc67   :  { %2810 = shalt.err (%p3091_p12)  }
 0xc68   :  { %2812 = vsyncmov [#allocation6 + $0x2] }
 0xc6b   :  { %s2813_s9 = vpop.sfrf %2812 }
 0xc6c   :  { %p3092_p0 = scmp.ne.s32.totalorder %s2813_s9, 0 }
 0xc6e   :  { %2817 = shalt.err (%p3092_p0)  }
 0xc6f   :  { %2819 = vsyncmov [#allocation6 + $0x3] }
 0xc72   :  { %s2820_s10 = vpop.sfrf %2819 }
 0xc73   :  { %p3093_p4 = scmp.ne.s32.totalorder %s2820_s10, 0 }
 0xc75   :  { %2824 = shalt.err (%p3093_p4)  }
 0xc76   :  { %2826 = vsyncmov [#allocation6 + $0x4] }
 0xc79   :  { %s2827_s11 = vpop.sfrf %2826 }
 0xc7a   :  { %p3094_p7 = scmp.ne.s32.totalorder %s2827_s11, 0 }
 0xc7c   :  { %2831 = shalt.err (%p3094_p7)  }
 0xc7d   :  { %2833 = vsyncmov [#allocation6 + $0x5] }
 0xc80   :  { %s2834_s12 = vpop.sfrf %2833 }
 0xc81   :  { %p3095_p9 = scmp.ne.s32.totalorder %s2834_s12, 0 }
 0xc83   :  { %2838 = shalt.err (%p3095_p9)  }
 0xc84   :  { %2840 = vsyncmov [#allocation6 + $0x6] }
 0xc87   :  { %s2841_s13 = vpop.sfrf %2840 }
 0xc88   :  { %p3096_p13 = scmp.ne.s32.totalorder %s2841_s13, 0 }
 0xc8a   :  { %2845 = shalt.err (%p3096_p13)  }
 0xc8b   :  { %2847 = vsyncmov [#allocation6 + $0x7] }
 0xc8e   :  { %s2848_s16 = vpop.sfrf %2847 }
 0xc8f   :  { %p3097_p1 = scmp.ne.s32.totalorder %s2848_s16, 0 }
 0xc91   :  { %2852 = shalt.err (%p3097_p1)  }

// kernel: tpu_custom_call.1
= control target key start
LH: loop header
LB: loop body
LE: loop exit
PB: predicated region body
PF: predicated region fallthrough
CT: control target
= control target key end

     0   :  { %s6183_s0 = inlined_call_operand.hbm [shape: s32[8], index: 0, kind: input, shape index: {}]   ;;  %s6184_s1 = inlined_call_operand.hbm [shape: f32[1000,128], index: 1, kind: input, shape index: {}]   ;;  %s6185_s2 = inlined_call_operand.hbm [shape: f32[8,128], index: 2, kind: input, shape index: {}]   ;;  %s6186_s3 = inlined_call_operand.vmem [shape: f32[8,9,128], index: 3, kind: input, shape index: {}]   ;;  %s6187_s4 = inlined_call_operand.vmem [shape: f32[128,128], index: 4, kind: input, shape index: {}]   ;;  %s6188_s5 = inlined_call_operand.hbm [shape: f32[128,128], index: 5, kind: input, shape index: {}]   ;;  %s6189_s6 = inlined_call_operand.hbm [shape: f32[128,128], index: 6, kind: input, shape index: {}]   ;;  %s6190_s7 = inlined_call_operand.hbm [shape: f32[128,128], index: 7, kind: input, shape index: {}]   ;;  %s6191_s8 = inlined_call_operand.hbm [shape: f32[128,128], index: 8, kind: input, shape index: {}]   ;;  %s6192_s9 = inlined_call_operand.hbm [shape: f32[128,128], index: 9, kind: input, shape index: {}]   ;;  %s6193_s10 = inlined_call_operand.hbm [shape: f32[1,128], index: 10, kind: input, shape index: {}]   ;;  %s6194_s11 = inlined_call_operand.hbm [shape: f32[1,128], index: 11, kind: input, shape index: {}]   ;;  %s6195_s12 = inlined_call_operand.hbm [shape: f32[1,128], index: 12, kind: input, shape index: {}]   ;;  %s6196_s13 = inlined_call_operand.hbm [shape: f32[1,128], index: 13, kind: input, shape index: {}]   ;;  %s6197_s14 = inlined_call_operand.hbm [shape: f32[128,128], index: 14, kind: input, shape index: {}]   ;;  %s6198_s15 = inlined_call_operand.vmem [shape: f32[128,128], index: 15, kind: input, shape index: {}]   ;;  %s6199_s16 = inlined_call_operand.hbm [shape: f32[1,128], index: 16, kind: input, shape index: {}]   ;;  %s6200_s17 = inlined_call_operand.hbm [shape: f32[128,1024], index: 17, kind: input, shape index: {}]   ;;  %s6201_s18 = inlined_call_operand.vmem [shape: f32[1,1024], index: 18, kind: input, shape index: {}]   ;;  %s6202_s19 = inlined_call_operand.hbm [shape: f32[8,1024], index: 19, kind: output, shape index: {0}]   ;;  %s6203_s20 = inlined_call_operand.hbm [shape: f32[8,128], index: 20, kind: output, shape index: {1}]  }
   0x1   :  { %6226 = sst [smem:[#allocation71_spill]] %s6183_s0 }
   0x2   :  { %6227 = sst [smem:[#allocation72_spill]] %s6184_s1  ;;  %s6241_s23 = sld [smem:[#allocation71_spill]] }
   0x3   :  { %6228 = sst [smem:[#allocation73_spill]] %s6185_s2 }
   0x4   :  { %6229 = sst [smem:[#allocation74_spill]] %s6186_s3 }
   0x5   :  { %6230 = sst [smem:[#allocation75_spill]] %s6187_s4 }
   0x6   :  { %6231 = sst [smem:[#allocation76_spill]] %s6188_s5 }
   0x7   :  { %6232 = sst [smem:[#allocation77_spill]] %s6189_s6 }
   0x8   :  { %6233 = sst [smem:[#allocation78_spill]] %s6190_s7 }
   0x9   :  { %6234 = sst [smem:[#allocation79_spill]] %s6191_s8 }
   0xa   :  { %6235 = sst [smem:[#allocation80_spill]] %s6197_s14  ;;  %s4052_s14 = scalar_lea.hbm %s6241_s23, 16 }
   0xb   :  { %6236 = sst [smem:[#allocation81_spill]] %s6198_s15  ;;  %p4053_p0 = scmp.ne.s32.totalorder %s6241_s23, %s4052_s14 }
   0xc   :  { %6237 = sst [smem:[#allocation82_spill]] %s6200_s17  ;;  %p4056_p1 = scmp.lt.u32.totalorder %s4052_s14, %s6241_s23 }
   0xd   :  { %6238 = sst [smem:[#allocation83_spill]] %s6201_s18 }
   0xe   :  { %6239 = sst [smem:[#allocation84_spill]] %s6202_s19  ;;  %p4058_p2 = pnand %p4056_p1, %p4053_p0 }
   0xf   :  { %6240 = sst [smem:[#allocation85_spill]] %s6203_s20 }
  0x10   :  { %4061 = shalt.err (!%p4058_p2)  }
  0x11   :  { %s4762_s26 = smov [#allocation8]  }
  0x12   :  { %27 = dma.hbm_to_smem %s6241_s23, 16, %s4762_s26, [#allocation7] }
  0x13   :  { %4688 = dma.done.wait [#allocation7], 16 }
  0x14   :  { %4689 = vsyncadd [#allocation7], 4294967280 }
  0x15   :  { %29 = sfence }
  0x16   :  { %30 = vsyncpa [#allocation10], 0 }
  0x17   :  { %31 = vsyncpa [#allocation13], 0 }
  0x18   :  { %32 = vsyncpa [#allocation16], 0 }
  0x19   :  { %33 = vsyncpa [#allocation19], 0 }
  0x1a   :  { %34 = vsyncpa [#allocation22], 0 }
  0x1b   :  { %35 = vsyncpa [#allocation25], 0 }
  0x1c   :  { %36 = vsyncpa [#allocation28], 0 }
  0x1d   :  { %37 = vsyncpa [#allocation11], 0 }
  0x1e   :  { %38 = vsyncpa [#allocation32], 0  ;;  %s4917_s14 = smov 0   ;;  %s4919_s4 = smov 0  }
  0x1f   :  { %s4921_s29 = smov 0   ;;  %s4923_s30 = smov 0  }
  0x20 LB: > { %s4763_s0 = smov [#allocation9]   ;;  %s4938_s1 = sadd.s32 4294967295, %s4760_s30   ;;  %s4760_s30 = sphi %s4923_s30, %s6291_s30   ;;  %s4756_s29 = sphi %s4921_s29, %s6290_s29   ;;  %s4752_s4 = sphi %s4919_s4, %s6289_s4   ;;  %s4748_s14 = sphi %s4917_s14, %s6288_s14  }
  0x21   : > { %s471_s21 = sshll.u32 %s4763_s0, 4  ;;  %p3026_p3 = scmp.ge.s32.totalorder %s4760_s30, 1  ;;  %s472_s21 = int_to_ptr.vmem [resolvable:$true] %s471_s21 }
  0x22   : > { %p6213_p4 = scmp.eq.s32.totalorder %s4938_s1, 0  ;;  %p458_p5 = scmp.lt.s32.totalorder %s4760_s30, 3 }
  0x23   : > { %s4764_s23 = smov [#allocation12]   ;;  %s4765_s25 = smov [#allocation15]  }
  0x24   : > { %p4944_p7 = pnand %p3026_p3, %p458_p5  ;;  %s487_s24 = sshll.u32 %s4764_s23, 4  ;;  %s4950_s24 = int_to_ptr.vmem [resolvable:$true] %s487_s24 }
  0x25   : > { %s513_s3 = sshll.u32 %s4765_s25, 4  ;;  %s6245_s28 = sld [smem:[#allocation73_spill]]  ;;  %s4958_s3 = int_to_ptr.vmem [resolvable:$true] %s513_s3 }
  0x26   : > { %s6242_s22 = scalar_select %p4944_p7, 1, 0 }
  0x27   : > { %p3835_p8 = pneg %p4944_p7 }
  0x28   : > { %6243 = sst [smem:[#allocation70_spill]] %s6242_s22 }
  0x29   : > { %p4954_p9 = pnand %p3835_p8, %p6213_p4 }
  0x2b   : > { %s4062_s0 = scalar_lea.hbm %s6245_s28, 128  ;;  %p4968_p11 = pneg %p4954_p9 }
  0x2c   : > { %p4063_p10 = scmp.ne.s32.totalorder %s6245_s28, %s4062_s0  ;;  %p4069_p0 = scmp.lt.u32.totalorder %s4062_s0, %s6245_s28 }
  0x2e   : > { %p4065_p12 = pnand %p4968_p11, %p4063_p10 }
  0x30   : > { %p4066_p13 = pneg %p4065_p12 }
  0x32   : > { %p4071_p1 = pnand %p4069_p0, %p4066_p13 }
  0x34   : > { %4074 = shalt.err (!%p4071_p1)
}
  0x35   : > { %s4075_s26 = scalar_lea.vmem %s472_s21, 128  ;;  %p4083_p8 = scmp.lt.s32.totalorder %s472_s21, %s472_s21 }
  0x36   : > { %p4076_p2 = scmp.ne.s32.totalorder %s472_s21, %s4075_s26  ;;  %p4084_p6 = scmp.lt.s32.totalorder %s4075_s26, %s4075_s26 }
  0x38   : > { %p4078_p3 = pnand %p4076_p2, %p4968_p11  ;;  %p4085_p4 = por %p4084_p6, %p4083_p8 }
  0x3a   : > { %p4079_p5 = pneg %p4078_p3 }
  0x3c   : > { %p4086_p7 = pnand %p4085_p4, %p4079_p5 }
  0x3e   : > { %4089 = shalt.err (!%p4086_p7)
}
  0x3f   : > { %3838 = dma.hbm_to_vmem [thread:$0]  (!%p4954_p9), %s6245_s28, 128, %s472_s21, [#allocation10]  }
  0x40   : > { %s6247_s5 = sld [smem:[#allocation76_spill]] }
  0x46   : > { %s4090_s0 = scalar_lea.hbm %s6247_s5, 2048 }
  0x47   : > { %p4091_p10 = scmp.ne.s32.totalorder %s6247_s5, %s4090_s0  ;;  %p4097_p4 = scmp.lt.u32.totalorder %s4090_s0, %s6247_s5 }
  0x49   : > { %p4093_p12 = pnand %p4091_p10, %p4968_p11 }
  0x4b   : > { %p4094_p6 = pneg %p4093_p12 }
  0x4d   : > { %p4099_p7 = pnand %p4097_p4, %p4094_p6 }
  0x4f   : > { %4102 = shalt.err (!%p4099_p7)
}
  0x50   : > { %s4103_s21 = scalar_lea.vmem %s4950_s24, 2048  ;;  %p4111_p2 = scmp.lt.s32.totalorder %s4950_s24, %s4950_s24 }
  0x51   : > { %p4104_p13 = scmp.ne.s32.totalorder %s4950_s24, %s4103_s21  ;;  %p4112_p3 = scmp.lt.s32.totalorder %s4103_s21, %s4103_s21 }
  0x53   : > { %p4106_p0 = pnand %p4104_p13, %p4968_p11  ;;  %p4113_p5 = por %p4112_p3, %p4111_p2 }
  0x55   : > { %p4107_p1 = pneg %p4106_p0 }
  0x57   : > { %p4114_p8 = pnand %p4113_p5, %p4107_p1 }
  0x59   : > { %4117 = shalt.err (!%p4114_p8)
}
  0x5a   : > { %s4766_s18 = smov 128   ;;  %s4767_s22 = smov 8  }
  0x5b   : > { %3841 = dma.hbm_to_vmem [thread:$0]  (!%p4954_p9), %s6247_s5, 2048, %s4950_s24, [#allocation13], %s4766_s18, %s4766_s18, %s4767_s22  }
  0x5c   : > { %s6248_s7 = sld [smem:[#allocation78_spill]] }
  0x62   : > { %s4118_s0 = scalar_lea.hbm %s6248_s7, 2048 }
  0x63   : > { %p4119_p10 = scmp.ne.s32.totalorder %s6248_s7, %s4118_s0  ;;  %p4125_p4 = scmp.lt.u32.totalorder %s4118_s0, %s6248_s7 }
  0x65   : > { %p4121_p12 = pnand %p4119_p10, %p4968_p11 }
  0x67   : > { %p4122_p6 = pneg %p4121_p12 }
  0x69   : > { %p4127_p7 = pnand %p4125_p4, %p4122_p6 }
  0x6b   : > { %4130 = shalt.err (!%p4127_p7)
}
  0x6c   : > { %s4131_s24 = scalar_lea.vmem %s4958_s3, 2048  ;;  %p4139_p2 = scmp.lt.s32.totalorder %s4958_s3, %s4958_s3 }
  0x6d   : > { %p4132_p13 = scmp.ne.s32.totalorder %s4958_s3, %s4131_s24  ;;  %p4140_p3 = scmp.lt.s32.totalorder %s4131_s24, %s4131_s24 }
  0x6f   : > { %p4134_p0 = pnand %p4132_p13, %p4968_p11  ;;  %p4141_p5 = por %p4140_p3, %p4139_p2 }
  0x71   : > { %p4135_p1 = pneg %p4134_p0 }
  0x73   : > { %p4142_p8 = pnand %p4141_p5, %p4135_p1 }
  0x75   : > { %4145 = shalt.err (!%p4142_p8)
}
  0x76   : > { %3847 = dma.hbm_to_vmem [thread:$0]  (!%p4954_p9), %s6248_s7, 2048, %s4958_s3, [#allocation16], %s4766_s18, %s4766_s18, %s4767_s22  }
  0x77   : > { %s4768_s20 = smov [#allocation18]   ;;  %s4769_s27 = smov [#allocation21]  }
  0x78   : > { %s539_s15 = sshll.u32 %s4768_s20, 4  ;;  %s564_s0 = sshll.u32 %s4769_s27, 4  ;;  %s540_s15 = int_to_ptr.vmem [resolvable:$true] %s539_s15  ;;  %s565_s0 = int_to_ptr.vmem [resolvable:$true] %s564_s0 }
  0x79   : > { %s4146_s21 = scalar_lea.hbm %s6192_s9, 2048 }
  0x7a   : > { %p4147_p10 = scmp.ne.s32.totalorder %s6192_s9, %s4146_s21  ;;  %p4153_p4 = scmp.lt.u32.totalorder %s4146_s21, %s6192_s9 }
  0x7c   : > { %p4149_p12 = pnand %p4147_p10, %p4968_p11 }
  0x7e   : > { %p4150_p6 = pneg %p4149_p12 }
  0x80   : > { %p4155_p7 = pnand %p4153_p4, %p4150_p6 }
  0x82   : > { %4158 = shalt.err (!%p4155_p7)
}
  0x83   : > { %s4159_s3 = scalar_lea.vmem %s540_s15, 2048  ;;  %p4167_p2 = scmp.lt.s32.totalorder %s540_s15, %s540_s15 }
  0x84   : > { %p4160_p13 = scmp.ne.s32.totalorder %s540_s15, %s4159_s3  ;;  %p4168_p3 = scmp.lt.s32.totalorder %s4159_s3, %s4159_s3 }
  0x86   : > { %p4162_p0 = pnand %p4160_p13, %p4968_p11  ;;  %p4169_p5 = por %p4168_p3, %p4167_p2 }
  0x88   : > { %p4163_p1 = pneg %p4162_p0 }
  0x8a   : > { %p4170_p8 = pnand %p4169_p5, %p4163_p1 }
  0x8c   : > { %4173 = shalt.err (!%p4170_p8)
}
  0x8d   : > { %3853 = dma.hbm_to_vmem [thread:$0]  (!%p4954_p9), %s6192_s9, 2048, %s540_s15, [#allocation19], %s4766_s18, %s4766_s18, %s4767_s22  }
  0x8e   : > { %s4174_s27 = scalar_lea.hbm %s6194_s11, 16 }
  0x8f   : > { %p4175_p10 = scmp.ne.s32.totalorder %s6194_s11, %s4174_s27  ;;  %p4181_p4 = scmp.lt.u32.totalorder %s4174_s27, %s6194_s11 }
  0x91   : > { %p4177_p12 = pnand %p4175_p10, %p4968_p11 }
  0x93   : > { %p4178_p6 = pneg %p4177_p12 }
  0x95   : > { %p4183_p7 = pnand %p4181_p4, %p4178_p6 }
  0x97   : > { %4186 = shalt.err (!%p4183_p7)
}
  0x98   : > { %s4187_s28 = scalar_lea.vmem %s565_s0, 16  ;;  %s4194_s15 = scalar_lea.vmem %s565_s0, 32 }
  0x99   : > { %p4188_p13 = scmp.ne.s32.totalorder %s565_s0, %s4187_s28  ;;  %p4195_p2 = scmp.lt.s32.totalorder %s565_s0, %s565_s0 }
  0x9a   : > { %p4196_p3 = scmp.lt.s32.totalorder %s4194_s15, %s4187_s28 }
  0x9b   : > { %p4190_p0 = pnand %p4188_p13, %p4968_p11 }
  0x9c   : > { %p4197_p5 = por %p4196_p3, %p4195_p2 }
  0x9d   : > { %p4191_p1 = pneg %p4190_p0 }
  0x9f   : > { %p4198_p8 = pnand %p4197_p5, %p4191_p1 }
  0xa1   : > { %4201 = shalt.err (!%p4198_p8)
}
  0xa2   : > { %3859 = dma.hbm_to_vmem [thread:$0]  (!%p4954_p9), %s6194_s11, 16, %s565_s0, [#allocation22]  }
  0xa3   : > { %s4770_s17 = smov [#allocation24]   ;;  %s4771_s20 = smov [#allocation14]  }
  0xa4   : > { %s586_s19 = sshll.u32 %s4770_s17, 4  ;;  %s500_s27 = sshll.u32 %s4771_s20, 4  ;;  %s587_s19 = int_to_ptr.vmem [resolvable:$true] %s586_s19  ;;  %s501_s27 = int_to_ptr.vmem [resolvable:$true] %s500_s27 }
  0xa5   : > { %s4202_s21 = scalar_lea.hbm %s6196_s13, 16 }
  0xa6   : > { %p4203_p10 = scmp.ne.s32.totalorder %s6196_s13, %s4202_s21  ;;  %p4209_p4 = scmp.lt.u32.totalorder %s4202_s21, %s6196_s13 }
  0xa8   : > { %p4205_p12 = pnand %p4203_p10, %p4968_p11 }
  0xaa   : > { %p4206_p6 = pneg %p4205_p12 }
  0xac   : > { %p4211_p7 = pnand %p4209_p4, %p4206_p6 }
  0xae   : > { %4214 = shalt.err (!%p4211_p7)
}
  0xaf   : > { %s4215_s0 = scalar_lea.vmem %s587_s19, 16  ;;  %s4222_s5 = scalar_lea.vmem %s587_s19, 32 }
  0xb0   : > { %p4216_p13 = scmp.ne.s32.totalorder %s587_s19, %s4215_s0  ;;  %p4223_p2 = scmp.lt.s32.totalorder %s587_s19, %s587_s19 }
  0xb1   : > { %p4224_p3 = scmp.lt.s32.totalorder %s4222_s5, %s4215_s0 }
  0xb2   : > { %p4218_p0 = pnand %p4216_p13, %p4968_p11 }
  0xb3   : > { %p4225_p5 = por %p4224_p3, %p4223_p2 }
  0xb4   : > { %p4219_p1 = pneg %p4218_p0 }
  0xb6   : > { %p4226_p8 = pnand %p4225_p5, %p4219_p1 }
  0xb8   : > { %4229 = shalt.err (!%p4226_p8)
}
  0xb9   : > { %3865 = dma.hbm_to_vmem [thread:$0]  (!%p4954_p9), %s6196_s13, 16, %s587_s19, [#allocation25]  }
  0xba   : > { %s6249_s6 = sld [smem:[#allocation77_spill]] }
  0xc0   : > { %s4230_s21 = scalar_lea.hbm %s6249_s6, 2048 }
  0xc1   : > { %p4231_p10 = scmp.ne.s32.totalorder %s6249_s6, %s4230_s21  ;;  %p4237_p4 = scmp.lt.u32.totalorder %s4230_s21, %s6249_s6 }
  0xc3   : > { %p4233_p12 = pnand %p4231_p10, %p4968_p11 }
  0xc5   : > { %p4234_p6 = pneg %p4233_p12 }
  0xc7   : > { %p4239_p7 = pnand %p4237_p4, %p4234_p6 }
  0xc9   : > { %4242 = shalt.err (!%p4239_p7)
}
  0xca   : > { %s4243_s0 = scalar_lea.vmem %s501_s27, 2048  ;;  %p4251_p2 = scmp.lt.s32.totalorder %s501_s27, %s501_s27 }
  0xcb   : > { %p4244_p13 = scmp.ne.s32.totalorder %s501_s27, %s4243_s0  ;;  %p4252_p3 = scmp.lt.s32.totalorder %s4243_s0, %s4243_s0 }
  0xcd   : > { %p4246_p0 = pnand %p4244_p13, %p4968_p11  ;;  %p4253_p5 = por %p4252_p3, %p4251_p2 }
  0xcf   : > { %p4247_p1 = pneg %p4246_p0 }
  0xd1   : > { %p4254_p8 = pnand %p4253_p5, %p4247_p1 }
  0xd3   : > { %4257 = shalt.err (!%p4254_p8)
}
  0xd4   : > { %3844 = dma.hbm_to_vmem [thread:$0]  (!%p4954_p9), %s6249_s6, 2048, %s501_s27, [#allocation13], %s4766_s18, %s4766_s18, %s4767_s22  }
  0xd5   : > { %s4772_s17 = smov [#allocation17]   ;;  %s4773_s25 = smov [#allocation20]  }
  0xd6   : > { %s526_s20 = sshll.u32 %s4772_s17, 4  ;;  %s553_s26 = sshll.u32 %s4773_s25, 4  ;;  %s527_s20 = int_to_ptr.vmem [resolvable:$true] %s526_s20  ;;  %s554_s26 = int_to_ptr.vmem [resolvable:$true] %s553_s26 }
  0xd7   : > { %s6250_s8 = sld [smem:[#allocation79_spill]] }
  0xdd   : > { %s4258_s28 = scalar_lea.hbm %s6250_s8, 2048 }
  0xde   : > { %p4259_p10 = scmp.ne.s32.totalorder %s6250_s8, %s4258_s28  ;;  %p4265_p4 = scmp.lt.u32.totalorder %s4258_s28, %s6250_s8 }
  0xe0   : > { %p4261_p12 = pnand %p4259_p10, %p4968_p11 }
  0xe2   : > { %p4262_p6 = pneg %p4261_p12 }
  0xe4   : > { %p4267_p7 = pnand %p4265_p4, %p4262_p6 }
  0xe6   : > { %4270 = shalt.err (!%p4267_p7)
}
  0xe7   : > { %s4271_s27 = scalar_lea.vmem %s527_s20, 2048  ;;  %p4279_p2 = scmp.lt.s32.totalorder %s527_s20, %s527_s20 }
  0xe8   : > { %p4272_p13 = scmp.ne.s32.totalorder %s527_s20, %s4271_s27  ;;  %p4280_p3 = scmp.lt.s32.totalorder %s4271_s27, %s4271_s27 }
  0xea   : > { %p4274_p0 = pnand %p4272_p13, %p4968_p11  ;;  %p4281_p5 = por %p4280_p3, %p4279_p2 }
  0xec   : > { %p4275_p1 = pneg %p4274_p0 }
  0xee   : > { %p4282_p8 = pnand %p4281_p5, %p4275_p1 }
  0xf0   : > { %4285 = shalt.err (!%p4282_p8)
}
  0xf1   : > { %3850 = dma.hbm_to_vmem [thread:$0]  (!%p4954_p9), %s6250_s8, 2048, %s527_s20, [#allocation16], %s4766_s18, %s4766_s18, %s4767_s22  }
  0xf2   : > { %s4286_s24 = scalar_lea.hbm %s6193_s10, 16 }
  0xf3   : > { %p4287_p10 = scmp.ne.s32.totalorder %s6193_s10, %s4286_s24  ;;  %p4293_p4 = scmp.lt.u32.totalorder %s4286_s24, %s6193_s10 }
  0xf5   : > { %p4289_p12 = pnand %p4287_p10, %p4968_p11 }
  0xf7   : > { %p4290_p6 = pneg %p4289_p12 }
  0xf9   : > { %p4295_p7 = pnand %p4293_p4, %p4290_p6 }
  0xfb   : > { %4298 = shalt.err (!%p4295_p7)
}
  0xfc   : > { %s4299_s19 = scalar_lea.vmem %s554_s26, 16  ;;  %s4306_s20 = scalar_lea.vmem %s554_s26, 32 }
  0xfd   : > { %p4300_p13 = scmp.ne.s32.totalorder %s554_s26, %s4299_s19  ;;  %p4307_p2 = scmp.lt.s32.totalorder %s554_s26, %s554_s26 }
  0xfe   : > { %p4308_p3 = scmp.lt.s32.totalorder %s4306_s20, %s4299_s19 }
  0xff   : > { %p4302_p0 = pnand %p4300_p13, %p4968_p11 }
 0x100   : > { %p4309_p5 = por %p4308_p3, %p4307_p2 }
 0x101   : > { %p4303_p1 = pneg %p4302_p0 }
 0x103   : > { %p4310_p8 = pnand %p4309_p5, %p4303_p1 }
 0x105   : > { %4313 = shalt.err (!%p4310_p8)
}
 0x106   : > { %3856 = dma.hbm_to_vmem [thread:$0]  (!%p4954_p9), %s6193_s10, 16, %s554_s26, [#allocation19]  }
 0x107   : > { %s4774_s17 = smov [#allocation23]   ;;  %s4775_s21 = smov [#allocation26]  }
 0x108   : > { %s575_s25 = sshll.u32 %s4774_s17, 4  ;;  %s596_s24 = sshll.u32 %s4775_s21, 4  ;;  %s576_s25 = int_to_ptr.vmem [resolvable:$true] %s575_s25  ;;  %s597_s24 = int_to_ptr.vmem [resolvable:$true] %s596_s24 }
 0x109   : > { %s4314_s3 = scalar_lea.hbm %s6195_s12, 16 }
 0x10a   : > { %p4315_p10 = scmp.ne.s32.totalorder %s6195_s12, %s4314_s3  ;;  %p4321_p4 = scmp.lt.u32.totalorder %s4314_s3, %s6195_s12 }
 0x10c   : > { %p4317_p12 = pnand %p4315_p10, %p4968_p11 }
 0x10e   : > { %p4318_p6 = pneg %p4317_p12 }
 0x110   : > { %p4323_p7 = pnand %p4321_p4, %p4318_p6 }
 0x112   : > { %4326 = shalt.err (!%p4323_p7)
}
 0x113   : > { %s4327_s26 = scalar_lea.vmem %s576_s25, 16  ;;  %s4334_s5 = scalar_lea.vmem %s576_s25, 32 }
 0x114   : > { %p4328_p13 = scmp.ne.s32.totalorder %s576_s25, %s4327_s26  ;;  %p4335_p2 = scmp.lt.s32.totalorder %s576_s25, %s576_s25 }
 0x115   : > { %p4336_p3 = scmp.lt.s32.totalorder %s4334_s5, %s4327_s26 }
 0x116   : > { %p4330_p0 = pnand %p4328_p13, %p4968_p11 }
 0x117   : > { %p4337_p5 = por %p4336_p3, %p4335_p2 }
 0x118   : > { %p4331_p1 = pneg %p4330_p0 }
 0x11a   : > { %p4338_p8 = pnand %p4337_p5, %p4331_p1 }
 0x11c   : > { %4341 = shalt.err (!%p4338_p8)
}
 0x11d   : > { %3862 = dma.hbm_to_vmem [thread:$0]  (!%p4954_p9), %s6195_s12, 16, %s576_s25, [#allocation22]  }
 0x11e   : > { %s6251_s3 = sld [smem:[#allocation80_spill]] }
 0x124   : > { %s4342_s0 = scalar_lea.hbm %s6251_s3, 2048 }
 0x125   : > { %p4343_p10 = scmp.ne.s32.totalorder %s6251_s3, %s4342_s0  ;;  %p4349_p4 = scmp.lt.u32.totalorder %s4342_s0, %s6251_s3 }
 0x127   : > { %p4345_p12 = pnand %p4343_p10, %p4968_p11 }
 0x129   : > { %p4346_p6 = pneg %p4345_p12 }
 0x12b   : > { %p4351_p7 = pnand %p4349_p4, %p4346_p6 }
 0x12d   : > { %4354 = shalt.err (!%p4351_p7)
}
 0x12e   : > { %s4355_s5 = scalar_lea.vmem %s597_s24, 2048  ;;  %p4363_p2 = scmp.lt.s32.totalorder %s597_s24, %s597_s24 }
 0x12f   : > { %p4356_p13 = scmp.ne.s32.totalorder %s597_s24, %s4355_s5  ;;  %p4364_p3 = scmp.lt.s32.totalorder %s4355_s5, %s4355_s5 }
 0x131   : > { %p4358_p0 = pnand %p4356_p13, %p4968_p11  ;;  %p4365_p5 = por %p4364_p3, %p4363_p2 }
 0x133   : > { %p4359_p1 = pneg %p4358_p0 }
 0x135   : > { %p4366_p8 = pnand %p4365_p5, %p4359_p1 }
 0x137   : > { %4369 = shalt.err (!%p4366_p8)
}
 0x138   : > { %3868 = dma.hbm_to_vmem [thread:$0]  (!%p4954_p9), %s6251_s3, 2048, %s597_s24, [#allocation25], %s4766_s18, %s4766_s18, %s4767_s22  }
 0x139   : > { %s4776_s21 = smov [#allocation27]   ;;  %s4370_s19 = scalar_lea.hbm %s6199_s16, 16 }
 0x13a   : > { %s613_s28 = sshll.u32 %s4776_s21, 4  ;;  %p4371_p10 = scmp.ne.s32.totalorder %s6199_s16, %s4370_s19  ;;  %s614_s28 = int_to_ptr.vmem [resolvable:$true] %s613_s28 }
 0x13b   : > { %p4377_p4 = scmp.lt.u32.totalorder %s4370_s19, %s6199_s16 }
 0x13c   : > { %p4373_p12 = pnand %p4371_p10, %p4968_p11 }
 0x13e   : > { %p4374_p6 = pneg %p4373_p12 }
 0x140   : > { %p4379_p7 = pnand %p4377_p4, %p4374_p6 }
 0x142   : > { %4382 = shalt.err (!%p4379_p7)
}
 0x143   : > { %s4383_s18 = scalar_lea.vmem %s614_s28, 16  ;;  %s4390_s22 = scalar_lea.vmem %s614_s28, 32 }
 0x144   : > { %p4384_p13 = scmp.ne.s32.totalorder %s614_s28, %s4383_s18  ;;  %p4391_p2 = scmp.lt.s32.totalorder %s614_s28, %s614_s28 }
 0x145   : > { %p4392_p3 = scmp.lt.s32.totalorder %s4390_s22, %s4383_s18 }
 0x146   : > { %p4386_p0 = pnand %p4384_p13, %p4968_p11 }
 0x147   : > { %p4393_p5 = por %p4392_p3, %p4391_p2 }
 0x148   : > { %p4387_p1 = pneg %p4386_p0 }
 0x14a   : > { %p4394_p8 = pnand %p4393_p5, %p4387_p1 }
 0x14c   : > { %4397 = shalt.err (!%p4394_p8)
}
 0x14d   : > { %3871 = dma.hbm_to_vmem [thread:$0]  (!%p4954_p9), %s6199_s16, 16, %s614_s28, [#allocation28]  }
 0x14e   : > { %s5211_s23 = sadd.s32 1, %s4760_s30   ;;  %s366_s2 = sadd.s32 1, %s4756_s29 }
 0x14f   : > { %s363_s17 = ssub.s32 %s4760_s30, %s5211_s23  ;;  %p373_p11 = scmp.ne.s32.totalorder %s4756_s29, %s4752_s4 }
 0x150   : > { %p364_p10 = scmp.eq.s32.totalorder %s363_s17, 0  ;;  %p374_p12 = scmp.eq.s32.totalorder %s4760_s30, 0 }
 0x151   : > { %p379_p6 = scmp.ne.s32.totalorder %s4752_s4, %s4748_s14  ;;  %p3888_p4 = scmp.lt.s32.totalorder %s4760_s30, 2 }
 0x152   : > { %s5223_s21 = scalar_select %p364_p10, %s4756_s29, %s366_s2  }
 0x153   : > { %p375_p7 = por %p374_p12, %p373_p11  ;;  %p6252_p13 = scmp.eq.s32.totalorder %s4938_s1, 0 }
 0x154   : > { %s624_s0 = sand.u32 1, %s4760_s30   ;;  %s626_s28 = sand.u32 1, %s4756_s29  }
 0x155   : > { %p5227_p0 = por %p6252_p13, %p379_p6  ;;  %s3040_s19 = sshll.u32 %s626_s28, 9 }
 0x156   : > { %s3098_s20 = sshll.u32 %s4760_s30, 9  ;;  %s6254_s5 = sld [smem:[#allocation82_spill]] }
 0x157   : > { %s628_s14 = scalar_lea.vmem [#allocation29], %s3040_s19  ;;  %p5241_p9 = pnand %p3888_p4, %p375_p7 }
 0x158   : > { %s635_s22 = sshll.u32 %s628_s14, 4  ;;  %s5245_s30 = scalar_lea.sflag [#allocation10], %s624_s0  ;;  %s5239_s22 = int_to_ptr.vmem [resolvable:$true] %s635_s22 }
 0x159   : > { %p4400_p2 = pneg %p5241_p9 }
 0x15c   : > { %s5237_s18 = scalar_lea.hbm %s6254_s5, %s3098_s20  ;;  %s4403_s28 = scalar_lea.hbm %s6254_s5, 16384 }
 0x15d   : > { %s4398_s25 = scalar_lea.hbm %s5237_s18, 8192  ;;  %p4404_p8 = scmp.lt.u32.totalorder %s5237_s18, %s6254_s5 }
 0x15e   : > { %p4399_p1 = scmp.ne.s32.totalorder %s5237_s18, %s4398_s25  ;;  %p4405_p11 = scmp.lt.u32.totalorder %s4403_s28, %s4398_s25 }
 0x15f   : > { %p4407_p12 = scmp.lt.u32.totalorder %s4398_s25, %s5237_s18 }
 0x160   : > { %p4401_p3 = pnand %p4400_p2, %p4399_p1  ;;  %p4406_p10 = por %p4405_p11, %p4404_p8 }
 0x162   : > { %p4402_p5 = pneg %p4401_p3  ;;  %p4408_p6 = por %p4407_p12, %p4406_p10 }
 0x164   : > { %p4409_p4 = pnand %p4408_p6, %p4402_p5 }
 0x166   : > { %4412 = shalt.err (!%p4409_p4)
}
 0x167   : > { %s4413_s0 = scalar_lea.vmem %s5239_s22, 8192  ;;  %s4777_s27 = smov [#allocation29]  }
 0x168   : > { %p4414_p7 = scmp.ne.s32.totalorder %s5239_s22, %s4413_s0  ;;  %s4418_s26 = sshll.u32 %s4777_s27, 4  ;;  %s4419_s26 = int_to_ptr.vmem [resolvable:$false] %s4418_s26 }
 0x169   : > { %s4420_s14 = scalar_lea.vmem %s4419_s26, 16384  ;;  %p4421_p3 = scmp.lt.s32.totalorder %s5239_s22, %s4419_s26 }
 0x16a   : > { %p4416_p13 = pnand %p4414_p7, %p4400_p2  ;;  %p4422_p8 = scmp.lt.s32.totalorder %s4420_s14, %s4413_s0 }
 0x16c   : > { %p4417_p1 = pneg %p4416_p13  ;;  %p4423_p11 = por %p4422_p8, %p4421_p3 }
 0x16e   : > { %p4424_p10 = pnand %p4423_p11, %p4417_p1 }
 0x170   : > { %4427 = shalt.err (!%p4424_p10)
}
 0x171   : > { %s4778_s25 = smov 1024   ;;  %s4779_s2 = smov 512  }
 0x172   : > { %s4780_s17 = smov 32   ;;  %s6256_s28 = sld [smem:[#allocation70_spill]] }
 0x173   : > { %3875 = dma.hbm_to_vmem [thread:$0]  (!%p5241_p9), %s5237_s18, 8192, %s5239_s22, %s5245_s30, %s4778_s25, %s4779_s2, %s4780_s17  }
 0x178   : > { %p6257_p2 = scmp.ne.s32.totalorder %s6256_s28, 0 }
 0x179   : > { %p6258_p5 = scmp.eq.s32.totalorder (!%p6257_p2), %s4938_s1, 0 }
 0x17a   : > { %655 = sbr.rel (%p6257_p2) target bundleno = 3142 (0xc46), region = 88 }
 0x181   : > { %4691 = dma.done.wait (%p6258_p5), [#allocation10], 128   ;;  %p6259_p12 = pmov %p6258_p5 }
 0x182   : > { %p6260_p6 = pmov %p6258_p5 }
 0x183   : > { %4693 = vsyncadd (%p6259_p12), [#allocation10], 4294967168 }
 0x184   : > { %4695 = dma.done.wait (%p6260_p6), [#allocation13], 4096   ;;  %p6261_p4 = pmov %p6258_p5 }
 0x186   : > { %4697 = vsyncadd (%p6261_p4), [#allocation13], 4294963200  ;;  %p6262_p7 = pmov %p6261_p4 }
 0x187   : > { %p6263_p9 = pmov %p6261_p4 }
 0x188   : > { %4699 = dma.done.wait (%p6262_p7), [#allocation16], 4096  }
 0x189   : > { %4701 = vsyncadd (%p6263_p9), [#allocation16], 4294963200  ;;  %p6264_p13 = pmov %p6261_p4 }
 0x18a   : > { %p6265_p1 = pmov %p6261_p4 }
 0x18b   : > { %4703 = dma.done.wait (%p6264_p13), [#allocation19], 2064  }
 0x18c   : > { %4705 = vsyncadd (%p6265_p1), [#allocation19], 4294965232  ;;  %p6266_p3 = pmov %p6265_p1 }
 0x18d   : > { %p6267_p8 = pmov %p6265_p1 }
 0x18e   : > { %4707 = dma.done.wait (%p6266_p3), [#allocation22], 32  }
 0x18f   : > { %4709 = vsyncadd (%p6267_p8), [#allocation22], 4294967264  ;;  %p6268_p11 = pmov %p6265_p1 }
 0x190   : > { %p6269_p10 = pmov %p6265_p1 }
 0x191   : > { %4711 = dma.done.wait (%p6268_p11), [#allocation25], 2064  }
 0x192   : > { %4713 = vsyncadd (%p6269_p10), [#allocation25], 4294965232  ;;  %p6270_p2 = pmov %p6265_p1 }
 0x193   : > { %p6271_p5 = pmov %p6265_p1 }
 0x194   : > { %4715 = dma.done.wait (%p6270_p2), [#allocation28], 16  }
 0x195   : > { %4717 = vsyncadd (%p6271_p5), [#allocation28], 4294967280  ;;  %s705_s18 = sand.u32 1, %s4938_s1   ;;  %s707_s22 = sand.u32 1, %s4752_s4  }
 0x196   : > { %s3056_s24 = sshll.u32 %s707_s22, 9  ;;  %s706_s30 = scalar_lea.sflag [#allocation10], %s705_s18 }
 0x197   : > { %s5305_s19 = scalar_lea.vmem [#allocation29], %s3056_s24 }
 0x198   : > { %4719 = dma.done.wait (%p5227_p0), %s706_s30, 8192  }
 0x199   : > { %4721 = vsyncadd (%p5227_p0), %s706_s30, 4294959104  ;;  %s3057_s20 = sshll.u32 %s4938_s1, 2  ;;  %p6273_p6 = scmp.ne.s32.totalorder %s4938_s1, 0 }
 0x19a   : > { %p763_p12 = scmp.lt.s32.totalorder %s3057_s20, 7  ;;  %v5320_v0 = vld [vmem:[#allocation20] ss:$0 sm:$0xff] (!%p6273_p6)  ;;  %v899_v2 = vld [vmem:[#allocation15 + $0x8] sm:$0xff] (!%p6273_p6)  ;;  %v6220_v3 = vmov (!%p6273_p6), 0.0|0.0   ;;  %v900_v5 = vld [vmem:[#allocation15 + $0x10] sm:$0xff] (!%p6273_p6) }
 0x19b   : > { %770 = sbr.rel (%p6273_p6) target bundleno = 2235 (0x8bb), region = 144  ;;  %v898_v1 = vld [vmem:[#allocation15] sm:$0xff] (!%p6273_p6)  ;;  %3515 = vmatprep.subr.bf16.mxu0 (!%p6273_p6), %v6220_v3  ;;  %v901_v6 = vld [vmem:[#allocation15 + $0x18] sm:$0xff] (!%p6273_p6)  ;;  %3539 = vmatprep.subr.bf16.mxu1 (!%p6273_p6), %v6220_v3  ;;  %s771_s15 = sld [smem:[#allocation8]] (!%p6273_p6)  ;;  %vm4782_vm0 = vmmov (!%p6273_p6), 0   ;;  %v4783_v7 = vmov (!%p6273_p6), 0.0  }
 0x19c   : > { %s6293_s20 = smov (!%p763_p12, %s3057_s20), 7  ;;  %v3516_v4 = vpack.c.bf16 (!%p6273_p6), %v899_v2, %v898_v1  ;;  %3267 = vmatprep.mubr.msk.f32.mxu0 (!%p6273_p6), %vm4782_vm0, %v4783_v7  ;;  %s5326_s25 = sld [smem:[#allocation8 + $0x1]] (!%p6273_p6)  ;;  %3302 = vmatprep.mubr.msk.f32.mxu1 (!%p6273_p6), %vm4782_vm0, %v4783_v7  ;;  %v3519_v8 = vpack.c.bf16 (!%p6273_p6), %v901_v6, %v900_v5  ;;  %v902_v9 = vld [vmem:[#allocation15 + $0x20] sm:$0xff] (!%p6273_p6)  ;;  %v903_v10 = vld [vmem:[#allocation15 + $0x28] sm:$0xff] (!%p6273_p6)  ;;  %v5340_v12 = vld [vmem:[#allocation15 + $0x30] sm:$0xff] (!%p6273_p6) }
 0x19d   : > { %s4784_s2 = smov (!%p6273_p6), [#allocation2]   ;;  %s4785_s28 = smov (!%p6273_p6), [#allocation2 + $0x1]   ;;  %v3522_v11 = vpack.c.bf16 (!%p6273_p6), %v903_v10, %v902_v9  ;;  %v5342_v13 = vld [vmem:[#allocation15 + $0x38] sm:$0xff] (!%p6273_p6) }
 0x19e   : > { %3517 = vmatpush3.bf16.msra.mxu0 (!%p6273_p6), %v3516_v4  ;;  %s781_s17 = sshll.u32 (!%p6273_p6), %s4784_s2, 4  ;;  %s797_s18 = sshll.u32 (!%p6273_p6), %s4785_s28, 4  ;;  %s5331_s17 = int_to_ptr.vmem [resolvable:$true] %s781_s17  ;;  %s5333_s18 = int_to_ptr.vmem [resolvable:$true] %s797_s18 }
 0x19f   : > { %3518 = vmatprep.subr.bf16.mxu0 (!%p6273_p6), %v6220_v3  ;;  %s5335_s22 = sld [smem:[#allocation8 + $0x2]] (!%p6273_p6)  ;;  %s5337_s24 = sld [smem:[#allocation8 + $0x3]] (!%p6273_p6) }
 0x1a0   : > { %s4786_s0 = smov (!%p6273_p6), [#allocation2 + $0x2]   ;;  %s6274_s28 = sld [smem:[#allocation72_spill]] (!%p6273_p6) }
 0x1a1   : > { %s3059_s30 = sshll.u32 (!%p6273_p6), %s771_s15, 4  ;;  %s813_s27 = sshll.u32 (!%p6273_p6), %s4786_s0, 4  ;;  %s5371_s27 = int_to_ptr.vmem [resolvable:$true] %s813_s27 }
 0x1a2   : > { %3520 = vmatpush3.bf16.msra.mxu0 %v3519_v8  ;;  %s3061_s3 = sshll.u32 %s5326_s25, 4 }
 0x1a3   : > { %3521 = vmatprep.subr.bf16.mxu0 %v6220_v3 }
 0x1a6   : > { %s773_s14 = scalar_lea.hbm %s6274_s28, %s3059_s30  ;;  %s5351_s8 = scalar_lea.hbm %s6274_s28, 16000 }
 0x1a7   : > { %s4428_s5 = scalar_lea.hbm %s773_s14, 16  ;;  %p4431_p4 = scmp.lt.u32.totalorder %s773_s14, %s6274_s28 }
 0x1a8   : > { %p4429_p0 = scmp.ne.s32.totalorder %s773_s14, %s4428_s5  ;;  %p4432_p7 = scmp.lt.u32.totalorder %s5351_s8, %s4428_s5 }
 0x1a9   : > { %p4434_p13 = scmp.lt.u32.totalorder %s4428_s5, %s773_s14 }
 0x1aa   : > { %p4433_p9 = por %p4432_p7, %p4431_p4 }
 0x1ac   : > { %p4435_p1 = por %p4434_p13, %p4433_p9 }
 0x1ae   : > { %p4436_p3 = pnand %p4435_p1, %p4429_p0 }
 0x1b0   : > { %4439 = shalt.err (!%p4436_p3)  }
 0x1b1   : > { %s4440_s25 = scalar_lea.vmem %s5331_s17, 16  ;;  %s5360_s6 = scalar_lea.vmem %s5331_s17, 128 }
 0x1b2   : > { %p4441_p8 = scmp.ne.s32.totalorder %s5331_s17, %s4440_s25  ;;  %p4445_p11 = scmp.lt.s32.totalorder %s5331_s17, %s5331_s17 }
 0x1b3   : > { %p4446_p10 = scmp.lt.s32.totalorder %s5360_s6, %s4440_s25 }
 0x1b5   : > { %p4447_p2 = por %p4446_p10, %p4445_p11 }
 0x1b7   : > { %p4448_p5 = pnand %p4447_p2, %p4441_p8 }
 0x1b9   : > { %4451 = shalt.err (!%p4448_p5)  }
 0x1ba   : > { %784 = dma.hbm_to_vmem [thread:$0]  %s773_s14, 16, %s5331_s17, [#allocation6]  ;;  %v5366_v14 = vld [vmem:[#allocation15 + $0x40] sm:$0xff]  ;;  %3523 = vmatpush3.bf16.msra.mxu0 %v3522_v11  ;;  %v3525_v15 = vpack.c.bf16 %v5342_v13, %v5340_v12  ;;  %v5375_v16 = vld [vmem:[#allocation15 + $0x48] sm:$0xff] }
 0x1bb   : > { %s787_s30 = scalar_lea.hbm %s6274_s28, %s3061_s3  ;;  %v5377_v17 = vld [vmem:[#allocation21] ss:$0 sm:$0xff] }
 0x1bc   : > { %v991_v18 = vld [vmem:[#allocation17] sm:$0xff]  ;;  %s4452_s26 = scalar_lea.hbm %s787_s30, 16  ;;  %p4455_p6 = scmp.lt.u32.totalorder %s787_s30, %s6274_s28 }
 0x1bd   : > { %p4453_p12 = scmp.ne.s32.totalorder %s787_s30, %s4452_s26  ;;  %p4456_p0 = scmp.lt.u32.totalorder %s5351_s8, %s4452_s26 }
 0x1be   : > { %p4458_p7 = scmp.lt.u32.totalorder %s4452_s26, %s787_s30 }
 0x1bf   : > { %p4457_p4 = por %p4456_p0, %p4455_p6 }
 0x1c1   : > { %p4459_p9 = por %p4458_p7, %p4457_p4 }
 0x1c3   : > { %p4460_p13 = pnand %p4459_p9, %p4453_p12 }
 0x1c5   : > { %4463 = shalt.err (!%p4460_p13)  }
 0x1c6   : > { %s4464_s3 = scalar_lea.vmem %s5333_s18, 16  ;;  %p4469_p3 = scmp.lt.s32.totalorder %s5333_s18, %s5331_s17 }
 0x1c7   : > { %p4465_p1 = scmp.ne.s32.totalorder %s5333_s18, %s4464_s3  ;;  %p4470_p8 = scmp.lt.s32.totalorder %s5360_s6, %s4464_s3 }
 0x1c9   : > { %p4471_p11 = por %p4470_p8, %p4469_p3 }
 0x1cb   : > { %p4472_p10 = pnand %p4471_p11, %p4465_p1 }
 0x1cd   : > { %4475 = shalt.err (!%p4472_p10)  }
 0x1ce   : > { %800 = dma.hbm_to_vmem [thread:$0]  %s787_s30, 16, %s5333_s18, [#allocation6 + $0x1]  ;;  %3524 = vmatprep.subr.bf16.mxu0 %v6220_v3  ;;  %v992_v19 = vld [vmem:[#allocation17 + $0x8] sm:$0xff]  ;;  %v993_v20 = vld [vmem:[#allocation17 + $0x10] sm:$0xff]  ;;  %v994_v21 = vld [vmem:[#allocation17 + $0x18] sm:$0xff] }
 0x1cf   : > { %s3063_s15 = sshll.u32 %s5335_s22, 4  ;;  %s3065_s0 = sshll.u32 %s5337_s24, 4  ;;  %v3540_v22 = vpack.c.bf16 %v992_v19, %v991_v18 }
 0x1d0   : > { %s803_s5 = scalar_lea.hbm %s6274_s28, %s3063_s15  ;;  %s5398_s2 = scalar_lea.hbm %s6274_s28, %s3065_s0 }
 0x1d1   : > { %s4476_s3 = scalar_lea.hbm %s803_s5, 16  ;;  %p4479_p5 = scmp.lt.u32.totalorder %s803_s5, %s6274_s28 }
 0x1d2   : > { %p4477_p2 = scmp.ne.s32.totalorder %s803_s5, %s4476_s3  ;;  %p4480_p12 = scmp.lt.u32.totalorder %s5351_s8, %s4476_s3 }
 0x1d3   : > { %p4482_p0 = scmp.lt.u32.totalorder %s4476_s3, %s803_s5 }
 0x1d4   : > { %p4481_p6 = por %p4480_p12, %p4479_p5 }
 0x1d6   : > { %p4483_p4 = por %p4482_p0, %p4481_p6 }
 0x1d8   : > { %p4484_p7 = pnand %p4483_p4, %p4477_p2 }
 0x1da   : > { %4487 = shalt.err (!%p4484_p7)  }
 0x1db   : > { %s4488_s22 = scalar_lea.vmem %s5371_s27, 16  ;;  %p4493_p13 = scmp.lt.s32.totalorder %s5371_s27, %s5331_s17 }
 0x1dc   : > { %p4489_p9 = scmp.ne.s32.totalorder %s5371_s27, %s4488_s22  ;;  %p4494_p1 = scmp.lt.s32.totalorder %s5360_s6, %s4488_s22 }
 0x1de   : > { %p4495_p3 = por %p4494_p1, %p4493_p13 }
 0x1e0   : > { %p4496_p8 = pnand %p4495_p3, %p4489_p9 }
 0x1e2   : > { %4499 = shalt.err (!%p4496_p8)  }
 0x1e3   : > { %816 = dma.hbm_to_vmem [thread:$0]  %s803_s5, 16, %s5371_s27, [#allocation6 + $0x2]  ;;  %3526 = vmatpush3.bf16.msra.mxu0 %v3525_v15  ;;  %v3528_v23 = vpack.c.bf16 %v5375_v16, %v5366_v14  ;;  %v908_v24 = vld [vmem:[#allocation15 + $0x50] sm:$0xff]  ;;  %3541 = vmatpush3.bf16.msra.mxu1 %v3540_v22  ;;  %v3543_v25 = vpack.c.bf16 %v994_v21, %v993_v20  ;;  %v909_v26 = vld [vmem:[#allocation15 + $0x58] sm:$0xff]  ;;  %v995_v27 = vld [vmem:[#allocation17 + $0x20] sm:$0xff] }
 0x1e4   : > { %s5412_s24 = sld [smem:[#allocation8 + $0x4]]  ;;  %3527 = vmatprep.subr.bf16.mxu0 %v6220_v3  ;;  %3542 = vmatprep.subr.bf16.mxu1 %v6220_v3  ;;  %v996_v28 = vld [vmem:[#allocation17 + $0x28] sm:$0xff]  ;;  %s4787_s27 = smov [#allocation2 + $0x3]  }
 0x1e5   : > { %s829_s15 = sshll.u32 %s4787_s27, 4  ;;  %s4788_s0 = smov [#allocation2 + $0x4]   ;;  %s830_s15 = int_to_ptr.vmem [resolvable:$true] %s829_s15 }
 0x1e6   : > { %s845_s25 = sshll.u32 %s4788_s0, 4  ;;  %s4500_s7 = scalar_lea.hbm %s5398_s2, 16  ;;  %s5427_s25 = int_to_ptr.vmem [resolvable:$true] %s845_s25 }
 0x1e7   : > { %p4501_p11 = scmp.ne.s32.totalorder %s5398_s2, %s4500_s7  ;;  %p4503_p10 = scmp.lt.u32.totalorder %s5398_s2, %s6274_s28 }
 0x1e8   : > { %p4504_p2 = scmp.lt.u32.totalorder %s5351_s8, %s4500_s7  ;;  %p4506_p12 = scmp.lt.u32.totalorder %s4500_s7, %s5398_s2 }
 0x1ea   : > { %p4505_p5 = por %p4504_p2, %p4503_p10 }
 0x1ec   : > { %p4507_p6 = por %p4506_p12, %p4505_p5 }
 0x1ee   : > { %p4508_p0 = pnand %p4507_p6, %p4501_p11 }
 0x1f0   : > { %4511 = shalt.err (!%p4508_p0)  }
 0x1f1   : > { %s4512_s14 = scalar_lea.vmem %s830_s15, 16  ;;  %p4517_p7 = scmp.lt.s32.totalorder %s830_s15, %s5331_s17 }
 0x1f2   : > { %p4513_p4 = scmp.ne.s32.totalorder %s830_s15, %s4512_s14  ;;  %p4518_p9 = scmp.lt.s32.totalorder %s5360_s6, %s4512_s14 }
 0x1f4   : > { %p4519_p13 = por %p4518_p9, %p4517_p7 }
 0x1f6   : > { %p4520_p1 = pnand %p4519_p13, %p4513_p4 }
 0x1f8   : > { %4523 = shalt.err (!%p4520_p1)  }
 0x1f9   : > { %832 = dma.hbm_to_vmem [thread:$0]  %s5398_s2, 16, %s830_s15, [#allocation6 + $0x3]  ;;  %3529 = vmatpush3.bf16.msra.mxu0 %v3528_v23  ;;  %v3531_v29 = vpack.c.bf16 %v909_v26, %v908_v24  ;;  %v910_v30 = vld [vmem:[#allocation15 + $0x60] sm:$0xff]  ;;  %3544 = vmatpush3.bf16.msra.mxu1 %v3543_v25  ;;  %v3546_v31 = vpack.c.bf16 %v996_v28, %v995_v27  ;;  %v911_v32 = vld [vmem:[#allocation15 + $0x68] sm:$0xff]  ;;  %v997_v33 = vld [vmem:[#allocation17 + $0x30] sm:$0xff] }
 0x1fa   : > { %s5429_s3 = sld [smem:[#allocation8 + $0x5]]  ;;  %3530 = vmatprep.subr.bf16.mxu0 %v6220_v3  ;;  %3545 = vmatprep.subr.bf16.mxu1 %v6220_v3  ;;  %v998_v34 = vld [vmem:[#allocation17 + $0x38] sm:$0xff]  ;;  %s5433_s18 = sld [smem:[#allocation8 + $0x6]]  ;;  %v3534_v35 = vpack.c.bf16 %v911_v32, %v910_v30  ;;  %v5439_v36 = vld [vmem:[#allocation15 + $0x70] sm:$0xff] }
 0x1fb   : > { %s3067_s2 = sshll.u32 %s5412_s24, 4  ;;  %s4789_s30 = smov [#allocation2 + $0x5]   ;;  %v3549_v37 = vpack.c.bf16 %v998_v34, %v997_v33 }
 0x1fc   : > { %s861_s22 = sshll.u32 %s4789_s30, 4  ;;  %s835_s0 = scalar_lea.hbm %s6274_s28, %s3067_s2  ;;  %s862_s22 = int_to_ptr.vmem [resolvable:$true] %s861_s22 }
 0x1fd   : > { %3532 = vmatpush3.bf16.msra.mxu0 %v3531_v29  ;;  %3547 = vmatpush3.bf16.msra.mxu1 %v3546_v31  ;;  %s4524_s7 = scalar_lea.hbm %s835_s0, 16  ;;  %p4527_p8 = scmp.lt.u32.totalorder %s835_s0, %s6274_s28 }
 0x1fe   : > { %p4525_p3 = scmp.ne.s32.totalorder %s835_s0, %s4524_s7  ;;  %p4528_p11 = scmp.lt.u32.totalorder %s5351_s8, %s4524_s7 }
 0x1ff   : > { %p4530_p2 = scmp.lt.u32.totalorder %s4524_s7, %s835_s0 }
 0x200   : > { %p4529_p10 = por %p4528_p11, %p4527_p8 }
 0x202   : > { %p4531_p5 = por %p4530_p2, %p4529_p10 }
 0x204   : > { %p4532_p12 = pnand %p4531_p5, %p4525_p3 }
 0x206   : > { %4535 = shalt.err (!%p4532_p12)  }
 0x207   : > { %s4536_s24 = scalar_lea.vmem %s5427_s25, 16  ;;  %p4541_p0 = scmp.lt.s32.totalorder %s5427_s25, %s5331_s17 }
 0x208   : > { %p4537_p6 = scmp.ne.s32.totalorder %s5427_s25, %s4536_s24  ;;  %p4542_p4 = scmp.lt.s32.totalorder %s5360_s6, %s4536_s24 }
 0x20a   : > { %p4543_p7 = por %p4542_p4, %p4541_p0 }
 0x20c   : > { %p4544_p9 = pnand %p4543_p7, %p4537_p6 }
 0x20e   : > { %4547 = shalt.err (!%p4544_p9)  }
 0x20f   : > { %848 = dma.hbm_to_vmem [thread:$0]  %s835_s0, 16, %s5427_s25, [#allocation6 + $0x4]  ;;  %3533 = vmatprep.subr.bf16.mxu0 %v6220_v3  ;;  %v913_v38 = vld [vmem:[#allocation15 + $0x78] sm:$0xff]  ;;  %3548 = vmatprep.subr.bf16.mxu1 %v6220_v3  ;;  %v999_v39 = vld [vmem:[#allocation17 + $0x40] sm:$0xff]  ;;  %v1000_v40 = vld [vmem:[#allocation17 + $0x48] sm:$0xff] }
 0x210   : > { %s3069_s14 = sshll.u32 %s5429_s3, 4  ;;  %s4790_s2 = smov [#allocation2 + $0x6]   ;;  %3535 = vmatpush3.bf16.msra.mxu0 %v3534_v35  ;;  %v3537_v41 = vpack.c.bf16 %v913_v38, %v5439_v36  ;;  %3550 = vmatpush3.bf16.msra.mxu1 %v3549_v37  ;;  %v3552_v42 = vpack.c.bf16 %v1000_v40, %v999_v39 }
 0x211   : > { %s5454_s30 = sshll.u32 %s4790_s2, 4  ;;  %s851_s7 = scalar_lea.hbm %s6274_s28, %s3069_s14  ;;  %s878_s30 = int_to_ptr.vmem [resolvable:$true] %s5454_s30 }
 0x212   : > { %s3071_s5 = sshll.u32 %s5433_s18, 4  ;;  %s4548_s25 = scalar_lea.hbm %s851_s7, 16 }
 0x213   : > { %p4549_p13 = scmp.ne.s32.totalorder %s851_s7, %s4548_s25  ;;  %p4551_p1 = scmp.lt.u32.totalorder %s851_s7, %s6274_s28 }
 0x214   : > { %p4552_p3 = scmp.lt.u32.totalorder %s5351_s8, %s4548_s25  ;;  %p4554_p11 = scmp.lt.u32.totalorder %s4548_s25, %s851_s7 }
 0x216   : > { %p4553_p8 = por %p4552_p3, %p4551_p1 }
 0x218   : > { %p4555_p10 = por %p4554_p11, %p4553_p8 }
 0x21a   : > { %p4556_p2 = pnand %p4555_p10, %p4549_p13 }
 0x21c   : > { %4559 = shalt.err (!%p4556_p2)  }
 0x21d   : > { %s4560_s3 = scalar_lea.vmem %s862_s22, 16  ;;  %p4565_p12 = scmp.lt.s32.totalorder %s862_s22, %s5331_s17 }
 0x21e   : > { %p4561_p5 = scmp.ne.s32.totalorder %s862_s22, %s4560_s3  ;;  %p4566_p6 = scmp.lt.s32.totalorder %s5360_s6, %s4560_s3 }
 0x220   : > { %p4567_p0 = por %p4566_p6, %p4565_p12 }
 0x222   : > { %p4568_p4 = pnand %p4567_p0, %p4561_p5 }
 0x224   : > { %4571 = shalt.err (!%p4568_p4)  }
 0x225   : > { %864 = dma.hbm_to_vmem [thread:$0]  %s851_s7, 16, %s862_s22, [#allocation6 + $0x5]  ;;  %3536 = vmatprep.subr.bf16.mxu0 %v6220_v3  ;;  %v1084_v43 = vld [vmem:[#allocation18] sm:$0xff]  ;;  %v1085_v44 = vld [vmem:[#allocation18 + $0x8] sm:$0xff]  ;;  %3551 = vmatprep.subr.bf16.mxu1 %v6220_v3  ;;  %v1001_v45 = vld [vmem:[#allocation17 + $0x50] sm:$0xff] }
 0x226   : > { %s867_s14 = scalar_lea.hbm %s6274_s28, %s3071_s5  ;;  %v1002_v46 = vld [vmem:[#allocation17 + $0x58] sm:$0xff] }
 0x227   : > { %s4572_s2 = scalar_lea.hbm %s867_s14, 16  ;;  %p4575_p9 = scmp.lt.u32.totalorder %s867_s14, %s6274_s28 }
 0x228   : > { %p4573_p7 = scmp.ne.s32.totalorder %s867_s14, %s4572_s2  ;;  %p4576_p13 = scmp.lt.u32.totalorder %s5351_s8, %s4572_s2 }
 0x229   : > { %p4578_p3 = scmp.lt.u32.totalorder %s4572_s2, %s867_s14 }
 0x22a   : > { %p4577_p1 = por %p4576_p13, %p4575_p9 }
 0x22c   : > { %p4579_p8 = por %p4578_p3, %p4577_p1 }
 0x22e   : > { %p4580_p11 = pnand %p4579_p8, %p4573_p7 }
 0x230   : > { %4583 = shalt.err (!%p4580_p11)  }
 0x231   : > { %s4584_s22 = scalar_lea.vmem %s878_s30, 16  ;;  %p4589_p2 = scmp.lt.s32.totalorder %s878_s30, %s5331_s17 }
 0x232   : > { %p4585_p10 = scmp.ne.s32.totalorder %s878_s30, %s4584_s22  ;;  %p4590_p5 = scmp.lt.s32.totalorder %s5360_s6, %s4584_s22 }
 0x234   : > { %p4591_p12 = por %p4590_p5, %p4589_p2 }
 0x236   : > { %p4592_p6 = pnand %p4591_p12, %p4585_p10 }
 0x238   : > { %4595 = shalt.err (!%p4592_p6)  }
 0x239   : > { %880 = dma.hbm_to_vmem [thread:$0]  %s867_s14, 16, %s878_s30, [#allocation6 + $0x6]  ;;  %3538 = vmatpush3.bf16.msra.mxu0 %v3537_v41  ;;  %v5479_v47 = vld [vmem:[#allocation9] sm:$0xff]  ;;  %v3564_v48 = vpack.c.bf16 %v1085_v44, %v1084_v43  ;;  %3553 = vmatpush3.bf16.msra.mxu1 %v3552_v42  ;;  %v1086_v49 = vld [vmem:[#allocation18 + $0x10] sm:$0xff]  ;;  %v3555_v51 = vpack.c.bf16 %v1002_v46, %v1001_v45  ;;  %v1003_v52 = vld [vmem:[#allocation17 + $0x60] sm:$0xff] }
 0x23a   : > { %3563 = vmatprep.subr.bf16.mxu0 %v6220_v3  ;;  %v1087_v50 = vld [vmem:[#allocation18 + $0x18] sm:$0xff]  ;;  %3554 = vmatprep.subr.bf16.mxu1 %v6220_v3  ;;  %v1004_v53 = vld [vmem:[#allocation17 + $0x68] sm:$0xff]  ;;  %v1088_v55 = vld [vmem:[#allocation18 + $0x20] sm:$0xff]  ;;  %s3072_s30 = sld [smem:[#allocation8 + $0x7]]  ;;  %s4791_s5 = smov [#allocation2 + $0x7]  }
 0x23b   : > { %v3567_v54 = vpack.c.bf16 %v1087_v50, %v1086_v49  ;;  %v1089_v56 = vld [vmem:[#allocation18 + $0x28] sm:$0xff]  ;;  %v3558_v57 = vpack.c.bf16 %v1004_v53, %v1003_v52  ;;  %v1005_v58 = vld [vmem:[#allocation17 + $0x70] sm:$0xff]  ;;  %v1006_v59 = vld [vmem:[#allocation17 + $0x78] sm:$0xff]  ;;  %s893_s25 = sshll.u32 %s4791_s5, 4  ;;  %s894_s25 = int_to_ptr.vmem [resolvable:$true] %s893_s25 }
 0x23c   : > { %3268 = vmatmul.mubr.f32.vlgmr.msra.gmra.mrb[0].mxu0 %v5479_v47  ;;  %v3570_v60 = vpack.c.bf16 %v1089_v56, %v1088_v55  ;;  %v1090_v61 = vld [vmem:[#allocation18 + $0x30] sm:$0xff]  ;;  %v1091_v62 = vld [vmem:[#allocation18 + $0x38] sm:$0xff]  ;;  %v3561_v63 = vpack.c.bf16 %v1006_v59, %v1005_v58  ;;  %v1092_v2 = vld [vmem:[#allocation18 + $0x40] sm:$0xff] }
 0x23d   : > { %3565 = vmatpush3.bf16.msra.mxu0 %v3564_v48  ;;  %3337 = vmatprep.mubr.msk.f32.mxu0 %vm4782_vm0, %v4783_v7  ;;  %v3573_v1 = vpack.c.bf16 %v1091_v62, %v1090_v61  ;;  %v1093_v4 = vld [vmem:[#allocation18 + $0x48] sm:$0xff]  ;;  %v1094_v6 = vld [vmem:[#allocation18 + $0x50] sm:$0xff]  ;;  %v1095_v8 = vld [vmem:[#allocation18 + $0x58] sm:$0xff] }
 0x23e   : > { %3566 = vmatprep.subr.bf16.mxu0 %v6220_v3  ;;  %3556 = vmatpush3.bf16.msra.mxu1 %v3555_v51  ;;  %v3576_v5 = vpack.c.bf16 %v1093_v4, %v1092_v2  ;;  %v3579_v9 = vpack.c.bf16 %v1095_v8, %v1094_v6  ;;  %v1096_v10 = vld [vmem:[#allocation18 + $0x60] sm:$0xff]  ;;  %v1097_v11 = vld [vmem:[#allocation18 + $0x68] sm:$0xff]  ;;  %v1098_v13 = vld [vmem:[#allocation18 + $0x70] sm:$0xff] }
 0x23f   : > { %3557 = vmatprep.subr.bf16.mxu1 %v6220_v3  ;;  %v3582_v12 = vpack.c.bf16 %v1097_v11, %v1096_v10  ;;  %v1099_v14 = vld [vmem:[#allocation18 + $0x78] sm:$0xff] }
 0x240   : > { %v3585_v15 = vpack.c.bf16 %v1099_v14, %v1098_v13  ;;  %s3073_s7 = sshll.u32 %s3072_s30, 4 }
 0x241   : > { %3568 = vmatpush3.bf16.msra.mxu0 %v3567_v54  ;;  %s883_s3 = scalar_lea.hbm %s6274_s28, %s3073_s7 }
 0x242   : > { %3569 = vmatprep.subr.bf16.mxu0 %v6220_v3  ;;  %3559 = vmatpush3.bf16.msra.mxu1 %v3558_v57  ;;  %s4596_s18 = scalar_lea.hbm %s883_s3, 16  ;;  %p4599_p4 = scmp.lt.u32.totalorder %s883_s3, %s6274_s28 }
 0x243   : > { %3560 = vmatprep.subr.bf16.mxu1 %v6220_v3  ;;  %p4597_p0 = scmp.ne.s32.totalorder %s883_s3, %s4596_s18  ;;  %p4600_p7 = scmp.lt.u32.totalorder %s5351_s8, %s4596_s18 }
 0x244   : > { %p4602_p13 = scmp.lt.u32.totalorder %s4596_s18, %s883_s3 }
 0x245   : > { %3571 = vmatpush3.bf16.msra.mxu0 %v3570_v60  ;;  %p4601_p9 = por %p4600_p7, %p4599_p4 }
 0x246   : > { %3572 = vmatprep.subr.bf16.mxu0 %v6220_v3  ;;  %3562 = vmatpush3.bf16.msra.mxu1 %v3561_v63 }
 0x247   : > { %p4603_p1 = por %p4602_p13, %p4601_p9 }
 0x249   : > { %3574 = vmatpush3.bf16.msra.mxu0 %v3573_v1  ;;  %3303 = vmatmul.mubr.f32.vlgmr.msra.gmra.mrb[0].mxu1 %v5479_v47  ;;  %p4604_p3 = pnand %p4603_p1, %p4597_p0 }
 0x24a   : > { %3575 = vmatprep.subr.bf16.mxu0 %v6220_v3 }
 0x24d   : > { %3577 = vmatpush3.bf16.msra.mxu0 %v3576_v5 }
 0x24e   : > { %3578 = vmatprep.subr.bf16.mxu0 %v6220_v3 }
 0x251   : > { %3580 = vmatpush3.bf16.msra.mxu0 %v3579_v9 }
 0x252   : > { %3581 = vmatprep.subr.bf16.mxu0 %v6220_v3 }
 0x255   : > { %3583 = vmatpush3.bf16.msra.mxu0 %v3582_v12 }
 0x256   : > { %3584 = vmatprep.subr.bf16.mxu0 %v6220_v3 }
 0x259   : > { %3586 = vmatpush3.bf16.msra.mxu0 %v3585_v15 }
 0x25c   : > { %3338 = vmatmul.mubr.f32.vlgmr.msra.gmra.mrb[2].mxu0 %v5479_v47 }
 0x25d   : > { %4607 = shalt.err (!%p4604_p3)  }
 0x25e   : > { %s4608_s2 = scalar_lea.vmem %s894_s25, 16  ;;  %p4613_p11 = scmp.lt.s32.totalorder %s894_s25, %s5331_s17 }
 0x25f   : > { %p4609_p8 = scmp.ne.s32.totalorder %s894_s25, %s4608_s2  ;;  %p4614_p10 = scmp.lt.s32.totalorder %s5360_s6, %s4608_s2 }
 0x261   : > { %p4615_p2 = por %p4614_p10, %p4613_p11 }
 0x263   : > { %p4616_p5 = pnand %p4615_p2, %p4609_p8 }
 0x265   : > { %4619 = shalt.err (!%p4616_p5)  }
 0x266   : > { %896 = dma.hbm_to_vmem [thread:$0]  %s883_s3, 16, %s894_s25, [#allocation6 + $0x7]  ;;  %v3076_v16 = vld [vmem:[#allocation24] ss:$0 sm:$0xff] }
 0x32f   : > { %v1173_v18 = vpop.f32.mrb[2].mxu0 }
 0x330   : > { %v5506_v19 = vadd.f32 %v3076_v16, %v1173_v18  ;;  %v3339_v20 = vpop.f32.mrb[3].mxu0 }
 0x331   : > { %4722 = dma.done.wait [#allocation6], 16 }
 0x332   : > { %4723 = vsyncadd [#allocation6], 4294967280 }
 0x333   : > { %4724 = dma.done.wait [#allocation6 + $0x1], 16 }
 0x334   : > { %4725 = vsyncadd [#allocation6 + $0x1], 4294967280 }
 0x335   : > { %4726 = dma.done.wait [#allocation6 + $0x2], 16 }
 0x336   : > { %4727 = vsyncadd [#allocation6 + $0x2], 4294967280 }
 0x337   : > { %4728 = dma.done.wait [#allocation6 + $0x3], 16 }
 0x338   : > { %4729 = vsyncadd [#allocation6 + $0x3], 4294967280 }
 0x339   : > { %4730 = dma.done.wait [#allocation6 + $0x4], 16 }
 0x33a   : > { %4731 = vsyncadd [#allocation6 + $0x4], 4294967280 }
 0x33b   : > { %4732 = dma.done.wait [#allocation6 + $0x5], 16 }
 0x33c   : > { %4733 = vsyncadd [#allocation6 + $0x5], 4294967280 }
 0x33d   : > { %4734 = dma.done.wait [#allocation6 + $0x6], 16 }
 0x33e   : > { %4735 = vsyncadd [#allocation6 + $0x6], 4294967280 }
 0x33f   : > { %4736 = dma.done.wait [#allocation6 + $0x7], 16 }
 0x340   : > { %4737 = vsyncadd [#allocation6 + $0x7], 4294967280  ;;  %vm2406_vm1 = vcmask 7168   ;;  %3611 = vmatprep.subr.bf16.mxu1 %v6220_v3  ;;  %3587 = vmatprep.subr.bf16.mxu0 %v6220_v3  ;;  %v4792_v21 = vmov -inf   ;;  %v1287_v22 = vld [vmem:[#allocation12] sm:$0xff]  ;;  %v1288_v23 = vld [vmem:[#allocation12 + $0x8] sm:$0xff] }
 0x341   : > { %2407 = vst.msk [vmem:[#allocation4] sm:$0xff] %vm2406_vm1, %v4792_v21  ;;  %2408 = vst.msk [vmem:[#allocation5] sm:$0xff] %vm2406_vm1, %v4783_v7  ;;  %3407 = vmatprep.mubr.msk.f32.mxu1 %vm4782_vm0, %v4783_v7  ;;  %3372 = vmatprep.mubr.msk.f32.mxu0 %vm4782_vm0, %v4783_v7  ;;  %s6275_s6 = sld [smem:[#allocation75_spill]]  ;;  %v3612_v25 = vpack.c.bf16 %v1288_v23, %v1287_v22  ;;  %v1289_v27 = vld [vmem:[#allocation12 + $0x10] sm:$0xff]  ;;  %v1290_v28 = vld [vmem:[#allocation12 + $0x18] sm:$0xff]  ;;  %s6276_s27 = sld [smem:[#allocation74_spill]] }
 0x342   : > { %v3615_v32 = vpack.c.bf16 %v1290_v28, %v1289_v27  ;;  %v1291_v34 = vld [vmem:[#allocation12 + $0x20] sm:$0xff]  ;;  %v1292_v35 = vld [vmem:[#allocation12 + $0x28] sm:$0xff]  ;;  %v1293_v40 = vld [vmem:[#allocation12 + $0x30] sm:$0xff]  ;;  %vm1603_vm2 = vcmask 1040384   ;;  %vm1669_vm3 = vcmask 130112   ;;  %vm1734_vm4 = vcmask 1041409  }
 0x343   : > { %3613 = vmatpush3.bf16.msra.mxu1 %v3612_v25  ;;  %v3618_v38 = vpack.c.bf16 %v1292_v35, %v1291_v34  ;;  %v1294_v41 = vld [vmem:[#allocation12 + $0x38] sm:$0xff]  ;;  %v1295_v46 = vld [vmem:[#allocation12 + $0x40] sm:$0xff]  ;;  %v1296_v48 = vld [vmem:[#allocation12 + $0x48] sm:$0xff]  ;;  %vm1736_vm5 = vcmask 1042434   ;;  %vm1738_vm6 = vcmask 1043459   ;;  %vm1740_vm7 = vcmask 1044484  }
 0x344   : > { %3614 = vmatprep.subr.bf16.mxu1 %v6220_v3  ;;  %v3621_v44 = vpack.c.bf16 %v1294_v41, %v1293_v40  ;;  %v3624_v51 = vpack.c.bf16 %v1296_v48, %v1295_v46  ;;  %v1297_v53 = vld [vmem:[#allocation12 + $0x50] sm:$0xff]  ;;  %v1298_v54 = vld [vmem:[#allocation12 + $0x58] sm:$0xff]  ;;  %v1299_v59 = vld [vmem:[#allocation12 + $0x60] sm:$0xff]  ;;  %vm1742_vm8 = vcmask 1045509   ;;  %vm1744_vm9 = vcmask 1046534   ;;  %s6281_s30 = sld [smem:[#allocation81_spill]] }
 0x345   : > { %v3627_v57 = vpack.c.bf16 %v1298_v54, %v1297_v53  ;;  %v1300_v60 = vld [vmem:[#allocation12 + $0x68] sm:$0xff]  ;;  %v1301_v2 = vld [vmem:[#allocation12 + $0x70] sm:$0xff]  ;;  %v1302_v4 = vld [vmem:[#allocation12 + $0x78] sm:$0xff]  ;;  %vm1746_vm10 = vcmask 1047559   ;;  %vm1749_vm11 = vcmask 72704  }
 0x346   : > { %v3630_v63 = vpack.c.bf16 %v1300_v60, %v1299_v59  ;;  %v3633_v8 = vpack.c.bf16 %v1302_v4, %v1301_v2  ;;  %v1379_v10 = vld [vmem:[#allocation14] sm:$0xff]  ;;  %v1380_v11 = vld [vmem:[#allocation14 + $0x8] sm:$0xff]  ;;  %v1194_v12 = vld [vmem:[#allocation2] sm:$0xff] }
 0x347   : > { %v1195_v24 = vld [vmem:[%s6275_s6] sm:$0xff]  ;;  %v1196_v26 = vld [vmem:[%s6275_s6 + $0x8] sm:$0xff]  ;;  %v1197_v30 = vld [vmem:[%s6275_s6 + $0x10] sm:$0xff]  ;;  %3616 = vmatpush3.bf16.msra.mxu1 %v3615_v32  ;;  %v3636_v13 = vpack.c.bf16 %v1380_v11, %v1379_v10 }
 0x348   : > { %v3588_v29 = vpack.c.bf16 %v1196_v26, %v1195_v24  ;;  %v1198_v31 = vld [vmem:[%s6275_s6 + $0x18] sm:$0xff]  ;;  %v1199_v36 = vld [vmem:[%s6275_s6 + $0x20] sm:$0xff]  ;;  %v1200_v37 = vld [vmem:[%s6275_s6 + $0x28] sm:$0xff]  ;;  %3617 = vmatprep.subr.bf16.mxu1 %v6220_v3 }
 0x349   : > { %v3591_v33 = vpack.c.bf16 %v1198_v31, %v1197_v30  ;;  %v3594_v39 = vpack.c.bf16 %v1200_v37, %v1199_v36  ;;  %v1201_v42 = vld [vmem:[%s6275_s6 + $0x30] sm:$0xff]  ;;  %v1202_v43 = vld [vmem:[%s6275_s6 + $0x38] sm:$0xff]  ;;  %v1203_v49 = vld [vmem:[%s6275_s6 + $0x40] sm:$0xff] }
 0x34a   : > { %3589 = vmatpush3.bf16.msra.mxu0 %v3588_v29  ;;  %v3597_v45 = vpack.c.bf16 %v1202_v43, %v1201_v42  ;;  %v1204_v50 = vld [vmem:[%s6275_s6 + $0x48] sm:$0xff]  ;;  %v1205_v55 = vld [vmem:[%s6275_s6 + $0x50] sm:$0xff]  ;;  %v1206_v56 = vld [vmem:[%s6275_s6 + $0x58] sm:$0xff]  ;;  %s6282_s7 = smov %s6281_s30 }
 0x34b   : > { %3590 = vmatprep.subr.bf16.mxu0 %v6220_v3  ;;  %3619 = vmatpush3.bf16.msra.mxu1 %v3618_v38  ;;  %v3600_v52 = vpack.c.bf16 %v1204_v50, %v1203_v49  ;;  %v3603_v58 = vpack.c.bf16 %v1206_v56, %v1205_v55  ;;  %v1207_v61 = vld [vmem:[%s6275_s6 + $0x60] sm:$0xff]  ;;  %v1208_v62 = vld [vmem:[%s6275_s6 + $0x68] sm:$0xff]  ;;  %v1209_v5 = vld [vmem:[%s6275_s6 + $0x70] sm:$0xff] }
 0x34c   : > { %3620 = vmatprep.subr.bf16.mxu1 %v6220_v3  ;;  %v3606_v1 = vpack.c.bf16 %v1208_v62, %v1207_v61  ;;  %v1210_v6 = vld [vmem:[%s6275_s6 + $0x78] sm:$0xff]  ;;  %v1382_v15 = vld [vmem:[#allocation14 + $0x18] sm:$0xff]  ;;  %v1383_v18 = vld [vmem:[#allocation14 + $0x20] sm:$0xff] }
 0x34d   : > { %v3609_v9 = vpack.c.bf16 %v1210_v6, %v1209_v5  ;;  %v1381_v14 = vld [vmem:[#allocation14 + $0x10] sm:$0xff]  ;;  %v1384_v20 = vld [vmem:[#allocation14 + $0x28] sm:$0xff]  ;;  %v1386_v23 = vld [vmem:[#allocation14 + $0x38] sm:$0xff] }
 0x34e   : > { %3592 = vmatpush3.bf16.msra.mxu0 %v3591_v33  ;;  %v3639_v16 = vpack.c.bf16 %v1382_v15, %v1381_v14  ;;  %v3642_v21 = vpack.c.bf16 %v1384_v20, %v1383_v18  ;;  %v1385_v22 = vld [vmem:[#allocation14 + $0x30] sm:$0xff]  ;;  %v1387_v25 = vld [vmem:[#allocation14 + $0x40] sm:$0xff]  ;;  %v1388_v26 = vld [vmem:[#allocation14 + $0x48] sm:$0xff]  ;;  %v4793_v20 = vmov 1966171168  }
 0x34f   : > { %3593 = vmatprep.subr.bf16.mxu0 %v6220_v3  ;;  %3622 = vmatpush3.bf16.msra.mxu1 %v3621_v44  ;;  %v3645_v24 = vpack.c.bf16 %v1386_v23, %v1385_v22  ;;  %v3648_v27 = vpack.c.bf16 %v1388_v26, %v1387_v25  ;;  %v1389_v28 = vld [vmem:[#allocation14 + $0x50] sm:$0xff]  ;;  %v1390_v29 = vld [vmem:[#allocation14 + $0x58] sm:$0xff]  ;;  %v1391_v31 = vld [vmem:[#allocation14 + $0x60] sm:$0xff] }
 0x350   : > { %3623 = vmatprep.subr.bf16.mxu1 %v6220_v3  ;;  %v3651_v30 = vpack.c.bf16 %v1390_v29, %v1389_v28  ;;  %v1392_v32 = vld [vmem:[#allocation14 + $0x68] sm:$0xff]  ;;  %v1393_v34 = vld [vmem:[#allocation14 + $0x70] sm:$0xff]  ;;  %v1394_v35 = vld [vmem:[#allocation14 + $0x78] sm:$0xff] }
 0x351   : > { %v3654_v33 = vpack.c.bf16 %v1392_v32, %v1391_v31  ;;  %v3657_v36 = vpack.c.bf16 %v1394_v35, %v1393_v34  ;;  %v2207_v37 = vld [vmem:[#allocation26] sm:$0xff]  ;;  %v2208_v38 = vld [vmem:[#allocation26 + $0x8] sm:$0xff]  ;;  %v2209_v40 = vld [vmem:[#allocation26 + $0x10] sm:$0xff] }
 0x352   : > { %3595 = vmatpush3.bf16.msra.mxu0 %v3594_v39  ;;  %v3684_v39 = vpack.c.bf16 %v2208_v38, %v2207_v37  ;;  %v2210_v41 = vld [vmem:[#allocation26 + $0x18] sm:$0xff]  ;;  %v2211_v43 = vld [vmem:[#allocation26 + $0x20] sm:$0xff]  ;;  %v2212_v44 = vld [vmem:[#allocation26 + $0x28] sm:$0xff] }
 0x353   : > { %3596 = vmatprep.subr.bf16.mxu0 %v6220_v3  ;;  %3625 = vmatpush3.bf16.msra.mxu1 %v3624_v51  ;;  %v3687_v42 = vpack.c.bf16 %v2210_v41, %v2209_v40  ;;  %v2213_v46 = vld [vmem:[#allocation26 + $0x30] sm:$0xff]  ;;  %v2215_v49 = vld [vmem:[#allocation26 + $0x40] sm:$0xff]  ;;  %v2216_v50 = vld [vmem:[#allocation26 + $0x48] sm:$0xff] }
 0x354   : > { %3626 = vmatprep.subr.bf16.mxu1 %v6220_v3  ;;  %v3696_v51 = vpack.c.bf16 %v2216_v50, %v2215_v49  ;;  %v2218_v53 = vld [vmem:[#allocation26 + $0x58] sm:$0xff]  ;;  %v2219_v55 = vld [vmem:[#allocation26 + $0x60] sm:$0xff]  ;;  %v2220_v56 = vld [vmem:[#allocation26 + $0x68] sm:$0xff] }
 0x355   : > { %v2222_v59 = vld [vmem:[#allocation26 + $0x78] sm:$0xff]  ;;  %v5614_v35 = vld [vmem:[%s6276_s27] sm:$0xff]  ;;  %v5625_v38 = vld [vmem:[%s6276_s27 + $0x10] sm:$0xff] }
 0x356   : > { %3598 = vmatpush3.bf16.msra.mxu0 %v3597_v45  ;;  %v3690_v45 = vpack.c.bf16 %v2212_v44, %v2211_v43  ;;  %v5620_v37 = vld [vmem:[%s6276_s27 + $0x8] sm:$0x1]  ;;  %v5632_v43 = vld [vmem:[%s6276_s27 + $0x18] sm:$0x1] }
 0x357   : > { %3599 = vmatprep.subr.bf16.mxu0 %v6220_v3  ;;  %3628 = vmatpush3.bf16.msra.mxu1 %v3627_v57  ;;  %v3702_v57 = vpack.c.bf16 %v2220_v56, %v2219_v55  ;;  %v5641_v49 = vld [vmem:[%s6276_s27 + $0x28] sm:$0x1] }
 0x358   : > { %3629 = vmatprep.subr.bf16.mxu1 %v6220_v3 }
 0x35a   : > { %3601 = vmatpush3.bf16.msra.mxu0 %v3600_v52  ;;  %v2217_v52 = vld [vmem:[#allocation26 + $0x50] sm:$0xff] }
 0x35b   : > { %3602 = vmatprep.subr.bf16.mxu0 %v6220_v3  ;;  %3631 = vmatpush3.bf16.msra.mxu1 %v3630_v63  ;;  %v3699_v54 = vpack.c.bf16 %v2218_v53, %v2217_v52 }
 0x35c   : > { %3632 = vmatprep.subr.bf16.mxu1 %v6220_v3 }
 0x35e   : > { %3604 = vmatpush3.bf16.msra.mxu0 %v3603_v58  ;;  %v2221_v58 = vld [vmem:[#allocation26 + $0x70] sm:$0xff] }
 0x35f   : > { %3605 = vmatprep.subr.bf16.mxu0 %v6220_v3  ;;  %3634 = vmatpush3.bf16.msra.mxu1 %v3633_v8  ;;  %v3705_v60 = vpack.c.bf16 %v2222_v59, %v2221_v58  ;;  %v5656_v58 = vld [vmem:[%s6276_s27 + $0x48] sm:$0x1]  ;;  %v5661_v59 = vld [vmem:[%s6276_s27 + $0x40] sm:$0xff] }
 0x360   : > { %3635 = vmatprep.subr.bf16.mxu1 %v6220_v3 }
 0x362   : > { %3607 = vmatpush3.bf16.msra.mxu0 %v3606_v1  ;;  %3408 = vmatmul.mubr.f32.vlgmr.msra.gmra.mrb[0].mxu1 %v1194_v12 }
 0x363   : > { %3608 = vmatprep.subr.bf16.mxu0 %v6220_v3  ;;  %3637 = vmatpush3.bf16.msra.mxu1 %v3636_v13  ;;  %v3079_v13 = vld [vmem:[#allocation23] ss:$0 sm:$0xff] }
 0x364   : > { %3638 = vmatprep.subr.bf16.mxu1 %v6220_v3  ;;  %3442 = vmatprep.mubr.msk.f32.mxu1 %vm4782_vm0, %v4783_v7 }
 0x366   : > { %3610 = vmatpush3.bf16.msra.mxu0 %v3609_v9 }
 0x367   : > { %3659 = vmatprep.subr.bf16.mxu0 %v6220_v3  ;;  %3640 = vmatpush3.bf16.msra.mxu1 %v3639_v16 }
 0x368   : > { %3641 = vmatprep.subr.bf16.mxu1 %v6220_v3 }
 0x369   : > { %3373 = vmatmul.mubr.f32.vlgmr.msra.gmra.mrb[0].mxu0 %v1194_v12 }
 0x36a   : > { %3477 = vmatprep.mubr.msk.f32.mxu0 %vm4782_vm0, %v4783_v7 }
 0x36b   : > { %3643 = vmatpush3.bf16.msra.mxu1 %v3642_v21  ;;  %v1498_v21 = vunpack.c.l.s4 %v4793_v20  ;;  %v5703_v20 = vld [vmem:[%s6276_s27 + $0x60] sm:$0xff] }
 0x36c   : > { %3644 = vmatprep.subr.bf16.mxu1 %v6220_v3 }
 0x36d   : > { %v1499_v23 = vunpack.c.0.s8 %v1498_v21 }
 0x36f   : > { %3646 = vmatpush3.bf16.msra.mxu1 %v3645_v24 }
 0x370   : > { %3647 = vmatprep.subr.bf16.mxu1 %v6220_v3 }
 0x373   : > { %3649 = vmatpush3.bf16.msra.mxu1 %v3648_v27 }
 0x374   : > { %3650 = vmatprep.subr.bf16.mxu1 %v6220_v3 }
 0x377   : > { %3652 = vmatpush3.bf16.msra.mxu1 %v3651_v30 }
 0x378   : > { %3653 = vmatprep.subr.bf16.mxu1 %v6220_v3 }
 0x37b   : > { %3655 = vmatpush3.bf16.msra.mxu1 %v3654_v33 }
 0x37c   : > { %3656 = vmatprep.subr.bf16.mxu1 %v6220_v3 }
 0x37f   : > { %3658 = vmatpush3.bf16.msra.mxu1 %v3657_v36 }
 0x380   : > { %3683 = vmatprep.subr.bf16.mxu1 %v6220_v3 }
 0x382   : > { %3443 = vmatmul.mubr.f32.vlgmr.msra.gmra.mrb[2].mxu1 %v1194_v12 }
 0x383   : > { %3512 = vmatprep.mubr.msk.f32.mxu1 %vm4782_vm0, %v4783_v7  ;;  %3685 = vmatpush3.bf16.msra.mxu1 %v3684_v39  ;;  %v2214_v7 = vld [vmem:[#allocation26 + $0x38] sm:$0xff] }
 0x384   : > { %3686 = vmatprep.subr.bf16.mxu1 %v6220_v3  ;;  %v3693_v48 = vpack.c.bf16 %v2214_v7, %v2213_v46 }
 0x387   : > { %3688 = vmatpush3.bf16.msra.mxu1 %v3687_v42 }
 0x388   : > { %3689 = vmatprep.subr.bf16.mxu1 %v6220_v3 }
 0x38b   : > { %3691 = vmatpush3.bf16.msra.mxu1 %v3690_v45 }
 0x38c   : > { %3692 = vmatprep.subr.bf16.mxu1 %v6220_v3 }
 0x38f   : > { %3694 = vmatpush3.bf16.msra.mxu1 %v3693_v48 }
 0x390   : > { %3695 = vmatprep.subr.bf16.mxu1 %v6220_v3 }
 0x393   : > { %3697 = vmatpush3.bf16.msra.mxu1 %v3696_v51  ;;  %v5647_v51 = vld [vmem:[%s6276_s27 + $0x20] sm:$0xff] }
 0x394   : > { %3698 = vmatprep.subr.bf16.mxu1 %v6220_v3 }
 0x397   : > { %3700 = vmatpush3.bf16.msra.mxu1 %v3699_v54 }
 0x398   : > { %3701 = vmatprep.subr.bf16.mxu1 %v6220_v3 }
 0x39b   : > { %3703 = vmatpush3.bf16.msra.mxu1 %v3702_v57 }
 0x39c   : > { %3704 = vmatprep.subr.bf16.mxu1 %v6220_v3 }
 0x39f   : > { %3706 = vmatpush3.bf16.msra.mxu1 %v3705_v60 }
 0x435   : > { %v1369_v61 = vpop.f32.mrb[0].mxu1 }
 0x436   : > { %v3409_v62 = vpop.f32.mrb[1].mxu1  ;;  %v3772_v5 = vadd.f32 %v5377_v17, %v1369_v61  ;;  %v1500_v17 = vlaneseq }
 0x438   : > { %v3078_v6 = vmul.f32 -1.442695, %v3772_v5  ;;  %v5604_v24 = vshrl.u32 %v1500_v17, 7 }
 0x43a   : > { %v5609_v31 = vsub.s32 0, %v5604_v24 }
 0x43c   : > { %v1277_v63 = vpop.f32.mrb[0].mxu0 }
 0x43d   : > { %v3771_v1 = vadd.f32 %v5320_v0, %v1277_v63  ;;  %v3374_v2 = vpop.f32.mrb[1].mxu0 }
 0x43e   : > { %v5670_v2 = vld [vmem:[%s6276_s27 + $0x38] sm:$0x1] }
 0x43f   : > { %v3077_v4 = vmul.f32 -1.442695, %v3771_v1 }
 0x441   : > { %3976 = vpow2.f32 %v3077_v4  ;;  %v5675_v4 = vld [vmem:[%s6276_s27 + $0x30] sm:$0xff] }
 0x442   : > { %3978 = vpow2.f32 %v3078_v6 }
 0x44b   : > { %v3977_v8 = vpop.eup %3976 }
 0x44c   : > { %v1284_v9 = vadd.f32 1.0, %v3977_v8  ;;  %v3979_v10 = vpop.eup %3978 }
 0x44d   : > { %v1376_v12 = vadd.f32 1.0, %v3979_v10 }
 0x44e   : > { %3980 = vrcp.f32 %v1284_v9 }
 0x44f   : > { %3982 = vrcp.f32 %v1376_v12  ;;  %v5689_v12 = vld [vmem:[%s6276_s27 + $0x50] sm:$0xff] }
 0x455   : > { %v1468_v15 = vpop.f32.mrb[2].mxu1 }
 0x456   : > { %v1469_v16 = vadd.f32 %v3079_v13, %v1468_v15  ;;  %v3444_v0 = vpop.f32.mrb[3].mxu1 }
 0x458   : > { %v3981_v11 = vpop.eup %3980 }
 0x459   : > { %v1472_v14 = vmul.f32 %v3981_v11, %v5506_v19  ;;  %v3983_v22 = vpop.eup %3982  ;;  %v1502_v19 = vsub.s32 %v1499_v23, %v5604_v24  ;;  %v5684_v11 = vld [vmem:[%s6276_s27 + $0x58] sm:$0x1] }
 0x45a   : > { %v1475_v25 = vsub.f32 1.0, %v3983_v22  ;;  %v1477_v28 = vmul.f32 %v3983_v22, %v5479_v47 }
 0x45b   : > { %v1473_v18 = vadd.f32 %v1472_v14, %v1469_v16 }
 0x45d   : > { %3984 = vtanh.f32 %v1473_v18  ;;  %v5698_v18 = vld [vmem:[%s6276_s27 + $0x68] sm:$0x1] }
 0x467   : > { %v3985_v26 = vpop.eup %3984 }
 0x468   : > { %v1476_v27 = vmul.f32 %v3985_v26, %v1475_v25  ;;  %v5712_v26 = vld [vmem:[%s6276_s27 + $0x78] sm:$0x1] }
 0x46a   : > { %v1478_v29 = vadd.f32 %v1477_v28, %v1476_v27  ;;  %v5717_v27 = vld [vmem:[%s6276_s27 + $0x70] sm:$0xff] }
 0x46c   : > { %3513 = vmatmul.mubr.f32.vlgmr.msra.gmra.mrb[4].mxu1 %v1478_v29  ;;  %2405 = vst [vmem:[#allocation31] sm:$0xff] %v1478_v29  ;;  %v1503_v30 = vrot.slane %v1478_v29, %v1502_v19  ;;  %v1496_v32 = vcombine.high %v1478_v29, %v1478_v29 }
 0x46e   : > { %v1519_v33 = vrot.slane %v1503_v30, %v1502_v19  ;;  %v1511_v34 = vcombine.high %v1503_v30, %v1503_v30  ;;  %v1510_v40 = vrot.slane %v1496_v32, %v1502_v19 }
 0x470   : > { %v1548_v36 = vrot.slane %v1519_v33, %v5609_v31  ;;  %v1533_v47 = vrot.slane %v1511_v34, %v1502_v19  ;;  %v1541_v39 = vcombine.high %v1519_v33, %v1519_v33  ;;  %v1526_v48 = vrot.slane %v1510_v40, %v1502_v19 }
 0x471   : > { %v1512_v52 = vcombine.high %v1510_v40, %v1510_v40  ;;  %v1659_v40 = vand.u32 127, %v1500_v17 }
 0x472   : > { %v1585_v41 = vmul.f32 %v1548_v36, %v5614_v35  ;;  %v1552_v42 = vrot.slane %v1533_v47, %v5609_v31  ;;  %v1586_v44 = vmul.f32 %v1548_v36, %v5620_v37  ;;  %v1556_v7 = vrot.slane %v1541_v39, %v5609_v31 }
 0x473   : > { %v1564_v55 = vrot.slane %v1526_v48, %v5609_v31  ;;  %v1543_v56 = vcombine.high %v1533_v47, %v1533_v47  ;;  %v1540_v63 = vrot.slane %v1512_v52, %v1502_v19  ;;  %v1542_v9 = vcombine.high %v1526_v48, %v1526_v48 }
 0x474   : > { %1601 = vadd.xlane.f32.xlu0 %v1585_v41  ;;  %v1587_v45 = vmul.f32 %v1552_v42, %v5625_v38  ;;  %v1588_v46 = vmul.f32 %v1552_v42, %v5632_v43  ;;  %v1604_v50 = vsel %vm1603_vm2, %v1586_v44, 0.0  ;;  %v1590_v54 = vmul.f32 %v1556_v7, %v5641_v49 }
 0x475   : > { %v1589_v57 = vmul.f32 %v1556_v7, %v5647_v51  ;;  %v1594_v61 = vmul.f32 %v1564_v55, %v5656_v58  ;;  %v1560_v62 = vrot.slane %v1543_v56, %v5609_v31  ;;  %v1593_v1 = vmul.f32 %v1564_v55, %v5661_v59 }
 0x476   : > { %1607 = vadd.xlane.f32.xlu1 %v1587_v45  ;;  %v1609_v53 = vsel %vm1603_vm2, %v1588_v46, 0.0  ;;  %v1614_v60 = vsel %vm1603_vm2, %v1590_v54, 0.0  ;;  %v1568_v8 = vrot.slane %v1540_v63, %v5609_v31  ;;  %v1572_v15 = vrot.slane %v1542_v9, %v5609_v31 }
 0x477   : > { %v1624_v5 = vsel %vm1603_vm2, %v1594_v61, 0.0  ;;  %v1592_v6 = vmul.f32 %v1560_v62, %v5670_v2  ;;  %v1591_v10 = vmul.f32 %v1560_v62, %v5675_v4  ;;  %v1544_v16 = vcombine.high %v1540_v63, %v1540_v63 }
 0x478   : > { %1605 = vadd.xlane.f32.xlu0 %v1604_v50  ;;  %v1596_v14 = vmul.f32 %v1568_v8, %v5684_v11  ;;  %v1595_v0 = vmul.f32 %v1568_v8, %v5689_v12  ;;  %v1598_v22 = vmul.f32 %v1572_v15, %v5698_v18  ;;  %v1597_v25 = vmul.f32 %v1572_v15, %v5703_v20 }
 0x479   : > { %v1619_v13 = vsel %vm1603_vm2, %v1592_v6, 0.0  ;;  %v1576_v23 = vrot.slane %v1544_v16, %v5609_v31  ;;  %v1664_v42 = vadd.s32 4294967288, %v1659_v40  ;;  %v5748_v48 = vsub.s32 %v1659_v40, %v5604_v24 }
 0x47a   : > { %1610 = vadd.xlane.f32.xlu1 %v1609_v53  ;;  %v1629_v21 = vsel %vm1603_vm2, %v1596_v14, 0.0  ;;  %v1634_v28 = vsel %vm1603_vm2, %v1598_v22, 0.0 }
 0x47b   : > { %v1600_v19 = vmul.f32 %v1576_v23, %v5712_v26  ;;  %v1599_v29 = vmul.f32 %v1576_v23, %v5717_v27  ;;  %v5743_v46 = vsub.s32 %v1664_v42, %v5604_v24 }
 0x47c   : > { %1612 = vadd.xlane.f32.xlu0 %v1589_v57 }
 0x47d   : > { %v1639_v30 = vsel %vm1603_vm2, %v1600_v19, 0.0 }
 0x47e   : > { %1615 = vadd.xlane.f32.xlu1 %v1614_v60 }
 0x480   : > { %1622 = vadd.xlane.f32.xlu0 %v1593_v1 }
 0x482   : > { %1625 = vadd.xlane.f32.xlu1 %v1624_v5 }
 0x484   : > { %1617 = vadd.xlane.f32.xlu0 %v1591_v10 }
 0x486   : > { %1620 = vadd.xlane.f32.xlu1 %v1619_v13 }
 0x488   : > { %1627 = vadd.xlane.f32.xlu0 %v1595_v0 }
 0x48a   : > { %1630 = vadd.xlane.f32.xlu1 %v1629_v21 }
 0x48c   : > { %1632 = vadd.xlane.f32.xlu0 %v1597_v25 }
 0x48e   : > { %1635 = vadd.xlane.f32.xlu1 %v1634_v28 }
 0x490   : > { %1637 = vadd.xlane.f32.xlu0 %v1599_v29 }
 0x492   : > { %1640 = vadd.xlane.f32.xlu1 %v1639_v30 }
 0x501   : > { %v5723_v32 = vpop.xlane.xlu0 %1601 }
 0x502   : > { %v1663_v60 = vrot.slane %v5723_v32, %v5748_v48 }
 0x503   : > { %v5725_v33 = vpop.xlane.xlu1 %1607 }
 0x504   : > { %v1674_v53 = vrot.slane %v5725_v33, %v5748_v48 }
 0x505   : > { %v5727_v34 = vpop.xlane.xlu0 %1605 }
 0x506   : > { %v1668_v54 = vrot.slane %v5727_v34, %v5743_v46 }
 0x507   : > { %v5729_v36 = vpop.xlane.xlu1 %1610 }
 0x508   : > { %v1678_v50 = vrot.slane %v5729_v36, %v5743_v46  ;;  %v1670_v5 = vsel %vm1669_vm3, %v1668_v54, %v1663_v60 }
 0x509   : > { %v5731_v47 = vpop.xlane.xlu0 %1612 }
 0x50a   : > { %v1683_v56 = vrot.slane %v5731_v47, %v5748_v48  ;;  %v1679_v61 = vsel %vm1669_vm3, %v1678_v50, %v1674_v53 }
 0x50b   : > { %v5733_v39 = vpop.xlane.xlu1 %1615  ;;  %v1735_v9 = vsel %vm1734_vm4, %v1679_v61, %v1670_v5  ;;  %v4794_v61 = vmov 0  }
 0x50c   : > { %v1687_v17 = vrot.slane %v5733_v39, %v5743_v46  ;;  %3975 = vset.pattern.permute.xlu0 %v4794_v61  ;;  %3974 = vset.pattern.permute.xlu1 %v4794_v61 }
 0x50d   : > { %v5736_v41 = vpop.xlane.xlu0 %1622 }
 0x50e   : > { %v1688_v63 = vsel %vm1669_vm3, %v1687_v17, %v1683_v56  ;;  %v1701_v0 = vrot.slane %v5736_v41, %v5748_v48 }
 0x50f   : > { %v5738_v44 = vpop.xlane.xlu1 %1625  ;;  %v1737_v14 = vsel %vm1736_vm5, %v1688_v63, %v1735_v9 }
 0x510   : > { %v1705_v10 = vrot.slane %v5738_v44, %v5743_v46 }
 0x511   : > { %v5740_v45 = vpop.xlane.xlu0 %1617 }
 0x512   : > { %v1692_v62 = vrot.slane %v5740_v45, %v5748_v48  ;;  %v1706_v28 = vsel %vm1669_vm3, %v1705_v10, %v1701_v0 }
 0x513   : > { %v5745_v7 = vpop.xlane.xlu1 %1620 }
 0x514   : > { %v1696_v55 = vrot.slane %v5745_v7, %v5743_v46 }
 0x515   : > { %v5754_v52 = vpop.xlane.xlu0 %1627 }
 0x516   : > { %v1697_v6 = vsel %vm1669_vm3, %v1696_v55, %v1692_v62  ;;  %v1710_v15 = vrot.slane %v5754_v52, %v5748_v48  ;;  %v1760_v62 = vsub.s32 1, %v5604_v24 }
 0x517   : > { %v5764_v57 = vpop.xlane.xlu1 %1630  ;;  %v1739_v21 = vsel %vm1738_vm6, %v1697_v6, %v1737_v14  ;;  %v6225_v14 = vsub.s32 2, %v5604_v24 }
 0x518   : > { %v1714_v8 = vrot.slane %v5764_v57, %v5743_v46  ;;  %v1741_v42 = vsel %vm1740_vm7, %v1706_v28, %v1739_v21 }
 0x519   : > { %v5772_v1 = vpop.xlane.xlu0 %1632 }
 0x51a   : > { %v1719_v22 = vrot.slane %v5772_v1, %v5748_v48  ;;  %v1715_v25 = vsel %vm1669_vm3, %v1714_v8, %v1710_v15  ;;  %v6223_v8 = vsub.s32 5, %v5604_v24 }
 0x51b   : > { %v5781_v13 = vpop.xlane.xlu1 %1635  ;;  %v1743_v50 = vsel %vm1742_vm8, %v1715_v25, %v1741_v42 }
 0x51c   : > { %v1723_v16 = vrot.slane %v5781_v13, %v5743_v46 }
 0x51d   : > { %v5793_v23 = vpop.xlane.xlu0 %1637 }
 0x51e   : > { %v1724_v29 = vsel %vm1669_vm3, %v1723_v16, %v1719_v22  ;;  %v1728_v30 = vrot.slane %v5793_v23, %v5748_v48  ;;  %v6222_v16 = vsub.s32 6, %v5604_v24 }
 0x51f   : > { %v5797_v19 = vpop.xlane.xlu1 %1640  ;;  %v1745_v53 = vsel %vm1744_vm9, %v1724_v29, %v1743_v50 }
 0x520   : > { %v1732_v40 = vrot.slane %v5797_v19, %v5743_v46 }
 0x522   : > { %v1733_v17 = vsel %vm1669_vm3, %v1732_v40, %v1728_v30  ;;  %v6224_v30 = vsub.s32 3, %v5604_v24 }
 0x523   : > { %v1747_v54 = vsel %vm1746_vm10, %v1733_v17, %v1745_v53 }
 0x524   : > { %v1750_v55 = vsel %vm1749_vm11, %v1747_v54, -inf }
 0x525   : > { %1751 = vmax.xlane.f32.xlu0 %v1750_v55 }
 0x53f   : > { %v5810_v56 = vpop.f32.mrb[4].mxu1 }
 0x540   : > { %v3514_v60 = vpop.f32.mrb[5].mxu1 }
 0x5b2   : > { %v1752_v63 = vpop.xlane.xlu0 %1751 }
 0x5b3   : > { %v1757_v5 = vrot.slane %v1752_v63, %v5609_v31  ;;  %v1761_v6 = vrot.slane %v1752_v63, %v1760_v62  ;;  %v5824_v0 = vrot.slane %v1752_v63, %v6223_v8  ;;  %v1765_v25 = vrot.slane %v1752_v63, %v6225_v14 }
 0x5b4   : > { %v1769_v53 = vrot.slane %v1752_v63, %v6224_v30 }
 0x5b5   : > { %v1794_v9 = vsub.f32 %v5723_v32, %v1757_v5  ;;  %v1795_v10 = vsub.f32 %v5727_v34, %v1757_v5  ;;  %v1796_v15 = vsub.f32 %v5725_v33, %v1761_v6  ;;  %v1797_v28 = vsub.f32 %v5729_v36, %v1761_v6 }
 0x5b6   : > { %v1784_v34 = vsub.s32 7, %v5604_v24  ;;  %v5832_v33 = vrot.slane %v1752_v63, %v6222_v16  ;;  %v1804_v29 = vsub.f32 %v5754_v52, %v5824_v0  ;;  %v1798_v40 = vsub.f32 %v5731_v47, %v1765_v25 }
 0x5b7   : > { %v1810_v21 = vmul.f32 1.442695, %v1794_v9  ;;  %v1812_v22 = vmul.f32 1.442695, %v1795_v10  ;;  %v1814_v32 = vmul.f32 1.442695, %v1796_v15  ;;  %v1799_v54 = vsub.f32 %v5733_v39, %v1765_v25 }
 0x5b8   : > { %v1816_v42 = vmul.f32 1.442695, %v1797_v28  ;;  %v1785_v36 = vrot.slane %v1752_v63, %v1784_v34  ;;  %v1806_v50 = vsub.f32 %v5772_v1, %v5832_v33  ;;  %v1830_v17 = vmul.f32 1.442695, %v1804_v29 }
 0x5b9   : > { %3986 = vpow2.f32 %v1810_v21  ;;  %v1818_v52 = vmul.f32 1.442695, %v1798_v40  ;;  %v1772_v1 = vsub.s32 4, %v5604_v24  ;;  %v1800_v5 = vsub.f32 %v5740_v45, %v1769_v53 }
 0x5ba   : > { %3988 = vpow2.f32 %v1812_v22  ;;  %v1808_v47 = vsub.f32 %v5793_v23, %v1785_v36  ;;  %v1834_v60 = vmul.f32 1.442695, %v1806_v50  ;;  %v1820_v6 = vmul.f32 1.442695, %v1799_v54 }
 0x5bb   : > { %3990 = vpow2.f32 %v1814_v32  ;;  %v1773_v23 = vrot.slane %v1752_v63, %v1772_v1  ;;  %v1801_v10 = vsub.f32 %v5745_v7, %v1769_v53  ;;  %v1822_v15 = vmul.f32 1.442695, %v1800_v5 }
 0x5bc   : > { %3992 = vpow2.f32 %v1816_v42  ;;  %v1838_v9 = vmul.f32 1.442695, %v1808_v47  ;;  %v1805_v40 = vsub.f32 %v5764_v57, %v5824_v0  ;;  %v1809_v54 = vsub.f32 %v5797_v19, %v1785_v36 }
 0x5bd   : > { %3994 = vpow2.f32 %v1830_v17  ;;  %v1802_v22 = vsub.f32 %v5736_v41, %v1773_v23  ;;  %v1824_v25 = vmul.f32 1.442695, %v1801_v10  ;;  %v1803_v63 = vsub.f32 %v5738_v44, %v1773_v23 }
 0x5be   : > { %3996 = vpow2.f32 %v1818_v52  ;;  %v1807_v44 = vsub.f32 %v5781_v13, %v5832_v33  ;;  %v1832_v17 = vmul.f32 1.442695, %v1805_v40  ;;  %v1840_v52 = vmul.f32 1.442695, %v1809_v54 }
 0x5bf   : > { %3998 = vpow2.f32 %v1834_v60  ;;  %v1826_v32 = vmul.f32 1.442695, %v1802_v22  ;;  %v1828_v42 = vmul.f32 1.442695, %v1803_v63 }
 0x5c0   : > { %4000 = vpow2.f32 %v1820_v6  ;;  %v1836_v57 = vmul.f32 1.442695, %v1807_v44 }
 0x5c1   : > { %4002 = vpow2.f32 %v1838_v9 }
 0x5c2   : > { %4004 = vpow2.f32 %v1822_v15 }
 0x5c3   : > { %v5845_v55 = vpop.eup %3986  ;;  %4006 = vpow2.f32 %v1824_v25 }
 0x5c4   : > { %v5848_v61 = vpop.eup %3988  ;;  %1859 = vperm.xlu1 %3974, %v5845_v55   ;;  %4008 = vpow2.f32 %v1826_v32 }
 0x5c5   : > { %1862 = vperm.xlu0 %3975, %v5848_v61   ;;  %v5854_v39 = vpop.eup %3990  ;;  %4010 = vpow2.f32 %v1828_v42 }
 0x5c6   : > { %v5860_v21 = vpop.eup %3992  ;;  %4012 = vpow2.f32 %v1832_v17 }
 0x5c7   : > { %v5863_v45 = vpop.eup %3994  ;;  %4014 = vpow2.f32 %v1836_v57 }
 0x5c8   : > { %1865 = vperm.xlu1 %3974, %v5854_v39   ;;  %v5867_v28 = vpop.eup %3996  ;;  %4016 = vpow2.f32 %v1840_v52 }
 0x5c9   : > { %1889 = vperm.xlu0 %3975, %v5863_v45   ;;  %v5870_v7 = vpop.eup %3998 }
 0x5ca   : > { %v5874_v29 = vpop.eup %4000 }
 0x5cb   : > { %v5877_v41 = vpop.eup %4002 }
 0x5cc   : > { %1868 = vperm.xlu1 %3974, %v5860_v21   ;;  %v5882_v50 = vpop.eup %4004 }
 0x5cd   : > { %1895 = vperm.xlu0 %3975, %v5870_v7   ;;  %v5887_v53 = vpop.eup %4006 }
 0x5ce   : > { %v5891_v0 = vpop.eup %4008 }
 0x5cf   : > { %v5894_v47 = vpop.eup %4010 }
 0x5d0   : > { %1871 = vperm.xlu1 %3974, %v5867_v28   ;;  %v5897_v13 = vpop.eup %4012 }
 0x5d1   : > { %1901 = vperm.xlu0 %3975, %v5877_v41   ;;  %v5900_v33 = vpop.eup %4014 }
 0x5d2   : > { %v4017_v19 = vpop.eup %4016 }
 0x5d4   : > { %1874 = vperm.xlu1 %3974, %v5874_v29  }
 0x5d8   : > { %1877 = vperm.xlu1 %3974, %v5882_v50  }
 0x5dc   : > { %1880 = vperm.xlu1 %3974, %v5887_v53  }
 0x5e0   : > { %1883 = vperm.xlu1 %3974, %v5891_v0  }
 0x5e4   : > { %1886 = vperm.xlu1 %3974, %v5894_v47  }
 0x5e8   : > { %1892 = vperm.xlu1 %3974, %v5897_v13  }
 0x5ec   : > { %1898 = vperm.xlu1 %3974, %v5900_v33  }
 0x5f0   : > { %1904 = vperm.xlu1 %3974, %v4017_v19  }
 0x643   : > { %v1860_v36 = vpop.permute.xlu1 %1859 }
 0x644   : > { %v1863_v10 = vpop.permute.xlu0 %1862  ;;  %v1909_v54 = vrot.slane %v1860_v36, %v5748_v48 }
 0x645   : > { %v1913_v17 = vrot.slane %v1863_v10, %v5743_v46 }
 0x647   : > { %v1866_v60 = vpop.permute.xlu1 %1865  ;;  %v1914_v36 = vsel %vm1669_vm3, %v1913_v17, %v1909_v54 }
 0x648   : > { %v1890_v25 = vpop.permute.xlu0 %1889  ;;  %v1918_v57 = vrot.slane %v1866_v60, %v5748_v48 }
 0x649   : > { %v1954_v60 = vrot.slane %v1890_v25, %v5748_v48 }
 0x64b   : > { %v1869_v5 = vpop.permute.xlu1 %1868 }
 0x64c   : > { %v1922_v32 = vrot.slane %v1869_v5, %v5743_v46  ;;  %v1896_v40 = vpop.permute.xlu0 %1895 }
 0x64e   : > { %v1923_v8 = vsel %vm1669_vm3, %v1922_v32, %v1918_v57 }
 0x64f   : > { %v1872_v6 = vpop.permute.xlu1 %1871  ;;  %v1978_v32 = vsel %vm1734_vm4, %v1923_v8, %v1914_v36 }
 0x650   : > { %v1927_v3 = vrot.slane %v1872_v6, %v5748_v48 }
 0x653   : > { %v1875_v9 = vpop.permute.xlu1 %1874 }
 0x654   : > { %v1931_v42 = vrot.slane %v1875_v9, %v5743_v46 }
 0x656   : > { %v1932_v9 = vsel %vm1669_vm3, %v1931_v42, %v1927_v3 }
 0x657   : > { %v1878_v23 = vpop.permute.xlu1 %1877  ;;  %v1979_v3 = vsel %vm1736_vm5, %v1932_v9, %v1978_v32 }
 0x658   : > { %v1936_v5 = vrot.slane %v1878_v23, %v5748_v48  ;;  %v1902_v23 = vpop.permute.xlu0 %1901 }
 0x659   : > { %v1972_v54 = vrot.slane %v1902_v23, %v5748_v48  ;;  %v6279_v23 = vsub.s32 5, %v5604_v24 }
 0x65b   : > { %v1881_v15 = vpop.permute.xlu1 %1880 }
 0x65c   : > { %v1940_v52 = vrot.slane %v1881_v15, %v5743_v46 }
 0x65e   : > { %v1941_v15 = vsel %vm1669_vm3, %v1940_v52, %v1936_v5 }
 0x65f   : > { %v1884_v22 = vpop.permute.xlu1 %1883  ;;  %v1980_v42 = vsel %vm1738_vm6, %v1941_v15, %v1979_v3  ;;  %v6280_v3 = vsub.s32 6, %v5604_v24 }
 0x660   : > { %v1945_v10 = vrot.slane %v1884_v22, %v5748_v48 }
 0x663   : > { %v1887_v63 = vpop.permute.xlu1 %1886 }
 0x664   : > { %v1949_v16 = vrot.slane %v1887_v63, %v5743_v46  ;;  %v1963_v63 = vrot.slane %v1896_v40, %v5748_v48 }
 0x667   : > { %v1893_v44 = vpop.permute.xlu1 %1892 }
 0x668   : > { %v1958_v30 = vrot.slane %v1893_v44, %v5743_v46  ;;  %v1950_v44 = vsel %vm1669_vm3, %v1949_v16, %v1945_v10 }
 0x66a   : > { %v1959_v22 = vsel %vm1669_vm3, %v1958_v30, %v1954_v60 }
 0x66b   : > { %v1899_v14 = vpop.permute.xlu1 %1898 }
 0x66c   : > { %v1967_v6 = vrot.slane %v1899_v14, %v5743_v46  ;;  %v1981_v14 = vsel %vm1740_vm7, %v1950_v44, %v1980_v42 }
 0x66d   : > { %v1982_v8 = vsel %vm1742_vm8, %v1959_v22, %v1981_v14  ;;  %v2229_v14 = vld [vmem:[%s6282_s7 + $0x30] sm:$0xff] }
 0x66e   : > { %v1968_v17 = vsel %vm1669_vm3, %v1967_v6, %v1963_v63 }
 0x66f   : > { %v1905_v25 = vpop.permute.xlu1 %1904  ;;  %v1983_v16 = vsel %vm1744_vm9, %v1968_v17, %v1982_v8  ;;  %v2227_v17 = vld [vmem:[%s6282_s7 + $0x20] sm:$0xff] }
 0x670   : > { %v1976_v40 = vrot.slane %v1905_v25, %v5743_v46 }
 0x672   : > { %v1977_v57 = vsel %vm1669_vm3, %v1976_v40, %v1972_v54  ;;  %v2230_v40 = vld [vmem:[%s6282_s7 + $0x38] sm:$0xff] }
 0x673   : > { %v1984_v52 = vsel %vm1746_vm10, %v1977_v57, %v1983_v16  ;;  %v3669_v8 = vpack.c.bf16 %v2230_v40, %v2229_v14  ;;  %v2231_v57 = vld [vmem:[%s6282_s7 + $0x40] sm:$0xff]  ;;  %v2232_v16 = vld [vmem:[%s6282_s7 + $0x48] sm:$0xff] }
 0x674   : > { %v1986_v30 = vsel %vm1749_vm11, %v1984_v52, 0.0  ;;  %v3672_v52 = vpack.c.bf16 %v2232_v16, %v2231_v57 }
 0x675   : > { %1987 = vadd.xlane.f32.xlu0 %v1986_v30  ;;  %v2233_v30 = vld [vmem:[%s6282_s7 + $0x50] sm:$0xff] }
 0x702   : > { %v1988_v5 = vpop.xlane.xlu0 %1987 }
 0x703   : > { %4018 = vrcp.f32 %v1988_v5  ;;  %v2234_v5 = vld [vmem:[%s6282_s7 + $0x58] sm:$0xff] }
 0x70d   : > { %v4019_v9 = vpop.eup %4018 }
 0x70e   : > { %v2010_v48 = vrot.slane %v4019_v9, %v1772_v1  ;;  %v1994_v10 = vrot.slane %v4019_v9, %v5609_v31  ;;  %v2022_v60 = vrot.slane %v4019_v9, %v1784_v34  ;;  %v1998_v15 = vrot.slane %v4019_v9, %v1760_v62 }
 0x70f   : > { %v2014_v44 = vrot.slane %v4019_v9, %v6279_v23  ;;  %v2018_v22 = vrot.slane %v4019_v9, %v6280_v3 }
 0x710   : > { %v2040_v46 = vmul.f32 %v5894_v47, %v2010_v48  ;;  %v2032_v36 = vmul.f32 %v5848_v61, %v1994_v10  ;;  %v2046_v6 = vmul.f32 %v4017_v19, %v2022_v60  ;;  %v2034_v63 = vmul.f32 %v5860_v21, %v1998_v15 }
 0x711   : > { %v2031_v1 = vmul.f32 %v5845_v55, %v1994_v10  ;;  %v2033_v31 = vmul.f32 %v5854_v39, %v1998_v15  ;;  %v6277_v61 = vsub.s32 2, %v5604_v24  ;;  %v6278_v19 = vsub.s32 3, %v5604_v24  ;;  %v2236_v10 = vld [vmem:[%s6282_s7 + $0x68] sm:$0xff] }
 0x712   : > { %2094 = vperm.xlu0 %3975, %v2040_v46   ;;  %2054 = vperm.xlu1 %3974, %v2032_v36   ;;  %v2039_v39 = vmul.f32 %v5891_v0, %v2010_v48  ;;  %v2223_v0 = vld [vmem:[%s6281_s30] sm:$0xff]  ;;  %v2045_v24 = vmul.f32 %v5877_v41, %v2022_v60  ;;  %v2228_v41 = vld [vmem:[%s6282_s7 + $0x28] sm:$0xff]  ;;  %v2237_v36 = vld [vmem:[%s6282_s7 + $0x70] sm:$0xff] }
 0x713   : > { %v2002_v47 = vrot.slane %v4019_v9, %v6277_v61  ;;  %v2006_v32 = vrot.slane %v4019_v9, %v6278_v19  ;;  %v3666_v54 = vpack.c.bf16 %v2228_v41, %v2227_v17  ;;  %v3675_v9 = vpack.c.bf16 %v2234_v5, %v2233_v30  ;;  %v2235_v48 = vld [vmem:[%s6282_s7 + $0x60] sm:$0xff]  ;;  %v2238_v60 = vld [vmem:[%s6282_s7 + $0x78] sm:$0xff] }
 0x714   : > { %v3678_v46 = vpack.c.bf16 %v2236_v10, %v2235_v48  ;;  %v3681_v15 = vpack.c.bf16 %v2238_v60, %v2237_v36 }
 0x715   : > { %v2036_v34 = vmul.f32 %v5874_v29, %v2002_v47  ;;  %v2035_v62 = vmul.f32 %v5867_v28, %v2002_v47  ;;  %v2038_v21 = vmul.f32 %v5887_v53, %v2006_v32  ;;  %v2037_v55 = vmul.f32 %v5882_v50, %v2006_v32 }
 0x716   : > { %2124 = vperm.xlu0 %3975, %v2046_v6   ;;  %2064 = vperm.xlu1 %3974, %v2034_v63   ;;  %v2042_v29 = vmul.f32 %v5897_v13, %v2014_v44  ;;  %v2041_v28 = vmul.f32 %v5863_v45, %v2014_v44  ;;  %v2044_v53 = vmul.f32 %v5900_v33, %v2018_v22  ;;  %v2224_v13 = vld [vmem:[%s6282_s7 + $0x8] sm:$0xff]  ;;  %v6283_v45 = vmov 0.0|0.0   ;;  %v2226_v33 = vld [vmem:[%s6282_s7 + $0x18] sm:$0xff] }
 0x717   : > { %v2043_v50 = vmul.f32 %v5870_v7, %v2018_v22  ;;  %v3660_v42 = vpack.c.bf16 %v2224_v13, %v2223_v0  ;;  %v2225_v7 = vld [vmem:[%s6282_s7 + $0x10] sm:$0xff] }
 0x718   : > { %v3663_v25 = vpack.c.bf16 %v2226_v33, %v2225_v7 }
 0x719   : > { %3661 = vmatpush3.bf16.msra.mxu0 %v3660_v42 }
 0x71a   : > { %2049 = vperm.xlu1 %3974, %v2031_v1   ;;  %3662 = vmatprep.subr.bf16.mxu0 %v6283_v45 }
 0x71d   : > { %3664 = vmatpush3.bf16.msra.mxu0 %v3663_v25 }
 0x71e   : > { %2059 = vperm.xlu1 %3974, %v2033_v31   ;;  %3665 = vmatprep.subr.bf16.mxu0 %v6283_v45 }
 0x721   : > { %3667 = vmatpush3.bf16.msra.mxu0 %v3666_v54 }
 0x722   : > { %2074 = vperm.xlu1 %3974, %v2036_v34   ;;  %3668 = vmatprep.subr.bf16.mxu0 %v6283_v45 }
 0x725   : > { %3670 = vmatpush3.bf16.msra.mxu0 %v3669_v8 }
 0x726   : > { %2069 = vperm.xlu1 %3974, %v2035_v62   ;;  %3671 = vmatprep.subr.bf16.mxu0 %v6283_v45 }
 0x729   : > { %3673 = vmatpush3.bf16.msra.mxu0 %v3672_v52 }
 0x72a   : > { %2084 = vperm.xlu1 %3974, %v2038_v21   ;;  %3674 = vmatprep.subr.bf16.mxu0 %v6283_v45 }
 0x72d   : > { %3676 = vmatpush3.bf16.msra.mxu0 %v3675_v9 }
 0x72e   : > { %2079 = vperm.xlu1 %3974, %v2037_v55   ;;  %3677 = vmatprep.subr.bf16.mxu0 %v6283_v45 }
 0x731   : > { %3679 = vmatpush3.bf16.msra.mxu0 %v3678_v46 }
 0x732   : > { %2089 = vperm.xlu1 %3974, %v2039_v39   ;;  %3680 = vmatprep.subr.bf16.mxu0 %v6283_v45 }
 0x735   : > { %3682 = vmatpush3.bf16.msra.mxu0 %v3681_v15 }
 0x736   : > { %2104 = vperm.xlu1 %3974, %v2042_v29  }
 0x73a   : > { %2099 = vperm.xlu1 %3974, %v2041_v28  }
 0x73e   : > { %2114 = vperm.xlu1 %3974, %v2044_v53  }
 0x742   : > { %2109 = vperm.xlu1 %3974, %v2043_v50  }
 0x746   : > { %2119 = vperm.xlu1 %3974, %v2045_v24  }
 0x791   : > { %v2055_v6 = vpop.permute.xlu1 %2054  ;;  %v2095_v19 = vpop.permute.xlu0 %2094 }
 0x792   : > { %v2128_v39 = vmul.f32 %v2055_v6, %v5620_v37  ;;  %v2136_v28 = vmul.f32 %v2095_v19, %v5656_v58 }
 0x794   : > { %v2143_v37 = vsel %vm1603_vm2, %v2128_v39, 0.0  ;;  %v2175_v0 = vsel %vm1603_vm2, %v2136_v28, 0.0 }
 0x795   : > { %v2065_v63 = vpop.permute.xlu1 %2064  ;;  %v2125_v30 = vpop.permute.xlu0 %2124 }
 0x796   : > { %v2130_v32 = vmul.f32 %v2065_v63, %v5632_v43  ;;  %v2142_v60 = vmul.f32 %v2125_v30, %v5712_v26 }
 0x798   : > { %v2151_v53 = vsel %vm1603_vm2, %v2130_v32, 0.0  ;;  %v2199_v32 = vsel %vm1603_vm2, %v2142_v60, 0.0 }
 0x799   : > { %v2050_v1 = vpop.permute.xlu1 %2049 }
 0x79a   : > { %v2127_v3 = vmul.f32 %v2050_v1, %v5614_v35 }
 0x79c   : > { %v2144_v58 = vadd.f32 %v2143_v37, %v2127_v3 }
 0x79d   : > { %v2060_v31 = vpop.permute.xlu1 %2059 }
 0x79e   : > { %v2129_v21 = vmul.f32 %v2060_v31, %v5625_v38 }
 0x7a0   : > { %v2152_v38 = vadd.f32 %v2151_v53, %v2129_v21 }
 0x7a1   : > { %v2075_v61 = vpop.permute.xlu1 %2074 }
 0x7a2   : > { %v2132_v55 = vmul.f32 %v2075_v61, %v5641_v49  ;;  %v2153_v42 = vrot.slane %v2152_v38, 4 }
 0x7a4   : > { %v2159_v49 = vsel %vm1603_vm2, %v2132_v55, 0.0  ;;  %v2154_v41 = vadd.f32 %v2153_v42, %v2152_v38 }
 0x7a5   : > { %v2070_v47 = vpop.permute.xlu1 %2069 }
 0x7a6   : > { %v2131_v23 = vmul.f32 %v2070_v47, %v5647_v51  ;;  %v2155_v5 = vrot.slane %v2154_v41, 2 }
 0x7a8   : > { %v2160_v50 = vadd.f32 %v2159_v49, %v2131_v23  ;;  %v2156_v63 = vadd.f32 %v2155_v5, %v2154_v41 }
 0x7a9   : > { %v2085_v34 = vpop.permute.xlu1 %2084 }
 0x7aa   : > { %v2134_v44 = vmul.f32 %v2085_v34, %v5670_v2  ;;  %v2161_v24 = vrot.slane %v2160_v50, 4  ;;  %v2157_v55 = vrot.slane %v2156_v63, 1 }
 0x7ac   : > { %v2167_v51 = vsel %vm1603_vm2, %v2134_v44, 0.0  ;;  %v2162_v14 = vadd.f32 %v2161_v24, %v2160_v50  ;;  %v2158_v53 = vadd.f32 %v2157_v55, %v2156_v63 }
 0x7ad   : > { %v2080_v62 = vpop.permute.xlu1 %2079 }
 0x7ae   : > { %v2133_v22 = vmul.f32 %v2080_v62, %v5675_v4  ;;  %v2163_v48 = vrot.slane %v2162_v14, 2 }
 0x7b0   : > { %v2168_v13 = vadd.f32 %v2167_v51, %v2133_v22  ;;  %v2164_v61 = vadd.f32 %v2163_v48, %v2162_v14 }
 0x7b1   : > { %v2090_v29 = vpop.permute.xlu1 %2089 }
 0x7b2   : > { %v2135_v43 = vmul.f32 %v2090_v29, %v5661_v59  ;;  %v2145_v59 = vrot.slane %v2144_v58, 4  ;;  %v2169_v7 = vrot.slane %v2168_v13, 4  ;;  %v2165_v23 = vrot.slane %v2164_v61, 1 }
 0x7b4   : > { %v2176_v35 = vadd.f32 %v2175_v0, %v2135_v43  ;;  %v2146_v8 = vadd.f32 %v2145_v59, %v2144_v58  ;;  %v2170_v57 = vadd.f32 %v2169_v7, %v2168_v13  ;;  %v2166_v37 = vadd.f32 %v2165_v23, %v2164_v61 }
 0x7b5   : > { %v2105_v2 = vpop.permute.xlu1 %2104 }
 0x7b6   : > { %v2138_v4 = vmul.f32 %v2105_v2, %v5684_v11  ;;  %v2177_v17 = vrot.slane %v2176_v35, 4  ;;  %v2147_v46 = vrot.slane %v2146_v8, 2 }
 0x7b8   : > { %v2183_v25 = vsel %vm1603_vm2, %v2138_v4, 0.0  ;;  %v2178_v52 = vadd.f32 %v2177_v17, %v2176_v35 }
 0x7b9   : > { %v2100_v45 = vpop.permute.xlu1 %2099 }
 0x7ba   : > { %v2137_v33 = vmul.f32 %v2100_v45, %v5689_v12  ;;  %v2171_v12 = vrot.slane %v2170_v57, 2  ;;  %v2179_v15 = vrot.slane %v2178_v52, 2 }
 0x7bc   : > { %v2184_v54 = vadd.f32 %v2183_v25, %v2137_v33  ;;  %v2172_v34 = vadd.f32 %v2171_v12, %v2170_v57  ;;  %v2180_v21 = vadd.f32 %v2179_v15, %v2178_v52 }
 0x7bd   : > { %v2115_v40 = vpop.permute.xlu1 %2114 }
 0x7be   : > { %v2185_v16 = vrot.slane %v2184_v54, 4  ;;  %v2140_v11 = vmul.f32 %v2115_v40, %v5698_v18  ;;  %v2148_v18 = vadd.f32 %v2147_v46, %v2146_v8  ;;  %v2173_v29 = vrot.slane %v2172_v34, 1 }
 0x7bf   : > { %v2181_v22 = vrot.slane %v2180_v21, 1 }
 0x7c0   : > { %v2186_v9 = vadd.f32 %v2185_v16, %v2184_v54  ;;  %v2191_v6 = vsel %vm1603_vm2, %v2140_v11, 0.0  ;;  %v2149_v44 = vrot.slane %v2148_v18, 1  ;;  %v3080_v54 = vld [vmem:[#allocation27] ss:$0 sm:$0xff] }
 0x7c1   : > { %v2110_v10 = vpop.permute.xlu1 %2109  ;;  %v2182_v0 = vadd.f32 %v2181_v22, %v2180_v21 }
 0x7c2   : > { %v2139_v36 = vmul.f32 %v2110_v10, %v5703_v20  ;;  %v2187_v1 = vrot.slane %v2186_v9, 2  ;;  %v2150_v50 = vadd.f32 %v2149_v44, %v2148_v18 }
 0x7c4   : > { %v2192_v31 = vadd.f32 %v2191_v6, %v2139_v36  ;;  %v2188_v20 = vadd.f32 %v2187_v1, %v2186_v9  ;;  %v2247_v58 = vsel %vm1734_vm4, %v2158_v53, %v2150_v50 }
 0x7c5   : > { %v2120_v47 = vpop.permute.xlu1 %2119  ;;  %v2248_v4 = vsel %vm1736_vm5, %v2166_v37, %v2247_v58 }
 0x7c6   : > { %v2193_v62 = vrot.slane %v2192_v31, 4  ;;  %v2141_v19 = vmul.f32 %v2120_v47, %v5717_v27  ;;  %v2189_v43 = vrot.slane %v2188_v20, 1  ;;  %v2174_v27 = vadd.f32 %v2173_v29, %v2172_v34 }
 0x7c8   : > { %v2194_v39 = vadd.f32 %v2193_v62, %v2192_v31  ;;  %v2200_v26 = vadd.f32 %v2199_v32, %v2141_v19  ;;  %v2190_v13 = vadd.f32 %v2189_v43, %v2188_v20  ;;  %v2249_v45 = vsel %vm1738_vm6, %v2174_v27, %v2248_v4 }
 0x7c9   : > { %v2250_v59 = vsel %vm1740_vm7, %v2182_v0, %v2249_v45 }
 0x7ca   : > { %v2195_v28 = vrot.slane %v2194_v39, 2  ;;  %v2201_v3 = vrot.slane %v2200_v26, 4  ;;  %v2251_v33 = vsel %vm1742_vm8, %v2190_v13, %v2250_v59 }
 0x7cc   : > { %v2196_v38 = vadd.f32 %v2195_v28, %v2194_v39  ;;  %v2202_v49 = vadd.f32 %v2201_v3, %v2200_v26 }
 0x7ce   : > { %v2197_v51 = vrot.slane %v2196_v38, 1  ;;  %v2203_v2 = vrot.slane %v2202_v49, 2 }
 0x7d0   : > { %v2204_v35 = vadd.f32 %v2203_v2, %v2202_v49  ;;  %v2198_v42 = vadd.f32 %v2197_v51, %v2196_v38 }
 0x7d2   : > { %v2205_v24 = vrot.slane %v2204_v35, 1  ;;  %v2252_v17 = vsel %vm1744_vm9, %v2198_v42, %v2251_v33 }
 0x7d4   : > { %v2206_v7 = vadd.f32 %v2205_v24, %v2204_v35 }
 0x7d6   : > { %v2253_v25 = vsel %vm1746_vm10, %v2206_v7, %v2252_v17 }
 0x7d7   : > { %3478 = vmatmul.mubr.f32.vlgmr.msra.gmra.mrb[4].mxu0 %v2253_v25 }
 0x8aa   : > { %v2321_v41 = vpop.f32.mrb[4].mxu0 }
 0x8ab   : > { %v2392_v14 = vadd.f32 %v5810_v56, %v2321_v41  ;;  %v3479_v40 = vpop.f32.mrb[5].mxu0 }
 0x8ad   : > { %v2402_v8 = vadd.f32 %v3080_v54, %v2392_v14 }
 0x8af   : > { %4020 = vtanh.f32 %v2402_v8 }
 0x8b9   : > { %v4021_v57 = vpop.eup %4020 }
 0x8ba   : > { %2404 = vst [vmem:[#allocation3] sm:$0xff] %v4021_v57 }
 0x8bb PF: > { %v2410_v16 = vld [vmem:[%s5305_s19 + $0x8] sm:$0xff]  ;;  %v2412_v11 = vld [vmem:[%s5305_s19 + $0x18] sm:$0xff]  ;;  %v2409_v5 = vld [vmem:[%s5305_s19] sm:$0xff]  ;;  %v4795_v48 = vmov 0.0   ;;  %s3081_s0 = sshll.u32 %s4938_s1, 9  ;;  %s6284_s18 = sld [smem:[#allocation83_spill]] }
 0x8bc   : > { %v2414_v52 = vld [vmem:[%s5305_s19 + $0x28] sm:$0xff]  ;;  %v2416_v30 = vld [vmem:[%s5305_s19 + $0x38] sm:$0xff]  ;;  %v2413_v9 = vld [vmem:[%s5305_s19 + $0x20] sm:$0xff]  ;;  %2560 = vmatprep.mubr.f32.mxu0 %v4795_v48  ;;  %2631 = vmatprep.mubr.f32.mxu1 %v4795_v48  ;;  %s2639_s24 = sshra.s32 %s3081_s0, 7  ;;  %vm2682_vm12 = vcmask 7168   ;;  %p3083_p12 = scmp.ne.s32.totalorder %s4938_s1, 1 }
 0x8bd   : > { %v3707_v56 = vpack.c.bf16 %v2414_v52, %v2410_v16  ;;  %v3739_v10 = vpack.c.bf16 %v2416_v30, %v2412_v11  ;;  %v3709_v46 = vpack.c.bf16 %v2413_v9, %v2409_v5  ;;  %v2411_v12 = vld [vmem:[%s5305_s19 + $0x10] sm:$0xff]  ;;  %v2418_v60 = vld [vmem:[%s5305_s19 + $0x48] sm:$0xff]  ;;  %v2420_v63 = vld [vmem:[%s5305_s19 + $0x58] sm:$0xff]  ;;  %s3082_s14 = sshll.u32 %s2639_s24, 3 }
 0x8be   : > { %v2415_v36 = vld [vmem:[%s5305_s19 + $0x30] sm:$0xff]  ;;  %v2422_v6 = vld [vmem:[%s5305_s19 + $0x68] sm:$0xff]  ;;  %v2424_v1 = vld [vmem:[%s5305_s19 + $0x78] sm:$0xff]  ;;  %s2642_s2 = scalar_lea.vmem [#allocation30], %s3082_s14 }
 0x8bf   : > { %3708 = vmatprep.subr.bf16.mxu0 %v3707_v56  ;;  %v3741_v15 = vpack.c.bf16 %v2415_v36, %v2411_v12  ;;  %3740 = vmatprep.subr.bf16.mxu1 %v3739_v10  ;;  %v3711_v31 = vpack.c.bf16 %v2422_v6, %v2418_v60  ;;  %v3743_v61 = vpack.c.bf16 %v2424_v1, %v2420_v63  ;;  %v2417_v47 = vld [vmem:[%s5305_s19 + $0x40] sm:$0xff]  ;;  %v2419_v34 = vld [vmem:[%s5305_s19 + $0x50] sm:$0xff]  ;;  %v2426_v32 = vld [vmem:[%s5305_s19 + $0x88] sm:$0xff] }
 0x8c0   : > { %3710 = vmatpush1.bf16.msra.mxu0 %v3709_v46  ;;  %v2421_v18 = vld [vmem:[%s5305_s19 + $0x60] sm:$0xff]  ;;  %v2423_v19 = vld [vmem:[%s5305_s19 + $0x70] sm:$0xff]  ;;  %v2430_v21 = vld [vmem:[%s5305_s19 + $0xa8] sm:$0xff] }
 0x8c1   : > { %3742 = vmatpush1.bf16.msra.mxu1 %v3741_v15  ;;  %v3713_v62 = vpack.c.bf16 %v2421_v18, %v2417_v47  ;;  %3712 = vmatprep.subr.bf16.mxu0 %v3711_v31  ;;  %v3745_v55 = vpack.c.bf16 %v2423_v19, %v2419_v34  ;;  %v3715_v20 = vpack.c.bf16 %v2430_v21, %v2426_v32  ;;  %v2428_v39 = vld [vmem:[%s5305_s19 + $0x98] sm:$0xff]  ;;  %v2425_v23 = vld [vmem:[%s5305_s19 + $0x80] sm:$0xff]  ;;  %v2427_v28 = vld [vmem:[%s5305_s19 + $0x90] sm:$0xff] }
 0x8c2   : > { %3744 = vmatprep.subr.bf16.mxu1 %v3743_v61  ;;  %v2432_v26 = vld [vmem:[%s5305_s19 + $0xb8] sm:$0xff]  ;;  %v2429_v29 = vld [vmem:[%s5305_s19 + $0xa0] sm:$0xff]  ;;  %v2431_v3 = vld [vmem:[%s5305_s19 + $0xb0] sm:$0xff] }
 0x8c3   : > { %v3747_v44 = vpack.c.bf16 %v2432_v26, %v2428_v39  ;;  %v3717_v22 = vpack.c.bf16 %v2429_v29, %v2425_v23  ;;  %v2434_v53 = vld [vmem:[%s5305_s19 + $0xc8] sm:$0xff]  ;;  %v2436_v38 = vld [vmem:[%s5305_s19 + $0xd8] sm:$0xff]  ;;  %v3749_v49 = vpack.c.bf16 %v2431_v3, %v2427_v28  ;;  %v2433_v27 = vld [vmem:[%s5305_s19 + $0xc0] sm:$0xff]  ;;  %v2476_v3 = vlaneseq }
 0x8c4   : > { %3714 = vmatpush1.bf16.msra.mxu0 %v3713_v62  ;;  %v2438_v43 = vld [vmem:[%s5305_s19 + $0xe8] sm:$0xff]  ;;  %v2440_v50 = vld [vmem:[%s5305_s19 + $0xf8] sm:$0xff]  ;;  %v2437_v51 = vld [vmem:[%s5305_s19 + $0xe0] sm:$0xff] }
 0x8c5   : > { %3746 = vmatpush1.bf16.msra.mxu1 %v3745_v55  ;;  %3716 = vmatprep.subr.bf16.mxu0 %v3715_v20  ;;  %v3719_v37 = vpack.c.bf16 %v2438_v43, %v2434_v53  ;;  %v3751_v2 = vpack.c.bf16 %v2440_v50, %v2436_v38  ;;  %v2435_v0 = vld [vmem:[%s5305_s19 + $0xd0] sm:$0xff]  ;;  %v2442_v13 = vld [vmem:[%s5305_s19 + $0x108] sm:$0xff]  ;;  %v2444_v4 = vld [vmem:[%s5305_s19 + $0x118] sm:$0xff]  ;;  %v3721_v24 = vpack.c.bf16 %v2437_v51, %v2433_v27 }
 0x8c6   : > { %3748 = vmatprep.subr.bf16.mxu1 %v3747_v44  ;;  %v2439_v58 = vld [vmem:[%s5305_s19 + $0xf0] sm:$0xff]  ;;  %v2446_v35 = vld [vmem:[%s5305_s19 + $0x128] sm:$0xff]  ;;  %v2448_v42 = vld [vmem:[%s5305_s19 + $0x138] sm:$0xff] }
 0x8c7   : > { %v3753_v45 = vpack.c.bf16 %v2439_v58, %v2435_v0  ;;  %v3723_v59 = vpack.c.bf16 %v2446_v35, %v2442_v13  ;;  %v2441_v7 = vld [vmem:[%s5305_s19 + $0x100] sm:$0xff]  ;;  %v2443_v17 = vld [vmem:[%s5305_s19 + $0x110] sm:$0xff]  ;;  %v3755_v25 = vpack.c.bf16 %v2448_v42, %v2444_v4  ;;  %v2450_v54 = vld [vmem:[%s5305_s19 + $0x148] sm:$0xff] }
 0x8c8   : > { %3718 = vmatpush1.bf16.msra.mxu0 %v3717_v22  ;;  %v2445_v33 = vld [vmem:[%s5305_s19 + $0x120] sm:$0xff]  ;;  %v2447_v41 = vld [vmem:[%s5305_s19 + $0x130] sm:$0xff]  ;;  %v2454_v14 = vld [vmem:[%s5305_s19 + $0x168] sm:$0xff]  ;;  %v2477_v22 = vshrl.u32 %v2476_v3, 7 }
 0x8c9   : > { %3750 = vmatpush1.bf16.msra.mxu1 %v3749_v49  ;;  %3720 = vmatprep.subr.bf16.mxu0 %v3719_v37  ;;  %v2452_v40 = vld [vmem:[%s5305_s19 + $0x158] sm:$0xff]  ;;  %v3725_v57 = vpack.c.bf16 %v2445_v33, %v2441_v7  ;;  %v3757_v16 = vpack.c.bf16 %v2447_v41, %v2443_v17  ;;  %v3727_v52 = vpack.c.bf16 %v2454_v14, %v2450_v54  ;;  %v2449_v11 = vld [vmem:[%s5305_s19 + $0x140] sm:$0xff]  ;;  %v2451_v30 = vld [vmem:[%s5305_s19 + $0x150] sm:$0xff]  ;;  %v4796_v17 = vmov 0  }
 0x8ca   : > { %3752 = vmatprep.subr.bf16.mxu1 %v3751_v2  ;;  %v2456_v8 = vld [vmem:[%s5305_s19 + $0x178] sm:$0xff]  ;;  %v2453_v56 = vld [vmem:[%s5305_s19 + $0x160] sm:$0xff]  ;;  %v2455_v9 = vld [vmem:[%s5305_s19 + $0x170] sm:$0xff]  ;;  %v2478_v53 = vsub.s32 0, %v2477_v22  ;;  %v2486_v38 = vsub.s32 2, %v2477_v22  ;;  %v2482_v49 = vsub.s32 1, %v2477_v22  ;;  %4022 = vset.pattern.permute.xlu0 %v4796_v17 }
 0x8cb   : > { %v3759_v5 = vpack.c.bf16 %v2456_v8, %v2452_v40  ;;  %v2458_v48 = vld [vmem:[%s5305_s19 + $0x188] sm:$0xff]  ;;  %v2460_v46 = vld [vmem:[%s5305_s19 + $0x198] sm:$0xff]  ;;  %v3729_v36 = vpack.c.bf16 %v2453_v56, %v2449_v11  ;;  %v3761_v60 = vpack.c.bf16 %v2455_v9, %v2451_v30  ;;  %v2457_v6 = vld [vmem:[%s5305_s19 + $0x180] sm:$0xff]  ;;  %v2490_v37 = vsub.s32 3, %v2477_v22 }
 0x8cc   : > { %3722 = vmatpush1.bf16.msra.mxu0 %v3721_v24  ;;  %v2462_v10 = vld [vmem:[%s5305_s19 + $0x1a8] sm:$0xff]  ;;  %v2464_v12 = vld [vmem:[%s5305_s19 + $0x1b8] sm:$0xff]  ;;  %v2461_v63 = vld [vmem:[%s5305_s19 + $0x1a0] sm:$0xff] }
 0x8cd   : > { %3754 = vmatpush1.bf16.msra.mxu1 %v3753_v45  ;;  %3724 = vmatprep.subr.bf16.mxu0 %v3723_v59  ;;  %v3731_v15 = vpack.c.bf16 %v2462_v10, %v2458_v48  ;;  %v2459_v1 = vld [vmem:[%s5305_s19 + $0x190] sm:$0xff]  ;;  %v3763_v31 = vpack.c.bf16 %v2464_v12, %v2460_v46  ;;  %v2466_v47 = vld [vmem:[%s5305_s19 + $0x1c8] sm:$0xff]  ;;  %v2468_v34 = vld [vmem:[%s5305_s19 + $0x1d8] sm:$0xff]  ;;  %v3733_v19 = vpack.c.bf16 %v2461_v63, %v2457_v6 }
 0x8ce   : > { %3756 = vmatprep.subr.bf16.mxu1 %v3755_v25  ;;  %v2463_v61 = vld [vmem:[%s5305_s19 + $0x1b0] sm:$0xff]  ;;  %v2470_v18 = vld [vmem:[%s5305_s19 + $0x1e8] sm:$0xff]  ;;  %v2472_v62 = vld [vmem:[%s5305_s19 + $0x1f8] sm:$0xff] }
 0x8cf   : > { %v3765_v32 = vpack.c.bf16 %v2463_v61, %v2459_v1  ;;  %v3735_v21 = vpack.c.bf16 %v2470_v18, %v2466_v47  ;;  %v2465_v55 = vld [vmem:[%s5305_s19 + $0x1c0] sm:$0xff]  ;;  %v3767_v39 = vpack.c.bf16 %v2472_v62, %v2468_v34  ;;  %v2467_v26 = vld [vmem:[%s5305_s19 + $0x1d0] sm:$0xff]  ;;  %v4797_v18 = vmov (!%p3083_p12), 0  }
 0x8d0   : > { %3726 = vmatpush1.bf16.msra.mxu0 %v3725_v57  ;;  %v2469_v20 = vld [vmem:[%s5305_s19 + $0x1e0] sm:$0xff]  ;;  %v2471_v23 = vld [vmem:[%s5305_s19 + $0x1f0] sm:$0xff]  ;;  %s6285_s19 = scalar_lea.vmem %s6284_s18, %s6293_s20 }
 0x8d1   : > { %3758 = vmatpush1.bf16.msra.mxu1 %v3757_v16  ;;  %3728 = vmatprep.subr.bf16.mxu0 %v3727_v52  ;;  %v3737_v44 = vpack.c.bf16 %v2469_v20, %v2465_v55  ;;  %v3769_v29 = vpack.c.bf16 %v2471_v23, %v2467_v26  ;;  %v2473_v28 = vld [vmem:[#allocation3] sm:$0xff]  ;;  %v2474_v43 = vld [vmem:[%s6285_s19] sm:$0xf]  ;;  %v2647_v25 = vld [vmem:[#allocation4] sm:$0xff] }
 0x8d2   : > { %3760 = vmatprep.subr.bf16.mxu1 %v3759_v5  ;;  %v2479_v50 = vrot.slane %v2474_v43, %v2478_v53  ;;  %v2487_v27 = vrot.slane %v2474_v43, %v2486_v38  ;;  %v2483_v51 = vrot.slane %v2474_v43, %v2482_v49  ;;  %v2491_v2 = vrot.slane %v2474_v43, %v2490_v37  ;;  %v2654_v63 = vld [vmem:[#allocation5] sm:$0xff] }
 0x8d4   : > { %3730 = vmatpush1.bf16.msra.mxu0 %v3729_v36 }
 0x8d5   : > { %3762 = vmatpush1.bf16.msra.mxu1 %v3761_v60  ;;  %3732 = vmatprep.subr.bf16.mxu0 %v3731_v15 }
 0x8d6   : > { %3764 = vmatprep.subr.bf16.mxu1 %v3763_v31 }
 0x8d8   : > { %3734 = vmatpush1.bf16.msra.mxu0 %v3733_v19 }
 0x8d9   : > { %3766 = vmatpush1.bf16.msra.mxu1 %v3765_v32  ;;  %3736 = vmatprep.subr.bf16.mxu0 %v3735_v21 }
 0x8da   : > { %3768 = vmatprep.subr.bf16.mxu1 %v3767_v39 }
 0x8dc   : > { %3738 = vmatpush1.bf16.msra.mxu0 %v3737_v44 }
 0x8dd   : > { %3770 = vmatpush1.bf16.msra.mxu1 %v3769_v29 }
 0x8df   : > { %2561 = vmatmul.mubr.f32.vlgmr.msra.gmra.mrb[0].mxu0 %v2473_v28 }
 0x8e0   : > { %2632 = vmatmul.mubr.f32.vlgmr.msra.gmra.mrb[0].mxu1 %v2473_v28 }
 0x9b2   : > { %v2562_v0 = vpop.f32.mrb[0].mxu0 }
 0x9b3   : > { %v2563_v58 = vadd.f32 %v2562_v0, %v2479_v50  ;;  %v2633_v13 = vpop.f32.mrb[0].mxu1  ;;  %v2564_v35 = vpop.f32.mrb[1].mxu0 }
 0x9b4   : > { %v2634_v4 = vadd.f32 %v2633_v13, %v2487_v27  ;;  %v2565_v42 = vadd.f32 %v2564_v35, %v2483_v51  ;;  %v2635_v24 = vpop.f32.mrb[1].mxu1 }
 0x9b5   : > { %2643 = vst [vmem:[%s2642_s2] sm:$0xff] %v2563_v58  ;;  %v2636_v45 = vadd.f32 %v2635_v24, %v2491_v2 }
 0x9b6   : > { %2645 = vst [vmem:[%s2642_s2 + $0x10] sm:$0xff] %v2634_v4  ;;  %2644 = vst [vmem:[%s2642_s2 + $0x8] sm:$0xff] %v2565_v42  ;;  %v2648_v59 = vmax.f32 %v2563_v58, %v2565_v42 }
 0x9b7   : > { %2646 = vst [vmem:[%s2642_s2 + $0x18] sm:$0xff] %v2636_v45  ;;  %v2649_v7 = vmax.f32 %v2634_v4, %v2636_v45 }
 0x9b9   : > { %v2650_v33 = vmax.f32 %v2648_v59, %v2649_v7 }
 0x9bb   : > { %2651 = vmax.xlane.f32.xlu0 %v2650_v33 }
 0x9be   : > { %v2689_v62 = vld [vmem:[#allocation30] sm:$0xff] (!%p3083_p12)  ;;  %v2690_v19 = vld [vmem:[#allocation30 + $0x8] sm:$0xff] (!%p3083_p12)  ;;  %v2691_v32 = vld [vmem:[#allocation30 + $0x10] sm:$0xff] (!%p3083_p12) }
 0x9bf   : > { %v2692_v21 = vld [vmem:[#allocation30 + $0x18] sm:$0xff] (!%p3083_p12)  ;;  %v2693_v55 = vld [vmem:[#allocation30 + $0x20] sm:$0xff] (!%p3083_p12)  ;;  %v2694_v20 = vld [vmem:[#allocation30 + $0x28] sm:$0xff] (!%p3083_p12) }
 0x9c0   : > { %v2695_v26 = vld [vmem:[#allocation30 + $0x30] sm:$0xff] (!%p3083_p12)  ;;  %v2696_v23 = vld [vmem:[#allocation30 + $0x38] sm:$0xff] (!%p3083_p12) }
 0xa48   : > { %v2652_v41 = vpop.xlane.xlu0 %2651 }
 0xa49   : > { %v2653_v54 = vmax.f32 %v2647_v25, %v2652_v41 }
 0xa4b   : > { %v2655_v14 = vsub.f32 %v2647_v25, %v2653_v54  ;;  %2684 = vst.msk [vmem:[#allocation4] sm:$0xff] %vm2682_vm12, %v2653_v54  ;;  %2661 = vperm.xlu0 %4022, %v2653_v54  }
 0xa4d   : > { %v2656_v15 = vmul.f32 1.442695, %v2655_v14 }
 0xa4f   : > { %4033 = vset.pattern.permute.xlu0 (!%p3083_p12), %v4797_v18 }
 0xa52   : > { %v2697_v47 = vld [vmem:[#allocation4] sm:$0xff] (!%p3083_p12) }
 0xa53   : > { %2700 = vperm.xlu0 (!%p3083_p12), %4033, %v2697_v47  }
 0xaca   : > { %v2662_v40 = vpop.permute.xlu0 %2661 }
 0xacb   : > { %v2664_v8 = vsub.f32 %v2563_v58, %v2662_v40  ;;  %v2665_v57 = vsub.f32 %v2565_v42, %v2662_v40  ;;  %v2666_v16 = vsub.f32 %v2634_v4, %v2662_v40  ;;  %v2667_v52 = vsub.f32 %v2636_v45, %v2662_v40 }
 0xacd   : > { %v2668_v11 = vmul.f32 1.442695, %v2664_v8  ;;  %v2670_v56 = vmul.f32 1.442695, %v2665_v57  ;;  %v2672_v30 = vmul.f32 1.442695, %v2666_v16 }
 0xace   : > { %v2674_v5 = vmul.f32 1.442695, %v2667_v52 }
 0xacf   : > { %4023 = vpow2.f32 %v2668_v11 }
 0xad0   : > { %4025 = vpow2.f32 %v2670_v56 }
 0xad1   : > { %4027 = vpow2.f32 %v2672_v30 }
 0xad2   : > { %4029 = vpow2.f32 %v2674_v5  ;;  %v2701_v39 = vpop.permute.xlu0 (!%p3083_p12), %2700 }
 0xad3   : > { %4031 = vpow2.f32 %v2656_v15  ;;  %v2703_v44 = vsub.f32 (!%p3083_p12), %v2689_v62, %v2701_v39  ;;  %v2704_v29 = vsub.f32 (!%p3083_p12), %v2690_v19, %v2701_v39  ;;  %v2705_v28 = vsub.f32 (!%p3083_p12), %v2691_v32, %v2701_v39 }
 0xad4   : > { %v2706_v3 = vsub.f32 (!%p3083_p12), %v2692_v21, %v2701_v39  ;;  %v2707_v22 = vsub.f32 (!%p3083_p12), %v2693_v55, %v2701_v39  ;;  %v2708_v53 = vsub.f32 (!%p3083_p12), %v2694_v20, %v2701_v39  ;;  %v2709_v43 = vsub.f32 (!%p3083_p12), %v2695_v26, %v2701_v39 }
 0xad5   : > { %v2711_v38 = vmul.f32 (!%p3083_p12), 1.442695, %v2703_v44  ;;  %v2713_v49 = vmul.f32 (!%p3083_p12), 1.442695, %v2704_v29  ;;  %v2715_v37 = vmul.f32 (!%p3083_p12), 1.442695, %v2705_v28  ;;  %v2710_v50 = vsub.f32 (!%p3083_p12), %v2696_v23, %v2701_v39 }
 0xad6   : > { %v2717_v27 = vmul.f32 (!%p3083_p12), 1.442695, %v2706_v3  ;;  %v2719_v51 = vmul.f32 (!%p3083_p12), 1.442695, %v2707_v22  ;;  %v2721_v2 = vmul.f32 (!%p3083_p12), 1.442695, %v2708_v53 }
 0xad7   : > { %4034 = vpow2.f32 (!%p3083_p12), %v2711_v38  ;;  %v2723_v0 = vmul.f32 (!%p3083_p12), 1.442695, %v2709_v43  ;;  %v2725_v58 = vmul.f32 (!%p3083_p12), 1.442695, %v2710_v50 }
 0xad8   : > { %4036 = vpow2.f32 (!%p3083_p12), %v2713_v49 }
 0xad9   : > { %v4024_v9 = vpop.eup %4023  ;;  %4038 = vpow2.f32 (!%p3083_p12), %v2715_v37 }
 0xada   : > { %v4026_v48 = vpop.eup %4025  ;;  %4040 = vpow2.f32 (!%p3083_p12), %v2717_v27 }
 0xadb   : > { %v2676_v10 = vadd.f32 %v4026_v48, %v4024_v9  ;;  %v4028_v46 = vpop.eup %4027  ;;  %4042 = vpow2.f32 (!%p3083_p12), %v2719_v51 }
 0xadc   : > { %v4030_v36 = vpop.eup %4029  ;;  %4044 = vpow2.f32 (!%p3083_p12), %v2721_v2 }
 0xadd   : > { %v2677_v12 = vadd.f32 %v4028_v46, %v2676_v10  ;;  %v4032_v6 = vpop.eup %4031  ;;  %4046 = vpow2.f32 (!%p3083_p12), %v2723_v0 }
 0xade   : > { %v2658_v1 = vmul.f32 %v4032_v6, %v2654_v63  ;;  %4048 = vpow2.f32 (!%p3083_p12), %v2725_v58 }
 0xadf   : > { %v2678_v60 = vadd.f32 %v4030_v36, %v2677_v12 }
 0xae1   : > { %2679 = vadd.xlane.f32.xlu1 %v2678_v60  ;;  %v4035_v35 = vpop.eup (!%p3083_p12), %4034 }
 0xae2   : > { %v4037_v4 = vpop.eup (!%p3083_p12), %4036 }
 0xae3   : > { %v4039_v42 = vpop.eup (!%p3083_p12), %4038 }
 0xae4   : > { %v4041_v24 = vpop.eup (!%p3083_p12), %4040 }
 0xae5   : > { %v4043_v45 = vpop.eup (!%p3083_p12), %4042 }
 0xae6   : > { %v4045_v59 = vpop.eup (!%p3083_p12), %4044 }
 0xae7   : > { %v4047_v7 = vpop.eup (!%p3083_p12), %4046 }
 0xae8   : > { %v4049_v33 = vpop.eup (!%p3083_p12), %4048 }
 0xb6b   : > { %2688 = sbr.rel (%p3083_p12) target bundleno = 3082 (0xc0a), region = 180 }
 0xb6e   : > { %v2680_v31 = vpop.xlane.xlu1 %2679 }
 0xb6f   : > { %v2681_v61 = vadd.f32 %v2680_v31, %v2658_v1 }
 0xb71   : > { %2683 = vst.msk [vmem:[#allocation5] sm:$0xff] %vm2682_vm12, %v2681_v61 }
 0xb78   : > { %v2727_v34 = vld [vmem:[#allocation5] sm:$0xff] }
 0xb79   : > { %2730 = vperm.xlu0 %4033, %v2727_v34  }
 0xbf8   : > { %v2731_v13 = vpop.permute.xlu0 %2730 }
 0xbf9   : > { %4050 = vrcp.f32 %v2731_v13 }
 0xc03   : > { %v4051_v17 = vpop.eup %4050 }
 0xc04   : > { %v2734_v25 = vmul.f32 %v4051_v17, %v4035_v35  ;;  %v2735_v41 = vmul.f32 %v4051_v17, %v4037_v4  ;;  %v2736_v54 = vmul.f32 %v4051_v17, %v4039_v42  ;;  %v2737_v14 = vmul.f32 %v4051_v17, %v4041_v24 }
 0xc05   : > { %v2738_v40 = vmul.f32 %v4051_v17, %v4043_v45  ;;  %v2739_v8 = vmul.f32 %v4051_v17, %v4045_v59  ;;  %v2740_v57 = vmul.f32 %v4051_v17, %v4047_v7  ;;  %v2741_v16 = vmul.f32 %v4051_v17, %v4049_v33 }
 0xc06   : > { %2742 = vst [vmem:[#allocation30] sm:$0xff] %v2734_v25  ;;  %2743 = vst [vmem:[#allocation30 + $0x8] sm:$0xff] %v2735_v41 }
 0xc07   : > { %2744 = vst [vmem:[#allocation30 + $0x10] sm:$0xff] %v2736_v54  ;;  %2745 = vst [vmem:[#allocation30 + $0x18] sm:$0xff] %v2737_v14 }
 0xc08   : > { %2746 = vst [vmem:[#allocation30 + $0x20] sm:$0xff] %v2738_v40  ;;  %2747 = vst [vmem:[#allocation30 + $0x28] sm:$0xff] %v2739_v8 }
 0xc09   : > { %2748 = vst [vmem:[#allocation30 + $0x30] sm:$0xff] %v2740_v57  ;;  %2749 = vst [vmem:[#allocation30 + $0x38] sm:$0xff] %v2741_v16 }
 0xc0a PF: > { %p3901_p6 = scmp.eq.s32.totalorder %s4938_s1, 1  ;;  %s4798_s20 = smov [#allocation30]  }
 0xc0b   : > { %s2757_s8 = sshll.u32 %s4798_s20, 4  ;;  %s4799_s17 = smov [#allocation31]   ;;  %s2758_s8 = int_to_ptr.vmem [resolvable:$true] %s2757_s8 }
 0xc0c   : > { %s2768_s15 = sshll.u32 %s4799_s17, 4  ;;  %s4620_s22 = scalar_lea.vmem %s2758_s8, 1024  ;;  %s2769_s15 = int_to_ptr.vmem [resolvable:$true] %s2768_s15 }
 0xc0d   : > { %p4621_p0 = scmp.ne.s32.totalorder %s2758_s8, %s4620_s22  ;;  %p4627_p9 = scmp.lt.s32.totalorder %s2758_s8, %s2758_s8 }
 0xc0e   : > { %p4628_p13 = scmp.lt.s32.totalorder %s4620_s22, %s4620_s22 }
 0xc0f   : > { %p4622_p4 = pnand %p4621_p0, %p3901_p6 }
 0xc10   : > { %p4629_p1 = por %p4628_p13, %p4627_p9 }
 0xc11   : > { %p4623_p7 = pneg %p4622_p4 }
 0xc13   : > { %p4630_p3 = pnand %p4629_p1, %p4623_p7 }
 0xc15   : > { %4633 = shalt.err (!%p4630_p3)
}
 0xc16   : > { %s6286_s25 = sld [smem:[#allocation84_spill]] }
 0xc1c   : > { %s4634_s0 = scalar_lea.hbm %s6286_s25, 1024 }
 0xc1d   : > { %p4635_p8 = scmp.ne.s32.totalorder %s6286_s25, %s4634_s0  ;;  %p4640_p2 = scmp.lt.u32.totalorder %s4634_s0, %s6286_s25 }
 0xc1f   : > { %p4636_p11 = pnand %p4635_p8, %p3901_p6 }
 0xc21   : > { %p4637_p10 = pneg %p4636_p11 }
 0xc23   : > { %p4642_p5 = pnand %p4640_p2, %p4637_p10 }
 0xc25   : > { %4645 = shalt.err (!%p4642_p5)
}
 0xc26   : > { %3828 = dma.vmem_to_hbm [thread:$0]  (%p3901_p6), %s2758_s8, 1024, %s6286_s25, [#allocation11]  }
 0xc27   : > { %s4646_s2 = scalar_lea.vmem %s2769_s15, 128  ;;  %p4653_p7 = scmp.lt.s32.totalorder %s2769_s15, %s2769_s15 }
 0xc28   : > { %p4647_p12 = scmp.ne.s32.totalorder %s2769_s15, %s4646_s2  ;;  %p4654_p9 = scmp.lt.s32.totalorder %s4646_s2, %s4646_s2 }
 0xc2a   : > { %p4648_p0 = pnand %p4647_p12, %p3901_p6  ;;  %p4655_p13 = por %p4654_p9, %p4653_p7 }
 0xc2c   : > { %p4649_p4 = pneg %p4648_p0 }
 0xc2e   : > { %p4656_p1 = pnand %p4655_p13, %p4649_p4 }
 0xc30   : > { %4659 = shalt.err (!%p4656_p1)
}
 0xc31   : > { %s6287_s22 = sld [smem:[#allocation85_spill]] }
 0xc37   : > { %s4660_s30 = scalar_lea.hbm %s6287_s22, 128 }
 0xc38   : > { %p4661_p3 = scmp.ne.s32.totalorder %s6287_s22, %s4660_s30  ;;  %p4666_p10 = scmp.lt.u32.totalorder %s4660_s30, %s6287_s22 }
 0xc3a   : > { %p4662_p8 = pnand %p4661_p3, %p3901_p6 }
 0xc3c   : > { %p4663_p11 = pneg %p4662_p8 }
 0xc3e   : > { %p4668_p2 = pnand %p4666_p10, %p4663_p11 }
 0xc40   : > { %4671 = shalt.err (!%p4668_p2)
}
 0xc41   : > { %3830 = dma.vmem_to_hbm [thread:$0]  (%p3901_p6), %s2769_s15, 128, %s6287_s22, [#allocation32]  }
 0xc42   : > { %4739 = dma.done.wait (%p3901_p6), [#allocation11], 1024  }
 0xc43   : > { %4741 = vsyncadd (%p3901_p6), [#allocation11], 4294966272 }
 0xc44   : > { %4743 = dma.done.wait (%p3901_p6), [#allocation32], 128  }
 0xc45   : > { %4745 = vsyncadd (%p3901_p6), [#allocation32], 4294967168 }
 0xc46 PF: > { %p41_p5 = scmp.ge.s32.totalorder %s5211_s23, 4   ;;  %s6288_s14 = smov %s4752_s4 }
 0xc47   : > { %s6289_s4 = smov %s4756_s29  ;;  %s6290_s29 = smov %s5223_s21 }
 0xc48   : > { %s6291_s30 = smov %s5211_s23  ;;  %43 = sbr.rel (!%p41_p5) target bundleno = 32 (0x20), region = 253 }
 0xc4f   :  { %2785 = vsyncpa [#allocation10], 1 }
 0xc50   :  { %2787 = vsyncpa [#allocation10 + $0x1], 1 }
 0xc51   :  { %2788 = vsyncpa [#allocation13], 1 }
 0xc52   :  { %2789 = vsyncpa [#allocation16], 1 }
 0xc53   :  { %2790 = vsyncpa [#allocation19], 1 }
 0xc54   :  { %2791 = vsyncpa [#allocation22], 1 }
 0xc55   :  { %2792 = vsyncpa [#allocation25], 1 }
 0xc56   :  { %2793 = vsyncpa [#allocation28], 1 }
 0xc57   :  { %2794 = vsyncpa [#allocation11], 1 }
 0xc58   :  { %2796 = vsyncpa [#allocation11 + $0x1], 1 }
 0xc59   :  { %2797 = vsyncpa [#allocation32], 1 }
 0xc5a   :  { %2798 = vsyncmov [#allocation6] }
 0xc5d   :  { %s2799_s1 = vpop.sfrf %2798 }
 0xc5e   :  { %p3090_p6 = scmp.ne.s32.totalorder %s2799_s1, 0 }
 0xc60   :  { %2803 = shalt.err (%p3090_p6)  }
 0xc61   :  { %2805 = vsyncmov [#allocation6 + $0x1] }
 0xc64   :  { %s2806_s21 = vpop.sfrf %2805 }
 0xc65   :  { %p3091_p12 = scmp.ne.s32.totalorder %s2806_s21, 0 }
 0xc67   :  { %2810 = shalt.err (%p3091_p12)  }
 0xc68   :  { %2812 = vsyncmov [#allocation6 + $0x2] }
 0xc6b   :  { %s2813_s9 = vpop.sfrf %2812 }
 0xc6c   :  { %p3092_p0 = scmp.ne.s32.totalorder %s2813_s9, 0 }
 0xc6e   :  { %2817 = shalt.err (%p3092_p0)  }
 0xc6f   :  { %2819 = vsyncmov [#allocation6 + $0x3] }
 0xc72   :  { %s2820_s10 = vpop.sfrf %2819 }
 0xc73   :  { %p3093_p4 = scmp.ne.s32.totalorder %s2820_s10, 0 }
 0xc75   :  { %2824 = shalt.err (%p3093_p4)  }
 0xc76   :  { %2826 = vsyncmov [#allocation6 + $0x4] }
 0xc79   :  { %s2827_s11 = vpop.sfrf %2826 }
 0xc7a   :  { %p3094_p7 = scmp.ne.s32.totalorder %s2827_s11, 0 }
 0xc7c   :  { %2831 = shalt.err (%p3094_p7)  }
 0xc7d   :  { %2833 = vsyncmov [#allocation6 + $0x5] }
 0xc80   :  { %s2834_s12 = vpop.sfrf %2833 }
 0xc81   :  { %p3095_p9 = scmp.ne.s32.totalorder %s2834_s12, 0 }
 0xc83   :  { %2838 = shalt.err (%p3095_p9)  }
 0xc84   :  { %2840 = vsyncmov [#allocation6 + $0x6] }
 0xc87   :  { %s2841_s13 = vpop.sfrf %2840 }
 0xc88   :  { %p3096_p13 = scmp.ne.s32.totalorder %s2841_s13, 0 }
 0xc8a   :  { %2845 = shalt.err (%p3096_p13)  }
 0xc8b   :  { %2847 = vsyncmov [#allocation6 + $0x7] }
 0xc8e   :  { %s2848_s16 = vpop.sfrf %2847 }
 0xc8f   :  { %p3097_p1 = scmp.ne.s32.totalorder %s2848_s16, 0 }
 0xc91   :  { %2852 = shalt.err (%p3097_p1)  }

</bundles_post_ra>
